<compile_context>
chip_gen: v6e
topology: v6e:2x2x1
jax: 0.10.0
libtpu: 0.0.40
codegen_flags: <defaults>
</compile_context>

<pallas_src>
import functools

import jax
import jax.numpy as jnp
from jax.experimental import pallas as pl
from jax.experimental.pallas import tpu as pltpu


# --------------------------------------------------------------------------
# helpers
# --------------------------------------------------------------------------
def _num_tensorcores():
    """Best-effort per-chip TensorCore count (2 on v7x-style megacore, else 1)."""
    try:
        info = pltpu.get_tpu_info()
    except Exception:
        return 1
    for name in ("num_cores", "core_count", "num_tensorcores", "tensor_cores",
                 "cores_per_chip"):
        v = getattr(info, name, None)
        if isinstance(v, int) and v > 0:
            return min(v, 2)          # megacore split spans at most 2 TCs
    return 1


def _pick_tr(rows, cols, max_block_rows):
    """Tile rows: ~2 MiB (f32) per streamed block, multiple of 8 or full."""
    mbr = max(8, (int(max_block_rows) // 8) * 8)
    budget_elems = (2 * 1024 * 1024) // 4
    tr = (budget_elems // max(int(cols), 1)) // 8 * 8
    tr = max(8, min(mbr, tr))
    if tr >= rows:
        return rows                    # one full-height block (always legal)
    return tr                          # multiple of 8; tail block is masked


def _as_2d(a):
    return a.reshape(-1, a.shape[-1]) if a.ndim >= 2 else a.reshape(1, -1)


def _class_head_views(pred, true, pos_weight):
    """Lane-dense 2D views of a head via FREE reshapes (no padding / copies)."""
    n = int(pred.size)
    if pos_weight is None:
        for tc in (512, 256, 128):     # packed, fully lane-dense view
            if n % tc == 0:
                return pred.reshape(n // tc, tc), true.reshape(n // tc, tc), None
    # natural layout: merge leading dims, last dim = lanes
    x2 = _as_2d(pred)
    z2 = true.reshape(x2.shape)
    pwm1_row = None
    if pos_weight is not None:
        cols = x2.shape[1]
        pw = jnp.asarray(pos_weight, jnp.float32).reshape(-1)
        if pw.size not in (1, cols):
            # TODO(synk): general-broadcast pos_weight shapes are not supported
            # by the fused kernel (PyTorch requires per-class pos_weight anyway).
            raise ValueError(
                f"pos_weight must be scalar or length {cols}; got size {pw.size}")
        pwm1_row = (jnp.broadcast_to(pw, (cols,)) - 1.0).reshape(1, cols)
    return x2, z2, pwm1_row


# --------------------------------------------------------------------------
# kernel
# --------------------------------------------------------------------------
def _fused_bce_kernel(*refs, rows, tr, bpg, has_pw, has_ood):
    """Sums BCE-with-logits loss over a streamed head (+ tiny resident OOD head).

    Output block (1, 128): lane 0 = class-head sum, lane 1 = OOD-head sum.
    """
    it = iter(refs)
    x_ref = next(it)
    z_ref = next(it)
    pwm1_ref = next(it) if has_pw else None
    ox_ref = next(it) if has_ood else None
    oz_ref = next(it) if has_ood else None
    out_ref = next(it)
    acc_ref = next(it)

    g = pl.program_id(0)               # "parallel" group (megacore axis)
    i = pl.program_id(1)               # reduction step within the group

    @pl.when(i == 0)
    def _():
        acc_ref[...] = jnp.zeros_like(acc_ref)

    x = x_ref[...].astype(jnp.float32)             # logits
    z = z_ref[...].astype(jnp.float32)             # targets
    # stable softplus(-x) = max(-x, 0) + log1p(exp(-|x|))   (EUP ops)
    sp = jnp.maximum(-x, 0.0) + jnp.log1p(jnp.exp(-jnp.abs(x)))
    if has_pw:
        coef = 1.0 + pwm1_ref[...] * z             # (1, C) row broadcasts over sublanes
        loss = x - x * z + coef * sp
    else:
        loss = x - x * z + sp

    base_row = (g * bpg + i) * tr                  # row offset of this block

    @pl.when(base_row + tr <= rows)
    def _():                                       # fully valid block: pure VPU add
        acc_ref[...] += loss

    @pl.when(base_row + tr > rows)
    def _():                                       # tail / overhang block: exact mask
        r = jax.lax.broadcasted_iota(jnp.int32, loss.shape, 0)
        acc_ref[...] += jnp.where(base_row + r < rows, loss, 0.0)

    @pl.when(i == bpg - 1)
    def _():
        s_cls = jnp.sum(acc_ref[...])              # single cross-lane reduce / group
        if has_ood:
            ox = ox_ref[...].astype(jnp.float32)
            oz = oz_ref[...].astype(jnp.float32)
            osp = jnp.maximum(-ox, 0.0) + jnp.log1p(jnp.exp(-jnp.abs(ox)))
            s_ood = jnp.sum(ox - ox * oz + osp)
            s_ood = jnp.where(g == 0, s_ood, 0.0)  # count the OOD head once
        else:
            s_ood = jnp.float32(0.0)
        lane = jax.lax.broadcasted_iota(jnp.int32, out_ref.shape, 1)
        out_ref[...] = jnp.where(lane == 0, s_cls,
                                 jnp.where(lane == 1, s_ood, 0.0))


def _fused_bce_sums(x2, z2, pwm1_row=None, ood_x2=None, ood_z2=None,
                    max_block_rows=1024, num_groups=None):
    """Returns (sum of BCE loss over x2/z2, sum over the resident OOD head)."""
    rows, cols = int(x2.shape[0]), int(x2.shape[1])
    has_pw = pwm1_row is not None
    has_ood = ood_x2 is not None

    tr = _pick_tr(rows, cols, max_block_rows)
    n_blocks = pl.cdiv(rows, tr)
    if num_groups is None:
        num_groups = _num_tensorcores()
    n_groups = max(1, min(int(num_groups), n_blocks))
    bpg = pl.cdiv(n_blocks, n_groups)

    def stream_idx(g, i):
        b = g * bpg + i
        if n_groups * bpg > n_blocks:              # static check
            b = jnp.minimum(b, n_blocks - 1)       # clamp overhang steps in-range
        return (b, 0)

    const_idx = lambda g, i: (0, 0)

    inputs = [x2, z2]
    in_specs = [pl.BlockSpec((tr, cols), stream_idx),
                pl.BlockSpec((tr, cols), stream_idx)]
    if has_pw:
        inputs.append(pwm1_row)
        in_specs.append(pl.BlockSpec((1, cols), const_idx))
    if has_ood:
        inputs += [ood_x2, ood_z2]
        in_specs += [pl.BlockSpec(tuple(ood_x2.shape), const_idx),
                     pl.BlockSpec(tuple(ood_z2.shape), const_idx)]

    kernel = functools.partial(_fused_bce_kernel, rows=rows, tr=tr, bpg=bpg,
                               has_pw=has_pw, has_ood=has_ood)

    out = pl.pallas_call(
        kernel,
        out_shape=jax.ShapeDtypeStruct((1, n_groups * 128), jnp.float32),
        grid_spec=pltpu.PrefetchScalarGridSpec(
            num_scalar_prefetch=0,
            grid=(n_groups, bpg),
            in_specs=in_specs,
            out_specs=pl.BlockSpec((1, 128), lambda g, i: (0, g)),
            scratch_shapes=[pltpu.VMEM((tr, cols), jnp.float32)],
        ),
        compiler_params=pltpu.CompilerParams(
            dimension_semantics=("parallel", "arbitrary"),
            vmem_limit_bytes=32 * 1024 * 1024),
    )(*inputs)

    per_group = out.reshape(n_groups, 128)
    return jnp.sum(per_group[:, 0]), jnp.sum(per_group[:, 1])


# --------------------------------------------------------------------------
# public API (CombinedLoss.forward equivalent)
# --------------------------------------------------------------------------
def _bce_mean_ref(pred, true, pos_weight=None):
    """Pure-JAX BCEWithLogitsLoss(mean) — small-input path and validation ref."""
    x = pred.astype(jnp.float32)
    z = true.astype(jnp.float32)
    sp = jnp.maximum(-x, 0.0) + jnp.log1p(jnp.exp(-jnp.abs(x)))
    if pos_weight is None:
        coef = 1.0
    else:
        pw = jnp.broadcast_to(jnp.asarray(pos_weight, jnp.float32), x.shape)
        coef = 1.0 + (pw - 1.0) * z
    return jnp.mean(x - x * z + coef * sp)


def combined_loss(y_true, y_pred, ood_true, ood_pred, pos_weight=None,
                  ood_weight=0.5, *, min_pallas_elements=65536,
                  max_block_rows=1024, num_groups=None,
                  ood_resident_max=65536):
    """JAX/Pallas equivalent of CombinedLoss.forward."""
    n1 = int(y_pred.size)
    n2 = int(ood_pred.size)
    class_empty = (n1 == 0) or (int(y_true.size) == 0)

    # Small inputs: the XLA-fused closed form beats a kernel launch.
    work = (0 if class_empty else n1) + n2
    if work < min_pallas_elements:
        class_loss = 0.0 if class_empty else _bce_mean_ref(y_pred, y_true, pos_weight)
        ood_loss = _bce_mean_ref(ood_pred, ood_true)
        return (1.0 - ood_weight) * class_loss + ood_weight * ood_loss

    if class_empty:
        if n2 == 0:
            return ood_weight * jnp.float32(jnp.nan)    # mean over empty (torch: nan)
        ox2, oz2, _ = _class_head_views(ood_pred, ood_true, None)
        s_ood, _ = _fused_bce_sums(ox2, oz2, max_block_rows=max_block_rows,
                                   num_groups=num_groups)
        return ood_weight * (s_ood / n2)

    x2, z2, pwm1_row = _class_head_views(y_pred, y_true, pos_weight)

    if 0 < n2 <= ood_resident_max:
        # Tiny OOD head rides along as a resident VMEM block: one launch total.
        s_cls, s_ood = _fused_bce_sums(
            x2, z2, pwm1_row, _as_2d(ood_pred), _as_2d(ood_true),
            max_block_rows=max_block_rows, num_groups=num_groups)
    else:
        s_cls, _ = _fused_bce_sums(x2, z2, pwm1_row,
                                   max_block_rows=max_block_rows,
                                   num_groups=num_groups)
        if n2 == 0:
            return (1.0 - ood_weight) * (s_cls / n1) + ood_weight * jnp.float32(jnp.nan)
        ox2, oz2, _ = _class_head_views(ood_pred, ood_true, None)
        s_ood, _ = _fused_bce_sums(ox2, oz2, max_block_rows=max_block_rows,
                                   num_groups=num_groups)

    class_loss = s_cls / n1
    ood_loss = s_ood / n2
    return (1.0 - ood_weight) * class_loss + ood_weight * ood_loss


# --------------------------------------------------------------------------
# demo / validation
# --------------------------------------------------------------------------
if __name__ == "__main__":
    key = jax.random.PRNGKey(0)
    keys = jax.random.split(key, 8)

    # 1) Tiny module-typical shapes -> small-input fallback (same semantics).
    B, C = 16, 8
    y_pred = jax.random.normal(keys[0], (B, C), jnp.float32)
    y_true = (jax.random.uniform(keys[1], (B, C)) > 0.5).astype(jnp.float32)
    ood_pred = jax.random.normal(keys[2], (B, 1), jnp.float32)
    ood_true = (jax.random.uniform(keys[3], (B, 1)) > 0.5).astype(jnp.float32)
    out1 = jax.block_until_ready(combined_loss(y_true, y_pred, ood_true, ood_pred))
    ref1 = 0.5 * _bce_mean_ref(y_pred, y_true) + 0.5 * _bce_mean_ref(ood_pred, ood_true)
    assert jnp.allclose(out1, ref1, rtol=1e-5, atol=1e-6), (out1, ref1)

    # 2) Pallas path: lane-dense packed view (f32), fused resident OOD head.
    Bl, Cl = 256, 512
    yp = jax.random.normal(keys[4], (Bl, Cl), jnp.float32)
    yt = (jax.random.uniform(keys[5], (Bl, Cl)) > 0.5).astype(jnp.float32)
    op = jax.random.normal(keys[6], (Bl, 1), jnp.float32)
    ot = (jax.random.uniform(keys[7], (Bl, 1)) > 0.5).astype(jnp.float32)
    out2 = jax.block_until_ready(combined_loss(yt, yp, ot, op))
    ref2 = 0.5 * _bce_mean_ref(yp, yt) + 0.5 * _bce_mean_ref(op, ot)
    assert jnp.allclose(out2, ref2, rtol=1e-4, atol=1e-5), (out2, ref2)

    # 2b) Same, with bf16 logits/targets streamed in native dtype.
    out2b = jax.block_until_ready(
        combined_loss(yt.astype(jnp.bfloat16), yp.astype(jnp.bfloat16), ot, op))
    ref2b = (0.5 * _bce_mean_ref(yp.astype(jnp.bfloat16), yt.astype(jnp.bfloat16))
             + 0.5 * _bce_mean_ref(op, ot))
    assert jnp.allclose(out2b, ref2b, rtol=1e-4, atol=1e-5), (out2b, ref2b)

    # 3) pos_weight row + non-128 lane width + multi-block tail mask +
    #    forced 2-group split (exercises the clamp + masked overhang block).
    Bm, Cm = 150, 160
    yp3 = jax.random.normal(keys[4], (Bm, Cm), jnp.float32)
    yt3 = (jax.random.uniform(keys[5], (Bm, Cm)) > 0.5).astype(jnp.float32)
    op3 = jax.random.normal(keys[6], (Bm, 1), jnp.float32)
    ot3 = (jax.random.uniform(keys[7], (Bm, 1)) > 0.5).astype(jnp.float32)
    pw = jnp.arange(1, Cm + 1, dtype=jnp.float32) * (2.0 / Cm)
    out3 = jax.block_until_ready(
        combined_loss(yt3, yp3, ot3, op3, pos_weight=pw, ood_weight=0.25,
                      min_pallas_elements=0, max_block_rows=64, num_groups=2))
    ref3 = 0.75 * _bce_mean_ref(yp3, yt3, pw) + 0.25 * _bce_mean_ref(op3, ot3)
    assert jnp.allclose(out3, ref3, rtol=1e-4, atol=1e-5), (out3, ref3)

    # 4) Empty class head -> class_loss == 0 branch.
    out4 = jax.block_until_ready(
        combined_loss(jnp.zeros((0, C), jnp.float32), jnp.zeros((0, C), jnp.float32),
                      ood_true, ood_pred))
    ref4 = 0.5 * _bce_mean_ref(ood_pred, ood_true)
    assert jnp.allclose(out4, ref4, rtol=1e-5, atol=1e-6), (out4, ref4)

    print("KERNEL_OK")
</pallas_src>

<mosaic_0001>
module attributes {stable_mosaic.version = 11 : i64} {
  func.func @_fused_bce_kernel(%arg0: i32, %arg1: i32, %arg2: memref<256x512xf32, #tpu.memory_space<vmem>>, %arg3: memref<256x512xf32, #tpu.memory_space<vmem>>, %arg4: memref<256x1xf32, #tpu.memory_space<vmem>>, %arg5: memref<256x1xf32, #tpu.memory_space<vmem>>, %arg6: memref<1x128xf32, #tpu.memory_space<vmem>>, %arg7: memref<256x512xf32, #tpu.memory_space<vmem>>) attributes {dimension_semantics = [#tpu.dimension_semantics<parallel>, #tpu.dimension_semantics<arbitrary>], iteration_bounds = array<i64: 1, 1>, scalar_prefetch = 0 : i64, scratch_operands = 1 : i64, tpu.core_type = #tpu.core_type<tc>, window_params = [{transform_indices = @transform_0, window_bounds = array<i64: 256, 512>}, {transform_indices = @transform_1, window_bounds = array<i64: 256, 512>}, {pipeline_mode = #tpu.pipeline_mode<synchronous>, transform_indices = @transform_2, window_bounds = array<i64: 256, 1>}, {pipeline_mode = #tpu.pipeline_mode<synchronous>, transform_indices = @transform_3, window_bounds = array<i64: 256, 1>}, {transform_indices = @transform_4, window_bounds = array<i64: 1, 128>}]} {
    %c0_i32 = arith.constant 0 : i32
    %0 = arith.cmpi eq, %arg1, %c0_i32 : i32
    %1 = arith.extui %0 : i1 to i32
    %c0_i32_0 = arith.constant 0 : i32
    %2 = arith.cmpi ne, %1, %c0_i32_0 : i32
    scf.if %2 {
      %cst_14 = arith.constant 0.000000e+00 : f32
      %32 = vector.broadcast %cst_14 : f32 to vector<256x512xf32>
      %c0_15 = arith.constant 0 : index
      %c0_16 = arith.constant 0 : index
      %33 = vector.load %arg7[%c0_15, %c0_16] : memref<256x512xf32, #tpu.memory_space<vmem>>, vector<256x512xf32>
      tpu.vector_store %arg7[%c0_15, %c0_16], %32 {strides = array<i32>} : memref<256x512xf32, #tpu.memory_space<vmem>>, vector<256x512xf32>,
    } else {
    }
    %c0 = arith.constant 0 : index
    %c0_1 = arith.constant 0 : index
    %3 = vector.load %arg2[%c0, %c0_1] : memref<256x512xf32, #tpu.memory_space<vmem>>, vector<256x512xf32>
    %c0_2 = arith.constant 0 : index
    %c0_3 = arith.constant 0 : index
    %4 = vector.load %arg3[%c0_2, %c0_3] : memref<256x512xf32, #tpu.memory_space<vmem>>, vector<256x512xf32>
    %cst = arith.constant 0.000000e+00 : f32
    %5 = vector.broadcast %cst : f32 to vector<256x512xf32>
    %6 = arith.subf %5, %3 : vector<256x512xf32>
    %cst_4 = arith.constant 0.000000e+00 : f32
    %7 = vector.broadcast %cst_4 : f32 to vector<256x512xf32>
    %8 = arith.maximumf %6, %7 : vector<256x512xf32>
    %9 = math.absf %3 : vector<256x512xf32>
    %cst_5 = arith.constant 0.000000e+00 : f32
    %10 = vector.broadcast %cst_5 : f32 to vector<256x512xf32>
    %11 = arith.subf %10, %9 : vector<256x512xf32>
    %12 = math.exp %11 : vector<256x512xf32>
    %13 = math.log1p %12 : vector<256x512xf32>
    %14 = arith.addf %8, %13 : vector<256x512xf32>
    %15 = arith.mulf %3, %4 : vector<256x512xf32>
    %16 = arith.subf %3, %15 : vector<256x512xf32>
    %17 = arith.addf %16, %14 : vector<256x512xf32>
    %c1_i32 = arith.constant 1 : i32
    %18 = arith.muli %arg0, %c1_i32 : i32
    %19 = arith.addi %18, %arg1 : i32
    %c256_i32 = arith.constant 256 : i32
    %20 = arith.muli %19, %c256_i32 : i32
    %c256_i32_6 = arith.constant 256 : i32
    %21 = arith.addi %20, %c256_i32_6 : i32
    %c256_i32_7 = arith.constant 256 : i32
    %22 = arith.cmpi sle, %21, %c256_i32_7 : i32
    %23 = arith.extui %22 : i1 to i32
    %c0_i32_8 = arith.constant 0 : i32
    %24 = arith.cmpi ne, %23, %c0_i32_8 : i32
    scf.if %24 {
      %c0_14 = arith.constant 0 : index
      %c0_15 = arith.constant 0 : index
      %32 = vector.load %arg7[%c0_14, %c0_15] : memref<256x512xf32, #tpu.memory_space<vmem>>, vector<256x512xf32>
      %33 = arith.addf %32, %17 : vector<256x512xf32>
      %c0_16 = arith.constant 0 : index
      %c0_17 = arith.constant 0 : index
      %34 = vector.load %arg7[%c0_16, %c0_17] : memref<256x512xf32, #tpu.memory_space<vmem>>, vector<256x512xf32>
      tpu.vector_store %arg7[%c0_16, %c0_17], %33 {strides = array<i32>} : memref<256x512xf32, #tpu.memory_space<vmem>>, vector<256x512xf32>,
    } else {
    }
    %c256_i32_9 = arith.constant 256 : i32
    %25 = arith.addi %20, %c256_i32_9 : i32
    %c256_i32_10 = arith.constant 256 : i32
    %26 = arith.cmpi sgt, %25, %c256_i32_10 : i32
    %27 = arith.extui %26 : i1 to i32
    %c0_i32_11 = arith.constant 0 : i32
    %28 = arith.cmpi ne, %27, %c0_i32_11 : i32
    scf.if %28 {
      %32 = tpu.iota {dimensions = array<i32: 0>} : vector<256x512xi32>
      %c0_14 = arith.constant 0 : index
      %c0_15 = arith.constant 0 : index
      %33 = vector.load %arg7[%c0_14, %c0_15] : memref<256x512xf32, #tpu.memory_space<vmem>>, vector<256x512xf32>
      %34 = vector.broadcast %20 : i32 to vector<256x512xi32>
      %35 = arith.addi %34, %32 : vector<256x512xi32>
      %c256_i32_16 = arith.constant 256 : i32
      %36 = vector.broadcast %c256_i32_16 : i32 to vector<256x512xi32>
      %37 = arith.cmpi slt, %35, %36 : vector<256x512xi32>
      %cst_17 = arith.constant 0.000000e+00 : f32
      %38 = vector.broadcast %cst_17 : f32 to vector<256x512xf32>
      %39 = arith.select %37, %17, %38 : vector<256x512xi1>, vector<256x512xf32>
      %40 = arith.addf %33, %39 : vector<256x512xf32>
      %c0_18 = arith.constant 0 : index
      %c0_19 = arith.constant 0 : index
      %41 = vector.load %arg7[%c0_18, %c0_19] : memref<256x512xf32, #tpu.memory_space<vmem>>, vector<256x512xf32>
      tpu.vector_store %arg7[%c0_18, %c0_19], %40 {strides = array<i32>} : memref<256x512xf32, #tpu.memory_space<vmem>>, vector<256x512xf32>,
    } else {
    }
    %c0_i32_12 = arith.constant 0 : i32
    %29 = arith.cmpi eq, %arg1, %c0_i32_12 : i32
    %30 = arith.extui %29 : i1 to i32
    %c0_i32_13 = arith.constant 0 : i32
    %31 = arith.cmpi ne, %30, %c0_i32_13 : i32
    scf.if %31 {
      %c0_14 = arith.constant 0 : index
      %c0_15 = arith.constant 0 : index
      %32 = vector.load %arg7[%c0_14, %c0_15] : memref<256x512xf32, #tpu.memory_space<vmem>>, vector<256x512xf32>
      %33 = vector.shape_cast %32 : vector<256x512xf32> to vector<1x256x512xf32>
      %cst_16 = arith.constant dense<0.000000e+00> : vector<1xf32>
      %34 = vector.multi_reduction <add>, %33, %cst_16 [1, 2] : vector<1x256x512xf32> to vector<1xf32>
      %35 = vector.shape_cast %34 : vector<1xf32> to vector<1x1x1xf32>
      %36 = vector.extract %35[0, 0, 0] : f32 from vector<1x1x1xf32>
      %c0_17 = arith.constant 0 : index
      %c0_18 = arith.constant 0 : index
      %37 = vector.load %arg4[%c0_17, %c0_18] : memref<256x1xf32, #tpu.memory_space<vmem>>, vector<256x1xf32>
      %c0_19 = arith.constant 0 : index
      %c0_20 = arith.constant 0 : index
      %38 = vector.load %arg5[%c0_19, %c0_20] : memref<256x1xf32, #tpu.memory_space<vmem>>, vector<256x1xf32>
      %cst_21 = arith.constant 0.000000e+00 : f32
      %39 = vector.broadcast %cst_21 : f32 to vector<256x1xf32>
      %40 = arith.subf %39, %37 : vector<256x1xf32>
      %cst_22 = arith.constant 0.000000e+00 : f32
      %41 = vector.broadcast %cst_22 : f32 to vector<256x1xf32>
      %42 = arith.maximumf %40, %41 : vector<256x1xf32>
      %43 = math.absf %37 : vector<256x1xf32>
      %cst_23 = arith.constant 0.000000e+00 : f32
      %44 = vector.broadcast %cst_23 : f32 to vector<256x1xf32>
      %45 = arith.subf %44, %43 : vector<256x1xf32>
      %46 = math.exp %45 : vector<256x1xf32>
      %47 = math.log1p %46 : vector<256x1xf32>
      %48 = arith.addf %42, %47 : vector<256x1xf32>
      %49 = arith.mulf %37, %38 : vector<256x1xf32>
      %50 = arith.subf %37, %49 : vector<256x1xf32>
      %51 = arith.addf %50, %48 : vector<256x1xf32>
      %52 = vector.shape_cast %51 : vector<256x1xf32> to vector<1x256x1xf32>
      %cst_24 = arith.constant dense<0.000000e+00> : vector<1xf32>
      %53 = vector.multi_reduction <add>, %52, %cst_24 [1, 2] : vector<1x256x1xf32> to vector<1xf32>
      %54 = vector.shape_cast %53 : vector<1xf32> to vector<1x1x1xf32>
      %55 = vector.extract %54[0, 0, 0] : f32 from vector<1x1x1xf32>
      %c0_i32_25 = arith.constant 0 : i32
      %56 = arith.cmpi eq, %arg0, %c0_i32_25 : i32
      %cst_26 = arith.constant 0.000000e+00 : f32
      %57 = arith.select %56, %55, %cst_26 : f32
      %58 = tpu.iota {dimensions = array<i32: 1>} : vector<1x128xi32>
      %c0_i32_27 = arith.constant 0 : i32
      %59 = vector.broadcast %c0_i32_27 : i32 to vector<1x128xi32>
      %60 = arith.cmpi eq, %58, %59 : vector<1x128xi32>
      %c1_i32_28 = arith.constant 1 : i32
      %61 = vector.broadcast %c1_i32_28 : i32 to vector<1x128xi32>
      %62 = arith.cmpi eq, %58, %61 : vector<1x128xi32>
      %cst_29 = arith.constant 0.000000e+00 : f32
      %63 = vector.broadcast %57 : f32 to vector<1x128xf32>
      %64 = vector.broadcast %cst_29 : f32 to vector<1x128xf32>
      %65 = arith.select %62, %63, %64 : vector<1x128xi1>, vector<1x128xf32>
      %66 = vector.broadcast %36 : f32 to vector<1x128xf32>
      %67 = arith.select %60, %66, %65 : vector<1x128xi1>, vector<1x128xf32>
      %c0_30 = arith.constant 0 : index
      %c0_31 = arith.constant 0 : index
      %68 = vector.load %arg6[%c0_30, %c0_31] : memref<1x128xf32, #tpu.memory_space<vmem>>, vector<1x128xf32>
      tpu.vector_store %arg6[%c0_30, %c0_31], %67 {strides = array<i32>} : memref<1x128xf32, #tpu.memory_space<vmem>>, vector<1x128xf32>,
    } else {
    }
    return
  }
  func.func @transform_0(%arg0: i32, %arg1: i32) -> (i32, i32) {
    %c1_i32 = arith.constant 1 : i32
    %0 = arith.muli %arg0, %c1_i32 : i32
    %1 = arith.addi %0, %arg1 : i32
    %c0_i32 = arith.constant 0 : i32
    %c0_i32_0 = arith.constant 0 : i32
    return %1, %c0_i32 : i32, i32
  }
  func.func @transform_1(%arg0: i32, %arg1: i32) -> (i32, i32) {
    %c1_i32 = arith.constant 1 : i32
    %0 = arith.muli %arg0, %c1_i32 : i32
    %1 = arith.addi %0, %arg1 : i32
    %c0_i32 = arith.constant 0 : i32
    %c0_i32_0 = arith.constant 0 : i32
    return %1, %c0_i32 : i32, i32
  }
  func.func @transform_2(%arg0: i32, %arg1: i32) -> (i32, i32) {
    %c0_i32 = arith.constant 0 : i32
    %c0_i32_0 = arith.constant 0 : i32
    %c0_i32_1 = arith.constant 0 : i32
    return %c0_i32, %c0_i32_0 : i32, i32
  }
  func.func @transform_3(%arg0: i32, %arg1: i32) -> (i32, i32) {
    %c0_i32 = arith.constant 0 : i32
    %c0_i32_0 = arith.constant 0 : i32
    %c0_i32_1 = arith.constant 0 : i32
    return %c0_i32, %c0_i32_0 : i32, i32
  }
  func.func @transform_4(%arg0: i32, %arg1: i32) -> (i32, i32) {
    %c0_i32 = arith.constant 0 : i32
    %c0_i32_0 = arith.constant 0 : i32
    return %c0_i32, %arg0 : i32, i32
  }
}

</mosaic_0001>

<bundles_post_ra>
// kernel: tpu_custom_call.1
= control target key start
LH: loop header
LB: loop body
LE: loop exit
PB: predicated region body
PF: predicated region fallthrough
CT: control target
= control target key end

     0   :  { %9 = vsyncpa [#allocation4], 0  ;;  %s14350_s0 = inlined_call_operand.hbm [shape: f32[256,512], index: 0, kind: input, shape index: {}]   ;;  %s14351_s1 = inlined_call_operand.hbm [shape: f32[256,512], index: 1, kind: input, shape index: {}]   ;;  %s14352_s2 = inlined_call_operand.vmem [shape: f32[256,1], index: 2, kind: input, shape index: {}]   ;;  %s14353_s3 = inlined_call_operand.vmem [shape: f32[256,1], index: 3, kind: input, shape index: {}]   ;;  %s14354_s4 = inlined_call_operand.hbm [shape: f32[1,128], index: 4, kind: output, shape index: {}]  }
   0x1   :  { %10 = vsyncpa [#allocation7], 0 }
   0x2   :  { %11 = vsyncpa [#allocation5], 0  ;;  %s5799_s15 = smov [#allocation3]  }
   0x3   :  { %s22_s16 = sshll.u32 %s5799_s15, 4  ;;  %s23_s16 = int_to_ptr.vmem [resolvable:$true] %s22_s16 }
   0x4   :  { %s5741_s17 = scalar_lea.vmem %s23_s16, 16384  ;;  %p5746_p1 = scmp.lt.s32.totalorder %s23_s16, %s23_s16 }
   0x5   :  { %p5742_p0 = scmp.ne.s32.totalorder %s23_s16, %s5741_s17  ;;  %p5747_p2 = scmp.lt.s32.totalorder %s5741_s17, %s5741_s17 }
   0x7   :  { %p5748_p3 = por %p5747_p2, %p5746_p1 }
   0x9   :  { %p5749_p4 = pnand %p5748_p3, %p5742_p0 }
   0xb   :  { %5752 = shalt.err (!%p5749_p4)
}
   0xc   :  { %s5800_s18 = smov 512   ;;  %s5801_s19 = smov 32  }
   0xd   :  { %28 = dma.hbm_to_vmem [thread:$0]  %s14350_s0, 16384, %s23_s16, [#allocation4], %s5800_s18, %s5800_s18, %s5801_s19  }
   0xe   :  { %s5802_s22 = smov [#allocation6]  }
   0xf   :  { %s39_s23 = sshll.u32 %s5802_s22, 4  ;;  %s40_s23 = int_to_ptr.vmem [resolvable:$true] %s39_s23 }
  0x10   :  { %s5761_s24 = scalar_lea.vmem %s40_s23, 16384  ;;  %p5766_p6 = scmp.lt.s32.totalorder %s40_s23, %s40_s23 }
  0x11   :  { %p5762_p5 = scmp.ne.s32.totalorder %s40_s23, %s5761_s24  ;;  %p5767_p7 = scmp.lt.s32.totalorder %s5761_s24, %s5761_s24 }
  0x13   :  { %p5768_p8 = por %p5767_p7, %p5766_p6 }
  0x15   :  { %p5769_p9 = pnand %p5768_p8, %p5762_p5 }
  0x17   :  { %5772 = shalt.err (!%p5769_p9)
}
  0x18   :  { %45 = dma.hbm_to_vmem [thread:$0]  %s14351_s1, 16384, %s40_s23, [#allocation7], %s5800_s18, %s5800_s18, %s5801_s19  }
  0x19   :  { %5793 = dma.done.wait [#allocation4], 16384  }
  0x1a   :  { %5794 = vsyncadd [#allocation4], 4294950912 }
  0x1b   :  { %5795 = dma.done.wait [#allocation7], 16384  }
  0x1c   :  { %5796 = vsyncadd [#allocation7], 4294950912  ;;  %v5835_v0 = vld [vmem:[#allocation3] sm:$0xff]  ;;  %v5837_v1 = vld [vmem:[#allocation3 + $0x8] sm:$0xff]  ;;  %s5803_s22 = smov [#allocation8]  }
  0x1d   :  { %v5839_v2 = vld [vmem:[#allocation3 + $0x10] sm:$0xff]  ;;  %v5841_v3 = vld [vmem:[#allocation3 + $0x18] sm:$0xff]  ;;  %v5843_v4 = vld [vmem:[#allocation3 + $0x20] sm:$0xff]  ;;  %v15648_v56 = vsub.f32 0.0, %v5837_v1  ;;  %s4914_s23 = sshll.u32 %s5803_s22, 4  ;;  %s4915_s23 = int_to_ptr.vmem [resolvable:$true] %s4914_s23 }
  0x1e   :  { %v5845_v5 = vld [vmem:[#allocation3 + $0x28] sm:$0xff]  ;;  %v5847_v6 = vld [vmem:[#allocation3 + $0x30] sm:$0xff]  ;;  %v5852_v10 = vld [vmem:[#allocation3 + $0x38] sm:$0xff]  ;;  %v15652_v62 = vsub.f32 0.0, %v5841_v3  ;;  %s5773_s25 = scalar_lea.vmem %s4915_s23, 16  ;;  %s5777_s26 = scalar_lea.vmem %s4915_s23, 32 }
  0x1f   :  { %v5854_v11 = vld [vmem:[#allocation3 + $0x40] sm:$0xff]  ;;  %v5856_v12 = vld [vmem:[#allocation3 + $0x48] sm:$0xff]  ;;  %v5861_v16 = vld [vmem:[#allocation3 + $0x50] sm:$0xff]  ;;  %p5774_p10 = scmp.ne.s32.totalorder %s4915_s23, %s5773_s25  ;;  %p5778_p11 = scmp.lt.s32.totalorder %s4915_s23, %s4915_s23 }
  0x20   :  { %v5863_v17 = vld [vmem:[#allocation3 + $0x58] sm:$0xff]  ;;  %v5865_v18 = vld [vmem:[#allocation3 + $0x60] sm:$0xff]  ;;  %v5870_v22 = vld [vmem:[#allocation3 + $0x68] sm:$0xff]  ;;  %p5779_p12 = scmp.lt.s32.totalorder %s5777_s26, %s5773_s25 }
  0x21   :  { %v5872_v23 = vld [vmem:[#allocation3 + $0x70] sm:$0xff]  ;;  %v5874_v24 = vld [vmem:[#allocation3 + $0x78] sm:$0xff]  ;;  %v5879_v28 = vld [vmem:[#allocation3 + $0x80] sm:$0xff] }
  0x22   :  { %v5881_v29 = vld [vmem:[#allocation3 + $0x88] sm:$0xff]  ;;  %v5883_v30 = vld [vmem:[#allocation3 + $0x90] sm:$0xff]  ;;  %v5888_v34 = vld [vmem:[#allocation3 + $0x98] sm:$0xff]  ;;  %p5780_p13 = por %p5779_p12, %p5778_p11 }
  0x23   :  { %v5890_v35 = vld [vmem:[#allocation3 + $0xa0] sm:$0xff]  ;;  %v5892_v36 = vld [vmem:[#allocation3 + $0xa8] sm:$0xff]  ;;  %v5897_v40 = vld [vmem:[#allocation3 + $0xb0] sm:$0xff] }
  0x24   :  { %v5899_v41 = vld [vmem:[#allocation3 + $0xb8] sm:$0xff]  ;;  %v5901_v42 = vld [vmem:[#allocation3 + $0xc0] sm:$0xff]  ;;  %v5906_v46 = vld [vmem:[#allocation3 + $0xc8] sm:$0xff]  ;;  %p5781_p0 = pnand %p5780_p13, %p5774_p10 }
  0x25   :  { %v5908_v47 = vld [vmem:[#allocation3 + $0xd0] sm:$0xff]  ;;  %v5910_v48 = vld [vmem:[#allocation3 + $0xd8] sm:$0xff]  ;;  %v5915_v52 = vld [vmem:[#allocation3 + $0xe0] sm:$0xff] }
  0x26   :  { %v5917_v53 = vld [vmem:[#allocation3 + $0xe8] sm:$0xff]  ;;  %v5919_v54 = vld [vmem:[#allocation3 + $0xf0] sm:$0xff]  ;;  %v5924_v58 = vld [vmem:[#allocation3 + $0xf8] sm:$0xff] }
  0x27   :  { %v5926_v59 = vld [vmem:[#allocation3 + $0x100] sm:$0xff]  ;;  %v5928_v60 = vld [vmem:[#allocation3 + $0x108] sm:$0xff]  ;;  %v5933_v51 = vld [vmem:[#allocation3 + $0x110] sm:$0xff] }
  0x28   :  { %15550 = vst [vmem:[#allocation12_spill] sm:$0xff] %v5926_v59  ;;  %15551 = vst [vmem:[#allocation13_spill] sm:$0xff] %v5928_v60  ;;  %v5935_v50 = vld [vmem:[#allocation3 + $0x118] sm:$0xff]  ;;  %v5937_v55 = vld [vmem:[#allocation3 + $0x120] sm:$0xff] }
  0x29   :  { %15552 = vst [vmem:[#allocation14_spill] sm:$0xff] %v5933_v51  ;;  %15553 = vst [vmem:[#allocation15_spill] sm:$0xff] %v5935_v50  ;;  %v5942_v45 = vld [vmem:[#allocation3 + $0x128] sm:$0xff]  ;;  %v5944_v44 = vld [vmem:[#allocation3 + $0x130] sm:$0xff] }
  0x2a   :  { %15554 = vst [vmem:[#allocation16_spill] sm:$0xff] %v5937_v55  ;;  %15555 = vst [vmem:[#allocation17_spill] sm:$0xff] %v5942_v45  ;;  %v5946_v61 = vld [vmem:[#allocation3 + $0x138] sm:$0xff]  ;;  %v5951_v39 = vld [vmem:[#allocation3 + $0x140] sm:$0xff] }
  0x2b   :  { %15556 = vst [vmem:[#allocation18_spill] sm:$0xff] %v5944_v44  ;;  %15557 = vst [vmem:[#allocation19_spill] sm:$0xff] %v5946_v61  ;;  %v5953_v38 = vld [vmem:[#allocation3 + $0x148] sm:$0xff]  ;;  %v5955_v57 = vld [vmem:[#allocation3 + $0x150] sm:$0xff] }
  0x2c   :  { %15558 = vst [vmem:[#allocation20_spill] sm:$0xff] %v5951_v39  ;;  %15559 = vst [vmem:[#allocation21_spill] sm:$0xff] %v5953_v38  ;;  %v5960_v33 = vld [vmem:[#allocation3 + $0x158] sm:$0xff]  ;;  %v5962_v32 = vld [vmem:[#allocation3 + $0x160] sm:$0xff] }
  0x2d   :  { %15560 = vst [vmem:[#allocation22_spill] sm:$0xff] %v5955_v57  ;;  %15561 = vst [vmem:[#allocation23_spill] sm:$0xff] %v5960_v33  ;;  %v5964_v63 = vld [vmem:[#allocation3 + $0x168] sm:$0xff]  ;;  %v5969_v27 = vld [vmem:[#allocation3 + $0x170] sm:$0xff] }
  0x2e   :  { %15562 = vst [vmem:[#allocation24_spill] sm:$0xff] %v5962_v32  ;;  %15563 = vst [vmem:[#allocation25_spill] sm:$0xff] %v5964_v63  ;;  %v5971_v26 = vld [vmem:[#allocation3 + $0x178] sm:$0xff]  ;;  %v5973_v49 = vld [vmem:[#allocation3 + $0x180] sm:$0xff] }
  0x2f   :  { %15564 = vst [vmem:[#allocation26_spill] sm:$0xff] %v5969_v27  ;;  %15565 = vst [vmem:[#allocation27_spill] sm:$0xff] %v5971_v26  ;;  %v5978_v21 = vld [vmem:[#allocation3 + $0x188] sm:$0xff]  ;;  %v5980_v20 = vld [vmem:[#allocation3 + $0x190] sm:$0xff] }
  0x30   :  { %15566 = vst [vmem:[#allocation28_spill] sm:$0xff] %v5973_v49  ;;  %15567 = vst [vmem:[#allocation29_spill] sm:$0xff] %v5978_v21  ;;  %v5982_v43 = vld [vmem:[#allocation3 + $0x198] sm:$0xff]  ;;  %v5987_v15 = vld [vmem:[#allocation3 + $0x1a0] sm:$0xff] }
  0x31   :  { %15568 = vst [vmem:[#allocation30_spill] sm:$0xff] %v5980_v20  ;;  %15569 = vst [vmem:[#allocation31_spill] sm:$0xff] %v5982_v43  ;;  %v5989_v14 = vld [vmem:[#allocation3 + $0x1a8] sm:$0xff]  ;;  %v5991_v37 = vld [vmem:[#allocation3 + $0x1b0] sm:$0xff] }
  0x32   :  { %15570 = vst [vmem:[#allocation32_spill] sm:$0xff] %v5987_v15  ;;  %15571 = vst [vmem:[#allocation33_spill] sm:$0xff] %v5989_v14  ;;  %v5996_v9 = vld [vmem:[#allocation3 + $0x1b8] sm:$0xff]  ;;  %v5998_v8 = vld [vmem:[#allocation3 + $0x1c0] sm:$0xff] }
  0x33   :  { %15572 = vst [vmem:[#allocation34_spill] sm:$0xff] %v5991_v37  ;;  %15573 = vst [vmem:[#allocation35_spill] sm:$0xff] %v5996_v9  ;;  %v6000_v31 = vld [vmem:[#allocation3 + $0x1c8] sm:$0xff]  ;;  %v6005_v26 = vld [vmem:[#allocation3 + $0x1d0] sm:$0xff] }
  0x34   :  { %15574 = vst [vmem:[#allocation36_spill] sm:$0xff] %v5998_v8  ;;  %15575 = vst [vmem:[#allocation37_spill] sm:$0xff] %v6000_v31  ;;  %v6007_v27 = vld [vmem:[#allocation3 + $0x1d8] sm:$0xff]  ;;  %v6009_v25 = vld [vmem:[#allocation3 + $0x1e0] sm:$0xff] }
  0x35   :  { %15576 = vst [vmem:[#allocation38_spill] sm:$0xff] %v6005_v26  ;;  %15577 = vst [vmem:[#allocation39_spill] sm:$0xff] %v6007_v27  ;;  %v6014_v21 = vld [vmem:[#allocation3 + $0x1e8] sm:$0xff]  ;;  %v6016_v49 = vld [vmem:[#allocation3 + $0x1f0] sm:$0xff] }
  0x36   :  { %15578 = vst [vmem:[#allocation40_spill] sm:$0xff] %v6009_v25  ;;  %15579 = vst [vmem:[#allocation41_spill] sm:$0xff] %v6014_v21  ;;  %v6018_v19 = vld [vmem:[#allocation3 + $0x1f8] sm:$0xff]  ;;  %v6023_v15 = vld [vmem:[#allocation3 + $0x200] sm:$0xff] }
  0x37   :  { %15580 = vst [vmem:[#allocation42_spill] sm:$0xff] %v6016_v49  ;;  %15581 = vst [vmem:[#allocation43_spill] sm:$0xff] %v6018_v19  ;;  %v6025_v43 = vld [vmem:[#allocation3 + $0x208] sm:$0xff]  ;;  %v6027_v13 = vld [vmem:[#allocation3 + $0x210] sm:$0xff] }
  0x38   :  { %15582 = vst [vmem:[#allocation44_spill] sm:$0xff] %v6023_v15  ;;  %15583 = vst [vmem:[#allocation45_spill] sm:$0xff] %v6025_v43  ;;  %v6032_v9 = vld [vmem:[#allocation3 + $0x218] sm:$0xff]  ;;  %v6034_v37 = vld [vmem:[#allocation3 + $0x220] sm:$0xff] }
  0x39   :  { %15584 = vst [vmem:[#allocation46_spill] sm:$0xff] %v6027_v13  ;;  %15585 = vst [vmem:[#allocation47_spill] sm:$0xff] %v6032_v9  ;;  %v6036_v7 = vld [vmem:[#allocation3 + $0x228] sm:$0xff]  ;;  %v6041_v26 = vld [vmem:[#allocation3 + $0x230] sm:$0xff] }
  0x3a   :  { %15586 = vst [vmem:[#allocation48_spill] sm:$0xff] %v6034_v37  ;;  %15587 = vst [vmem:[#allocation49_spill] sm:$0xff] %v6036_v7  ;;  %v6043_v31 = vld [vmem:[#allocation3 + $0x238] sm:$0xff]  ;;  %v6045_v20 = vld [vmem:[#allocation3 + $0x240] sm:$0xff] }
  0x3b   :  { %15588 = vst [vmem:[#allocation50_spill] sm:$0xff] %v6041_v26  ;;  %15589 = vst [vmem:[#allocation51_spill] sm:$0xff] %v6043_v31  ;;  %v6050_v21 = vld [vmem:[#allocation3 + $0x248] sm:$0xff]  ;;  %v6052_v25 = vld [vmem:[#allocation3 + $0x250] sm:$0xff] }
  0x3c   :  { %15590 = vst [vmem:[#allocation52_spill] sm:$0xff] %v6045_v20  ;;  %15591 = vst [vmem:[#allocation53_spill] sm:$0xff] %v6050_v21  ;;  %v6054_v14 = vld [vmem:[#allocation3 + $0x258] sm:$0xff]  ;;  %v6059_v15 = vld [vmem:[#allocation3 + $0x260] sm:$0xff] }
  0x3d   :  { %15592 = vst [vmem:[#allocation54_spill] sm:$0xff] %v6052_v25  ;;  %15593 = vst [vmem:[#allocation55_spill] sm:$0xff] %v6054_v14  ;;  %v6061_v19 = vld [vmem:[#allocation3 + $0x268] sm:$0xff]  ;;  %v6063_v8 = vld [vmem:[#allocation3 + $0x270] sm:$0xff] }
  0x3e   :  { %15594 = vst [vmem:[#allocation56_spill] sm:$0xff] %v6059_v15  ;;  %15595 = vst [vmem:[#allocation57_spill] sm:$0xff] %v6061_v19  ;;  %v6068_v9 = vld [vmem:[#allocation3 + $0x278] sm:$0xff]  ;;  %v6070_v13 = vld [vmem:[#allocation3 + $0x280] sm:$0xff] }
  0x3f   :  { %15596 = vst [vmem:[#allocation58_spill] sm:$0xff] %v6063_v8  ;;  %15597 = vst [vmem:[#allocation59_spill] sm:$0xff] %v6068_v9  ;;  %v6072_v27 = vld [vmem:[#allocation3 + $0x288] sm:$0xff]  ;;  %v6077_v26 = vld [vmem:[#allocation3 + $0x290] sm:$0xff] }
  0x40   :  { %15598 = vst [vmem:[#allocation60_spill] sm:$0xff] %v6070_v13  ;;  %15599 = vst [vmem:[#allocation61_spill] sm:$0xff] %v6072_v27  ;;  %v6079_v7 = vld [vmem:[#allocation3 + $0x298] sm:$0xff]  ;;  %v6081_v49 = vld [vmem:[#allocation3 + $0x2a0] sm:$0xff] }
  0x41   :  { %15600 = vst [vmem:[#allocation62_spill] sm:$0xff] %v6077_v26  ;;  %15601 = vst [vmem:[#allocation63_spill] sm:$0xff] %v6079_v7  ;;  %v6086_v21 = vld [vmem:[#allocation3 + $0x2a8] sm:$0xff]  ;;  %v6088_v20 = vld [vmem:[#allocation3 + $0x2b0] sm:$0xff] }
  0x42   :  { %15602 = vst [vmem:[#allocation64_spill] sm:$0xff] %v6081_v49  ;;  %15603 = vst [vmem:[#allocation65_spill] sm:$0xff] %v6086_v21  ;;  %v6090_v43 = vld [vmem:[#allocation3 + $0x2b8] sm:$0xff]  ;;  %v6095_v15 = vld [vmem:[#allocation3 + $0x2c0] sm:$0xff] }
  0x43   :  { %15604 = vst [vmem:[#allocation66_spill] sm:$0xff] %v6088_v20  ;;  %15605 = vst [vmem:[#allocation67_spill] sm:$0xff] %v6090_v43  ;;  %v6097_v14 = vld [vmem:[#allocation3 + $0x2c8] sm:$0xff]  ;;  %v6099_v37 = vld [vmem:[#allocation3 + $0x2d0] sm:$0xff] }
  0x44   :  { %15606 = vst [vmem:[#allocation68_spill] sm:$0xff] %v6095_v15  ;;  %15607 = vst [vmem:[#allocation69_spill] sm:$0xff] %v6097_v14  ;;  %v6104_v9 = vld [vmem:[#allocation3 + $0x2d8] sm:$0xff]  ;;  %v6106_v8 = vld [vmem:[#allocation3 + $0x2e0] sm:$0xff] }
  0x45   :  { %15608 = vst [vmem:[#allocation70_spill] sm:$0xff] %v6099_v37  ;;  %15609 = vst [vmem:[#allocation71_spill] sm:$0xff] %v6104_v9  ;;  %v6108_v31 = vld [vmem:[#allocation3 + $0x2e8] sm:$0xff]  ;;  %v6113_v26 = vld [vmem:[#allocation3 + $0x2f0] sm:$0xff] }
  0x46   :  { %15610 = vst [vmem:[#allocation72_spill] sm:$0xff] %v6106_v8  ;;  %15611 = vst [vmem:[#allocation73_spill] sm:$0xff] %v6108_v31  ;;  %v6115_v27 = vld [vmem:[#allocation3 + $0x2f8] sm:$0xff]  ;;  %v6117_v25 = vld [vmem:[#allocation3 + $0x300] sm:$0xff] }
  0x47   :  { %15612 = vst [vmem:[#allocation74_spill] sm:$0xff] %v6113_v26  ;;  %15613 = vst [vmem:[#allocation75_spill] sm:$0xff] %v6115_v27  ;;  %v6122_v21 = vld [vmem:[#allocation3 + $0x308] sm:$0xff]  ;;  %v6124_v49 = vld [vmem:[#allocation3 + $0x310] sm:$0xff] }
  0x48   :  { %15614 = vst [vmem:[#allocation76_spill] sm:$0xff] %v6117_v25  ;;  %15615 = vst [vmem:[#allocation77_spill] sm:$0xff] %v6122_v21  ;;  %v6126_v19 = vld [vmem:[#allocation3 + $0x318] sm:$0xff]  ;;  %v6131_v15 = vld [vmem:[#allocation3 + $0x320] sm:$0xff] }
  0x49   :  { %15616 = vst [vmem:[#allocation78_spill] sm:$0xff] %v6124_v49  ;;  %15617 = vst [vmem:[#allocation79_spill] sm:$0xff] %v6126_v19  ;;  %v6133_v43 = vld [vmem:[#allocation3 + $0x328] sm:$0xff]  ;;  %v6135_v13 = vld [vmem:[#allocation3 + $0x330] sm:$0xff] }
  0x4a   :  { %15618 = vst [vmem:[#allocation80_spill] sm:$0xff] %v6131_v15  ;;  %15619 = vst [vmem:[#allocation81_spill] sm:$0xff] %v6133_v43  ;;  %v6140_v9 = vld [vmem:[#allocation3 + $0x338] sm:$0xff]  ;;  %v6142_v37 = vld [vmem:[#allocation3 + $0x340] sm:$0xff] }
  0x4b   :  { %15620 = vst [vmem:[#allocation82_spill] sm:$0xff] %v6135_v13  ;;  %15621 = vst [vmem:[#allocation83_spill] sm:$0xff] %v6140_v9  ;;  %v6144_v7 = vld [vmem:[#allocation3 + $0x348] sm:$0xff]  ;;  %v6149_v26 = vld [vmem:[#allocation3 + $0x350] sm:$0xff] }
  0x4c   :  { %15622 = vst [vmem:[#allocation84_spill] sm:$0xff] %v6142_v37  ;;  %15623 = vst [vmem:[#allocation85_spill] sm:$0xff] %v6144_v7  ;;  %v6151_v31 = vld [vmem:[#allocation3 + $0x358] sm:$0xff]  ;;  %v6153_v20 = vld [vmem:[#allocation3 + $0x360] sm:$0xff] }
  0x4d   :  { %15624 = vst [vmem:[#allocation86_spill] sm:$0xff] %v6149_v26  ;;  %15625 = vst [vmem:[#allocation87_spill] sm:$0xff] %v6151_v31  ;;  %v6158_v21 = vld [vmem:[#allocation3 + $0x368] sm:$0xff]  ;;  %v6160_v25 = vld [vmem:[#allocation3 + $0x370] sm:$0xff]  ;;  %v6233_v31 = vmax.f32 %v15652_v62, 0.0 }
  0x4e   :  { %15626 = vst [vmem:[#allocation88_spill] sm:$0xff] %v6153_v20  ;;  %15627 = vst [vmem:[#allocation89_spill] sm:$0xff] %v6158_v21  ;;  %v6162_v14 = vld [vmem:[#allocation3 + $0x378] sm:$0xff]  ;;  %v6167_v15 = vld [vmem:[#allocation3 + $0x380] sm:$0xff] }
  0x4f   :  { %15628 = vst [vmem:[#allocation90_spill] sm:$0xff] %v6160_v25  ;;  %15629 = vst [vmem:[#allocation91_spill] sm:$0xff] %v6162_v14  ;;  %v6169_v19 = vld [vmem:[#allocation3 + $0x388] sm:$0xff]  ;;  %v6171_v8 = vld [vmem:[#allocation3 + $0x390] sm:$0xff]  ;;  %v6225_v25 = vmax.f32 %v15648_v56, 0.0 }
  0x50   :  { %15630 = vst [vmem:[#allocation92_spill] sm:$0xff] %v6167_v15  ;;  %15631 = vst [vmem:[#allocation93_spill] sm:$0xff] %v6169_v19  ;;  %v6176_v9 = vld [vmem:[#allocation3 + $0x398] sm:$0xff]  ;;  %v6178_v13 = vld [vmem:[#allocation3 + $0x3a0] sm:$0xff] }
  0x51   :  { %15632 = vst [vmem:[#allocation94_spill] sm:$0xff] %v6171_v8  ;;  %15633 = vst [vmem:[#allocation95_spill] sm:$0xff] %v6176_v9  ;;  %v6180_v27 = vld [vmem:[#allocation3 + $0x3a8] sm:$0xff]  ;;  %v6185_v26 = vld [vmem:[#allocation3 + $0x3b0] sm:$0xff] }
  0x52   :  { %15634 = vst [vmem:[#allocation96_spill] sm:$0xff] %v6178_v13  ;;  %15635 = vst [vmem:[#allocation97_spill] sm:$0xff] %v6180_v27  ;;  %v6187_v7 = vld [vmem:[#allocation3 + $0x3b8] sm:$0xff]  ;;  %v6189_v49 = vld [vmem:[#allocation3 + $0x3c0] sm:$0xff]  ;;  %v15646_v27 = vsub.f32 0.0, %v5835_v0  ;;  %v15650_v13 = vsub.f32 0.0, %v5839_v2 }
  0x53   :  { %15636 = vst [vmem:[#allocation98_spill] sm:$0xff] %v6185_v26  ;;  %15637 = vst [vmem:[#allocation99_spill] sm:$0xff] %v6187_v7  ;;  %v6194_v21 = vld [vmem:[#allocation3 + $0x3c8] sm:$0xff]  ;;  %v6196_v20 = vld [vmem:[#allocation3 + $0x3d0] sm:$0xff]  ;;  %v15654_v7 = vsub.f32 0.0, %v5843_v4  ;;  %v15656_v26 = vsub.f32 0.0, %v5845_v5 }
  0x54   :  { %15638 = vst [vmem:[#allocation100_spill] sm:$0xff] %v6189_v49  ;;  %15639 = vst [vmem:[#allocation101_spill] sm:$0xff] %v6194_v21  ;;  %v6198_v43 = vld [vmem:[#allocation3 + $0x3d8] sm:$0xff]  ;;  %v6203_v15 = vld [vmem:[#allocation3 + $0x3e0] sm:$0xff]  ;;  %v6221_v8 = vmax.f32 %v15646_v27, 0.0 }
  0x55   :  { %15640 = vst [vmem:[#allocation102_spill] sm:$0xff] %v6196_v20  ;;  %15641 = vst [vmem:[#allocation103_spill] sm:$0xff] %v6198_v43  ;;  %v6205_v14 = vld [vmem:[#allocation3 + $0x3e8] sm:$0xff]  ;;  %v6207_v37 = vld [vmem:[#allocation3 + $0x3f0] sm:$0xff]  ;;  %v6229_v20 = vmax.f32 %v15650_v13, 0.0  ;;  %v6237_v19 = vmax.f32 %v15654_v7, 0.0 }
  0x56   :  { %15642 = vst [vmem:[#allocation104_spill] sm:$0xff] %v6203_v15  ;;  %15643 = vst [vmem:[#allocation105_spill] sm:$0xff] %v6205_v14  ;;  %v6212_v9 = vld [vmem:[#allocation3 + $0x3f8] sm:$0xff]  ;;  %v6241_v27 = vmax.f32 %v15656_v26, 0.0 }
  0x57   :  { %15644 = vst [vmem:[#allocation106_spill] sm:$0xff] %v6207_v37  ;;  %15645 = vst [vmem:[#allocation107_spill] sm:$0xff] %v6212_v9 }
  0x58   :  { %15647 = vst [vmem:[#allocation108_spill] sm:$0xff] %v6221_v8  ;;  %15649 = vst [vmem:[#allocation109_spill] sm:$0xff] %v6225_v25  ;;  %v15658_v8 = vsub.f32 0.0, %v5847_v6  ;;  %v15660_v25 = vsub.f32 0.0, %v5852_v10 }
  0x59   :  { %15651 = vst [vmem:[#allocation110_spill] sm:$0xff] %v6229_v20  ;;  %15653 = vst [vmem:[#allocation111_spill] sm:$0xff] %v6233_v31  ;;  %v15662_v20 = vsub.f32 0.0, %v5854_v11  ;;  %v15664_v31 = vsub.f32 0.0, %v5856_v12 }
  0x5a   :  { %15655 = vst [vmem:[#allocation112_spill] sm:$0xff] %v6237_v19  ;;  %15657 = vst [vmem:[#allocation113_spill] sm:$0xff] %v6241_v27  ;;  %v6245_v56 = vmax.f32 %v15658_v8, 0.0  ;;  %v6249_v13 = vmax.f32 %v15660_v25, 0.0  ;;  %v15666_v19 = vsub.f32 0.0, %v5861_v16  ;;  %v15668_v27 = vsub.f32 0.0, %v5863_v17 }
  0x5b   :  { %v6253_v62 = vmax.f32 %v15662_v20, 0.0  ;;  %v6257_v7 = vmax.f32 %v15664_v31, 0.0 }
  0x5c   :  { %15659 = vst [vmem:[#allocation114_spill] sm:$0xff] %v6245_v56  ;;  %15661 = vst [vmem:[#allocation115_spill] sm:$0xff] %v6249_v13  ;;  %v6261_v26 = vmax.f32 %v15666_v19, 0.0  ;;  %v6265_v8 = vmax.f32 %v15668_v27, 0.0  ;;  %v15670_v56 = vsub.f32 0.0, %v5865_v18  ;;  %v15672_v13 = vsub.f32 0.0, %v5870_v22 }
  0x5d   :  { %15663 = vst [vmem:[#allocation116_spill] sm:$0xff] %v6253_v62  ;;  %15665 = vst [vmem:[#allocation117_spill] sm:$0xff] %v6257_v7  ;;  %v15674_v62 = vsub.f32 0.0, %v5872_v23  ;;  %v15676_v7 = vsub.f32 0.0, %v5874_v24 }
  0x5e   :  { %15667 = vst [vmem:[#allocation118_spill] sm:$0xff] %v6261_v26  ;;  %15669 = vst [vmem:[#allocation119_spill] sm:$0xff] %v6265_v8  ;;  %v6269_v25 = vmax.f32 %v15670_v56, 0.0  ;;  %v6273_v20 = vmax.f32 %v15672_v13, 0.0  ;;  %v15678_v26 = vsub.f32 0.0, %v5879_v28  ;;  %v15680_v8 = vsub.f32 0.0, %v5881_v29 }
  0x5f   :  { %v6277_v31 = vmax.f32 %v15674_v62, 0.0  ;;  %v6281_v19 = vmax.f32 %v15676_v7, 0.0 }
  0x60   :  { %15671 = vst [vmem:[#allocation120_spill] sm:$0xff] %v6269_v25  ;;  %15673 = vst [vmem:[#allocation121_spill] sm:$0xff] %v6273_v20  ;;  %v6285_v27 = vmax.f32 %v15678_v26, 0.0  ;;  %v6289_v56 = vmax.f32 %v15680_v8, 0.0  ;;  %v15682_v25 = vsub.f32 0.0, %v5883_v30  ;;  %v15684_v20 = vsub.f32 0.0, %v5888_v34 }
  0x61   :  { %15675 = vst [vmem:[#allocation122_spill] sm:$0xff] %v6277_v31  ;;  %15677 = vst [vmem:[#allocation123_spill] sm:$0xff] %v6281_v19  ;;  %v15686_v31 = vsub.f32 0.0, %v5890_v35  ;;  %v15688_v19 = vsub.f32 0.0, %v5892_v36 }
  0x62   :  { %15679 = vst [vmem:[#allocation124_spill] sm:$0xff] %v6285_v27  ;;  %15681 = vst [vmem:[#allocation125_spill] sm:$0xff] %v6289_v56  ;;  %v6293_v13 = vmax.f32 %v15682_v25, 0.0  ;;  %v6297_v62 = vmax.f32 %v15684_v20, 0.0  ;;  %v15690_v27 = vsub.f32 0.0, %v5897_v40  ;;  %v15692_v56 = vsub.f32 0.0, %v5899_v41 }
  0x63   :  { %v6301_v7 = vmax.f32 %v15686_v31, 0.0  ;;  %v6305_v26 = vmax.f32 %v15688_v19, 0.0 }
  0x64   :  { %15683 = vst [vmem:[#allocation126_spill] sm:$0xff] %v6293_v13  ;;  %15685 = vst [vmem:[#allocation127_spill] sm:$0xff] %v6297_v62  ;;  %v6309_v8 = vmax.f32 %v15690_v27, 0.0  ;;  %v6313_v25 = vmax.f32 %v15692_v56, 0.0  ;;  %v15694_v13 = vsub.f32 0.0, %v5901_v42  ;;  %v15696_v62 = vsub.f32 0.0, %v5906_v46 }
  0x65   :  { %15687 = vst [vmem:[#allocation128_spill] sm:$0xff] %v6301_v7  ;;  %15689 = vst [vmem:[#allocation129_spill] sm:$0xff] %v6305_v26  ;;  %v15698_v7 = vsub.f32 0.0, %v5908_v47  ;;  %v15700_v26 = vsub.f32 0.0, %v5910_v48 }
  0x66   :  { %15691 = vst [vmem:[#allocation130_spill] sm:$0xff] %v6309_v8  ;;  %15693 = vst [vmem:[#allocation131_spill] sm:$0xff] %v6313_v25  ;;  %v6317_v20 = vmax.f32 %v15694_v13, 0.0  ;;  %v6321_v31 = vmax.f32 %v15696_v62, 0.0  ;;  %v15702_v8 = vsub.f32 0.0, %v5915_v52  ;;  %v15704_v25 = vsub.f32 0.0, %v5917_v53 }
  0x67   :  { %v6325_v19 = vmax.f32 %v15698_v7, 0.0  ;;  %v6329_v27 = vmax.f32 %v15700_v26, 0.0 }
  0x68   :  { %15695 = vst [vmem:[#allocation132_spill] sm:$0xff] %v6317_v20  ;;  %15697 = vst [vmem:[#allocation133_spill] sm:$0xff] %v6321_v31  ;;  %v6333_v56 = vmax.f32 %v15702_v8, 0.0  ;;  %v6337_v13 = vmax.f32 %v15704_v25, 0.0  ;;  %v15706_v20 = vsub.f32 0.0, %v5919_v54  ;;  %v15708_v31 = vsub.f32 0.0, %v5924_v58 }
  0x69   :  { %15699 = vst [vmem:[#allocation134_spill] sm:$0xff] %v6325_v19  ;;  %15701 = vst [vmem:[#allocation135_spill] sm:$0xff] %v6329_v27  ;;  %v15710_v19 = vsub.f32 0.0, %v5926_v59  ;;  %v15712_v27 = vsub.f32 0.0, %v5928_v60  ;;  %v16042_v59 = vld [vmem:[#allocation89_spill] sm:$0xff]  ;;  %v16043_v60 = vld [vmem:[#allocation90_spill] sm:$0xff] }
  0x6a   :  { %15703 = vst [vmem:[#allocation136_spill] sm:$0xff] %v6333_v56  ;;  %15705 = vst [vmem:[#allocation137_spill] sm:$0xff] %v6337_v13  ;;  %v6341_v62 = vmax.f32 %v15706_v20, 0.0  ;;  %v6345_v7 = vmax.f32 %v15708_v31, 0.0  ;;  %v15714_v56 = vsub.f32 0.0, %v5933_v51  ;;  %v15716_v13 = vsub.f32 0.0, %v5935_v50 }
  0x6b   :  { %v6349_v26 = vmax.f32 %v15710_v19, 0.0  ;;  %v6353_v8 = vmax.f32 %v15712_v27, 0.0  ;;  %v16044_v51 = vld [vmem:[#allocation91_spill] sm:$0xff]  ;;  %v16045_v50 = vld [vmem:[#allocation92_spill] sm:$0xff] }
  0x6c   :  { %15707 = vst [vmem:[#allocation138_spill] sm:$0xff] %v6341_v62  ;;  %15709 = vst [vmem:[#allocation139_spill] sm:$0xff] %v6345_v7  ;;  %v6357_v25 = vmax.f32 %v15714_v56, 0.0  ;;  %v6361_v20 = vmax.f32 %v15716_v13, 0.0  ;;  %v15718_v62 = vsub.f32 0.0, %v5937_v55  ;;  %v15720_v7 = vsub.f32 0.0, %v5942_v45 }
  0x6d   :  { %15711 = vst [vmem:[#allocation140_spill] sm:$0xff] %v6349_v26  ;;  %15713 = vst [vmem:[#allocation141_spill] sm:$0xff] %v6353_v8  ;;  %v15722_v26 = vsub.f32 0.0, %v5944_v44  ;;  %v15724_v8 = vsub.f32 0.0, %v5946_v61  ;;  %v16037_v44 = vld [vmem:[#allocation84_spill] sm:$0xff]  ;;  %v16038_v61 = vld [vmem:[#allocation85_spill] sm:$0xff] }
  0x6e   :  { %15715 = vst [vmem:[#allocation142_spill] sm:$0xff] %v6357_v25  ;;  %15717 = vst [vmem:[#allocation143_spill] sm:$0xff] %v6361_v20  ;;  %v6365_v31 = vmax.f32 %v15718_v62, 0.0  ;;  %v6369_v19 = vmax.f32 %v15720_v7, 0.0  ;;  %v15726_v25 = vsub.f32 0.0, %v5951_v39  ;;  %v15728_v20 = vsub.f32 0.0, %v5953_v38 }
  0x6f   :  { %v6373_v27 = vmax.f32 %v15722_v26, 0.0  ;;  %v6377_v56 = vmax.f32 %v15724_v8, 0.0  ;;  %v16040_v38 = vld [vmem:[#allocation87_spill] sm:$0xff]  ;;  %v16046_v55 = vld [vmem:[#allocation93_spill] sm:$0xff]  ;;  %v16047_v45 = vld [vmem:[#allocation94_spill] sm:$0xff] }
  0x70   :  { %15719 = vst [vmem:[#allocation144_spill] sm:$0xff] %v6365_v31  ;;  %15721 = vst [vmem:[#allocation145_spill] sm:$0xff] %v6369_v19  ;;  %v6381_v13 = vmax.f32 %v15726_v25, 0.0  ;;  %v6385_v62 = vmax.f32 %v15728_v20, 0.0  ;;  %v15730_v31 = vsub.f32 0.0, %v5955_v57  ;;  %v15732_v19 = vsub.f32 0.0, %v5960_v33 }
  0x71   :  { %15723 = vst [vmem:[#allocation146_spill] sm:$0xff] %v6373_v27  ;;  %15725 = vst [vmem:[#allocation147_spill] sm:$0xff] %v6377_v56  ;;  %v15734_v27 = vsub.f32 0.0, %v5962_v32  ;;  %v15736_v56 = vsub.f32 0.0, %v5964_v63  ;;  %v16048_v39 = vld [vmem:[#allocation97_spill] sm:$0xff] }
  0x72   :  { %15727 = vst [vmem:[#allocation148_spill] sm:$0xff] %v6381_v13  ;;  %15729 = vst [vmem:[#allocation149_spill] sm:$0xff] %v6385_v62  ;;  %v6389_v7 = vmax.f32 %v15730_v31, 0.0  ;;  %v6393_v26 = vmax.f32 %v15732_v19, 0.0  ;;  %v15738_v13 = vld [vmem:[#allocation26_spill] sm:$0xff]  ;;  %v15741_v62 = vld [vmem:[#allocation27_spill] sm:$0xff] }
  0x73   :  { %v6397_v8 = vmax.f32 %v15734_v27, 0.0  ;;  %v6401_v25 = vmax.f32 %v15736_v56, 0.0  ;;  %v15739_v9 = vsub.f32 0.0, %v15738_v13  ;;  %v15742_v57 = vsub.f32 0.0, %v15741_v62 }
  0x74   :  { %15731 = vst [vmem:[#allocation150_spill] sm:$0xff] %v6389_v7  ;;  %15733 = vst [vmem:[#allocation151_spill] sm:$0xff] %v6393_v26  ;;  %v15744_v7 = vld [vmem:[#allocation28_spill] sm:$0xff]  ;;  %v15747_v26 = vld [vmem:[#allocation29_spill] sm:$0xff] }
  0x75   :  { %15735 = vst [vmem:[#allocation152_spill] sm:$0xff] %v6397_v8  ;;  %15737 = vst [vmem:[#allocation153_spill] sm:$0xff] %v6401_v25  ;;  %v6405_v20 = vmax.f32 %v15739_v9, 0.0  ;;  %v6409_v31 = vmax.f32 %v15742_v57, 0.0  ;;  %v15745_v33 = vsub.f32 0.0, %v15744_v7  ;;  %v15748_v32 = vsub.f32 0.0, %v15747_v26 }
  0x76   :  { %v15750_v8 = vld [vmem:[#allocation30_spill] sm:$0xff]  ;;  %v15753_v25 = vld [vmem:[#allocation31_spill] sm:$0xff] }
  0x77   :  { %15740 = vst [vmem:[#allocation154_spill] sm:$0xff] %v6405_v20  ;;  %15743 = vst [vmem:[#allocation155_spill] sm:$0xff] %v6409_v31  ;;  %v6413_v19 = vmax.f32 %v15745_v33, 0.0  ;;  %v6417_v27 = vmax.f32 %v15748_v32, 0.0  ;;  %v15751_v63 = vsub.f32 0.0, %v15750_v8  ;;  %v15754_v13 = vsub.f32 0.0, %v15753_v25 }
  0x78   :  { %v15756_v20 = vld [vmem:[#allocation32_spill] sm:$0xff]  ;;  %v15759_v31 = vld [vmem:[#allocation33_spill] sm:$0xff] }
  0x79   :  { %15746 = vst [vmem:[#allocation156_spill] sm:$0xff] %v6413_v19  ;;  %15749 = vst [vmem:[#allocation157_spill] sm:$0xff] %v6417_v27  ;;  %v6421_v56 = vmax.f32 %v15751_v63, 0.0  ;;  %v6425_v9 = vmax.f32 %v15754_v13, 0.0  ;;  %v15757_v62 = vsub.f32 0.0, %v15756_v20  ;;  %v15760_v7 = vsub.f32 0.0, %v15759_v31 }
  0x7a   :  { %v15762_v19 = vld [vmem:[#allocation34_spill] sm:$0xff]  ;;  %v15765_v27 = vld [vmem:[#allocation35_spill] sm:$0xff] }
  0x7b   :  { %15752 = vst [vmem:[#allocation158_spill] sm:$0xff] %v6421_v56  ;;  %15755 = vst [vmem:[#allocation159_spill] sm:$0xff] %v6425_v9  ;;  %v6429_v57 = vmax.f32 %v15757_v62, 0.0  ;;  %v6433_v33 = vmax.f32 %v15760_v7, 0.0  ;;  %v15763_v26 = vsub.f32 0.0, %v15762_v19  ;;  %v15766_v8 = vsub.f32 0.0, %v15765_v27 }
  0x7c   :  { %v15768_v56 = vld [vmem:[#allocation36_spill] sm:$0xff]  ;;  %v15771_v9 = vld [vmem:[#allocation37_spill] sm:$0xff] }
  0x7d   :  { %15758 = vst [vmem:[#allocation160_spill] sm:$0xff] %v6429_v57  ;;  %15761 = vst [vmem:[#allocation161_spill] sm:$0xff] %v6433_v33  ;;  %v6437_v32 = vmax.f32 %v15763_v26, 0.0  ;;  %v6441_v63 = vmax.f32 %v15766_v8, 0.0  ;;  %v15769_v25 = vsub.f32 0.0, %v15768_v56  ;;  %v15772_v20 = vsub.f32 0.0, %v15771_v9 }
  0x7e   :  { %v15774_v57 = vld [vmem:[#allocation38_spill] sm:$0xff]  ;;  %v15777_v33 = vld [vmem:[#allocation39_spill] sm:$0xff] }
  0x7f   :  { %15764 = vst [vmem:[#allocation162_spill] sm:$0xff] %v6437_v32  ;;  %15767 = vst [vmem:[#allocation163_spill] sm:$0xff] %v6441_v63  ;;  %v6445_v13 = vmax.f32 %v15769_v25, 0.0  ;;  %v6449_v62 = vmax.f32 %v15772_v20, 0.0  ;;  %v15775_v31 = vsub.f32 0.0, %v15774_v57  ;;  %v15778_v19 = vsub.f32 0.0, %v15777_v33 }
  0x80   :  { %v15780_v32 = vld [vmem:[#allocation40_spill] sm:$0xff]  ;;  %v15783_v63 = vld [vmem:[#allocation41_spill] sm:$0xff] }
  0x81   :  { %15770 = vst [vmem:[#allocation164_spill] sm:$0xff] %v6445_v13  ;;  %15773 = vst [vmem:[#allocation165_spill] sm:$0xff] %v6449_v62  ;;  %v6453_v7 = vmax.f32 %v15775_v31, 0.0  ;;  %v6457_v26 = vmax.f32 %v15778_v19, 0.0  ;;  %v15781_v27 = vsub.f32 0.0, %v15780_v32  ;;  %v15784_v56 = vsub.f32 0.0, %v15783_v63 }
  0x82   :  { %v15786_v13 = vld [vmem:[#allocation42_spill] sm:$0xff]  ;;  %v15789_v62 = vld [vmem:[#allocation43_spill] sm:$0xff] }
  0x83   :  { %15776 = vst [vmem:[#allocation166_spill] sm:$0xff] %v6453_v7  ;;  %15779 = vst [vmem:[#allocation167_spill] sm:$0xff] %v6457_v26  ;;  %v6461_v8 = vmax.f32 %v15781_v27, 0.0  ;;  %v6465_v25 = vmax.f32 %v15784_v56, 0.0  ;;  %v15787_v9 = vsub.f32 0.0, %v15786_v13  ;;  %v15790_v57 = vsub.f32 0.0, %v15789_v62 }
  0x84   :  { %v15792_v7 = vld [vmem:[#allocation44_spill] sm:$0xff]  ;;  %v15795_v26 = vld [vmem:[#allocation45_spill] sm:$0xff] }
  0x85   :  { %15782 = vst [vmem:[#allocation168_spill] sm:$0xff] %v6461_v8  ;;  %15785 = vst [vmem:[#allocation169_spill] sm:$0xff] %v6465_v25  ;;  %v6469_v20 = vmax.f32 %v15787_v9, 0.0  ;;  %v6473_v31 = vmax.f32 %v15790_v57, 0.0  ;;  %v15793_v33 = vsub.f32 0.0, %v15792_v7  ;;  %v15796_v32 = vsub.f32 0.0, %v15795_v26 }
  0x86   :  { %v15798_v8 = vld [vmem:[#allocation46_spill] sm:$0xff]  ;;  %v15801_v25 = vld [vmem:[#allocation47_spill] sm:$0xff] }
  0x87   :  { %15788 = vst [vmem:[#allocation170_spill] sm:$0xff] %v6469_v20  ;;  %15791 = vst [vmem:[#allocation171_spill] sm:$0xff] %v6473_v31  ;;  %v6477_v19 = vmax.f32 %v15793_v33, 0.0  ;;  %v6481_v27 = vmax.f32 %v15796_v32, 0.0  ;;  %v15799_v63 = vsub.f32 0.0, %v15798_v8  ;;  %v15802_v13 = vsub.f32 0.0, %v15801_v25 }
  0x88   :  { %v15804_v20 = vld [vmem:[#allocation48_spill] sm:$0xff]  ;;  %v15807_v31 = vld [vmem:[#allocation49_spill] sm:$0xff] }
  0x89   :  { %15794 = vst [vmem:[#allocation172_spill] sm:$0xff] %v6477_v19  ;;  %15797 = vst [vmem:[#allocation173_spill] sm:$0xff] %v6481_v27  ;;  %v6485_v56 = vmax.f32 %v15799_v63, 0.0  ;;  %v6489_v9 = vmax.f32 %v15802_v13, 0.0  ;;  %v15805_v62 = vsub.f32 0.0, %v15804_v20  ;;  %v15808_v7 = vsub.f32 0.0, %v15807_v31 }
  0x8a   :  { %v15810_v19 = vld [vmem:[#allocation50_spill] sm:$0xff]  ;;  %v15813_v27 = vld [vmem:[#allocation51_spill] sm:$0xff] }
  0x8b   :  { %15800 = vst [vmem:[#allocation174_spill] sm:$0xff] %v6485_v56  ;;  %15803 = vst [vmem:[#allocation175_spill] sm:$0xff] %v6489_v9  ;;  %v6493_v57 = vmax.f32 %v15805_v62, 0.0  ;;  %v6497_v33 = vmax.f32 %v15808_v7, 0.0  ;;  %v15811_v26 = vsub.f32 0.0, %v15810_v19  ;;  %v15814_v8 = vsub.f32 0.0, %v15813_v27 }
  0x8c   :  { %v15816_v56 = vld [vmem:[#allocation52_spill] sm:$0xff]  ;;  %v15819_v9 = vld [vmem:[#allocation53_spill] sm:$0xff] }
  0x8d   :  { %15806 = vst [vmem:[#allocation176_spill] sm:$0xff] %v6493_v57  ;;  %15809 = vst [vmem:[#allocation177_spill] sm:$0xff] %v6497_v33  ;;  %v6501_v32 = vmax.f32 %v15811_v26, 0.0  ;;  %v6505_v63 = vmax.f32 %v15814_v8, 0.0  ;;  %v15817_v25 = vsub.f32 0.0, %v15816_v56  ;;  %v15820_v20 = vsub.f32 0.0, %v15819_v9 }
  0x8e   :  { %v15822_v57 = vld [vmem:[#allocation54_spill] sm:$0xff]  ;;  %v15825_v33 = vld [vmem:[#allocation55_spill] sm:$0xff] }
  0x8f   :  { %15812 = vst [vmem:[#allocation178_spill] sm:$0xff] %v6501_v32  ;;  %15815 = vst [vmem:[#allocation179_spill] sm:$0xff] %v6505_v63  ;;  %v6509_v13 = vmax.f32 %v15817_v25, 0.0  ;;  %v6513_v62 = vmax.f32 %v15820_v20, 0.0  ;;  %v15823_v31 = vsub.f32 0.0, %v15822_v57  ;;  %v15826_v19 = vsub.f32 0.0, %v15825_v33 }
  0x90   :  { %v15828_v32 = vld [vmem:[#allocation56_spill] sm:$0xff]  ;;  %v15831_v63 = vld [vmem:[#allocation57_spill] sm:$0xff] }
  0x91   :  { %15818 = vst [vmem:[#allocation180_spill] sm:$0xff] %v6509_v13  ;;  %15821 = vst [vmem:[#allocation181_spill] sm:$0xff] %v6513_v62  ;;  %v6517_v7 = vmax.f32 %v15823_v31, 0.0  ;;  %v6521_v26 = vmax.f32 %v15826_v19, 0.0  ;;  %v15829_v27 = vsub.f32 0.0, %v15828_v32  ;;  %v15832_v56 = vsub.f32 0.0, %v15831_v63 }
  0x92   :  { %v15834_v13 = vld [vmem:[#allocation58_spill] sm:$0xff]  ;;  %v15837_v62 = vld [vmem:[#allocation59_spill] sm:$0xff] }
  0x93   :  { %15824 = vst [vmem:[#allocation182_spill] sm:$0xff] %v6517_v7  ;;  %15827 = vst [vmem:[#allocation183_spill] sm:$0xff] %v6521_v26  ;;  %v6525_v8 = vmax.f32 %v15829_v27, 0.0  ;;  %v6529_v25 = vmax.f32 %v15832_v56, 0.0  ;;  %v15835_v9 = vsub.f32 0.0, %v15834_v13  ;;  %v15838_v57 = vsub.f32 0.0, %v15837_v62 }
  0x94   :  { %v15840_v7 = vld [vmem:[#allocation60_spill] sm:$0xff]  ;;  %v15843_v26 = vld [vmem:[#allocation61_spill] sm:$0xff] }
  0x95   :  { %15830 = vst [vmem:[#allocation184_spill] sm:$0xff] %v6525_v8  ;;  %15833 = vst [vmem:[#allocation185_spill] sm:$0xff] %v6529_v25  ;;  %v6533_v20 = vmax.f32 %v15835_v9, 0.0  ;;  %v6537_v31 = vmax.f32 %v15838_v57, 0.0  ;;  %v15841_v33 = vsub.f32 0.0, %v15840_v7  ;;  %v15844_v32 = vsub.f32 0.0, %v15843_v26 }
  0x96   :  { %v15846_v8 = vld [vmem:[#allocation62_spill] sm:$0xff]  ;;  %v15849_v25 = vld [vmem:[#allocation63_spill] sm:$0xff] }
  0x97   :  { %15836 = vst [vmem:[#allocation186_spill] sm:$0xff] %v6533_v20  ;;  %15839 = vst [vmem:[#allocation187_spill] sm:$0xff] %v6537_v31  ;;  %v6541_v19 = vmax.f32 %v15841_v33, 0.0  ;;  %v6545_v27 = vmax.f32 %v15844_v32, 0.0  ;;  %v15847_v63 = vsub.f32 0.0, %v15846_v8  ;;  %v15850_v13 = vsub.f32 0.0, %v15849_v25 }
  0x98   :  { %v15852_v20 = vld [vmem:[#allocation64_spill] sm:$0xff]  ;;  %v15855_v31 = vld [vmem:[#allocation65_spill] sm:$0xff] }
  0x99   :  { %15842 = vst [vmem:[#allocation188_spill] sm:$0xff] %v6541_v19  ;;  %15845 = vst [vmem:[#allocation189_spill] sm:$0xff] %v6545_v27  ;;  %v6549_v56 = vmax.f32 %v15847_v63, 0.0  ;;  %v6553_v9 = vmax.f32 %v15850_v13, 0.0  ;;  %v15853_v62 = vsub.f32 0.0, %v15852_v20  ;;  %v15856_v7 = vsub.f32 0.0, %v15855_v31 }
  0x9a   :  { %v15858_v19 = vld [vmem:[#allocation66_spill] sm:$0xff]  ;;  %v15861_v27 = vld [vmem:[#allocation67_spill] sm:$0xff] }
  0x9b   :  { %15848 = vst [vmem:[#allocation190_spill] sm:$0xff] %v6549_v56  ;;  %15851 = vst [vmem:[#allocation191_spill] sm:$0xff] %v6553_v9  ;;  %v6557_v57 = vmax.f32 %v15853_v62, 0.0  ;;  %v6561_v33 = vmax.f32 %v15856_v7, 0.0  ;;  %v15859_v26 = vsub.f32 0.0, %v15858_v19  ;;  %v15862_v8 = vsub.f32 0.0, %v15861_v27 }
  0x9c   :  { %v15864_v56 = vld [vmem:[#allocation68_spill] sm:$0xff]  ;;  %v15867_v9 = vld [vmem:[#allocation69_spill] sm:$0xff] }
  0x9d   :  { %15854 = vst [vmem:[#allocation192_spill] sm:$0xff] %v6557_v57  ;;  %15857 = vst [vmem:[#allocation193_spill] sm:$0xff] %v6561_v33  ;;  %v6565_v32 = vmax.f32 %v15859_v26, 0.0  ;;  %v6569_v63 = vmax.f32 %v15862_v8, 0.0  ;;  %v15865_v25 = vsub.f32 0.0, %v15864_v56  ;;  %v15868_v20 = vsub.f32 0.0, %v15867_v9 }
  0x9e   :  { %v15870_v57 = vld [vmem:[#allocation70_spill] sm:$0xff]  ;;  %v15873_v33 = vld [vmem:[#allocation71_spill] sm:$0xff] }
  0x9f   :  { %15860 = vst [vmem:[#allocation194_spill] sm:$0xff] %v6565_v32  ;;  %15863 = vst [vmem:[#allocation195_spill] sm:$0xff] %v6569_v63  ;;  %v6573_v13 = vmax.f32 %v15865_v25, 0.0  ;;  %v6577_v62 = vmax.f32 %v15868_v20, 0.0  ;;  %v15871_v31 = vsub.f32 0.0, %v15870_v57  ;;  %v15874_v19 = vsub.f32 0.0, %v15873_v33 }
  0xa0   :  { %v15876_v32 = vld [vmem:[#allocation72_spill] sm:$0xff]  ;;  %v15879_v63 = vld [vmem:[#allocation73_spill] sm:$0xff] }
  0xa1   :  { %15866 = vst [vmem:[#allocation196_spill] sm:$0xff] %v6573_v13  ;;  %15869 = vst [vmem:[#allocation197_spill] sm:$0xff] %v6577_v62  ;;  %v6581_v7 = vmax.f32 %v15871_v31, 0.0  ;;  %v6585_v26 = vmax.f32 %v15874_v19, 0.0  ;;  %v15877_v27 = vsub.f32 0.0, %v15876_v32  ;;  %v15880_v56 = vsub.f32 0.0, %v15879_v63 }
  0xa2   :  { %v15882_v13 = vld [vmem:[#allocation74_spill] sm:$0xff]  ;;  %v15885_v62 = vld [vmem:[#allocation75_spill] sm:$0xff] }
  0xa3   :  { %15872 = vst [vmem:[#allocation198_spill] sm:$0xff] %v6581_v7  ;;  %15875 = vst [vmem:[#allocation199_spill] sm:$0xff] %v6585_v26  ;;  %v6589_v8 = vmax.f32 %v15877_v27, 0.0  ;;  %v6593_v25 = vmax.f32 %v15880_v56, 0.0  ;;  %v15883_v9 = vsub.f32 0.0, %v15882_v13  ;;  %v15886_v57 = vsub.f32 0.0, %v15885_v62 }
  0xa4   :  { %v15888_v7 = vld [vmem:[#allocation76_spill] sm:$0xff]  ;;  %v15891_v26 = vld [vmem:[#allocation77_spill] sm:$0xff] }
  0xa5   :  { %15878 = vst [vmem:[#allocation200_spill] sm:$0xff] %v6589_v8  ;;  %15881 = vst [vmem:[#allocation201_spill] sm:$0xff] %v6593_v25  ;;  %v6597_v20 = vmax.f32 %v15883_v9, 0.0  ;;  %v6601_v31 = vmax.f32 %v15886_v57, 0.0  ;;  %v15889_v33 = vsub.f32 0.0, %v15888_v7  ;;  %v15892_v32 = vsub.f32 0.0, %v15891_v26 }
  0xa6   :  { %v15894_v8 = vld [vmem:[#allocation78_spill] sm:$0xff]  ;;  %v15897_v25 = vld [vmem:[#allocation79_spill] sm:$0xff] }
  0xa7   :  { %15884 = vst [vmem:[#allocation202_spill] sm:$0xff] %v6597_v20  ;;  %15887 = vst [vmem:[#allocation203_spill] sm:$0xff] %v6601_v31  ;;  %v6605_v19 = vmax.f32 %v15889_v33, 0.0  ;;  %v6609_v27 = vmax.f32 %v15892_v32, 0.0  ;;  %v15895_v63 = vsub.f32 0.0, %v15894_v8  ;;  %v15898_v13 = vsub.f32 0.0, %v15897_v25 }
  0xa8   :  { %v15900_v20 = vld [vmem:[#allocation80_spill] sm:$0xff]  ;;  %v15903_v31 = vld [vmem:[#allocation81_spill] sm:$0xff] }
  0xa9   :  { %15890 = vst [vmem:[#allocation204_spill] sm:$0xff] %v6605_v19  ;;  %15893 = vst [vmem:[#allocation205_spill] sm:$0xff] %v6609_v27  ;;  %v6613_v56 = vmax.f32 %v15895_v63, 0.0  ;;  %v6617_v9 = vmax.f32 %v15898_v13, 0.0  ;;  %v15901_v62 = vsub.f32 0.0, %v15900_v20  ;;  %v15904_v7 = vsub.f32 0.0, %v15903_v31 }
  0xaa   :  { %v15906_v19 = vld [vmem:[#allocation82_spill] sm:$0xff]  ;;  %v15909_v27 = vld [vmem:[#allocation83_spill] sm:$0xff] }
  0xab   :  { %15896 = vst [vmem:[#allocation206_spill] sm:$0xff] %v6613_v56  ;;  %15899 = vst [vmem:[#allocation207_spill] sm:$0xff] %v6617_v9  ;;  %v6621_v57 = vmax.f32 %v15901_v62, 0.0  ;;  %v6625_v33 = vmax.f32 %v15904_v7, 0.0  ;;  %v15907_v26 = vsub.f32 0.0, %v15906_v19  ;;  %v15910_v8 = vsub.f32 0.0, %v15909_v27 }
  0xac   :  { %v15912_v56 = vld [vmem:[#allocation84_spill] sm:$0xff]  ;;  %v15915_v9 = vld [vmem:[#allocation85_spill] sm:$0xff] }
  0xad   :  { %15902 = vst [vmem:[#allocation208_spill] sm:$0xff] %v6621_v57  ;;  %15905 = vst [vmem:[#allocation209_spill] sm:$0xff] %v6625_v33  ;;  %v6629_v32 = vmax.f32 %v15907_v26, 0.0  ;;  %v6633_v63 = vmax.f32 %v15910_v8, 0.0  ;;  %v15913_v25 = vsub.f32 0.0, %v15912_v56  ;;  %v15916_v20 = vsub.f32 0.0, %v15915_v9 }
  0xae   :  { %v15918_v57 = vld [vmem:[#allocation86_spill] sm:$0xff]  ;;  %v15921_v33 = vld [vmem:[#allocation87_spill] sm:$0xff] }
  0xaf   :  { %15908 = vst [vmem:[#allocation210_spill] sm:$0xff] %v6629_v32  ;;  %15911 = vst [vmem:[#allocation211_spill] sm:$0xff] %v6633_v63  ;;  %v6637_v13 = vmax.f32 %v15913_v25, 0.0  ;;  %v6641_v62 = vmax.f32 %v15916_v20, 0.0  ;;  %v15919_v31 = vsub.f32 0.0, %v15918_v57  ;;  %v15922_v19 = vsub.f32 0.0, %v15921_v33 }
  0xb0   :  { %v15924_v32 = vld [vmem:[#allocation88_spill] sm:$0xff]  ;;  %v15927_v63 = vld [vmem:[#allocation89_spill] sm:$0xff] }
  0xb1   :  { %15914 = vst [vmem:[#allocation212_spill] sm:$0xff] %v6637_v13  ;;  %15917 = vst [vmem:[#allocation213_spill] sm:$0xff] %v6641_v62  ;;  %v6645_v7 = vmax.f32 %v15919_v31, 0.0  ;;  %v6649_v26 = vmax.f32 %v15922_v19, 0.0  ;;  %v15925_v27 = vsub.f32 0.0, %v15924_v32  ;;  %v15928_v56 = vsub.f32 0.0, %v15927_v63 }
  0xb2   :  { %v15930_v13 = vld [vmem:[#allocation90_spill] sm:$0xff]  ;;  %v15933_v62 = vld [vmem:[#allocation91_spill] sm:$0xff] }
  0xb3   :  { %15920 = vst [vmem:[#allocation214_spill] sm:$0xff] %v6645_v7  ;;  %15923 = vst [vmem:[#allocation215_spill] sm:$0xff] %v6649_v26  ;;  %v6653_v8 = vmax.f32 %v15925_v27, 0.0  ;;  %v6657_v25 = vmax.f32 %v15928_v56, 0.0  ;;  %v15931_v9 = vsub.f32 0.0, %v15930_v13  ;;  %v15934_v57 = vsub.f32 0.0, %v15933_v62 }
  0xb4   :  { %v15936_v7 = vld [vmem:[#allocation92_spill] sm:$0xff]  ;;  %v15939_v26 = vld [vmem:[#allocation93_spill] sm:$0xff] }
  0xb5   :  { %15926 = vst [vmem:[#allocation216_spill] sm:$0xff] %v6653_v8  ;;  %15929 = vst [vmem:[#allocation217_spill] sm:$0xff] %v6657_v25  ;;  %v6661_v20 = vmax.f32 %v15931_v9, 0.0  ;;  %v6665_v31 = vmax.f32 %v15934_v57, 0.0  ;;  %v15937_v33 = vsub.f32 0.0, %v15936_v7  ;;  %v15940_v32 = vsub.f32 0.0, %v15939_v26 }
  0xb6   :  { %v15942_v8 = vld [vmem:[#allocation94_spill] sm:$0xff]  ;;  %v15945_v25 = vld [vmem:[#allocation95_spill] sm:$0xff] }
  0xb7   :  { %15932 = vst [vmem:[#allocation218_spill] sm:$0xff] %v6661_v20  ;;  %15935 = vst [vmem:[#allocation219_spill] sm:$0xff] %v6665_v31  ;;  %v6669_v19 = vmax.f32 %v15937_v33, 0.0  ;;  %v6673_v27 = vmax.f32 %v15940_v32, 0.0  ;;  %v15943_v63 = vsub.f32 0.0, %v15942_v8  ;;  %v15946_v13 = vsub.f32 0.0, %v15945_v25 }
  0xb8   :  { %v15948_v20 = vld [vmem:[#allocation96_spill] sm:$0xff]  ;;  %v15951_v31 = vld [vmem:[#allocation97_spill] sm:$0xff]  ;;  %v16049_v25 = vld [vmem:[#allocation107_spill] sm:$0xff] }
  0xb9   :  { %15938 = vst [vmem:[#allocation220_spill] sm:$0xff] %v6669_v19  ;;  %15941 = vst [vmem:[#allocation221_spill] sm:$0xff] %v6673_v27  ;;  %v6677_v56 = vmax.f32 %v15943_v63, 0.0  ;;  %v6681_v9 = vmax.f32 %v15946_v13, 0.0  ;;  %v15949_v62 = vsub.f32 0.0, %v15948_v20  ;;  %v15952_v7 = vsub.f32 0.0, %v15951_v31 }
  0xba   :  { %v15954_v19 = vld [vmem:[#allocation98_spill] sm:$0xff]  ;;  %v15957_v27 = vld [vmem:[#allocation99_spill] sm:$0xff] }
  0xbb   :  { %15944 = vst [vmem:[#allocation222_spill] sm:$0xff] %v6677_v56  ;;  %15947 = vst [vmem:[#allocation223_spill] sm:$0xff] %v6681_v9  ;;  %v6685_v57 = vmax.f32 %v15949_v62, 0.0  ;;  %v6689_v33 = vmax.f32 %v15952_v7, 0.0  ;;  %v15955_v26 = vsub.f32 0.0, %v15954_v19  ;;  %v15958_v8 = vsub.f32 0.0, %v15957_v27 }
  0xbc   :  { %v15960_v56 = vsub.f32 0.0, %v6189_v49  ;;  %v15962_v9 = vsub.f32 0.0, %v6194_v21  ;;  %v16102_v21 = vld [vmem:[#allocation19_spill] sm:$0xff]  ;;  %v16105_v49 = vld [vmem:[#allocation20_spill] sm:$0xff] }
  0xbd   :  { %15950 = vst [vmem:[#allocation224_spill] sm:$0xff] %v6685_v57  ;;  %15953 = vst [vmem:[#allocation225_spill] sm:$0xff] %v6689_v33  ;;  %v6693_v32 = vmax.f32 %v15955_v26, 0.0  ;;  %v6697_v63 = vmax.f32 %v15958_v8, 0.0  ;;  %v15964_v57 = vld [vmem:[#allocation102_spill] sm:$0xff]  ;;  %v15967_v33 = vsub.f32 0.0, %v6198_v43 }
  0xbe   :  { %v6701_v13 = vmax.f32 %v15960_v56, 0.0  ;;  %v6705_v62 = vmax.f32 %v15962_v9, 0.0  ;;  %v15965_v31 = vsub.f32 0.0, %v15964_v57  ;;  %v16099_v57 = vld [vmem:[#allocation18_spill] sm:$0xff] }
  0xbf   :  { %15956 = vst [vmem:[#allocation98_spill] sm:$0xff] %v6693_v32  ;;  %15959 = vst [vmem:[#allocation226_spill] sm:$0xff] %v6697_v63  ;;  %v6713_v26 = vmax.f32 %v15967_v33, 0.0  ;;  %v15969_v32 = vsub.f32 0.0, %v6203_v15  ;;  %v15971_v63 = vsub.f32 0.0, %v6205_v14  ;;  %v16096_v15 = vld [vmem:[#allocation17_spill] sm:$0xff] }
  0xc0   :  { %15961 = vst [vmem:[#allocation227_spill] sm:$0xff] %v6701_v13  ;;  %15963 = vst [vmem:[#allocation228_spill] sm:$0xff] %v6705_v62  ;;  %v6709_v7 = vmax.f32 %v15965_v31, 0.0  ;;  %v15973_v13 = vsub.f32 0.0, %v6207_v37  ;;  %v16052_v62 = vand.u32 2147483647, %v5835_v0 }
  0xc1   :  { %15968 = vst [vmem:[#allocation230_spill] sm:$0xff] %v6713_v26  ;;  %v6717_v8 = vmax.f32 %v15969_v32, 0.0  ;;  %v6721_v56 = vmax.f32 %v15971_v63, 0.0  ;;  %v16053_v31 = vand.u32 2147483647, %v5837_v1  ;;  %v16093_v37 = vld [vmem:[#allocation16_spill] sm:$0xff] }
  0xc2   :  { %15966 = vst [vmem:[#allocation229_spill] sm:$0xff] %v6709_v7  ;;  %v6725_v9 = vmax.f32 %v15973_v13, 0.0  ;;  %v832_v63 = vsub.f32 0.0, %v16052_v62  ;;  %v16054_v33 = vand.u32 2147483647, %v5839_v2 }
  0xc3   :  { %15970 = vst [vmem:[#allocation231_spill] sm:$0xff] %v6717_v8  ;;  %15972 = vst [vmem:[#allocation232_spill] sm:$0xff] %v6721_v56  ;;  %v16050_v8 = vsub.f32 0.0, %v16049_v25  ;;  %v833_v7 = vsub.f32 0.0, %v16053_v31  ;;  %v16055_v26 = vand.u32 2147483647, %v5841_v3 }
  0xc4   :  { %15974 = vst [vmem:[#allocation233_spill] sm:$0xff] %v6725_v9  ;;  %v16041_v9 = vld [vmem:[#allocation88_spill] sm:$0xff]  ;;  %v834_v43 = vsub.f32 0.0, %v16054_v33  ;;  %v16056_v14 = vand.u32 2147483647, %v5843_v4 }
  0xc5   :  { %v6855_v20 = vmax.f32 %v16050_v8, 0.0  ;;  %v835_v32 = vsub.f32 0.0, %v16055_v26  ;;  %v16058_v13 = vand.u32 2147483647, %v5847_v6  ;;  %v16059_v0 = vand.u32 2147483647, %v5852_v10 }
  0xc6   :  { %v836_v8 = vsub.f32 0.0, %v16056_v14  ;;  %v16060_v2 = vand.u32 2147483647, %v5854_v11  ;;  %v16061_v3 = vand.u32 2147483647, %v5856_v12 }
  0xc7   :  { %16051 = vst [vmem:[#allocation84_spill] sm:$0xff] %v6855_v20  ;;  %v16057_v20 = vand.u32 2147483647, %v5845_v5  ;;  %v6873_v25 = vsub.f32 0.0, %v16058_v13  ;;  %v6877_v1 = vsub.f32 0.0, %v16059_v0 }
  0xc8   :  { %v6881_v62 = vsub.f32 0.0, %v16060_v2  ;;  %v6885_v26 = vsub.f32 0.0, %v16061_v3  ;;  %v16062_v4 = vand.u32 2147483647, %v5861_v16  ;;  %v16063_v6 = vand.u32 2147483647, %v5863_v17 }
  0xc9   :  { %v837_v56 = vsub.f32 0.0, %v16057_v20  ;;  %v16064_v10 = vand.u32 2147483647, %v5865_v18  ;;  %v16065_v11 = vand.u32 2147483647, %v5870_v22 }
  0xca   :  { %v6889_v5 = vsub.f32 0.0, %v16062_v4  ;;  %v6893_v14 = vsub.f32 0.0, %v16063_v6  ;;  %v16066_v12 = vand.u32 2147483647, %v5872_v23  ;;  %v16067_v16 = vand.u32 2147483647, %v5874_v24 }
  0xcb   :  { %v6897_v20 = vsub.f32 0.0, %v16064_v10  ;;  %v6901_v31 = vsub.f32 0.0, %v16065_v11  ;;  %v16068_v17 = vand.u32 2147483647, %v5879_v28  ;;  %v16069_v18 = vand.u32 2147483647, %v5881_v29 }
  0xcc   :  { %v6905_v33 = vsub.f32 0.0, %v16066_v12  ;;  %v6909_v13 = vsub.f32 0.0, %v16067_v16  ;;  %v16070_v22 = vand.u32 2147483647, %v5883_v30  ;;  %v16071_v23 = vand.u32 2147483647, %v5888_v34 }
  0xcd   :  { %v6913_v0 = vsub.f32 0.0, %v16068_v17  ;;  %v6917_v2 = vsub.f32 0.0, %v16069_v18  ;;  %v16072_v24 = vand.u32 2147483647, %v5890_v35  ;;  %v16073_v28 = vand.u32 2147483647, %v5892_v36 }
  0xce   :  { %v6921_v3 = vsub.f32 0.0, %v16070_v22  ;;  %v6925_v4 = vsub.f32 0.0, %v16071_v23  ;;  %v16074_v29 = vand.u32 2147483647, %v5897_v40  ;;  %v16075_v30 = vand.u32 2147483647, %v5899_v41 }
  0xcf   :  { %v6929_v6 = vsub.f32 0.0, %v16072_v24  ;;  %v6933_v10 = vsub.f32 0.0, %v16073_v28  ;;  %v16076_v34 = vand.u32 2147483647, %v5901_v42  ;;  %v16077_v35 = vand.u32 2147483647, %v5906_v46 }
  0xd0   :  { %v6937_v11 = vsub.f32 0.0, %v16074_v29  ;;  %v6941_v12 = vsub.f32 0.0, %v16075_v30  ;;  %v16078_v36 = vand.u32 2147483647, %v5908_v47  ;;  %v16079_v40 = vand.u32 2147483647, %v5910_v48 }
  0xd1   :  { %v6945_v16 = vsub.f32 0.0, %v16076_v34  ;;  %v6949_v17 = vsub.f32 0.0, %v16077_v35  ;;  %v16080_v41 = vand.u32 2147483647, %v5915_v52  ;;  %v16081_v42 = vand.u32 2147483647, %v5917_v53 }
  0xd2   :  { %v6953_v18 = vsub.f32 0.0, %v16078_v36  ;;  %v6957_v22 = vsub.f32 0.0, %v16079_v40  ;;  %v16082_v46 = vand.u32 2147483647, %v5919_v54  ;;  %v16083_v47 = vand.u32 2147483647, %v5924_v58 }
  0xd3   :  { %v6961_v23 = vsub.f32 0.0, %v16080_v41  ;;  %v6965_v24 = vsub.f32 0.0, %v16081_v42  ;;  %v16084_v30 = vld [vmem:[#allocation12_spill] sm:$0xff]  ;;  %v16086_v35 = vld [vmem:[#allocation13_spill] sm:$0xff]  ;;  %v16088_v40 = vld [vmem:[#allocation14_spill] sm:$0xff] }
  0xd4   :  { %v6969_v28 = vsub.f32 0.0, %v16082_v46  ;;  %v6973_v29 = vsub.f32 0.0, %v16083_v47  ;;  %v16085_v48 = vand.u32 2147483647, %v16084_v30  ;;  %v16087_v52 = vand.u32 2147483647, %v16086_v35 }
  0xd5   :  { %v16089_v53 = vand.u32 2147483647, %v16088_v40  ;;  %v16090_v42 = vld [vmem:[#allocation15_spill] sm:$0xff]  ;;  %v16094_v58 = vand.u32 2147483647, %v16093_v37 }
  0xd6   :  { %v6977_v34 = vsub.f32 0.0, %v16085_v48  ;;  %v6981_v36 = vsub.f32 0.0, %v16087_v52  ;;  %v16091_v54 = vand.u32 2147483647, %v16090_v42  ;;  %v16097_v30 = vand.u32 2147483647, %v16096_v15 }
  0xd7   :  { %v6985_v41 = vsub.f32 0.0, %v16089_v53  ;;  %v6993_v47 = vsub.f32 0.0, %v16094_v58  ;;  %v16100_v35 = vand.u32 2147483647, %v16099_v57  ;;  %v16103_v40 = vand.u32 2147483647, %v16102_v21 }
  0xd8   :  { %v6989_v46 = vsub.f32 0.0, %v16091_v54  ;;  %v6997_v48 = vsub.f32 0.0, %v16097_v30  ;;  %v16106_v42 = vand.u32 2147483647, %v16105_v49 }
  0xd9   :  { %16095 = vst [vmem:[#allocation87_spill] sm:$0xff] %v6993_v47  ;;  %v7001_v52 = vsub.f32 0.0, %v16100_v35  ;;  %v7005_v53 = vsub.f32 0.0, %v16103_v40  ;;  %v16111_v47 = vld [vmem:[#allocation22_spill] sm:$0xff] }
  0xda   :  { %16092 = vst [vmem:[#allocation85_spill] sm:$0xff] %v6989_v46  ;;  %16098 = vst [vmem:[#allocation88_spill] sm:$0xff] %v6997_v48  ;;  %v7009_v54 = vsub.f32 0.0, %v16106_v42  ;;  %v16108_v46 = vld [vmem:[#allocation21_spill] sm:$0xff]  ;;  %v16112_v15 = vand.u32 2147483647, %v16111_v47 }
  0xdb   :  { %16101 = vst [vmem:[#allocation89_spill] sm:$0xff] %v7001_v52  ;;  %16104 = vst [vmem:[#allocation90_spill] sm:$0xff] %v7005_v53  ;;  %v16109_v37 = vand.u32 2147483647, %v16108_v46  ;;  %v16114_v48 = vld [vmem:[#allocation23_spill] sm:$0xff]  ;;  %v16117_v52 = vld [vmem:[#allocation24_spill] sm:$0xff] }
  0xdc   :  { %16107 = vst [vmem:[#allocation91_spill] sm:$0xff] %v7009_v54  ;;  %v7017_v30 = vsub.f32 0.0, %v16112_v15  ;;  %v16115_v57 = vand.u32 2147483647, %v16114_v48  ;;  %v16118_v21 = vand.u32 2147483647, %v16117_v52 }
  0xdd   :  { %v7013_v58 = vsub.f32 0.0, %v16109_v37  ;;  %v16120_v53 = vld [vmem:[#allocation25_spill] sm:$0xff]  ;;  %v16123_v54 = vld [vmem:[#allocation26_spill] sm:$0xff]  ;;  %v16129_v48 = vld [vmem:[#allocation28_spill] sm:$0xff] }
  0xde   :  { %16113 = vst [vmem:[#allocation93_spill] sm:$0xff] %v7017_v30  ;;  %v7021_v35 = vsub.f32 0.0, %v16115_v57  ;;  %v7025_v40 = vsub.f32 0.0, %v16118_v21  ;;  %v16121_v49 = vand.u32 2147483647, %v16120_v53  ;;  %v16132_v52 = vld [vmem:[#allocation29_spill] sm:$0xff] }
  0xdf   :  { %16110 = vst [vmem:[#allocation92_spill] sm:$0xff] %v7013_v58  ;;  %v16124_v46 = vand.u32 2147483647, %v16123_v54  ;;  %v16126_v58 = vld [vmem:[#allocation27_spill] sm:$0xff]  ;;  %v960_v30 = vmul.f32 1.442695, %v832_v63 }
  0xe0   :  { %16116 = vst [vmem:[#allocation94_spill] sm:$0xff] %v7021_v35  ;;  %16119 = vst [vmem:[#allocation97_spill] sm:$0xff] %v7025_v40  ;;  %v7029_v42 = vsub.f32 0.0, %v16121_v49  ;;  %v16127_v47 = vand.u32 2147483647, %v16126_v58  ;;  %v16135_v53 = vld [vmem:[#allocation30_spill] sm:$0xff] }
  0xe1   :  { %v7033_v37 = vsub.f32 0.0, %v16124_v46  ;;  %v16130_v57 = vand.u32 2147483647, %v16129_v48  ;;  %v16133_v21 = vand.u32 2147483647, %v16132_v52  ;;  %v16138_v46 = vld [vmem:[#allocation31_spill] sm:$0xff]  ;;  %4933 = vpow2.f32 %v960_v30 }
  0xe2   :  { %16122 = vst [vmem:[#allocation12_spill] sm:$0xff] %v7029_v42  ;;  %v7037_v15 = vsub.f32 0.0, %v16127_v47  ;;  %v16136_v49 = vand.u32 2147483647, %v16135_v53  ;;  %v962_v54 = vmul.f32 1.442695, %v833_v7 }
  0xe3   :  { %16125 = vst [vmem:[#allocation13_spill] sm:$0xff] %v7033_v37  ;;  %v7041_v35 = vsub.f32 0.0, %v16130_v57  ;;  %v7045_v40 = vsub.f32 0.0, %v16133_v21  ;;  %v16139_v37 = vand.u32 2147483647, %v16138_v46  ;;  %v16141_v58 = vld [vmem:[#allocation32_spill] sm:$0xff] }
  0xe4   :  { %16128 = vst [vmem:[#allocation14_spill] sm:$0xff] %v7037_v15  ;;  %v7049_v42 = vsub.f32 0.0, %v16136_v49  ;;  %v16142_v47 = vand.u32 2147483647, %v16141_v58  ;;  %v16144_v48 = vld [vmem:[#allocation33_spill] sm:$0xff]  ;;  %v16146_v21 = vld [vmem:[#allocation34_spill] sm:$0xff]  ;;  %4935 = vpow2.f32 %v962_v54 }
  0xe5   :  { %16131 = vst [vmem:[#allocation15_spill] sm:$0xff] %v7041_v35  ;;  %16134 = vst [vmem:[#allocation16_spill] sm:$0xff] %v7045_v40  ;;  %v7053_v27 = vsub.f32 0.0, %v16139_v37  ;;  %v16145_v57 = vand.u32 2147483647, %v16144_v48  ;;  %v16149_v53 = vld [vmem:[#allocation35_spill] sm:$0xff] }
  0xe6   :  { %16137 = vst [vmem:[#allocation17_spill] sm:$0xff] %v7049_v42  ;;  %v7057_v63 = vsub.f32 0.0, %v16142_v47  ;;  %v964_v52 = vmul.f32 1.442695, %v834_v43  ;;  %v16147_v40 = vand.u32 2147483647, %v16146_v21 }
  0xe7   :  { %16140 = vst [vmem:[#allocation18_spill] sm:$0xff] %v7053_v27  ;;  %v7061_v35 = vsub.f32 0.0, %v16145_v57  ;;  %v16150_v49 = vand.u32 2147483647, %v16149_v53  ;;  %v16152_v46 = vld [vmem:[#allocation36_spill] sm:$0xff]  ;;  %v16154_v47 = vld [vmem:[#allocation37_spill] sm:$0xff] }
  0xe8   :  { %16143 = vst [vmem:[#allocation19_spill] sm:$0xff] %v7057_v63  ;;  %v7065_v15 = vsub.f32 0.0, %v16147_v40  ;;  %v16153_v37 = vand.u32 2147483647, %v16152_v46  ;;  %v966_v58 = vmul.f32 1.442695, %v835_v32  ;;  %4937 = vpow2.f32 %v964_v52 }
  0xe9   :  { %v7069_v7 = vsub.f32 0.0, %v16150_v49  ;;  %v16155_v63 = vand.u32 2147483647, %v16154_v47  ;;  %v16157_v48 = vld [vmem:[#allocation38_spill] sm:$0xff]  ;;  %v968_v40 = vmul.f32 1.442695, %v836_v8 }
  0xea   :  { %16148 = vst [vmem:[#allocation20_spill] sm:$0xff] %v7065_v15  ;;  %v7073_v27 = vsub.f32 0.0, %v16153_v37  ;;  %v16158_v57 = vand.u32 2147483647, %v16157_v48  ;;  %v16159_v21 = vld [vmem:[#allocation39_spill] sm:$0xff]  ;;  %v16161_v49 = vld [vmem:[#allocation40_spill] sm:$0xff]  ;;  %4939 = vpow2.f32 %v966_v58 }
  0xeb   :  { %16151 = vst [vmem:[#allocation21_spill] sm:$0xff] %v7069_v7  ;;  %v7077_v42 = vsub.f32 0.0, %v16155_v63  ;;  %v16160_v15 = vand.u32 2147483647, %v16159_v21  ;;  %v16162_v7 = vand.u32 2147483647, %v16161_v49  ;;  %4941 = vpow2.f32 %v968_v40 }
  0xec   :  { %v7081_v43 = vsub.f32 0.0, %v16158_v57  ;;  %v970_v32 = vmul.f32 1.442695, %v837_v56  ;;  %v16164_v37 = vld [vmem:[#allocation41_spill] sm:$0xff]  ;;  %v972_v8 = vmul.f32 1.442695, %v6873_v25 }
  0xed   :  { %16156 = vst [vmem:[#allocation22_spill] sm:$0xff] %v7077_v42  ;;  %v7085_v53 = vsub.f32 0.0, %v16160_v15  ;;  %v7089_v46 = vsub.f32 0.0, %v16162_v7  ;;  %v16165_v47 = vand.u32 2147483647, %v16164_v37  ;;  %v16166_v42 = vld [vmem:[#allocation42_spill] sm:$0xff] }
  0xee   :  { %v16167_v48 = vand.u32 2147483647, %v16166_v42  ;;  %v16168_v30 = vld [vmem:[#allocation43_spill] sm:$0xff]  ;;  %v16171_v49 = vld [vmem:[#allocation44_spill] sm:$0xff]  ;;  %v974_v56 = vmul.f32 1.442695, %v6877_v1  ;;  %4943 = vpow2.f32 %v970_v32 }
  0xef   :  { %16163 = vst [vmem:[#allocation23_spill] sm:$0xff] %v7089_v46  ;;  %v7093_v63 = vsub.f32 0.0, %v16165_v47  ;;  %v16169_v15 = vand.u32 2147483647, %v16168_v30  ;;  %v16172_v7 = vand.u32 2147483647, %v16171_v49  ;;  %4945 = vpow2.f32 %v972_v8 }
  0xf0   :  { %v7097_v57 = vsub.f32 0.0, %v16167_v48  ;;  %v16173_v54 = vld [vmem:[#allocation45_spill] sm:$0xff]  ;;  %v16176_v42 = vld [vmem:[#allocation46_spill] sm:$0xff]  ;;  %v976_v25 = vmul.f32 1.442695, %v6881_v62  ;;  %v16178_v30 = vld [vmem:[#allocation47_spill] sm:$0xff]  ;;  %4947 = vpow2.f32 %v974_v56 }
  0xf1   :  { %v7102_v21 = vsub.f32 0.0, %v16169_v15  ;;  %v7106_v46 = vsub.f32 0.0, %v16172_v7  ;;  %v16174_v37 = vand.u32 2147483647, %v16173_v54  ;;  %v16177_v48 = vand.u32 2147483647, %v16176_v42 }
  0xf2   :  { %v16179_v15 = vand.u32 2147483647, %v16178_v30  ;;  %v16181_v49 = vld [vmem:[#allocation48_spill] sm:$0xff]  ;;  %v978_v1 = vmul.f32 1.442695, %v6885_v26  ;;  %v16183_v54 = vld [vmem:[#allocation49_spill] sm:$0xff]  ;;  %4949 = vpow2.f32 %v976_v25 }
  0xf3   :  { %16170 = vst [vmem:[#allocation24_spill] sm:$0xff] %v7102_v21  ;;  %v7111_v47 = vsub.f32 0.0, %v16174_v37  ;;  %v7115_v52 = vsub.f32 0.0, %v16177_v48  ;;  %v16182_v7 = vand.u32 2147483647, %v16181_v49  ;;  %v16186_v42 = vld [vmem:[#allocation50_spill] sm:$0xff] }
  0xf4   :  { %v7120_v21 = vsub.f32 0.0, %v16179_v15  ;;  %v16184_v37 = vand.u32 2147483647, %v16183_v54  ;;  %v16187_v48 = vand.u32 2147483647, %v16186_v42  ;;  %v16188_v30 = vld [vmem:[#allocation51_spill] sm:$0xff]  ;;  %4951 = vpow2.f32 %v978_v1 }
  0xf5   :  { %16175 = vst [vmem:[#allocation25_spill] sm:$0xff] %v7111_v47  ;;  %v7124_v58 = vsub.f32 0.0, %v16182_v7  ;;  %v980_v62 = vmul.f32 1.442695, %v6889_v5  ;;  %v16189_v15 = vand.u32 2147483647, %v16188_v30 }
  0xf6   :  { %16180 = vst [vmem:[#allocation26_spill] sm:$0xff] %v7120_v21  ;;  %v7129_v47 = vsub.f32 0.0, %v16184_v37  ;;  %v7133_v40 = vsub.f32 0.0, %v16187_v48  ;;  %v16191_v49 = vld [vmem:[#allocation52_spill] sm:$0xff]  ;;  %v982_v26 = vmul.f32 1.442695, %v6893_v14 }
  0xf7   :  { %v7138_v21 = vsub.f32 0.0, %v16189_v15  ;;  %v16192_v7 = vand.u32 2147483647, %v16191_v49  ;;  %v16193_v54 = vld [vmem:[#allocation53_spill] sm:$0xff]  ;;  %v16196_v42 = vld [vmem:[#allocation54_spill] sm:$0xff]  ;;  %v16198_v30 = vld [vmem:[#allocation55_spill] sm:$0xff]  ;;  %4953 = vpow2.f32 %v980_v62 }
  0xf8   :  { %16185 = vst [vmem:[#allocation27_spill] sm:$0xff] %v7129_v47  ;;  %v16194_v37 = vand.u32 2147483647, %v16193_v54  ;;  %v16197_v48 = vand.u32 2147483647, %v16196_v42  ;;  %v16201_v49 = vld [vmem:[#allocation56_spill] sm:$0xff]  ;;  %4955 = vpow2.f32 %v982_v26 }
  0xf9   :  { %16190 = vst [vmem:[#allocation28_spill] sm:$0xff] %v7138_v21  ;;  %v7142_v32 = vsub.f32 0.0, %v16192_v7  ;;  %v984_v5 = vmul.f32 1.442695, %v6897_v20  ;;  %v16199_v15 = vand.u32 2147483647, %v16198_v30 }
  0xfa   :  { %v7147_v47 = vsub.f32 0.0, %v16194_v37  ;;  %v7151_v8 = vsub.f32 0.0, %v16197_v48  ;;  %v16202_v7 = vand.u32 2147483647, %v16201_v49  ;;  %v986_v14 = vmul.f32 1.442695, %v6901_v31 }
  0xfb   :  { %v7156_v21 = vsub.f32 0.0, %v16199_v15  ;;  %v16203_v54 = vld [vmem:[#allocation57_spill] sm:$0xff]  ;;  %v16206_v42 = vld [vmem:[#allocation58_spill] sm:$0xff]  ;;  %v988_v20 = vmul.f32 1.442695, %v6905_v33  ;;  %v16208_v30 = vld [vmem:[#allocation59_spill] sm:$0xff]  ;;  %4957 = vpow2.f32 %v984_v5 }
  0xfc   :  { %16195 = vst [vmem:[#allocation29_spill] sm:$0xff] %v7147_v47  ;;  %v7160_v56 = vsub.f32 0.0, %v16202_v7  ;;  %v16204_v37 = vand.u32 2147483647, %v16203_v54  ;;  %v16207_v48 = vand.u32 2147483647, %v16206_v42  ;;  %4959 = vpow2.f32 %v986_v14 }
  0xfd   :  { %16200 = vst [vmem:[#allocation30_spill] sm:$0xff] %v7156_v21  ;;  %v16209_v15 = vand.u32 2147483647, %v16208_v30  ;;  %v16210_v49 = vld [vmem:[#allocation60_spill] sm:$0xff]  ;;  %v990_v31 = vmul.f32 1.442695, %v6909_v13  ;;  %v7190_v30 = vpop.eup %4933  ;;  %4961 = vpow2.f32 %v988_v20 }
  0xfe   :  { %v7165_v47 = vsub.f32 0.0, %v16204_v37  ;;  %v7169_v25 = vsub.f32 0.0, %v16207_v48  ;;  %v16211_v7 = vand.u32 2147483647, %v16210_v49  ;;  %v16213_v54 = vld [vmem:[#allocation61_spill] sm:$0xff]  ;;  %v16215_v42 = vld [vmem:[#allocation62_spill] sm:$0xff] }
  0xff   :  { %v7174_v21 = vsub.f32 0.0, %v16209_v15  ;;  %v16214_v37 = vand.u32 2147483647, %v16213_v54  ;;  %v16216_v48 = vand.u32 2147483647, %v16215_v42  ;;  %16218 = vst [vmem:[#allocation34_spill] sm:$0xff] %v7190_v30  ;;  %4963 = vpow2.f32 %v990_v31 }
 0x100   :  { %16205 = vst [vmem:[#allocation31_spill] sm:$0xff] %v7165_v47  ;;  %v7178_v1 = vsub.f32 0.0, %v16211_v7  ;;  %v992_v33 = vmul.f32 1.442695, %v6913_v0  ;;  %v16219_v15 = vld [vmem:[#allocation63_spill] sm:$0xff]  ;;  %v16221_v26 = vld [vmem:[#allocation64_spill] sm:$0xff] }
 0x101   :  { %v7183_v47 = vsub.f32 0.0, %v16214_v37  ;;  %v7187_v62 = vsub.f32 0.0, %v16216_v48  ;;  %v16220_v49 = vand.u32 2147483647, %v16219_v15  ;;  %v994_v54 = vmul.f32 1.442695, %v6917_v2  ;;  %v7201_v37 = vpop.eup %4935 }
 0x102   :  { %16212 = vst [vmem:[#allocation32_spill] sm:$0xff] %v7178_v1  ;;  %v16222_v1 = vand.u32 2147483647, %v16221_v26  ;;  %16224 = vst [vmem:[#allocation36_spill] sm:$0xff] %v7201_v37  ;;  %v16225_v42 = vld [vmem:[#allocation65_spill] sm:$0xff]  ;;  %v16227_v0 = vld [vmem:[#allocation66_spill] sm:$0xff]  ;;  %4965 = vpow2.f32 %v992_v33 }
 0x103   :  { %16217 = vst [vmem:[#allocation33_spill] sm:$0xff] %v7187_v62  ;;  %v7194_v7 = vsub.f32 0.0, %v16220_v49  ;;  %v16226_v48 = vand.u32 2147483647, %v16225_v42  ;;  %v16228_v62 = vand.u32 2147483647, %v16227_v0  ;;  %v7212_v49 = vpop.eup %4937  ;;  %4967 = vpow2.f32 %v994_v54 }
 0x104   :  { %v7198_v13 = vsub.f32 0.0, %v16222_v1  ;;  %v996_v15 = vmul.f32 1.442695, %v6921_v3  ;;  %16230 = vst [vmem:[#allocation38_spill] sm:$0xff] %v7212_v49  ;;  %v16231_v1 = vld [vmem:[#allocation67_spill] sm:$0xff]  ;;  %v16233_v2 = vld [vmem:[#allocation68_spill] sm:$0xff] }
 0x105   :  { %v7205_v5 = vsub.f32 0.0, %v16226_v48  ;;  %v7209_v30 = vsub.f32 0.0, %v16228_v62  ;;  %v16232_v26 = vand.u32 2147483647, %v16231_v1  ;;  %v998_v42 = vmul.f32 1.442695, %v6925_v4  ;;  %v7223_v48 = vpop.eup %4939 }
 0x106   :  { %16223 = vst [vmem:[#allocation35_spill] sm:$0xff] %v7198_v13  ;;  %v16234_v13 = vand.u32 2147483647, %v16233_v2  ;;  %16236 = vst [vmem:[#allocation40_spill] sm:$0xff] %v7223_v48  ;;  %v16237_v62 = vld [vmem:[#allocation69_spill] sm:$0xff]  ;;  %v16239_v3 = vld [vmem:[#allocation70_spill] sm:$0xff]  ;;  %4969 = vpow2.f32 %v996_v15 }
 0x107   :  { %16229 = vst [vmem:[#allocation37_spill] sm:$0xff] %v7209_v30  ;;  %v7216_v14 = vsub.f32 0.0, %v16232_v26  ;;  %v16238_v0 = vand.u32 2147483647, %v16237_v62  ;;  %v16240_v30 = vand.u32 2147483647, %v16239_v3  ;;  %v7234_v26 = vpop.eup %4941  ;;  %4971 = vpow2.f32 %v998_v42 }
 0x108   :  { %v7220_v37 = vsub.f32 0.0, %v16234_v13  ;;  %v1000_v1 = vmul.f32 1.442695, %v6929_v6  ;;  %16242 = vst [vmem:[#allocation42_spill] sm:$0xff] %v7234_v26  ;;  %v16243_v13 = vld [vmem:[#allocation71_spill] sm:$0xff]  ;;  %v16245_v4 = vld [vmem:[#allocation72_spill] sm:$0xff] }
 0x109   :  { %v7227_v20 = vsub.f32 0.0, %v16238_v0  ;;  %v7231_v49 = vsub.f32 0.0, %v16240_v30  ;;  %v16244_v2 = vand.u32 2147483647, %v16243_v13  ;;  %v1002_v62 = vmul.f32 1.442695, %v6933_v10  ;;  %v7245_v0 = vpop.eup %4943 }
 0x10a   :  { %16235 = vst [vmem:[#allocation39_spill] sm:$0xff] %v7220_v37  ;;  %v16246_v37 = vand.u32 2147483647, %v16245_v4  ;;  %16248 = vst [vmem:[#allocation44_spill] sm:$0xff] %v7245_v0  ;;  %v16249_v30 = vld [vmem:[#allocation73_spill] sm:$0xff]  ;;  %v16251_v6 = vld [vmem:[#allocation74_spill] sm:$0xff]  ;;  %4973 = vpow2.f32 %v1000_v1 }
 0x10b   :  { %16241 = vst [vmem:[#allocation41_spill] sm:$0xff] %v7231_v49  ;;  %v7238_v31 = vsub.f32 0.0, %v16244_v2  ;;  %v16250_v3 = vand.u32 2147483647, %v16249_v30  ;;  %v16252_v49 = vand.u32 2147483647, %v16251_v6  ;;  %v7256_v2 = vpop.eup %4945  ;;  %4975 = vpow2.f32 %v1002_v62 }
 0x10c   :  { %v7242_v48 = vsub.f32 0.0, %v16246_v37  ;;  %v1004_v13 = vmul.f32 1.442695, %v6937_v11  ;;  %16254 = vst [vmem:[#allocation46_spill] sm:$0xff] %v7256_v2  ;;  %v16255_v37 = vld [vmem:[#allocation75_spill] sm:$0xff]  ;;  %v16257_v10 = vld [vmem:[#allocation76_spill] sm:$0xff] }
 0x10d   :  { %v7249_v33 = vsub.f32 0.0, %v16250_v3  ;;  %v7253_v26 = vsub.f32 0.0, %v16252_v49  ;;  %v16256_v4 = vand.u32 2147483647, %v16255_v37  ;;  %v1006_v30 = vmul.f32 1.442695, %v6941_v12  ;;  %v7267_v3 = vpop.eup %4947 }
 0x10e   :  { %16247 = vst [vmem:[#allocation43_spill] sm:$0xff] %v7242_v48  ;;  %v16258_v48 = vand.u32 2147483647, %v16257_v10  ;;  %16260 = vst [vmem:[#allocation48_spill] sm:$0xff] %v7267_v3  ;;  %v16261_v49 = vld [vmem:[#allocation77_spill] sm:$0xff]  ;;  %v16263_v11 = vld [vmem:[#allocation78_spill] sm:$0xff]  ;;  %4977 = vpow2.f32 %v1004_v13 }
 0x10f   :  { %16253 = vst [vmem:[#allocation45_spill] sm:$0xff] %v7253_v26  ;;  %v7260_v54 = vsub.f32 0.0, %v16256_v4  ;;  %v16262_v6 = vand.u32 2147483647, %v16261_v49  ;;  %v16264_v26 = vand.u32 2147483647, %v16263_v11  ;;  %v7278_v4 = vpop.eup %4949  ;;  %4979 = vpow2.f32 %v1006_v30 }
 0x110   :  { %v7264_v0 = vsub.f32 0.0, %v16258_v48  ;;  %v1008_v37 = vmul.f32 1.442695, %v6945_v16  ;;  %16266 = vst [vmem:[#allocation50_spill] sm:$0xff] %v7278_v4  ;;  %v16267_v48 = vld [vmem:[#allocation79_spill] sm:$0xff]  ;;  %v16269_v12 = vld [vmem:[#allocation80_spill] sm:$0xff] }
 0x111   :  { %v7271_v15 = vsub.f32 0.0, %v16262_v6  ;;  %v7275_v2 = vsub.f32 0.0, %v16264_v26  ;;  %v16268_v10 = vand.u32 2147483647, %v16267_v48  ;;  %v1010_v49 = vmul.f32 1.442695, %v6949_v17  ;;  %v7289_v6 = vpop.eup %4951 }
 0x112   :  { %16259 = vst [vmem:[#allocation47_spill] sm:$0xff] %v7264_v0  ;;  %v16270_v0 = vand.u32 2147483647, %v16269_v12  ;;  %16271 = vst [vmem:[#allocation51_spill] sm:$0xff] %v7289_v6  ;;  %v16272_v26 = vld [vmem:[#allocation81_spill] sm:$0xff]  ;;  %v16274_v16 = vld [vmem:[#allocation82_spill] sm:$0xff]  ;;  %4981 = vpow2.f32 %v1008_v37 }
 0x113   :  { %16265 = vst [vmem:[#allocation49_spill] sm:$0xff] %v7275_v2  ;;  %v7282_v42 = vsub.f32 0.0, %v16268_v10  ;;  %v16273_v11 = vand.u32 2147483647, %v16272_v26  ;;  %v16275_v2 = vand.u32 2147483647, %v16274_v16  ;;  %v7300_v10 = vpop.eup %4953  ;;  %4983 = vpow2.f32 %v1010_v49 }
 0x114   :  { %v7286_v3 = vsub.f32 0.0, %v16270_v0  ;;  %v1012_v48 = vmul.f32 1.442695, %v6953_v18  ;;  %16276 = vst [vmem:[#allocation52_spill] sm:$0xff] %v7300_v10  ;;  %v16277_v0 = vld [vmem:[#allocation83_spill] sm:$0xff]  ;;  %v16282_v18 = vld [vmem:[#allocation86_spill] sm:$0xff] }
 0x115   :  { %v7293_v1 = vsub.f32 0.0, %v16273_v11  ;;  %v7297_v4 = vsub.f32 0.0, %v16275_v2  ;;  %v16278_v12 = vand.u32 2147483647, %v16277_v0  ;;  %v16279_v17 = vand.u32 2147483647, %v16037_v44  ;;  %v7311_v11 = vpop.eup %4955 }
 0x116   :  { %v1014_v26 = vmul.f32 1.442695, %v6957_v22  ;;  %16280 = vst [vmem:[#allocation53_spill] sm:$0xff] %v7311_v11  ;;  %v16281_v2 = vand.u32 2147483647, %v16038_v61  ;;  %4985 = vpow2.f32 %v1012_v48 }
 0x117   :  { %v7304_v62 = vsub.f32 0.0, %v16278_v12  ;;  %v7308_v6 = vsub.f32 0.0, %v16279_v17  ;;  %v16283_v16 = vand.u32 2147483647, %v16282_v18  ;;  %v1016_v0 = vmul.f32 1.442695, %v6961_v23  ;;  %v7322_v12 = vpop.eup %4957 }
 0x118   :  { %v7315_v13 = vsub.f32 0.0, %v16281_v2  ;;  %16284 = vst [vmem:[#allocation54_spill] sm:$0xff] %v7322_v12  ;;  %v16285_v44 = vand.u32 2147483647, %v16040_v38  ;;  %v16286_v22 = vand.u32 2147483647, %v16041_v9  ;;  %v7333_v2 = vpop.eup %4959  ;;  %4987 = vpow2.f32 %v1014_v26 }
 0x119   :  { %v7319_v10 = vsub.f32 0.0, %v16283_v16  ;;  %v1018_v61 = vmul.f32 1.442695, %v6965_v24  ;;  %16287 = vst [vmem:[#allocation55_spill] sm:$0xff] %v7333_v2  ;;  %v16288_v18 = vand.u32 2147483647, %v16042_v59  ;;  %4989 = vpow2.f32 %v1016_v0 }
 0x11a   :  { %v7326_v30 = vsub.f32 0.0, %v16285_v44  ;;  %v7330_v17 = vsub.f32 0.0, %v16286_v22  ;;  %v16289_v23 = vand.u32 2147483647, %v16043_v60  ;;  %v1020_v38 = vmul.f32 1.442695, %v6969_v28  ;;  %v7344_v44 = vpop.eup %4961 }
 0x11b   :  { %v7337_v37 = vsub.f32 0.0, %v16288_v18  ;;  %16290 = vst [vmem:[#allocation56_spill] sm:$0xff] %v7344_v44  ;;  %v16291_v9 = vand.u32 2147483647, %v16044_v51  ;;  %v16292_v24 = vand.u32 2147483647, %v16045_v50  ;;  %v7355_v18 = vpop.eup %4963  ;;  %4991 = vpow2.f32 %v1018_v61 }
 0x11c   :  { %v7341_v16 = vsub.f32 0.0, %v16289_v23  ;;  %v1022_v59 = vmul.f32 1.442695, %v6973_v29  ;;  %16293 = vst [vmem:[#allocation57_spill] sm:$0xff] %v7355_v18  ;;  %v16294_v60 = vand.u32 2147483647, %v16046_v55  ;;  %4993 = vpow2.f32 %v1020_v38 }
 0x11d   :  { %v7348_v49 = vsub.f32 0.0, %v16291_v9  ;;  %v7352_v22 = vsub.f32 0.0, %v16292_v24  ;;  %v16295_v28 = vand.u32 2147483647, %v16047_v45  ;;  %v1024_v51 = vmul.f32 1.442695, %v6977_v34  ;;  %v7366_v9 = vpop.eup %4965 }
 0x11e   :  { %v7359_v48 = vsub.f32 0.0, %v16294_v60  ;;  %16297 = vst [vmem:[#allocation59_spill] sm:$0xff] %v7366_v9  ;;  %v16298_v50 = vld [vmem:[#allocation95_spill] sm:$0xff]  ;;  %v16301_v29 = vld [vmem:[#allocation96_spill] sm:$0xff]  ;;  %v1026_v55 = vmul.f32 1.442695, %v6981_v36  ;;  %v7377_v60 = vpop.eup %4967  ;;  %4995 = vpow2.f32 %v1022_v59 }
 0x11f   :  { %v7363_v23 = vsub.f32 0.0, %v16295_v28  ;;  %v16299_v24 = vand.u32 2147483647, %v16298_v50  ;;  %v16302_v44 = vand.u32 2147483647, %v16301_v29  ;;  %16304 = vst [vmem:[#allocation62_spill] sm:$0xff] %v7377_v60  ;;  %4997 = vpow2.f32 %v1024_v51 }
 0x120   :  { %v16305_v45 = vand.u32 2147483647, %v16048_v39  ;;  %v16307_v34 = vand.u32 2147483647, %v15954_v19  ;;  %v1028_v50 = vmul.f32 1.442695, %v6985_v41  ;;  %4999 = vpow2.f32 %v1026_v55 }
 0x121   :  { %16296 = vst [vmem:[#allocation58_spill] sm:$0xff] %v7363_v23  ;;  %v7370_v26 = vsub.f32 0.0, %v16299_v24  ;;  %v7374_v18 = vsub.f32 0.0, %v16302_v44  ;;  %v7388_v24 = vpop.eup %4969  ;;  %v16310_v44 = vld [vmem:[#allocation99_spill] sm:$0xff]  ;;  %v16313_v36 = vld [vmem:[#allocation100_spill] sm:$0xff]  ;;  %v16316_v39 = vld [vmem:[#allocation85_spill] sm:$0xff] }
 0x122   :  { %v7381_v0 = vsub.f32 0.0, %v16305_v45  ;;  %v7385_v28 = vsub.f32 0.0, %v16307_v34  ;;  %16309 = vst [vmem:[#allocation65_spill] sm:$0xff] %v7388_v24  ;;  %v16311_v29 = vand.u32 2147483647, %v16310_v44  ;;  %v7399_v2 = vpop.eup %4971  ;;  %v16318_v19 = vld [vmem:[#allocation101_spill] sm:$0xff]  ;;  %5001 = vpow2.f32 %v1028_v50 }
 0x123   :  { %16300 = vst [vmem:[#allocation60_spill] sm:$0xff] %v7370_v26  ;;  %16303 = vst [vmem:[#allocation61_spill] sm:$0xff] %v7374_v18  ;;  %v16314_v9 = vand.u32 2147483647, %v16313_v36  ;;  %v1030_v45 = vmul.f32 1.442695, %v16316_v39  ;;  %v7410_v11 = vpop.eup %4973 }
 0x124   :  { %16306 = vst [vmem:[#allocation63_spill] sm:$0xff] %v7381_v0  ;;  %16308 = vst [vmem:[#allocation64_spill] sm:$0xff] %v7385_v28  ;;  %v7392_v61 = vsub.f32 0.0, %v16311_v29  ;;  %v16319_v34 = vand.u32 2147483647, %v16318_v19  ;;  %v16321_v41 = vld [vmem:[#allocation102_spill] sm:$0xff] }
 0x125   :  { %v7396_v60 = vsub.f32 0.0, %v16314_v9  ;;  %16317 = vst [vmem:[#allocation68_spill] sm:$0xff] %v7399_v2  ;;  %v16322_v12 = vand.u32 2147483647, %v16321_v41  ;;  %v16324_v44 = vld [vmem:[#allocation87_spill] sm:$0xff]  ;;  %16325 = vst [vmem:[#allocation71_spill] sm:$0xff] %v7410_v11  ;;  %5003 = vpow2.f32 %v1030_v45 }
 0x126   :  { %16312 = vst [vmem:[#allocation66_spill] sm:$0xff] %v7392_v61  ;;  %v7403_v38 = vsub.f32 0.0, %v16319_v34  ;;  %v1032_v29 = vmul.f32 1.442695, %v16324_v44  ;;  %v16326_v9 = vld [vmem:[#allocation103_spill] sm:$0xff]  ;;  %v16329_v39 = vld [vmem:[#allocation104_spill] sm:$0xff] }
 0x127   :  { %16315 = vst [vmem:[#allocation67_spill] sm:$0xff] %v7396_v60  ;;  %v7407_v24 = vsub.f32 0.0, %v16322_v12  ;;  %v16327_v36 = vand.u32 2147483647, %v16326_v9  ;;  %v16330_v60 = vand.u32 2147483647, %v16329_v39 }
 0x128   :  { %16320 = vst [vmem:[#allocation69_spill] sm:$0xff] %v7403_v38  ;;  %v16332_v19 = vld [vmem:[#allocation88_spill] sm:$0xff]  ;;  %v7421_v38 = vpop.eup %4975  ;;  %v16334_v12 = vld [vmem:[#allocation105_spill] sm:$0xff]  ;;  %v16337_v44 = vld [vmem:[#allocation106_spill] sm:$0xff]  ;;  %5005 = vpow2.f32 %v1032_v29 }
 0x129   :  { %16323 = vst [vmem:[#allocation70_spill] sm:$0xff] %v7407_v24  ;;  %v7414_v59 = vsub.f32 0.0, %v16327_v36  ;;  %v7418_v2 = vsub.f32 0.0, %v16330_v60  ;;  %v1034_v34 = vmul.f32 1.442695, %v16332_v19  ;;  %16333 = vst [vmem:[#allocation74_spill] sm:$0xff] %v7421_v38 }
 0x12a   :  { %v16335_v41 = vand.u32 2147483647, %v16334_v12  ;;  %v16338_v24 = vand.u32 2147483647, %v16337_v44  ;;  %v16340_v9 = vld [vmem:[#allocation89_spill] sm:$0xff]  ;;  %v16342_v60 = vld [vmem:[#allocation107_spill] sm:$0xff] }
 0x12b   :  { %16328 = vst [vmem:[#allocation72_spill] sm:$0xff] %v7414_v59  ;;  %16331 = vst [vmem:[#allocation73_spill] sm:$0xff] %v7418_v2  ;;  %v1036_v36 = vmul.f32 1.442695, %v16340_v9  ;;  %v7432_v59 = vpop.eup %4977  ;;  %v16343_v39 = vand.u32 2147483647, %v16342_v60  ;;  %5007 = vpow2.f32 %v1034_v34 }
 0x12c   :  { %v7425_v51 = vsub.f32 0.0, %v16335_v41  ;;  %v7429_v11 = vsub.f32 0.0, %v16338_v24  ;;  %16341 = vst [vmem:[#allocation77_spill] sm:$0xff] %v7432_v59  ;;  %v16345_v19 = vld [vmem:[#allocation90_spill] sm:$0xff]  ;;  %v16346_v2 = vld [vmem:[#allocation91_spill] sm:$0xff]  ;;  %v7440_v41 = vpop.eup %4979  ;;  %v16348_v44 = vld [vmem:[#allocation92_spill] sm:$0xff] }
 0x12d   :  { %v7436_v55 = vsub.f32 0.0, %v16343_v39  ;;  %v1038_v38 = vmul.f32 1.442695, %v16345_v19  ;;  %v1040_v12 = vmul.f32 1.442695, %v16346_v2  ;;  %16347 = vst [vmem:[#allocation79_spill] sm:$0xff] %v7440_v41  ;;  %v7445_v61 = vpop.eup %4981  ;;  %5009 = vpow2.f32 %v1036_v36 }
 0x12e   :  { %16336 = vst [vmem:[#allocation75_spill] sm:$0xff] %v7425_v51  ;;  %16339 = vst [vmem:[#allocation76_spill] sm:$0xff] %v7429_v11  ;;  %v1042_v24 = vmul.f32 1.442695, %v16348_v44  ;;  %v16349_v11 = vld [vmem:[#allocation93_spill] sm:$0xff]  ;;  %v16350_v51 = vld [vmem:[#allocation94_spill] sm:$0xff]  ;;  %v7450_v28 = vpop.eup %4983 }
 0x12f   :  { %16344 = vst [vmem:[#allocation78_spill] sm:$0xff] %v7436_v55  ;;  %v1044_v50 = vmul.f32 1.442695, %v16349_v11  ;;  %v1046_v9 = vmul.f32 1.442695, %v16350_v51  ;;  %16351 = vst [vmem:[#allocation80_spill] sm:$0xff] %v7445_v61  ;;  %v7455_v18 = vpop.eup %4985  ;;  %5011 = vpow2.f32 %v1038_v38 }
 0x130   :  { %v16352_v60 = vld [vmem:[#allocation97_spill] sm:$0xff]  ;;  %v16353_v59 = vld [vmem:[#allocation12_spill] sm:$0xff]  ;;  %16355 = vst [vmem:[#allocation81_spill] sm:$0xff] %v7450_v28  ;;  %v16356_v2 = vld [vmem:[#allocation14_spill] sm:$0xff]  ;;  %v7460_v23 = vpop.eup %4987  ;;  %5013 = vpow2.f32 %v1040_v12  ;;  %v7463_v36 = vmul.f32 1.442695, %v7061_v35 }
 0x131   :  { %v1048_v39 = vmul.f32 1.442695, %v16352_v60  ;;  %v1050_v45 = vmul.f32 1.442695, %v16353_v59  ;;  %v16354_v55 = vld [vmem:[#allocation13_spill] sm:$0xff]  ;;  %v16357_v41 = vld [vmem:[#allocation15_spill] sm:$0xff]  ;;  %5015 = vpow2.f32 %v1042_v24 }
 0x132   :  { %v1052_v19 = vmul.f32 1.442695, %v16354_v55  ;;  %v1054_v29 = vmul.f32 1.442695, %v16356_v2  ;;  %v1056_v44 = vmul.f32 1.442695, %v16357_v41  ;;  %5017 = vpow2.f32 %v1044_v50 }
 0x133   :  { %v16358_v0 = vld [vmem:[#allocation16_spill] sm:$0xff]  ;;  %16359 = vst [vmem:[#allocation82_spill] sm:$0xff] %v7455_v18  ;;  %v16360_v51 = vld [vmem:[#allocation17_spill] sm:$0xff]  ;;  %v16361_v61 = vld [vmem:[#allocation18_spill] sm:$0xff]  ;;  %v7471_v18 = vpop.eup %4989  ;;  %v7474_v38 = vmul.f32 1.442695, %v7073_v27  ;;  %5019 = vpow2.f32 %v1046_v9 }
 0x134   :  { %v1058_v11 = vmul.f32 1.442695, %v16358_v0  ;;  %v1060_v34 = vmul.f32 1.442695, %v16360_v51  ;;  %v1062_v60 = vmul.f32 1.442695, %v16361_v61  ;;  %v7482_v35 = vpop.eup %4991  ;;  %5021 = vpow2.f32 %v1048_v39 }
 0x135   :  { %v16362_v26 = vld [vmem:[#allocation19_spill] sm:$0xff]  ;;  %16363 = vst [vmem:[#allocation83_spill] sm:$0xff] %v7460_v23  ;;  %v16364_v55 = vld [vmem:[#allocation20_spill] sm:$0xff]  ;;  %v16365_v41 = vld [vmem:[#allocation21_spill] sm:$0xff]  ;;  %v7480_v12 = vmul.f32 1.442695, %v7081_v43  ;;  %v7493_v27 = vpop.eup %4993  ;;  %5023 = vpow2.f32 %v1050_v45 }
 0x136   :  { %v1064_v59 = vmul.f32 1.442695, %v16362_v26  ;;  %v7466_v2 = vmul.f32 1.442695, %v16364_v55  ;;  %v7469_v0 = vmul.f32 1.442695, %v16365_v41  ;;  %5025 = vpow2.f32 %v1052_v19 }
 0x137   :  { %16366 = vst [vmem:[#allocation86_spill] sm:$0xff] %v7471_v18  ;;  %v16367_v61 = vld [vmem:[#allocation22_spill] sm:$0xff]  ;;  %16368 = vst [vmem:[#allocation95_spill] sm:$0xff] %v7482_v35  ;;  %v7485_v51 = vmul.f32 1.442695, %v7085_v53  ;;  %v16369_v55 = vld [vmem:[#allocation23_spill] sm:$0xff]  ;;  %v7504_v53 = vpop.eup %4995  ;;  %5027 = vpow2.f32 %v1054_v29 }
 0x138   :  { %v7477_v26 = vmul.f32 1.442695, %v16367_v61  ;;  %v7488_v41 = vmul.f32 1.442695, %v16369_v55  ;;  %v7491_v24 = vmul.f32 1.442695, %v7093_v63 }
 0x139   :  { %16370 = vst [vmem:[#allocation96_spill] sm:$0xff] %v7493_v27  ;;  %v7496_v61 = vmul.f32 1.442695, %v7097_v57  ;;  %v16371_v43 = vld [vmem:[#allocation24_spill] sm:$0xff]  ;;  %v7502_v50 = vmul.f32 1.442695, %v7106_v46  ;;  %v7515_v57 = vpop.eup %4997  ;;  %5029 = vpow2.f32 %v1056_v44 }
 0x13a   :  { %v7499_v18 = vmul.f32 1.442695, %v16371_v43  ;;  %16372 = vst [vmem:[#allocation99_spill] sm:$0xff] %v7504_v53  ;;  %v16373_v55 = vld [vmem:[#allocation25_spill] sm:$0xff]  ;;  %v7510_v63 = vmul.f32 1.442695, %v7115_v52 }
 0x13b   :  { %v7507_v35 = vmul.f32 1.442695, %v16373_v55  ;;  %v16374_v27 = vld [vmem:[#allocation26_spill] sm:$0xff]  ;;  %16375 = vst [vmem:[#allocation100_spill] sm:$0xff] %v7515_v57  ;;  %v7518_v43 = vmul.f32 1.442695, %v7124_v58  ;;  %v7526_v55 = vpop.eup %4999  ;;  %5031 = vpow2.f32 %v1058_v11 }
 0x13c   :  { %v7513_v9 = vmul.f32 1.442695, %v16374_v27  ;;  %v16376_v46 = vld [vmem:[#allocation27_spill] sm:$0xff]  ;;  %v7524_v39 = vmul.f32 1.442695, %v7133_v40  ;;  %16377 = vst [vmem:[#allocation85_spill] sm:$0xff] %v7526_v55  ;;  %v7537_v58 = vpop.eup %5001  ;;  %5033 = vpow2.f32 %v1060_v34 }
 0x13d   :  { %v7521_v23 = vmul.f32 1.442695, %v16376_v46  ;;  %v16378_v52 = vld [vmem:[#allocation28_spill] sm:$0xff]  ;;  %v7532_v27 = vmul.f32 1.442695, %v7142_v32  ;;  %v16379_v57 = vld [vmem:[#allocation29_spill] sm:$0xff] }
 0x13e   :  { %v7529_v53 = vmul.f32 1.442695, %v16378_v52  ;;  %v7535_v45 = vmul.f32 1.442695, %v16379_v57  ;;  %16380 = vst [vmem:[#allocation101_spill] sm:$0xff] %v7537_v58  ;;  %v16381_v40 = vld [vmem:[#allocation30_spill] sm:$0xff]  ;;  %v7548_v52 = vpop.eup %5003  ;;  %5035 = vpow2.f32 %v1062_v60 }
 0x13f   :  { %v7540_v46 = vmul.f32 1.442695, %v7151_v8  ;;  %v7543_v28 = vmul.f32 1.442695, %v16381_v40  ;;  %v7546_v19 = vmul.f32 1.442695, %v7160_v56  ;;  %v7559_v8 = vpop.eup %5005  ;;  %5037 = vpow2.f32 %v1064_v59 }
 0x140   :  { %16382 = vst [vmem:[#allocation102_spill] sm:$0xff] %v7548_v52  ;;  %v16383_v32 = vld [vmem:[#allocation31_spill] sm:$0xff]  ;;  %v7554_v57 = vmul.f32 1.442695, %v7169_v25  ;;  %v7557_v29 = vmul.f32 1.442695, %v7174_v21 }
 0x141   :  { %v7551_v55 = vmul.f32 1.442695, %v16383_v32  ;;  %16385 = vst [vmem:[#allocation103_spill] sm:$0xff] %v7559_v8  ;;  %v16386_v40 = vld [vmem:[#allocation32_spill] sm:$0xff]  ;;  %v7565_v56 = vmul.f32 1.442695, %v7183_v47  ;;  %v7570_v32 = vpop.eup %5007  ;;  %5039 = vpow2.f32 %v7463_v36 }
 0x142   :  { %16384 = vst [vmem:[#allocation87_spill] sm:$0xff] %v7557_v29  ;;  %v7562_v58 = vmul.f32 1.442695, %v16386_v40  ;;  %v16387_v52 = vld [vmem:[#allocation33_spill] sm:$0xff]  ;;  %16388 = vst [vmem:[#allocation104_spill] sm:$0xff] %v7570_v32  ;;  %v16389_v21 = vld [vmem:[#allocation35_spill] sm:$0xff]  ;;  %v7581_v40 = vpop.eup %5009  ;;  %5041 = vpow2.f32 %v7466_v2 }
 0x143   :  { %v7568_v44 = vmul.f32 1.442695, %v16387_v52  ;;  %v7573_v25 = vmul.f32 1.442695, %v7194_v7  ;;  %v7576_v29 = vmul.f32 1.442695, %v16389_v21  ;;  %v7592_v7 = vpop.eup %5011  ;;  %5043 = vpow2.f32 %v7469_v0 }
 0x144   :  { %v7579_v11 = vmul.f32 1.442695, %v7205_v5  ;;  %16391 = vst [vmem:[#allocation105_spill] sm:$0xff] %v7581_v40  ;;  %v16392_v47 = vld [vmem:[#allocation37_spill] sm:$0xff]  ;;  %v7587_v52 = vmul.f32 1.442695, %v7216_v14 }
 0x145   :  { %v7584_v8 = vmul.f32 1.442695, %v16392_v47  ;;  %v16393_v32 = vld [vmem:[#allocation39_spill] sm:$0xff]  ;;  %16394 = vst [vmem:[#allocation106_spill] sm:$0xff] %v7592_v7  ;;  %v7595_v21 = vmul.f32 1.442695, %v7227_v20  ;;  %v7603_v47 = vpop.eup %5013  ;;  %5045 = vpow2.f32 %v7474_v38 }
 0x146   :  { %16390 = vst [vmem:[#allocation88_spill] sm:$0xff] %v7579_v11  ;;  %v7590_v34 = vmul.f32 1.442695, %v16393_v32  ;;  %v16395_v5 = vld [vmem:[#allocation41_spill] sm:$0xff]  ;;  %v7601_v60 = vmul.f32 1.442695, %v7238_v31  ;;  %v7615_v20 = vpop.eup %5015  ;;  %5047 = vpow2.f32 %v7477_v26 }
 0x147   :  { %v7598_v11 = vmul.f32 1.442695, %v16395_v5  ;;  %16396 = vst [vmem:[#allocation89_spill] sm:$0xff] %v7603_v47  ;;  %v16397_v14 = vld [vmem:[#allocation43_spill] sm:$0xff]  ;;  %v7610_v32 = vmul.f32 1.442695, %v7249_v33 }
 0x148   :  { %v7607_v40 = vmul.f32 1.442695, %v16397_v14  ;;  %v16398_v59 = vld [vmem:[#allocation45_spill] sm:$0xff]  ;;  %16399 = vst [vmem:[#allocation107_spill] sm:$0xff] %v7615_v20  ;;  %v7619_v31 = vmul.f32 1.442695, %v7260_v54  ;;  %v7627_v14 = vpop.eup %5017  ;;  %5049 = vpow2.f32 %v7480_v12 }
 0x149   :  { %v7613_v7 = vmul.f32 1.442695, %v16398_v59  ;;  %v16400_v5 = vld [vmem:[#allocation47_spill] sm:$0xff]  ;;  %v7625_v36 = vmul.f32 1.442695, %v7271_v15  ;;  %16401 = vst [vmem:[#allocation90_spill] sm:$0xff] %v7627_v14  ;;  %v7639_v54 = vpop.eup %5019  ;;  %5051 = vpow2.f32 %v7485_v51 }
 0x14a   :  { %v7622_v47 = vmul.f32 1.442695, %v16400_v5  ;;  %v16402_v33 = vld [vmem:[#allocation49_spill] sm:$0xff]  ;;  %v7634_v20 = vmul.f32 1.442695, %v7282_v42  ;;  %16403 = vst [vmem:[#allocation91_spill] sm:$0xff] %v7639_v54 }
 0x14b   :  { %v7631_v59 = vmul.f32 1.442695, %v16402_v33  ;;  %v7637_v2 = vmul.f32 1.442695, %v7286_v3  ;;  %v7643_v15 = vmul.f32 1.442695, %v7293_v1  ;;  %v7651_v33 = vpop.eup %5021  ;;  %5053 = vpow2.f32 %v7488_v41 }
 0x14c   :  { %v7646_v5 = vmul.f32 1.442695, %v7297_v4  ;;  %v7649_v0 = vmul.f32 1.442695, %v7304_v62  ;;  %16404 = vst [vmem:[#allocation92_spill] sm:$0xff] %v7651_v33  ;;  %v7663_v1 = vpop.eup %5023  ;;  %v16410_v51 = vld [vmem:[#allocation60_spill] sm:$0xff]  ;;  %5055 = vpow2.f32 %v7491_v24 }
 0x14d   :  { %v7655_v3 = vmul.f32 1.442695, %v7308_v6  ;;  %v7658_v42 = vmul.f32 1.442695, %v7315_v13  ;;  %v7661_v38 = vmul.f32 1.442695, %v7319_v10  ;;  %v7675_v6 = vpop.eup %5025  ;;  %5057 = vpow2.f32 %v7496_v61 }
 0x14e   :  { %16405 = vst [vmem:[#allocation93_spill] sm:$0xff] %v7663_v1  ;;  %v7667_v4 = vmul.f32 1.442695, %v7326_v30  ;;  %v7670_v62 = vmul.f32 1.442695, %v7330_v17  ;;  %16406 = vst [vmem:[#allocation94_spill] sm:$0xff] %v7675_v6  ;;  %v7687_v30 = vpop.eup %5027  ;;  %5059 = vpow2.f32 %v7499_v18 }
 0x14f   :  { %v7673_v26 = vmul.f32 1.442695, %v7337_v37  ;;  %v7679_v10 = vmul.f32 1.442695, %v7341_v16  ;;  %v7682_v13 = vmul.f32 1.442695, %v7348_v49  ;;  %v7699_v16 = vpop.eup %5029  ;;  %5061 = vpow2.f32 %v7502_v50 }
 0x150   :  { %v7685_v12 = vmul.f32 1.442695, %v7352_v22  ;;  %16407 = vst [vmem:[#allocation97_spill] sm:$0xff] %v7687_v30  ;;  %v7691_v17 = vmul.f32 1.442695, %v7359_v48  ;;  %v16408_v37 = vld [vmem:[#allocation58_spill] sm:$0xff]  ;;  %v7709_v48 = vpop.eup %5031  ;;  %5063 = vpow2.f32 %v7507_v35 }
 0x151   :  { %v7694_v6 = vmul.f32 1.442695, %v16408_v37  ;;  %v7697_v1 = vmul.f32 1.442695, %v16410_v51  ;;  %16412 = vst [vmem:[#allocation14_spill] sm:$0xff] %v7699_v16  ;;  %v16413_v49 = vld [vmem:[#allocation61_spill] sm:$0xff] }
 0x152   :  { %v7703_v22 = vmul.f32 1.442695, %v16413_v49  ;;  %v16415_v33 = vld [vmem:[#allocation63_spill] sm:$0xff]  ;;  %v16417_v41 = vld [vmem:[#allocation34_spill] sm:$0xff]  ;;  %16418 = vst [vmem:[#allocation17_spill] sm:$0xff] %v7709_v48  ;;  %v16419_v37 = vld [vmem:[#allocation64_spill] sm:$0xff]  ;;  %v7721_v49 = vpop.eup %5033  ;;  %5065 = vpow2.f32 %v7510_v63 }
 0x153   :  { %16409 = vst [vmem:[#allocation12_spill] sm:$0xff] %v7694_v6  ;;  %16411 = vst [vmem:[#allocation13_spill] sm:$0xff] %v7697_v1  ;;  %v7706_v30 = vmul.f32 1.442695, %v16415_v33  ;;  %v1219_v54 = vmul.f32 -0.5, %v16417_v41  ;;  %v16421_v51 = vld [vmem:[#allocation66_spill] sm:$0xff] }
 0x154   :  { %16414 = vst [vmem:[#allocation15_spill] sm:$0xff] %v7703_v22  ;;  %v7713_v14 = vmul.f32 1.442695, %v16419_v37  ;;  %v7716_v1 = vmul.f32 1.442695, %v16421_v51  ;;  %v16423_v16 = vld [vmem:[#allocation67_spill] sm:$0xff]  ;;  %v7731_v37 = vpop.eup %5035  ;;  %5067 = vpow2.f32 %v7513_v9 }
 0x155   :  { %16416 = vst [vmem:[#allocation16_spill] sm:$0xff] %v7706_v30  ;;  %v7719_v24 = vmul.f32 1.442695, %v16423_v16  ;;  %16425 = vst [vmem:[#allocation21_spill] sm:$0xff] %v7721_v49  ;;  %v16426_v33 = vld [vmem:[#allocation69_spill] sm:$0xff]  ;;  %v16428_v22 = vld [vmem:[#allocation70_spill] sm:$0xff] }
 0x156   :  { %16420 = vst [vmem:[#allocation18_spill] sm:$0xff] %v7713_v14  ;;  %16422 = vst [vmem:[#allocation19_spill] sm:$0xff] %v7716_v1  ;;  %v7725_v30 = vmul.f32 1.442695, %v16426_v33  ;;  %v7728_v48 = vmul.f32 1.442695, %v16428_v22  ;;  %v7741_v14 = vpop.eup %5037  ;;  %5069 = vpow2.f32 %v7518_v43 }
 0x157   :  { %16424 = vst [vmem:[#allocation20_spill] sm:$0xff] %v7719_v24  ;;  %v16430_v61 = vld [vmem:[#allocation36_spill] sm:$0xff]  ;;  %16431 = vst [vmem:[#allocation24_spill] sm:$0xff] %v7731_v37  ;;  %v16434_v16 = vld [vmem:[#allocation73_spill] sm:$0xff]  ;;  %v1220_v37 = vadd.f32 1.0, %v1219_v54  ;;  %v7750_v50 = vpop.eup %5039  ;;  %5071 = vpow2.f32 %v7521_v23 }
 0x158   :  { %16427 = vst [vmem:[#allocation22_spill] sm:$0xff] %v7725_v30  ;;  %16429 = vst [vmem:[#allocation23_spill] sm:$0xff] %v7728_v48  ;;  %v1228_v6 = vmul.f32 -0.5, %v16430_v61  ;;  %v16432_v51 = vld [vmem:[#allocation72_spill] sm:$0xff]  ;;  %v7738_v24 = vmul.f32 1.442695, %v16434_v16  ;;  %v7760_v35 = vpop.eup %5041  ;;  %5073 = vpow2.f32 %v7524_v39 }
 0x159   :  { %v7735_v1 = vmul.f32 1.442695, %v16432_v51  ;;  %v16436_v49 = vld [vmem:[#allocation38_spill] sm:$0xff]  ;;  %16437 = vst [vmem:[#allocation27_spill] sm:$0xff] %v7741_v14  ;;  %v16438_v22 = vld [vmem:[#allocation75_spill] sm:$0xff]  ;;  %v16439_v48 = vld [vmem:[#allocation76_spill] sm:$0xff]  ;;  %v7776_v9 = vmul.f32 %v16417_v41, %v1220_v37 }
 0x15a   :  { %16435 = vst [vmem:[#allocation26_spill] sm:$0xff] %v7738_v24  ;;  %v1237_v18 = vmul.f32 -0.5, %v16436_v49  ;;  %v7745_v33 = vmul.f32 1.442695, %v16438_v22  ;;  %v7748_v30 = vmul.f32 1.442695, %v16439_v48 }
 0x15b   :  { %16433 = vst [vmem:[#allocation25_spill] sm:$0xff] %v7735_v1  ;;  %16441 = vst [vmem:[#allocation29_spill] sm:$0xff] %v7750_v50  ;;  %v16442_v51 = vld [vmem:[#allocation78_spill] sm:$0xff]  ;;  %v7757_v24 = vadd.f32 1.0, %v16417_v41  ;;  %v16445_v14 = vld [vmem:[#allocation40_spill] sm:$0xff]  ;;  %v7765_v54 = vadd.f32 1.0, %v16430_v61  ;;  %v7767_v50 = vpop.eup %5043  ;;  %5075 = vpow2.f32 %v7529_v53 }
 0x15c   :  { %16440 = vst [vmem:[#allocation28_spill] sm:$0xff] %v7748_v30  ;;  %v7754_v16 = vmul.f32 1.442695, %v16442_v51  ;;  %v1246_v1 = vmul.f32 -0.5, %v16445_v14  ;;  %16446 = vst [vmem:[#allocation32_spill] sm:$0xff] %v7760_v35  ;;  %v1229_v22 = vadd.f32 1.0, %v1228_v6  ;;  %v7772_v30 = vpop.eup %5045  ;;  %5077 = vpow2.f32 %v7532_v27 }
 0x15d   :  { %16444 = vst [vmem:[#allocation31_spill] sm:$0xff] %v7757_v24  ;;  %16447 = vst [vmem:[#allocation33_spill] sm:$0xff] %v7767_v50  ;;  %v1238_v51 = vadd.f32 1.0, %v1237_v18  ;;  %v16448_v24 = vld [vmem:[#allocation42_spill] sm:$0xff]  ;;  %v7779_v48 = vadd.f32 1.0, %v16436_v49  ;;  %v16451_v6 = vld [vmem:[#allocation44_spill] sm:$0xff]  ;;  %v7782_v50 = vpop.eup %5047  ;;  %5079 = vpow2.f32 %v7535_v45 }
 0x15e   :  { %16443 = vst [vmem:[#allocation30_spill] sm:$0xff] %v7754_v16  ;;  %v1255_v16 = vmul.f32 -0.5, %v16448_v24  ;;  %16449 = vst [vmem:[#allocation35_spill] sm:$0xff] %v7772_v30  ;;  %v1264_v35 = vmul.f32 -0.5, %v16451_v6  ;;  %v7787_v18 = vadd.f32 1.0, %v16445_v14  ;;  %v1247_v63 = vadd.f32 1.0, %v1246_v1  ;;  %v7789_v30 = vpop.eup %5049 }
 0x15f   :  { %16450 = vst [vmem:[#allocation37_spill] sm:$0xff] %v7776_v9  ;;  %16452 = vst [vmem:[#allocation39_spill] sm:$0xff] %v7782_v50  ;;  %v7793_v23 = vmul.f32 %v16430_v61, %v1229_v22  ;;  %v16455_v9 = vld [vmem:[#allocation46_spill] sm:$0xff]  ;;  %v7797_v50 = vpop.eup %5051  ;;  %v7801_v39 = vmul.f32 %v16436_v49, %v1238_v51  ;;  %v7804_v1 = vadd.f32 1.0, %v16448_v24  ;;  %v16459_v37 = vld [vmem:[#allocation48_spill] sm:$0xff]  ;;  %5081 = vpow2.f32 %v7540_v46 }
 0x160   :  { %16453 = vst [vmem:[#allocation41_spill] sm:$0xff] %v7789_v30  ;;  %v1273_v41 = vmul.f32 -0.5, %v16455_v9  ;;  %16456 = vst [vmem:[#allocation45_spill] sm:$0xff] %v7797_v50  ;;  %v1256_v43 = vadd.f32 1.0, %v1255_v16  ;;  %v7806_v30 = vpop.eup %5053  ;;  %v1265_v22 = vadd.f32 1.0, %v1264_v35  ;;  %v7815_v27 = vmul.f32 %v16445_v14, %v1247_v63  ;;  %v16462_v16 = vld [vmem:[#allocation50_spill] sm:$0xff] }
 0x161   :  { %16454 = vst [vmem:[#allocation43_spill] sm:$0xff] %v7793_v23  ;;  %16457 = vst [vmem:[#allocation47_spill] sm:$0xff] %v7801_v39  ;;  %v1282_v23 = vmul.f32 -0.5, %v16459_v37  ;;  %v7811_v61 = vpop.eup %5055  ;;  %v7818_v51 = vadd.f32 1.0, %v16451_v6  ;;  %v1291_v50 = vmul.f32 -0.5, %v16462_v16  ;;  %5083 = vpow2.f32 %v7543_v28  ;;  %v16470_v63 = vld [vmem:[#allocation52_spill] sm:$0xff] }
 0x162   :  { %16458 = vst [vmem:[#allocation49_spill] sm:$0xff] %v7806_v30  ;;  %16460 = vst [vmem:[#allocation58_spill] sm:$0xff] %v7811_v61  ;;  %v7821_v30 = vpop.eup %5057  ;;  %v7826_v35 = vadd.f32 1.0, %v16455_v9  ;;  %v1274_v53 = vadd.f32 1.0, %v1273_v41  ;;  %5085 = vpow2.f32 %v7546_v19  ;;  %v7832_v46 = vmul.f32 %v16448_v24, %v1256_v43 }
 0x163   :  { %16461 = vst [vmem:[#allocation60_spill] sm:$0xff] %v7815_v27  ;;  %16463 = vst [vmem:[#allocation61_spill] sm:$0xff] %v7821_v30  ;;  %v7828_v61 = vpop.eup %5059  ;;  %v16466_v27 = vld [vmem:[#allocation51_spill] sm:$0xff]  ;;  %5087 = vpow2.f32 %v7551_v55  ;;  %v7840_v28 = vmul.f32 %v16451_v6, %v1265_v22  ;;  %v7843_v41 = vadd.f32 1.0, %v16459_v37  ;;  %v1283_v45 = vadd.f32 1.0, %v1282_v23  ;;  %v16474_v23 = vld [vmem:[#allocation53_spill] sm:$0xff] }
 0x164   :  { %16464 = vst [vmem:[#allocation63_spill] sm:$0xff] %v7828_v61  ;;  %16465 = vst [vmem:[#allocation64_spill] sm:$0xff] %v7832_v46  ;;  %v1300_v39 = vmul.f32 -0.5, %v16466_v27  ;;  %v7836_v30 = vpop.eup %5061  ;;  %5089 = vpow2.f32 %v7554_v57  ;;  %v1292_v43 = vadd.f32 1.0, %v1291_v50  ;;  %v1309_v46 = vmul.f32 -0.5, %v16470_v63 }
 0x165   :  { %16467 = vst [vmem:[#allocation66_spill] sm:$0xff] %v7836_v30  ;;  %16468 = vst [vmem:[#allocation67_spill] sm:$0xff] %v7840_v28  ;;  %v7845_v61 = vpop.eup %5063  ;;  %v16472_v30 = vld [vmem:[#allocation87_spill] sm:$0xff]  ;;  %v7854_v55 = vmul.f32 %v16455_v9, %v1274_v53  ;;  %v7857_v22 = vadd.f32 1.0, %v16462_v16  ;;  %v1318_v28 = vmul.f32 -0.5, %v16474_v23  ;;  %v7865_v50 = vadd.f32 1.0, %v16466_v27 }
 0x166   :  { %16469 = vst [vmem:[#allocation69_spill] sm:$0xff] %v7845_v61  ;;  %v7850_v24 = vpop.eup %5065  ;;  %5091 = vpow2.f32 %v16472_v30  ;;  %v1301_v19 = vadd.f32 1.0, %v1300_v39  ;;  %v7871_v30 = vmul.f32 %v16459_v37, %v1283_v45  ;;  %v7882_v39 = vadd.f32 1.0, %v16470_v63  ;;  %v16482_v53 = vld [vmem:[#allocation55_spill] sm:$0xff] }
 0x167   :  { %16471 = vst [vmem:[#allocation70_spill] sm:$0xff] %v7850_v24  ;;  %16473 = vst [vmem:[#allocation72_spill] sm:$0xff] %v7854_v55  ;;  %v7860_v61 = vpop.eup %5067  ;;  %5093 = vpow2.f32 %v7562_v58  ;;  %v16478_v55 = vld [vmem:[#allocation54_spill] sm:$0xff]  ;;  %v7879_v58 = vmul.f32 %v16462_v16, %v1292_v43  ;;  %v1310_v57 = vadd.f32 1.0, %v1309_v46  ;;  %v1319_v45 = vadd.f32 1.0, %v1318_v28  ;;  %v16485_v46 = vld [vmem:[#allocation56_spill] sm:$0xff] }
 0x168   :  { %16475 = vst [vmem:[#allocation73_spill] sm:$0xff] %v7860_v61  ;;  %v7867_v24 = vpop.eup %5069  ;;  %5095 = vpow2.f32 %v7565_v56  ;;  %16477 = vst [vmem:[#allocation75_spill] sm:$0xff] %v7871_v30  ;;  %v1327_v9 = vmul.f32 -0.5, %v16478_v55  ;;  %v1336_v30 = vmul.f32 -0.5, %v16482_v53  ;;  %v7896_v43 = vadd.f32 1.0, %v16474_v23 }
 0x169   :  { %16476 = vst [vmem:[#allocation38_spill] sm:$0xff] %v7867_v24  ;;  %v7875_v61 = vpop.eup %5071  ;;  %5097 = vpow2.f32 %v7568_v44  ;;  %16480 = vst [vmem:[#allocation78_spill] sm:$0xff] %v7879_v58  ;;  %v7893_v44 = vmul.f32 %v16466_v27, %v1301_v19  ;;  %v7904_v56 = vadd.f32 1.0, %v16478_v55  ;;  %v16494_v19 = vld [vmem:[#allocation59_spill] sm:$0xff] }
 0x16a   :  { %16479 = vst [vmem:[#allocation76_spill] sm:$0xff] %v7875_v61  ;;  %v7884_v24 = vpop.eup %5073  ;;  %5099 = vpow2.f32 %v7573_v25  ;;  %v1345_v61 = vmul.f32 -0.5, %v16485_v46  ;;  %v16487_v25 = vld [vmem:[#allocation88_spill] sm:$0xff]  ;;  %v1337_v28 = vadd.f32 1.0, %v1336_v30  ;;  %v16497_v30 = vld [vmem:[#allocation62_spill] sm:$0xff] }
 0x16b   :  { %16481 = vst [vmem:[#allocation40_spill] sm:$0xff] %v7884_v24  ;;  %v7889_v37 = vpop.eup %5075  ;;  %5101 = vpow2.f32 %v7576_v29  ;;  %16484 = vst [vmem:[#allocation50_spill] sm:$0xff] %v7893_v44  ;;  %v7910_v29 = vmul.f32 %v16470_v63, %v1310_v57  ;;  %v16490_v44 = vld [vmem:[#allocation57_spill] sm:$0xff] }
 0x16c   :  { %16483 = vst [vmem:[#allocation44_spill] sm:$0xff] %v7889_v37  ;;  %v7899_v24 = vpop.eup %5077  ;;  %5103 = vpow2.f32 %v16487_v25  ;;  %v1328_v37 = vadd.f32 1.0, %v1327_v9  ;;  %v1354_v27 = vmul.f32 -0.5, %v16490_v44  ;;  %v7918_v25 = vmul.f32 %v16474_v23, %v1319_v45 }
 0x16d   :  { %16486 = vst [vmem:[#allocation87_spill] sm:$0xff] %v7899_v24  ;;  %v7906_v58 = vpop.eup %5079  ;;  %5105 = vpow2.f32 %v7584_v8  ;;  %16489 = vst [vmem:[#allocation54_spill] sm:$0xff] %v7910_v29  ;;  %v7921_v9 = vadd.f32 1.0, %v16482_v53  ;;  %v1346_v57 = vadd.f32 1.0, %v1345_v61  ;;  %v1363_v29 = vmul.f32 -0.5, %v16494_v19 }
 0x16e   :  { %16488 = vst [vmem:[#allocation53_spill] sm:$0xff] %v7906_v58  ;;  %v7914_v24 = vpop.eup %5081  ;;  %5107 = vpow2.f32 %v7587_v52  ;;  %16492 = vst [vmem:[#allocation88_spill] sm:$0xff] %v7918_v25  ;;  %v7932_v52 = vmul.f32 %v16478_v55, %v1328_v37  ;;  %v7935_v45 = vadd.f32 1.0, %v16485_v46  ;;  %v7943_v61 = vadd.f32 1.0, %v16490_v44  ;;  %v16505_v37 = vld [vmem:[#allocation68_spill] sm:$0xff] }
 0x16f   :  { %16491 = vst [vmem:[#allocation56_spill] sm:$0xff] %v7914_v24  ;;  %v7923_v58 = vpop.eup %5083  ;;  %5109 = vpow2.f32 %v7590_v34  ;;  %v1372_v24 = vmul.f32 -0.5, %v16497_v30  ;;  %v1355_v8 = vadd.f32 1.0, %v1354_v27  ;;  %v7960_v27 = vadd.f32 1.0, %v16494_v19 }
 0x170   :  { %16493 = vst [vmem:[#allocation57_spill] sm:$0xff] %v7923_v58  ;;  %v7928_v63 = vpop.eup %5085  ;;  %5111 = vpow2.f32 %v7595_v21  ;;  %16496 = vst [vmem:[#allocation235_spill] sm:$0xff] %v7932_v52  ;;  %v7949_v21 = vmul.f32 %v16482_v53, %v1337_v28  ;;  %v16501_v52 = vld [vmem:[#allocation65_spill] sm:$0xff]  ;;  %v1364_v34 = vadd.f32 1.0, %v1363_v29  ;;  %v16508_v29 = vld [vmem:[#allocation71_spill] sm:$0xff] }
 0x171   :  { %16495 = vst [vmem:[#allocation234_spill] sm:$0xff] %v7928_v63  ;;  %v7938_v58 = vpop.eup %5087  ;;  %5113 = vpow2.f32 %v7598_v11  ;;  %v1381_v25 = vmul.f32 -0.5, %v16501_v52  ;;  %v7957_v11 = vmul.f32 %v16485_v46, %v1346_v57  ;;  %v1373_v28 = vadd.f32 1.0, %v1372_v24 }
 0x172   :  { %16498 = vst [vmem:[#allocation62_spill] sm:$0xff] %v7938_v58  ;;  %v7945_v63 = vpop.eup %5089  ;;  %5115 = vpow2.f32 %v7601_v60  ;;  %16500 = vst [vmem:[#allocation237_spill] sm:$0xff] %v7949_v21  ;;  %v1390_v21 = vmul.f32 -0.5, %v16505_v37  ;;  %v7974_v57 = vadd.f32 1.0, %v16497_v30  ;;  %v7982_v24 = vadd.f32 1.0, %v16501_v52 }
 0x173   :  { %16499 = vst [vmem:[#allocation236_spill] sm:$0xff] %v7945_v63  ;;  %v7953_v58 = vpop.eup %5091  ;;  %5117 = vpow2.f32 %v7607_v40  ;;  %16503 = vst [vmem:[#allocation238_spill] sm:$0xff] %v7957_v11  ;;  %v7971_v40 = vmul.f32 %v16490_v44, %v1355_v8  ;;  %v1382_v60 = vadd.f32 1.0, %v1381_v25  ;;  %v7999_v25 = vadd.f32 1.0, %v16505_v37  ;;  %v16516_v8 = vld [vmem:[#allocation77_spill] sm:$0xff] }
 0x174   :  { %16502 = vst [vmem:[#allocation65_spill] sm:$0xff] %v7953_v58  ;;  %v7962_v63 = vpop.eup %5093  ;;  %5119 = vpow2.f32 %v7610_v32  ;;  %v1399_v58 = vmul.f32 -0.5, %v16508_v29  ;;  %v1391_v32 = vadd.f32 1.0, %v1390_v21  ;;  %v16519_v21 = vld [vmem:[#allocation79_spill] sm:$0xff] }
 0x175   :  { %16504 = vst [vmem:[#allocation239_spill] sm:$0xff] %v7962_v63  ;;  %v7967_v53 = vpop.eup %5095  ;;  %5121 = vpow2.f32 %v7613_v7  ;;  %16507 = vst [vmem:[#allocation241_spill] sm:$0xff] %v7971_v40  ;;  %v7988_v7 = vmul.f32 %v16494_v19, %v1364_v34  ;;  %v16512_v40 = vld [vmem:[#allocation74_spill] sm:$0xff] }
 0x176   :  { %16506 = vst [vmem:[#allocation240_spill] sm:$0xff] %v7967_v53  ;;  %v7977_v63 = vpop.eup %5097  ;;  %5123 = vpow2.f32 %v7619_v31  ;;  %v1408_v11 = vmul.f32 -0.5, %v16512_v40  ;;  %v7996_v31 = vmul.f32 %v16497_v30, %v1373_v28  ;;  %v1400_v34 = vadd.f32 1.0, %v1399_v58 }
 0x177   :  { %16509 = vst [vmem:[#allocation242_spill] sm:$0xff] %v7977_v63  ;;  %v7984_v53 = vpop.eup %5099  ;;  %5125 = vpow2.f32 %v7622_v47  ;;  %16511 = vst [vmem:[#allocation244_spill] sm:$0xff] %v7988_v7  ;;  %v1417_v7 = vmul.f32 -0.5, %v16516_v8  ;;  %v8013_v28 = vadd.f32 1.0, %v16508_v29  ;;  %v8021_v58 = vadd.f32 1.0, %v16512_v40 }
 0x178   :  { %16510 = vst [vmem:[#allocation243_spill] sm:$0xff] %v7984_v53  ;;  %v7992_v63 = vpop.eup %5101  ;;  %5127 = vpow2.f32 %v7625_v36  ;;  %16514 = vst [vmem:[#allocation246_spill] sm:$0xff] %v7996_v31  ;;  %v8010_v36 = vmul.f32 %v16501_v52, %v1382_v60  ;;  %v1409_v47 = vadd.f32 1.0, %v1408_v11  ;;  %v8038_v11 = vadd.f32 1.0, %v16516_v8  ;;  %v16527_v60 = vld [vmem:[#allocation81_spill] sm:$0xff] }
 0x179   :  { %16513 = vst [vmem:[#allocation245_spill] sm:$0xff] %v7992_v63  ;;  %v8001_v53 = vpop.eup %5103  ;;  %5129 = vpow2.f32 %v7631_v59  ;;  %v1426_v63 = vmul.f32 -0.5, %v16519_v21  ;;  %v1418_v59 = vadd.f32 1.0, %v1417_v7  ;;  %v16530_v7 = vld [vmem:[#allocation82_spill] sm:$0xff] }
 0x17a   :  { %16515 = vst [vmem:[#allocation247_spill] sm:$0xff] %v8001_v53  ;;  %v8006_v19 = vpop.eup %5105  ;;  %5131 = vpow2.f32 %v7634_v20  ;;  %16518 = vst [vmem:[#allocation249_spill] sm:$0xff] %v8010_v36  ;;  %v8027_v20 = vmul.f32 %v16505_v37, %v1391_v32  ;;  %v16523_v36 = vld [vmem:[#allocation80_spill] sm:$0xff] }
 0x17b   :  { %16517 = vst [vmem:[#allocation248_spill] sm:$0xff] %v8006_v19  ;;  %v8016_v53 = vpop.eup %5107  ;;  %5133 = vpow2.f32 %v7637_v2  ;;  %v1435_v31 = vmul.f32 -0.5, %v16523_v36  ;;  %v8035_v2 = vmul.f32 %v16508_v29, %v1400_v34  ;;  %v1427_v32 = vadd.f32 1.0, %v1426_v63 }
 0x17c   :  { %16520 = vst [vmem:[#allocation250_spill] sm:$0xff] %v8016_v53  ;;  %v8023_v19 = vpop.eup %5109  ;;  %5135 = vpow2.f32 %v7643_v15  ;;  %16522 = vst [vmem:[#allocation252_spill] sm:$0xff] %v8027_v20  ;;  %v1444_v20 = vmul.f32 -0.5, %v16527_v60  ;;  %v8052_v34 = vadd.f32 1.0, %v16519_v21  ;;  %v8060_v63 = vadd.f32 1.0, %v16523_v36 }
 0x17d   :  { %16521 = vst [vmem:[#allocation251_spill] sm:$0xff] %v8023_v19  ;;  %v8031_v53 = vpop.eup %5111  ;;  %5137 = vpow2.f32 %v7646_v5  ;;  %16525 = vst [vmem:[#allocation254_spill] sm:$0xff] %v8035_v2  ;;  %v8049_v5 = vmul.f32 %v16512_v40, %v1409_v47  ;;  %v1436_v15 = vadd.f32 1.0, %v1435_v31  ;;  %v8077_v31 = vadd.f32 1.0, %v16527_v60  ;;  %v16538_v47 = vld [vmem:[#allocation86_spill] sm:$0xff] }
 0x17e   :  { %16524 = vst [vmem:[#allocation253_spill] sm:$0xff] %v8031_v53  ;;  %v8040_v19 = vpop.eup %5113  ;;  %5139 = vpow2.f32 %v7649_v0  ;;  %v1453_v53 = vmul.f32 -0.5, %v16530_v7  ;;  %v1445_v0 = vadd.f32 1.0, %v1444_v20  ;;  %v16541_v20 = vld [vmem:[#allocation95_spill] sm:$0xff] }
 0x17f   :  { %16526 = vst [vmem:[#allocation255_spill] sm:$0xff] %v8040_v19  ;;  %v8045_v37 = vpop.eup %5115  ;;  %5141 = vpow2.f32 %v7655_v3  ;;  %16529 = vst [vmem:[#allocation257_spill] sm:$0xff] %v8049_v5  ;;  %v8066_v3 = vmul.f32 %v16516_v8, %v1418_v59  ;;  %v16534_v5 = vld [vmem:[#allocation83_spill] sm:$0xff] }
 0x180   :  { %16528 = vst [vmem:[#allocation256_spill] sm:$0xff] %v8045_v37  ;;  %v8055_v19 = vpop.eup %5117  ;;  %5143 = vpow2.f32 %v7658_v42  ;;  %v1462_v2 = vmul.f32 -0.5, %v16534_v5  ;;  %v8074_v42 = vmul.f32 %v16519_v21, %v1427_v32  ;;  %v1454_v59 = vadd.f32 1.0, %v1453_v53 }
 0x181   :  { %16531 = vst [vmem:[#allocation258_spill] sm:$0xff] %v8055_v19  ;;  %v8062_v37 = vpop.eup %5119  ;;  %5145 = vpow2.f32 %v7661_v38  ;;  %16533 = vst [vmem:[#allocation260_spill] sm:$0xff] %v8066_v3  ;;  %v1471_v3 = vmul.f32 -0.5, %v16538_v47  ;;  %v8091_v32 = vadd.f32 1.0, %v16530_v7  ;;  %v8099_v53 = vadd.f32 1.0, %v16534_v5 }
 0x182   :  { %16532 = vst [vmem:[#allocation259_spill] sm:$0xff] %v8062_v37  ;;  %v8070_v19 = vpop.eup %5121  ;;  %5147 = vpow2.f32 %v7667_v4  ;;  %16536 = vst [vmem:[#allocation262_spill] sm:$0xff] %v8074_v42  ;;  %v8088_v4 = vmul.f32 %v16523_v36, %v1436_v15  ;;  %v1463_v38 = vadd.f32 1.0, %v1462_v2  ;;  %v8116_v2 = vadd.f32 1.0, %v16538_v47  ;;  %v16549_v15 = vld [vmem:[#allocation99_spill] sm:$0xff] }
 0x183   :  { %16535 = vst [vmem:[#allocation261_spill] sm:$0xff] %v8070_v19  ;;  %v8079_v37 = vpop.eup %5123  ;;  %5149 = vpow2.f32 %v7670_v62  ;;  %v1480_v19 = vmul.f32 -0.5, %v16541_v20  ;;  %v1472_v62 = vadd.f32 1.0, %v1471_v3  ;;  %v16553_v3 = vld [vmem:[#allocation100_spill] sm:$0xff] }
 0x184   :  { %16537 = vst [vmem:[#allocation263_spill] sm:$0xff] %v8079_v37  ;;  %v8084_v8 = vpop.eup %5125  ;;  %5151 = vpow2.f32 %v7673_v26  ;;  %16540 = vst [vmem:[#allocation265_spill] sm:$0xff] %v8088_v4  ;;  %v8105_v26 = vmul.f32 %v16527_v60, %v1445_v0  ;;  %v16545_v4 = vld [vmem:[#allocation96_spill] sm:$0xff] }
 0x185   :  { %16539 = vst [vmem:[#allocation264_spill] sm:$0xff] %v8084_v8  ;;  %v8094_v37 = vpop.eup %5127  ;;  %5153 = vpow2.f32 %v7679_v10  ;;  %v1489_v42 = vmul.f32 -0.5, %v16545_v4  ;;  %v8113_v10 = vmul.f32 %v16530_v7, %v1454_v59  ;;  %v1481_v0 = vadd.f32 1.0, %v1480_v19 }
 0x186   :  { %16542 = vst [vmem:[#allocation266_spill] sm:$0xff] %v8094_v37  ;;  %v8101_v8 = vpop.eup %5129  ;;  %5155 = vpow2.f32 %v7682_v13  ;;  %16544 = vst [vmem:[#allocation268_spill] sm:$0xff] %v8105_v26  ;;  %v1498_v26 = vmul.f32 -0.5, %v16549_v15  ;;  %v8130_v59 = vadd.f32 1.0, %v16541_v20  ;;  %v8138_v13 = vadd.f32 1.0, %v16545_v4 }
 0x187   :  { %16543 = vst [vmem:[#allocation267_spill] sm:$0xff] %v8101_v8  ;;  %v8109_v37 = vpop.eup %5131  ;;  %5157 = vpow2.f32 %v7685_v12  ;;  %16547 = vst [vmem:[#allocation270_spill] sm:$0xff] %v8113_v10  ;;  %v8127_v12 = vmul.f32 %v16534_v5, %v1463_v38  ;;  %v1507_v10 = vmul.f32 -0.5, %v16553_v3  ;;  %v8144_v38 = vmul.f32 %v16538_v47, %v1472_v62  ;;  %v16559_v5 = vld [vmem:[#allocation85_spill] sm:$0xff] }
 0x188   :  { %16546 = vst [vmem:[#allocation269_spill] sm:$0xff] %v8109_v37  ;;  %v8118_v8 = vpop.eup %5133  ;;  %5159 = vpow2.f32 %v7691_v17  ;;  %v16551_v37 = vld [vmem:[#allocation12_spill] sm:$0xff]  ;;  %v16555_v17 = vld [vmem:[#allocation13_spill] sm:$0xff]  ;;  %v1516_v36 = vmul.f32 -0.5, %v16559_v5  ;;  %v8152_v19 = vmul.f32 %v16541_v20, %v1481_v0  ;;  %v8177_v62 = vadd.f32 1.0, %v16559_v5 }
 0x189   :  { %16548 = vst [vmem:[#allocation271_spill] sm:$0xff] %v8118_v8  ;;  %v8123_v60 = vpop.eup %5135  ;;  %5161 = vpow2.f32 %v16551_v37  ;;  %16552 = vst [vmem:[#allocation12_spill] sm:$0xff] %v8127_v12  ;;  %v16557_v37 = vld [vmem:[#allocation15_spill] sm:$0xff]  ;;  %v1508_v12 = vadd.f32 1.0, %v1507_v10 }
 0x18a   :  { %16550 = vst [vmem:[#allocation272_spill] sm:$0xff] %v8123_v60  ;;  %v8133_v8 = vpop.eup %5137  ;;  %5163 = vpow2.f32 %v16555_v17  ;;  %v1490_v60 = vadd.f32 1.0, %v1489_v42  ;;  %16558 = vst [vmem:[#allocation15_spill] sm:$0xff] %v8144_v38  ;;  %v16561_v17 = vld [vmem:[#allocation16_spill] sm:$0xff]  ;;  %v8155_v42 = vadd.f32 1.0, %v16549_v15  ;;  %v16565_v38 = vld [vmem:[#allocation101_spill] sm:$0xff] }
 0x18b   :  { %16554 = vst [vmem:[#allocation273_spill] sm:$0xff] %v8133_v8  ;;  %v8140_v7 = vpop.eup %5139  ;;  %5165 = vpow2.f32 %v16557_v37  ;;  %16562 = vst [vmem:[#allocation16_spill] sm:$0xff] %v8152_v19  ;;  %v16564_v37 = vld [vmem:[#allocation18_spill] sm:$0xff]  ;;  %v1525_v47 = vmul.f32 -0.5, %v16565_v38  ;;  %v8191_v10 = vmul.f32 %v16553_v3, %v1508_v12 }
 0x18c   :  { %16556 = vst [vmem:[#allocation13_spill] sm:$0xff] %v8140_v7  ;;  %v8148_v8 = vpop.eup %5141  ;;  %5167 = vpow2.f32 %v16561_v17  ;;  %v1499_v7 = vadd.f32 1.0, %v1498_v26  ;;  %v8166_v0 = vmul.f32 %v16545_v4, %v1490_v60  ;;  %v8169_v17 = vadd.f32 1.0, %v16553_v3  ;;  %v16570_v26 = vld [vmem:[#allocation102_spill] sm:$0xff]  ;;  %v16577_v4 = vld [vmem:[#allocation103_spill] sm:$0xff] }
 0x18d   :  { %16560 = vst [vmem:[#allocation274_spill] sm:$0xff] %v8148_v8  ;;  %v8157_v21 = vpop.eup %5143  ;;  %5169 = vpow2.f32 %v16564_v37  ;;  %v16567_v8 = vld [vmem:[#allocation19_spill] sm:$0xff]  ;;  %v1534_v19 = vmul.f32 -0.5, %v16570_v26  ;;  %v16572_v37 = vld [vmem:[#allocation20_spill] sm:$0xff] }
 0x18e   :  { %16563 = vst [vmem:[#allocation275_spill] sm:$0xff] %v8157_v21  ;;  %v8162_v40 = vpop.eup %5145  ;;  %5171 = vpow2.f32 %v16567_v8  ;;  %16568 = vst [vmem:[#allocation19_spill] sm:$0xff] %v8166_v0  ;;  %v16575_v8 = vld [vmem:[#allocation22_spill] sm:$0xff]  ;;  %v8183_v60 = vmul.f32 %v16549_v15, %v1499_v7 }
 0x18f   :  { %16566 = vst [vmem:[#allocation18_spill] sm:$0xff] %v8162_v40  ;;  %16569 = vst [vmem:[#allocation276_spill] sm:$0xff] %v8169_v17  ;;  %v8172_v21 = vpop.eup %5147  ;;  %5173 = vpow2.f32 %v16572_v37  ;;  %v1517_v40 = vadd.f32 1.0, %v1516_v36  ;;  %v1543_v17 = vmul.f32 -0.5, %v16577_v4  ;;  %v16579_v37 = vld [vmem:[#allocation23_spill] sm:$0xff]  ;;  %v8194_v36 = vadd.f32 1.0, %v16565_v38 }
 0x190   :  { %16571 = vst [vmem:[#allocation277_spill] sm:$0xff] %v8172_v21  ;;  %16573 = vst [vmem:[#allocation20_spill] sm:$0xff] %v8177_v62  ;;  %v8179_v20 = vpop.eup %5149  ;;  %5175 = vpow2.f32 %v16575_v8  ;;  %v16582_v8 = vld [vmem:[#allocation25_spill] sm:$0xff]  ;;  %v1535_v0 = vadd.f32 1.0, %v1534_v19 }
 0x191   :  { %16574 = vst [vmem:[#allocation278_spill] sm:$0xff] %v8179_v20  ;;  %16576 = vst [vmem:[#allocation22_spill] sm:$0xff] %v8183_v60  ;;  %v8187_v21 = vpop.eup %5151  ;;  %5177 = vpow2.f32 %v16579_v37  ;;  %v1526_v20 = vadd.f32 1.0, %v1525_v47  ;;  %v16583_v60 = vld [vmem:[#allocation104_spill] sm:$0xff]  ;;  %v8205_v12 = vmul.f32 %v16559_v5, %v1517_v40  ;;  %v8208_v37 = vadd.f32 1.0, %v16570_v26  ;;  %v16588_v47 = vld [vmem:[#allocation105_spill] sm:$0xff] }
 0x192   :  { %16578 = vst [vmem:[#allocation279_spill] sm:$0xff] %v8187_v21  ;;  %16580 = vst [vmem:[#allocation23_spill] sm:$0xff] %v8191_v10  ;;  %v8196_v62 = vpop.eup %5153  ;;  %5179 = vpow2.f32 %v16582_v8  ;;  %v1552_v15 = vmul.f32 -0.5, %v16583_v60  ;;  %v16585_v21 = vld [vmem:[#allocation26_spill] sm:$0xff]  ;;  %v1561_v10 = vmul.f32 -0.5, %v16588_v47  ;;  %v8216_v8 = vadd.f32 1.0, %v16577_v4 }
 0x193   :  { %16581 = vst [vmem:[#allocation280_spill] sm:$0xff] %v8196_v62  ;;  %v8201_v29 = vpop.eup %5155  ;;  %5181 = vpow2.f32 %v16585_v21  ;;  %16586 = vst [vmem:[#allocation26_spill] sm:$0xff] %v8205_v12  ;;  %v1544_v7 = vadd.f32 1.0, %v1543_v17  ;;  %v16592_v21 = vld [vmem:[#allocation28_spill] sm:$0xff]  ;;  %v8222_v40 = vmul.f32 %v16565_v38, %v1526_v20  ;;  %v16594_v5 = vld [vmem:[#allocation106_spill] sm:$0xff]  ;;  %v8230_v19 = vmul.f32 %v16570_v26, %v1535_v0 }
 0x194   :  { %16584 = vst [vmem:[#allocation25_spill] sm:$0xff] %v8201_v29  ;;  %16587 = vst [vmem:[#allocation281_spill] sm:$0xff] %v8208_v37  ;;  %v8211_v62 = vpop.eup %5157  ;;  %5183 = vpow2.f32 %v7745_v33  ;;  %v1570_v3 = vmul.f32 -0.5, %v16594_v5  ;;  %v16596_v33 = vld [vmem:[#allocation30_spill] sm:$0xff]  ;;  %v8233_v17 = vadd.f32 1.0, %v16583_v60  ;;  %v1562_v12 = vadd.f32 1.0, %v1561_v10 }
 0x195   :  { %16589 = vst [vmem:[#allocation282_spill] sm:$0xff] %v8211_v62  ;;  %16590 = vst [vmem:[#allocation283_spill] sm:$0xff] %v8216_v8  ;;  %v8218_v29 = vpop.eup %5159  ;;  %5185 = vpow2.f32 %v16592_v21  ;;  %v16599_v21 = vld [vmem:[#allocation31_spill] sm:$0xff]  ;;  %v8244_v0 = vmul.f32 %v16577_v4, %v1544_v7  ;;  %v8254_v10 = vadd.f32 1.0, %v16594_v5  ;;  %v16670_v4 = vld [vmem:[#allocation48_spill] sm:$0xff]  ;;  %v16672_v26 = vmov 0 }
 0x196   :  { %16591 = vst [vmem:[#allocation284_spill] sm:$0xff] %v8218_v29  ;;  %16593 = vst [vmem:[#allocation28_spill] sm:$0xff] %v8222_v40  ;;  %v8226_v62 = vpop.eup %5161  ;;  %5187 = vpow2.f32 %v16596_v33  ;;  %v1553_v29 = vadd.f32 1.0, %v1552_v15  ;;  %v16600_v40 = vld [vmem:[#allocation89_spill] sm:$0xff]  ;;  %v8247_v33 = vadd.f32 1.0, %v16588_v47  ;;  %v16604_v20 = vld [vmem:[#allocation107_spill] sm:$0xff] }
 0x197   :  { %16595 = vst [vmem:[#allocation285_spill] sm:$0xff] %v8226_v62  ;;  %16597 = vst [vmem:[#allocation30_spill] sm:$0xff] %v8230_v19  ;;  %v8235_v8 = vpop.eup %5163  ;;  %5189 = vlog2.f32 %v16599_v21  ;;  %v1579_v38 = vmul.f32 -0.5, %v16600_v40  ;;  %v1571_v21 = vadd.f32 1.0, %v1570_v3  ;;  %v16607_v15 = vld [vmem:[#allocation90_spill] sm:$0xff]  ;;  %v8272_v3 = vadd.f32 1.0, %v16600_v40 }
 0x198   :  { %16598 = vst [vmem:[#allocation286_spill] sm:$0xff] %v8235_v8  ;;  %v8240_v37 = vpop.eup %5165  ;;  %5191 = vlog2.f32 %v7765_v54  ;;  %16602 = vst [vmem:[#allocation287_spill] sm:$0xff] %v8244_v0  ;;  %v8261_v54 = vmul.f32 %v16583_v60, %v1553_v29  ;;  %v1597_v0 = vmul.f32 -0.5, %v16607_v15  ;;  %v8279_v29 = vadd.f32 1.0, %v16604_v20  ;;  %v16611_v7 = vld [vmem:[#allocation91_spill] sm:$0xff] }
 0x199   :  { %16601 = vst [vmem:[#allocation31_spill] sm:$0xff] %v8240_v37  ;;  %v8250_v8 = vpop.eup %5167  ;;  %5193 = vlog2.f32 %v7779_v48  ;;  %v1588_v37 = vmul.f32 -0.5, %v16604_v20  ;;  %v8269_v48 = vmul.f32 %v16588_v47, %v1562_v12 }
 0x19a   :  { %16603 = vst [vmem:[#allocation288_spill] sm:$0xff] %v8250_v8  ;;  %v8257_v62 = vpop.eup %5169  ;;  %5195 = vlog2.f32 %v7787_v18  ;;  %16606 = vst [vmem:[#allocation290_spill] sm:$0xff] %v8261_v54  ;;  %v8294_v18 = vadd.f32 1.0, %v16607_v15  ;;  %v1598_v47 = vadd.f32 1.0, %v1597_v0  ;;  %v16620_v0 = vld [vmem:[#allocation94_spill] sm:$0xff] }
 0x19b   :  { %16605 = vst [vmem:[#allocation289_spill] sm:$0xff] %v8257_v62  ;;  %v8265_v8 = vpop.eup %5171  ;;  %5197 = vlog2.f32 %v7804_v1  ;;  %16609 = vst [vmem:[#allocation292_spill] sm:$0xff] %v8269_v48  ;;  %v1580_v62 = vadd.f32 1.0, %v1579_v38  ;;  %v8286_v1 = vmul.f32 %v16594_v5, %v1571_v21  ;;  %v1589_v12 = vadd.f32 1.0, %v1588_v37  ;;  %v16614_v38 = vld [vmem:[#allocation92_spill] sm:$0xff]  ;;  %v16618_v21 = vld [vmem:[#allocation93_spill] sm:$0xff] }
 0x19c   :  { %16608 = vst [vmem:[#allocation291_spill] sm:$0xff] %v8265_v8  ;;  %v8274_v19 = vpop.eup %5173  ;;  %5199 = vlog2.f32 %v7818_v51  ;;  %v1606_v8 = vmul.f32 -0.5, %v16611_v7  ;;  %v1615_v48 = vmul.f32 -0.5, %v16614_v38  ;;  %v16652_v5 = vmov 0 }
 0x19d   :  { %16610 = vst [vmem:[#allocation293_spill] sm:$0xff] %v8274_v19  ;;  %v8282_v54 = vpop.eup %5175  ;;  %5201 = vlog2.f32 %v7826_v35  ;;  %16613 = vst [vmem:[#allocation295_spill] sm:$0xff] %v8286_v1  ;;  %v8300_v35 = vmul.f32 %v16600_v40, %v1580_v62  ;;  %v1633_v1 = vmul.f32 -0.5, %v16620_v0 }
 0x19e   :  { %16612 = vst [vmem:[#allocation294_spill] sm:$0xff] %v8282_v54  ;;  %v8289_v19 = vpop.eup %5177  ;;  %5203 = vlog2.f32 %v7843_v41  ;;  %v1624_v54 = vmul.f32 -0.5, %v16618_v21  ;;  %v8308_v41 = vadd.f32 1.0, %v16611_v7  ;;  %v1607_v51 = vadd.f32 1.0, %v1606_v8 }
 0x19f   :  { %16615 = vst [vmem:[#allocation296_spill] sm:$0xff] %v8289_v19  ;;  %v8296_v60 = vpop.eup %5179  ;;  %5205 = vlog2.f32 %v7857_v22  ;;  %16617 = vst [vmem:[#allocation298_spill] sm:$0xff] %v8300_v35  ;;  %v8315_v22 = vmul.f32 %v16604_v20, %v1589_v12  ;;  %v1616_v37 = vadd.f32 1.0, %v1615_v48  ;;  %v8325_v8 = vadd.f32 1.0, %v16614_v38 }
 0x1a0   :  { %16616 = vst [vmem:[#allocation297_spill] sm:$0xff] %v8296_v60  ;;  %v8304_v19 = vpop.eup %5181  ;;  %5207 = vlog2.f32 %v7865_v50  ;;  %v8322_v50 = vmul.f32 %v16607_v15, %v1598_v47  ;;  %v8333_v48 = vadd.f32 1.0, %v16618_v21  ;;  %v1625_v12 = vadd.f32 1.0, %v1624_v54 }
 0x1a1   :  { %16619 = vst [vmem:[#allocation299_spill] sm:$0xff] %v8304_v19  ;;  %v8311_v60 = vpop.eup %5183  ;;  %5209 = vlog2.f32 %v7882_v39  ;;  %16622 = vst [vmem:[#allocation301_spill] sm:$0xff] %v8315_v22  ;;  %v16625_v19 = vld [vmem:[#allocation97_spill] sm:$0xff]  ;;  %v16629_v47 = vmov 0  ;;  %v16633_v22 = vld [vmem:[#allocation36_spill] sm:$0xff] }
 0x1a2   :  { %16621 = vst [vmem:[#allocation300_spill] sm:$0xff] %v8311_v60  ;;  %v8318_v35 = vpop.eup %5185  ;;  %5211 = vlog2.f32 %v7896_v43  ;;  %16624 = vst [vmem:[#allocation303_spill] sm:$0xff] %v8322_v50  ;;  %v1642_v60 = vmul.f32 -0.5, %v16625_v19  ;;  %v16627_v43 = vld [vmem:[#allocation34_spill] sm:$0xff]  ;;  %v8343_v50 = vmul.f32 %v16611_v7, %v1607_v51  ;;  %v16634_v15 = vand.u32 2147483647, %v16633_v22 }
 0x1a3   :  { %16623 = vst [vmem:[#allocation302_spill] sm:$0xff] %v8318_v35  ;;  %v8328_v40 = vpop.eup %5187  ;;  %5213 = vlog2.f32 %v7904_v56  ;;  %v16628_v35 = vand.u32 2147483647, %v16627_v43  ;;  %v16638_v43 = vmov 0  ;;  %v16642_v51 = vld [vmem:[#allocation14_spill] sm:$0xff] }
 0x1a4   :  { %16626 = vst [vmem:[#allocation304_spill] sm:$0xff] %v8328_v40  ;;  %v5190_v62 = vpop.eup %5189  ;;  %5215 = vlog2.f32 %v7921_v9  ;;  %16632 = vst [vmem:[#allocation305_spill] sm:$0xff] %v8343_v50  ;;  %v1634_v40 = vadd.f32 1.0, %v1633_v1  ;;  %vm8348_vm1 = vcmp.lt.f32.partialorder %v16634_v15, 0.0004427343  ;;  %v8360_v9 = vmul.f32 %v16614_v38, %v1616_v37  ;;  %v16650_v56 = vld [vmem:[#allocation42_spill] sm:$0xff] }
 0x1a5   :  { %vm8337_vm0 = vcmp.lt.f32.partialorder %v16628_v35, 0.0004427343  ;;  %v5192_v39 = vpop.eup %5191  ;;  %v16637_v35 = vand.u32 2147483647, %v16436_v49  ;;  %5217 = vlog2.f32 %v7935_v45  ;;  %v8363_v1 = vadd.f32 1.0, %v16620_v0 }
 0x1a6   :  { %v16630_v47 = vsel %vm8337_vm0, 4294967295, %v16629_v47  ;;  %16641 = vst [vmem:[#allocation306_spill] sm:$0xff] %v8360_v9  ;;  %v1651_v22 = vmul.f32 -0.5, %v16642_v51  ;;  %v5194_v15 = vpop.eup %5193  ;;  %5219 = vlog2.f32 %v7943_v61  ;;  %v1643_v49 = vadd.f32 1.0, %v1642_v60  ;;  %v16661_v61 = vld [vmem:[#allocation21_spill] sm:$0xff] }
 0x1a7   :  { %16631 = vst [vmem:[#allocation34_spill] sm:$0xff] %v16630_v47  ;;  %vm8354_vm2 = vcmp.lt.f32.partialorder %v16637_v35, 0.0004427343  ;;  %v16643_v35 = vld [vmem:[#allocation17_spill] sm:$0xff]  ;;  %v5196_v7 = vpop.eup %5195  ;;  %v16644_v20 = vand.u32 2147483647, %v16445_v14  ;;  %5221 = vlog2.f32 %v7960_v27  ;;  %v8377_v37 = vmul.f32 %v16618_v21, %v1625_v12 }
 0x1a8   :  { %v16639_v43 = vsel %vm8354_vm2, 4294967295, %v16638_v43  ;;  %v1660_v50 = vmul.f32 -0.5, %v16643_v35  ;;  %v16645_v45 = vmov 0  ;;  %v8380_v9 = vadd.f32 1.0, %v16625_v19  ;;  %v5198_v60 = vpop.eup %5197 }
 0x1a9   :  { %16640 = vst [vmem:[#allocation36_spill] sm:$0xff] %v16639_v43  ;;  %vm8371_vm3 = vcmp.lt.f32.partialorder %v16644_v20, 0.0004427343  ;;  %16648 = vst [vmem:[#allocation307_spill] sm:$0xff] %v8377_v37  ;;  %v16651_v38 = vand.u32 2147483647, %v16650_v56  ;;  %5223 = vlog2.f32 %v7974_v57  ;;  %v8397_v27 = vmul.f32 %v16620_v0, %v1634_v40 }
 0x1aa   :  { %v16646_v45 = vsel %vm8371_vm3, 4294967295, %v16645_v45  ;;  %16649 = vst [vmem:[#allocation308_spill] sm:$0xff] %v8380_v9  ;;  %v16655_v14 = vand.u32 2147483647, %v16451_v6  ;;  %v16656_v20 = vmov 0  ;;  %v8400_v12 = vadd.f32 1.0, %v16642_v51 }
 0x1ab   :  { %16647 = vst [vmem:[#allocation17_spill] sm:$0xff] %v16646_v45  ;;  %vm8385_vm4 = vcmp.lt.f32.partialorder %v16651_v38, 0.0004427343  ;;  %16659 = vst [vmem:[#allocation310_spill] sm:$0xff] %v8397_v27  ;;  %v1669_v56 = vmul.f32 -0.5, %v16661_v61  ;;  %v5200_v38 = vpop.eup %5199  ;;  %5225 = vlog2.f32 %v7982_v24  ;;  %v1652_v37 = vadd.f32 1.0, %v1651_v22 }
 0x1ac   :  { %v16653_v5 = vsel %vm8385_vm4, 4294967295, %v16652_v5  ;;  %vm8391_vm5 = vcmp.lt.f32.partialorder %v16655_v14, 0.0004427343  ;;  %16660 = vst [vmem:[#allocation311_spill] sm:$0xff] %v8400_v12  ;;  %v8406_v14 = vadd.f32 1.0, %v16643_v35  ;;  %v5202_v21 = vpop.eup %5201  ;;  %v16663_v9 = vld [vmem:[#allocation46_spill] sm:$0xff]  ;;  %5227 = vlog2.f32 %v7999_v25 }
 0x1ad   :  { %16654 = vst [vmem:[#allocation42_spill] sm:$0xff] %v16653_v5  ;;  %v16657_v20 = vsel %vm8391_vm5, 4294967295, %v16656_v20  ;;  %v16664_v57 = vand.u32 2147483647, %v16663_v9  ;;  %v16665_v40 = vmov 0  ;;  %v8416_v27 = vmul.f32 %v16625_v19, %v1643_v49  ;;  %v16669_v24 = vld [vmem:[#allocation24_spill] sm:$0xff]  ;;  %v5204_v12 = vpop.eup %5203 }
 0x1ae   :  { %16658 = vst [vmem:[#allocation309_spill] sm:$0xff] %v16657_v20  ;;  %16662 = vst [vmem:[#allocation21_spill] sm:$0xff] %v8406_v14  ;;  %v1661_v0 = vadd.f32 1.0, %v1660_v50  ;;  %v1678_v22 = vmul.f32 -0.5, %v16669_v24  ;;  %v8419_v6 = vmul.f32 0.6931472, %v5190_v62  ;;  %5229 = vlog2.f32 %v8013_v28  ;;  %v5206_v49 = vpop.eup %5205 }
 0x1af   :  { %vm8410_vm6 = vcmp.lt.f32.partialorder %v16664_v57, 0.0004427343  ;;  %16668 = vst [vmem:[#allocation312_spill] sm:$0xff] %v8416_v27  ;;  %v16671_v14 = vand.u32 2147483647, %v16670_v4  ;;  %v8430_v25 = vadd.f32 1.0, %v16661_v61  ;;  %5231 = vlog2.f32 %v8021_v58  ;;  %v5208_v28 = vpop.eup %5207 }
 0x1b0   :  { %v16666_v40 = vsel %vm8410_vm6, 4294967295, %v16665_v40  ;;  %v8432_v50 = vmul.f32 0.6931472, %v5192_v39  ;;  %v8434_v57 = vmul.f32 0.6931472, %v5194_v15  ;;  %v16679_v4 = vmov 0 }
 0x1b1   :  { %16667 = vst [vmem:[#allocation46_spill] sm:$0xff] %v16666_v40  ;;  %vm8423_vm7 = vcmp.lt.f32.partialorder %v16671_v14, 0.0004427343  ;;  %16675 = vst [vmem:[#allocation48_spill] sm:$0xff] %v8430_v25  ;;  %v16678_v62 = vand.u32 2147483647, %v16462_v16  ;;  %5233 = vlog2.f32 %v8038_v11  ;;  %v8457_v16 = vmul.f32 %v16642_v51, %v1652_v37 }
 0x1b2   :  { %v16673_v26 = vsel %vm8423_vm7, 4294967295, %v16672_v26  ;;  %16676 = vst [vmem:[#allocation313_spill] sm:$0xff] %v8432_v50  ;;  %16677 = vst [vmem:[#allocation314_spill] sm:$0xff] %v8434_v57  ;;  %v1670_v14 = vadd.f32 1.0, %v1669_v56  ;;  %v16682_v27 = vld [vmem:[#allocation51_spill] sm:$0xff]  ;;  %v16684_v19 = vmov 0  ;;  %5235 = vlog2.f32 %v8052_v34 }
 0x1b3   :  { %16674 = vst [vmem:[#allocation24_spill] sm:$0xff] %v16673_v26  ;;  %vm8438_vm8 = vcmp.lt.f32.partialorder %v16678_v62, 0.0004427343  ;;  %v16683_v9 = vand.u32 2147483647, %v16682_v27  ;;  %v16687_v39 = vld [vmem:[#allocation52_spill] sm:$0xff]  ;;  %v5210_v27 = vpop.eup %5209  ;;  %v8473_v11 = vmul.f32 %v16643_v35, %v1661_v0  ;;  %5237 = vlog2.f32 %v8060_v63 }
 0x1b4   :  { %v16680_v4 = vsel %vm8438_vm8, 4294967295, %v16679_v4  ;;  %v16688_v25 = vand.u32 2147483647, %v16687_v39  ;;  %v16689_v15 = vmov 0  ;;  %16692 = vst [vmem:[#allocation316_spill] sm:$0xff] %v8457_v16  ;;  %v8461_v56 = vadd.f32 1.0, %v16669_v24  ;;  %v5212_v39 = vpop.eup %5211 }
 0x1b5   :  { %16681 = vst [vmem:[#allocation315_spill] sm:$0xff] %v16680_v4  ;;  %vm8445_vm9 = vcmp.lt.f32.partialorder %v16683_v9, 0.0004427343  ;;  %v8463_v9 = vmul.f32 0.6931472, %v5196_v7  ;;  %v1679_v37 = vadd.f32 1.0, %v1678_v22  ;;  %5239 = vlog2.f32 %v8077_v31 }
 0x1b6   :  { %v16685_v19 = vsel %vm8445_vm9, 4294967295, %v16684_v19  ;;  %vm8451_vm10 = vcmp.lt.f32.partialorder %v16688_v25, 0.0004427343  ;;  %v16694_v62 = vand.u32 2147483647, %v16474_v23  ;;  %v16695_v25 = vmov 0  ;;  %v5214_v23 = vpop.eup %5213 }
 0x1b7   :  { %16686 = vst [vmem:[#allocation51_spill] sm:$0xff] %v16685_v19  ;;  %v16690_v15 = vsel %vm8451_vm10, 4294967295, %v16689_v15  ;;  %16693 = vst [vmem:[#allocation317_spill] sm:$0xff] %v8463_v9  ;;  %v16698_v58 = vld [vmem:[#allocation37_spill] sm:$0xff]  ;;  %v8479_v7 = vmul.f32 0.6931472, %v5198_v60  ;;  %v8506_v34 = vmul.f32 %v16661_v61, %v1670_v14  ;;  %v5216_v50 = vpop.eup %5215  ;;  %5241 = vlog2.f32 %v8091_v32 }
 0x1b8   :  { %16691 = vst [vmem:[#allocation52_spill] sm:$0xff] %v16690_v15  ;;  %vm8467_vm11 = vcmp.lt.f32.partialorder %v16694_v62, 0.0004427343  ;;  %v8481_v51 = vmul.f32 0.6931472, %v5200_v38  ;;  %v16700_v62 = vld [vmem:[#allocation43_spill] sm:$0xff]  ;;  %v5218_v57 = vpop.eup %5217  ;;  %5243 = vlog2.f32 %v8099_v53  ;;  %v8533_v32 = vmul.f32 %v16669_v24, %v1679_v37 }
 0x1b9   :  { %v16696_v25 = vsel %vm8467_vm11, 4294967295, %v16695_v25  ;;  %v16702_v47 = vand.u32 2147483647, %v16478_v55  ;;  %v16703_v60 = vmov 0  ;;  %v16705_v38 = vld [vmem:[#allocation55_spill] sm:$0xff]  ;;  %v16707_v63 = vmov 0 }
 0x1ba   :  { %16697 = vst [vmem:[#allocation318_spill] sm:$0xff] %v16696_v25  ;;  %16699 = vst [vmem:[#allocation37_spill] sm:$0xff] %v8481_v51  ;;  %v16706_v16 = vand.u32 2147483647, %v16705_v38  ;;  %v8508_v43 = vmul.f32 0.6931472, %v5202_v21  ;;  %5245 = vlog2.f32 %v8116_v2 }
 0x1bb   :  { %vm8494_vm12 = vcmp.lt.f32.partialorder %v16702_v47, 0.0004427343  ;;  %v16710_v55 = vand.u32 2147483647, %v16485_v46  ;;  %v16711_v47 = vmov 0  ;;  %v16714_v38 = vld [vmem:[#allocation27_spill] sm:$0xff]  ;;  %5247 = vlog2.f32 %v8130_v59 }
 0x1bc   :  { %v16704_v60 = vsel %vm8494_vm12, 4294967295, %v16703_v60  ;;  %vm8500_vm13 = vcmp.lt.f32.partialorder %v16706_v16, 0.0004427343  ;;  %16709 = vst [vmem:[#allocation43_spill] sm:$0xff] %v8508_v43  ;;  %v1687_v22 = vmul.f32 -0.5, %v16714_v38  ;;  %16721 = vst [vmem:[#allocation320_spill] sm:$0xff] %v8533_v32  ;;  %v5220_v16 = vpop.eup %5219  ;;  %5249 = vlog2.f32 %v8138_v13 }
 0x1bd   :  { %v16708_v63 = vsel %vm8500_vm13, 4294967295, %v16707_v63  ;;  %vm8512_vm14 = vcmp.lt.f32.partialorder %v16710_v55, 0.0004427343  ;;  %v8523_v21 = vmul.f32 0.6931472, %v5204_v12  ;;  %v16718_v55 = vmov 0  ;;  %v5222_v37 = vpop.eup %5221 }
 0x1be   :  { %v16712_v47 = vsel %vm8512_vm14, 4294967295, %v16711_v47  ;;  %v16717_v46 = vand.u32 2147483647, %v16490_v44  ;;  %v16722_v0 = vld [vmem:[#allocation64_spill] sm:$0xff]  ;;  %v16725_v14 = vld [vmem:[#allocation59_spill] sm:$0xff]  ;;  %v16727_v53 = vmov 0  ;;  %5251 = vlog2.f32 %v8155_v42 }
 0x1bf   :  { %16713 = vst [vmem:[#allocation55_spill] sm:$0xff] %v16712_v47  ;;  %16716 = vst [vmem:[#allocation27_spill] sm:$0xff] %v8523_v21  ;;  %v16726_v9 = vand.u32 2147483647, %v16725_v14  ;;  %v8552_v31 = vmul.f32 0.6931472, %v5208_v28 }
 0x1c0   :  { %vm8527_vm15 = vcmp.lt.f32.partialorder %v16717_v46, 0.0004427343  ;;  %v8543_v46 = vmul.f32 0.6931472, %v5206_v49  ;;  %v8554_v5 = vmul.f32 0.6931472, %v5210_v27 }
 0x1c1   :  { %v16719_v55 = vsel %vm8527_vm15, 4294967295, %v16718_v55  ;;  %vm8547_vm3 = vcmp.lt.f32.partialorder %v16726_v9, 0.0004427343  ;;  %16730 = vst [vmem:[#allocation321_spill] sm:$0xff] %v8552_v31  ;;  %v16732_v45 = vand.u32 2147483647, %v16497_v30  ;;  %v5224_v9 = vpop.eup %5223 }
 0x1c2   :  { %16720 = vst [vmem:[#allocation319_spill] sm:$0xff] %v16719_v55  ;;  %16724 = vst [vmem:[#allocation64_spill] sm:$0xff] %v8543_v46  ;;  %v16728_v53 = vsel %vm8547_vm3, 4294967295, %v16727_v53  ;;  %v16733_v20 = vmov 0  ;;  %v8564_v49 = vadd.f32 1.0, %v16714_v38  ;;  %v1688_v30 = vadd.f32 1.0, %v1687_v22 }
 0x1c3   :  { %16729 = vst [vmem:[#allocation59_spill] sm:$0xff] %v16728_v53  ;;  %16731 = vst [vmem:[#allocation322_spill] sm:$0xff] %v8554_v5  ;;  %vm8558_vm4 = vcmp.lt.f32.partialorder %v16732_v45, 0.0004427343  ;;  %v8570_v28 = vmul.f32 0.6931472, %v5212_v39  ;;  %v5226_v45 = vpop.eup %5225 }
 0x1c4   :  { %v16734_v20 = vsel %vm8558_vm4, 4294967295, %v16733_v20  ;;  %v16739_v44 = vand.u32 2147483647, %v16501_v52  ;;  %v16740_v51 = vmov 0  ;;  %v16743_v12 = vld [vmem:[#allocation68_spill] sm:$0xff]  ;;  %v16745_v39 = vmov 0  ;;  %v5228_v26 = vpop.eup %5227 }
 0x1c5   :  { %16735 = vst [vmem:[#allocation323_spill] sm:$0xff] %v16734_v20  ;;  %16737 = vst [vmem:[#allocation324_spill] sm:$0xff] %v8570_v28  ;;  %v16744_v40 = vand.u32 2147483647, %v16743_v12  ;;  %v16748_v22 = vld [vmem:[#allocation29_spill] sm:$0xff]  ;;  %v16754_v27 = vmov 0  ;;  %v5230_v13 = vpop.eup %5229 }
 0x1c6   :  { %vm8579_vm5 = vcmp.lt.f32.partialorder %v16739_v44, 0.0004427343  ;;  %v1696_v2 = vmul.f32 -0.5, %v16748_v22  ;;  %v8596_v44 = vmul.f32 0.6931472, %v5214_v23  ;;  %v16757_v42 = vld [vmem:[#allocation276_spill] sm:$0xff]  ;;  %v5232_v31 = vpop.eup %5231 }
 0x1c7   :  { %v16741_v51 = vsel %vm8579_vm5, 4294967295, %v16740_v51  ;;  %vm8585_vm6 = vcmp.lt.f32.partialorder %v16744_v40, 0.0004427343  ;;  %v8598_v21 = vmul.f32 0.6931472, %v5216_v50  ;;  %v16752_v40 = vld [vmem:[#allocation71_spill] sm:$0xff]  ;;  %5253 = vlog2.f32 %v16757_v42 }
 0x1c8   :  { %16742 = vst [vmem:[#allocation325_spill] sm:$0xff] %v16741_v51  ;;  %v16746_v39 = vsel %vm8585_vm6, 4294967295, %v16745_v39  ;;  %16750 = vst [vmem:[#allocation29_spill] sm:$0xff] %v8596_v44  ;;  %v16753_v12 = vand.u32 2147483647, %v16752_v40  ;;  %v16761_v40 = vld [vmem:[#allocation74_spill] sm:$0xff] }
 0x1c9   :  { %16747 = vst [vmem:[#allocation68_spill] sm:$0xff] %v16746_v39  ;;  %16751 = vst [vmem:[#allocation326_spill] sm:$0xff] %v8598_v21  ;;  %v8615_v23 = vmul.f32 0.6931472, %v5218_v57  ;;  %v16763_v46 = vmov 0  ;;  %v16766_v42 = vld [vmem:[#allocation77_spill] sm:$0xff] }
 0x1ca   :  { %vm8602_vm7 = vcmp.lt.f32.partialorder %v16753_v12, 0.0004427343  ;;  %v16762_v12 = vand.u32 2147483647, %v16761_v40  ;;  %v16767_v59 = vand.u32 2147483647, %v16766_v42 }
 0x1cb   :  { %v16755_v27 = vsel %vm8602_vm7, 4294967295, %v16754_v27  ;;  %16760 = vst [vmem:[#allocation276_spill] sm:$0xff] %v8615_v23  ;;  %v16768_v4 = vmov 0  ;;  %v16771_v14 = vld [vmem:[#allocation20_spill] sm:$0xff]  ;;  %v8634_v50 = vmul.f32 0.6931472, %v5220_v16 }
 0x1cc   :  { %16756 = vst [vmem:[#allocation71_spill] sm:$0xff] %v16755_v27  ;;  %vm8619_vm8 = vcmp.lt.f32.partialorder %v16762_v12, 0.0004427343  ;;  %vm8625_vm2 = vcmp.lt.f32.partialorder %v16767_v59, 0.0004427343  ;;  %5255 = vlog2.f32 %v16771_v14  ;;  %v16774_v40 = vld [vmem:[#allocation79_spill] sm:$0xff]  ;;  %v8644_v59 = vmul.f32 %v16714_v38, %v1688_v30  ;;  %v5234_v14 = vpop.eup %5233 }
 0x1cd   :  { %v16764_v46 = vsel %vm8619_vm8, 4294967295, %v16763_v46  ;;  %v16769_v4 = vsel %vm8625_vm2, 4294967295, %v16768_v4  ;;  %16773 = vst [vmem:[#allocation20_spill] sm:$0xff] %v8634_v50  ;;  %v16775_v12 = vand.u32 2147483647, %v16774_v40  ;;  %v16776_v5 = vmov 0  ;;  %v5236_v28 = vpop.eup %5235 }
 0x1ce   :  { %16765 = vst [vmem:[#allocation74_spill] sm:$0xff] %v16764_v46  ;;  %16770 = vst [vmem:[#allocation77_spill] sm:$0xff] %v16769_v4  ;;  %5257 = vlog2.f32 %v8194_v36  ;;  %v8646_v42 = vmul.f32 0.6931472, %v5222_v37  ;;  %v16781_v52 = vld [vmem:[#allocation281_spill] sm:$0xff]  ;;  %v8650_v57 = vadd.f32 1.0, %v16748_v22  ;;  %v5238_v43 = vpop.eup %5237 }
 0x1cf   :  { %vm8638_vm10 = vcmp.lt.f32.partialorder %v16775_v12, 0.0004427343  ;;  %16779 = vst [vmem:[#allocation327_spill] sm:$0xff] %v8644_v59  ;;  %5259 = vlog2.f32 %v16781_v52  ;;  %v1697_v16 = vadd.f32 1.0, %v1696_v2  ;;  %v8660_v15 = vmul.f32 0.6931472, %v5224_v9  ;;  %v5240_v21 = vpop.eup %5239 }
 0x1d0   :  { %v16777_v5 = vsel %vm8638_vm10, 4294967295, %v16776_v5  ;;  %16780 = vst [vmem:[#allocation328_spill] sm:$0xff] %v8646_v42  ;;  %v16785_v37 = vld [vmem:[#allocation80_spill] sm:$0xff]  ;;  %v16787_v52 = vmov 0  ;;  %v16790_v2 = vld [vmem:[#allocation283_spill] sm:$0xff]  ;;  %v16792_v44 = vld [vmem:[#allocation81_spill] sm:$0xff] }
 0x1d1   :  { %16778 = vst [vmem:[#allocation79_spill] sm:$0xff] %v16777_v5  ;;  %16784 = vst [vmem:[#allocation281_spill] sm:$0xff] %v8660_v15  ;;  %v16786_v25 = vand.u32 2147483647, %v16785_v37  ;;  %5261 = vlog2.f32 %v16790_v2  ;;  %v16793_v40 = vand.u32 2147483647, %v16792_v44 }
 0x1d2   :  { %v16794_v30 = vmov 0  ;;  %5263 = vlog2.f32 %v8233_v17  ;;  %v16797_v9 = vld [vmem:[#allocation32_spill] sm:$0xff]  ;;  %v8686_v47 = vmul.f32 0.6931472, %v5226_v45  ;;  %v8688_v12 = vmul.f32 0.6931472, %v5228_v26  ;;  %v5242_v17 = vpop.eup %5241 }
 0x1d3   :  { %vm8664_vm11 = vcmp.lt.f32.partialorder %v16786_v25, 0.0004427343  ;;  %vm8675_vm12 = vcmp.lt.f32.partialorder %v16793_v40, 0.0004427343  ;;  %v1705_v37 = vmul.f32 -0.5, %v16797_v9  ;;  %v16801_v44 = vld [vmem:[#allocation82_spill] sm:$0xff]  ;;  %5265 = vlog2.f32 %v8247_v33  ;;  %v5244_v19 = vpop.eup %5243 }
 0x1d4   :  { %v16788_v52 = vsel %vm8664_vm11, 4294967295, %v16787_v52  ;;  %v16795_v30 = vsel %vm8675_vm12, 4294967295, %v16794_v30  ;;  %16799 = vst [vmem:[#allocation81_spill] sm:$0xff] %v8686_v47  ;;  %16800 = vst [vmem:[#allocation32_spill] sm:$0xff] %v8688_v12  ;;  %v16802_v40 = vand.u32 2147483647, %v16801_v44  ;;  %5267 = vlog2.f32 %v8254_v10  ;;  %v5246_v10 = vpop.eup %5245 }
 0x1d5   :  { %16789 = vst [vmem:[#allocation80_spill] sm:$0xff] %v16788_v52  ;;  %16796 = vst [vmem:[#allocation283_spill] sm:$0xff] %v16795_v30  ;;  %v16803_v23 = vmov 0  ;;  %v8701_v55 = vmul.f32 0.6931472, %v5230_v13  ;;  %v16808_v45 = vld [vmem:[#allocation83_spill] sm:$0xff]  ;;  %v8717_v33 = vmul.f32 %v16748_v22, %v1697_v16  ;;  %5269 = vlog2.f32 %v8272_v3 }
 0x1d6   :  { %vm8692_vm14 = vcmp.lt.f32.partialorder %v16802_v40, 0.0004427343  ;;  %v16809_v36 = vand.u32 2147483647, %v16808_v45  ;;  %v16810_v26 = vmov 0  ;;  %v16813_v44 = vld [vmem:[#allocation86_spill] sm:$0xff]  ;;  %5271 = vlog2.f32 %v8279_v29 }
 0x1d7   :  { %v16804_v23 = vsel %vm8692_vm14, 4294967295, %v16803_v23  ;;  %16807 = vst [vmem:[#allocation329_spill] sm:$0xff] %v8701_v55  ;;  %v16814_v40 = vand.u32 2147483647, %v16813_v44  ;;  %v16815_v50 = vmov 0  ;;  %16818 = vst [vmem:[#allocation330_spill] sm:$0xff] %v8717_v33  ;;  %5273 = vlog2.f32 %v8294_v18 }
 0x1d8   :  { %16805 = vst [vmem:[#allocation82_spill] sm:$0xff] %v16804_v23  ;;  %vm8705_vm15 = vcmp.lt.f32.partialorder %v16809_v36, 0.0004427343  ;;  %v8723_v45 = vmul.f32 0.6931472, %v5232_v31  ;;  %v16822_v44 = vld [vmem:[#allocation95_spill] sm:$0xff]  ;;  %v5248_v36 = vpop.eup %5247  ;;  %5275 = vlog2.f32 %v8308_v41 }
 0x1d9   :  { %v16811_v26 = vsel %vm8705_vm15, 4294967295, %v16810_v26  ;;  %vm8711_vm13 = vcmp.lt.f32.partialorder %v16814_v40, 0.0004427343  ;;  %v8725_v42 = vmul.f32 0.6931472, %v5234_v14  ;;  %v16824_v25 = vmov 0  ;;  %v5250_v14 = vpop.eup %5249 }
 0x1da   :  { %16812 = vst [vmem:[#allocation83_spill] sm:$0xff] %v16811_v26  ;;  %v16816_v50 = vsel %vm8711_vm13, 4294967295, %v16815_v50  ;;  %16820 = vst [vmem:[#allocation331_spill] sm:$0xff] %v8723_v45  ;;  %v16823_v40 = vand.u32 2147483647, %v16822_v44  ;;  %v8738_v20 = vadd.f32 1.0, %v16797_v9  ;;  %5277 = vlog2.f32 %v8325_v8 }
 0x1db   :  { %16817 = vst [vmem:[#allocation86_spill] sm:$0xff] %v16816_v50  ;;  %16821 = vst [vmem:[#allocation332_spill] sm:$0xff] %v8725_v42  ;;  %v8734_v16 = vmul.f32 0.6931472, %v5236_v28  ;;  %v1706_v31 = vadd.f32 1.0, %v1705_v37  ;;  %v16830_v15 = vld [vmem:[#allocation96_spill] sm:$0xff]  ;;  %5279 = vlog2.f32 %v8333_v48 }
 0x1dc   :  { %vm8729_vm3 = vcmp.lt.f32.partialorder %v16823_v40, 0.0004427343  ;;  %v16831_v28 = vand.u32 2147483647, %v16830_v15  ;;  %v16832_v13 = vmov 0  ;;  %v16835_v29 = vld [vmem:[#allocation99_spill] sm:$0xff]  ;;  %5281 = vlog2.f32 %v8363_v1 }
 0x1dd   :  { %v16825_v25 = vsel %vm8729_vm3, 4294967295, %v16824_v25  ;;  %16827 = vst [vmem:[#allocation333_spill] sm:$0xff] %v8734_v16  ;;  %v16836_v53 = vand.u32 2147483647, %v16835_v29  ;;  %v16837_v37 = vmov 0  ;;  %v16840_v44 = vld [vmem:[#allocation33_spill] sm:$0xff]  ;;  %v8807_v8 = vmul.f32 %v16797_v9, %v1706_v31 }
 0x1de   :  { %16826 = vst [vmem:[#allocation95_spill] sm:$0xff] %v16825_v25  ;;  %vm8750_vm4 = vcmp.lt.f32.partialorder %v16831_v28, 0.0004427343  ;;  %v1714_v47 = vmul.f32 -0.5, %v16840_v44  ;;  %v8766_v28 = vmul.f32 0.6931472, %v5238_v43 }
 0x1df   :  { %v16833_v13 = vsel %vm8750_vm4, 4294967295, %v16832_v13  ;;  %vm8756_vm9 = vcmp.lt.f32.partialorder %v16836_v53, 0.0004427343  ;;  %v5252_v53 = vpop.eup %5251  ;;  %v8778_v51 = vmul.f32 0.6931472, %v5240_v21  ;;  %v16846_v15 = vld [vmem:[#allocation100_spill] sm:$0xff] }
 0x1e0   :  { %16834 = vst [vmem:[#allocation96_spill] sm:$0xff] %v16833_v13  ;;  %v16838_v37 = vsel %vm8756_vm9, 4294967295, %v16837_v37  ;;  %16842 = vst [vmem:[#allocation33_spill] sm:$0xff] %v8766_v28  ;;  %v16847_v43 = vand.u32 2147483647, %v16846_v15  ;;  %v16848_v55 = vmov 0  ;;  %v5254_v41 = vpop.eup %5253 }
 0x1e1   :  { %16839 = vst [vmem:[#allocation99_spill] sm:$0xff] %v16838_v37  ;;  %16845 = vst [vmem:[#allocation334_spill] sm:$0xff] %v8778_v51  ;;  %v8791_v45 = vmul.f32 0.6931472, %v5242_v17  ;;  %v16853_v4 = vld [vmem:[#allocation85_spill] sm:$0xff]  ;;  %v16855_v21 = vmov 0  ;;  %v5256_v18 = vpop.eup %5255 }
 0x1e2   :  { %vm8782_vm7 = vcmp.lt.f32.partialorder %v16847_v43, 0.0004427343  ;;  %v16854_v40 = vand.u32 2147483647, %v16853_v4  ;;  %v16857_v15 = vld [vmem:[#allocation101_spill] sm:$0xff]  ;;  %v16859_v42 = vmov 0 }
 0x1e3   :  { %v16849_v55 = vsel %vm8782_vm7, 4294967295, %v16848_v55  ;;  %16852 = vst [vmem:[#allocation335_spill] sm:$0xff] %v8791_v45  ;;  %v16858_v43 = vand.u32 2147483647, %v16857_v15  ;;  %16862 = vst [vmem:[#allocation101_spill] sm:$0xff] %v8807_v8  ;;  %v1715_v4 = vadd.f32 1.0, %v1714_v47 }
 0x1e4   :  { %16850 = vst [vmem:[#allocation100_spill] sm:$0xff] %v16849_v55  ;;  %vm8795_vm2 = vcmp.lt.f32.partialorder %v16854_v40, 0.0004427343  ;;  %v8809_v17 = vmul.f32 0.6931472, %v5244_v19  ;;  %v5258_v40 = vpop.eup %5257  ;;  %v16867_v48 = vld [vmem:[#allocation102_spill] sm:$0xff] }
 0x1e5   :  { %v16856_v21 = vsel %vm8795_vm2, 4294967295, %v16855_v21  ;;  %vm8801_vm8 = vcmp.lt.f32.partialorder %v16858_v43, 0.0004427343  ;;  %v8811_v16 = vmul.f32 0.6931472, %v5246_v10  ;;  %v16869_v31 = vmov 0  ;;  %v5260_v52 = vpop.eup %5259 }
 0x1e6   :  { %v16860_v42 = vsel %vm8801_vm8, 4294967295, %v16859_v42  ;;  %16863 = vst [vmem:[#allocation336_spill] sm:$0xff] %v8809_v17  ;;  %v8818_v29 = vmul.f32 0.6931472, %v5248_v36  ;;  %v16868_v5 = vand.u32 2147483647, %v16867_v48  ;;  %v5262_v3 = vpop.eup %5261 }
 0x1e7   :  { %16861 = vst [vmem:[#allocation85_spill] sm:$0xff] %v16860_v42  ;;  %16864 = vst [vmem:[#allocation337_spill] sm:$0xff] %v8811_v16  ;;  %v16872_v19 = vld [vmem:[#allocation103_spill] sm:$0xff]  ;;  %v16874_v12 = vmov 0  ;;  %v16877_v1 = vld [vmem:[#allocation308_spill] sm:$0xff]  ;;  %v1711_v47 = vadd.f32 1.0, %v16840_v44 }
 0x1e8   :  { %16866 = vst [vmem:[#allocation338_spill] sm:$0xff] %v8818_v29  ;;  %vm8822_vm10 = vcmp.lt.f32.partialorder %v16868_v5, 0.0004427343  ;;  %v16873_v10 = vand.u32 2147483647, %v16872_v19  ;;  %5283 = vlog2.f32 %v16877_v1  ;;  %v16879_v5 = vld [vmem:[#allocation104_spill] sm:$0xff] }
 0x1e9   :  { %v16870_v31 = vsel %vm8822_vm10, 4294967295, %v16869_v31  ;;  %v16880_v43 = vand.u32 2147483647, %v16879_v5  ;;  %v16881_v28 = vmov 0  ;;  %v16884_v19 = vld [vmem:[#allocation311_spill] sm:$0xff]  ;;  %v5264_v5 = vpop.eup %5263  ;;  %v16892_v27 = vld [vmem:[#allocation105_spill] sm:$0xff] }
 0x1ea   :  { %16871 = vst [vmem:[#allocation102_spill] sm:$0xff] %v16870_v31  ;;  %vm8828_vm6 = vcmp.lt.f32.partialorder %v16873_v10, 0.0004427343  ;;  %5285 = vlog2.f32 %v16884_v19  ;;  %v16885_v15 = vld [vmem:[#allocation35_spill] sm:$0xff]  ;;  %v8851_v30 = vmul.f32 0.6931472, %v5250_v14 }
 0x1eb   :  { %v16875_v12 = vsel %vm8828_vm6, 4294967295, %v16874_v12  ;;  %vm8840_vm11 = vcmp.lt.f32.partialorder %v16880_v43, 0.0004427343  ;;  %v1723_v1 = vmul.f32 -0.5, %v16885_v15  ;;  %v8853_v48 = vmul.f32 0.6931472, %v5252_v53 }
 0x1ec   :  { %16876 = vst [vmem:[#allocation103_spill] sm:$0xff] %v16875_v12  ;;  %v16882_v28 = vsel %vm8840_vm11, 4294967295, %v16881_v28  ;;  %16887 = vst [vmem:[#allocation104_spill] sm:$0xff] %v8851_v30  ;;  %v16889_v43 = vld [vmem:[#allocation21_spill] sm:$0xff]  ;;  %v16893_v23 = vand.u32 2147483647, %v16892_v27  ;;  %v8884_v27 = vmul.f32 %v16840_v44, %v1715_v4 }
 0x1ed   :  { %16883 = vst [vmem:[#allocation308_spill] sm:$0xff] %v16882_v28  ;;  %16888 = vst [vmem:[#allocation311_spill] sm:$0xff] %v8853_v48  ;;  %5287 = vlog2.f32 %v16889_v43  ;;  %v16894_v14 = vmov 0  ;;  %v16897_v53 = vld [vmem:[#allocation106_spill] sm:$0xff]  ;;  %v16899_v43 = vmov 0  ;;  %v16902_v45 = vld [vmem:[#allocation89_spill] sm:$0xff] }
 0x1ee   :  { %vm8866_vm14 = vcmp.lt.f32.partialorder %v16893_v23, 0.0004427343  ;;  %v16898_v39 = vand.u32 2147483647, %v16897_v53  ;;  %v16903_v26 = vand.u32 2147483647, %v16902_v45  ;;  %v5266_v23 = vpop.eup %5265 }
 0x1ef   :  { %v16895_v14 = vsel %vm8866_vm14, 4294967295, %v16894_v14  ;;  %v16904_v19 = vmov 0  ;;  %v16907_v50 = vld [vmem:[#allocation48_spill] sm:$0xff]  ;;  %16908 = vst [vmem:[#allocation106_spill] sm:$0xff] %v8884_v27  ;;  %v8890_v53 = vmul.f32 0.6931472, %v5254_v41  ;;  %v5268_v45 = vpop.eup %5267 }
 0x1f0   :  { %16896 = vst [vmem:[#allocation35_spill] sm:$0xff] %v16895_v14  ;;  %vm8872_vm12 = vcmp.lt.f32.partialorder %v16898_v39, 0.0004427343  ;;  %vm8878_vm15 = vcmp.lt.f32.partialorder %v16903_v26, 0.0004427343  ;;  %5289 = vlog2.f32 %v16907_v50  ;;  %v1720_v26 = vadd.f32 1.0, %v16885_v15  ;;  %v5270_v39 = vpop.eup %5269 }
 0x1f1   :  { %v16900_v43 = vsel %vm8872_vm12, 4294967295, %v16899_v43  ;;  %v16905_v19 = vsel %vm8878_vm15, 4294967295, %v16904_v19  ;;  %16910 = vst [vmem:[#allocation89_spill] sm:$0xff] %v8890_v53  ;;  %5291 = vlog2.f32 %v8461_v56  ;;  %v8894_v16 = vmul.f32 0.6931472, %v5256_v18  ;;  %v16913_v50 = vld [vmem:[#allocation107_spill] sm:$0xff] }
 0x1f2   :  { %16901 = vst [vmem:[#allocation21_spill] sm:$0xff] %v16900_v43  ;;  %16906 = vst [vmem:[#allocation105_spill] sm:$0xff] %v16905_v19  ;;  %v8896_v10 = vmul.f32 0.6931472, %v5258_v40  ;;  %v16914_v4 = vand.u32 2147483647, %v16913_v50  ;;  %5293 = vlog2.f32 %v8564_v49  ;;  %v5272_v49 = vpop.eup %5271 }
 0x1f3   :  { %16911 = vst [vmem:[#allocation48_spill] sm:$0xff] %v8894_v16  ;;  %v16915_v17 = vmov 0  ;;  %v16917_v51 = vld [vmem:[#allocation90_spill] sm:$0xff]  ;;  %v16919_v41 = vmov 0  ;;  %v1724_v56 = vadd.f32 1.0, %v1723_v1  ;;  %v16927_v36 = vmov 0 }
 0x1f4   :  { %16912 = vst [vmem:[#allocation339_spill] sm:$0xff] %v8896_v10  ;;  %vm8900_vm13 = vcmp.lt.f32.partialorder %v16914_v4, 0.0004427343  ;;  %v16918_v25 = vand.u32 2147483647, %v16917_v51  ;;  %v16925_v51 = vld [vmem:[#allocation91_spill] sm:$0xff]  ;;  %5295 = vlog2.f32 %v8650_v57 }
 0x1f5   :  { %v16916_v17 = vsel %vm8900_vm13, 4294967295, %v16915_v17  ;;  %v8919_v29 = vmul.f32 0.6931472, %v5260_v52  ;;  %v8928_v1 = vmul.f32 0.6931472, %v5262_v3  ;;  %v16931_v13 = vld [vmem:[#allocation92_spill] sm:$0xff]  ;;  %5297 = vlog2.f32 %v8738_v20 }
 0x1f6   :  { %vm8906_vm3 = vcmp.lt.f32.partialorder %v16918_v25, 0.0004427343  ;;  %v16926_v25 = vand.u32 2147483647, %v16925_v51  ;;  %v16932_v40 = vand.u32 2147483647, %v16931_v13  ;;  %5299 = vlog2.f32 %v1711_v47 }
 0x1f7   :  { %v16920_v41 = vsel %vm8906_vm3, 4294967295, %v16919_v41  ;;  %16924 = vst [vmem:[#allocation90_spill] sm:$0xff] %v8919_v29  ;;  %16930 = vst [vmem:[#allocation340_spill] sm:$0xff] %v8928_v1  ;;  %v16933_v30 = vmov 0  ;;  %v16935_v52 = vld [vmem:[#allocation39_spill] sm:$0xff]  ;;  %v16938_v50 = vld [vmem:[#allocation93_spill] sm:$0xff]  ;;  %v8967_v47 = vmul.f32 %v16885_v15, %v1724_v56  ;;  %5301 = vlog2.f32 %v1720_v26 }
 0x1f8   :  { %16921 = vst [vmem:[#allocation107_spill] sm:$0xff] %v16920_v41  ;;  %vm8923_vm5 = vcmp.lt.f32.partialorder %v16926_v25, 0.0004427343  ;;  %vm8932_vm4 = vcmp.lt.f32.partialorder %v16932_v40, 0.0004427343  ;;  %v1729_v4 = vadd.f32 1.0, %v16935_v52  ;;  %v5274_v25 = vpop.eup %5273 }
 0x1f9   :  { %v16928_v36 = vsel %vm8923_vm5, 4294967295, %v16927_v36  ;;  %v16934_v30 = vsel %vm8932_vm4, 4294967295, %v16933_v30  ;;  %v1732_v51 = vmul.f32 -0.5, %v16935_v52  ;;  %v8943_v3 = vmul.f32 0.6931472, %v5264_v5  ;;  %v5276_v37 = vpop.eup %5275  ;;  %v16942_v18 = vld [vmem:[#allocation26_spill] sm:$0xff] }
 0x1fa   :  { %16929 = vst [vmem:[#allocation91_spill] sm:$0xff] %v16928_v36  ;;  %v16939_v13 = vand.u32 2147483647, %v16938_v50  ;;  %v16944_v57 = vld [vmem:[#allocation94_spill] sm:$0xff]  ;;  %16949 = vst [vmem:[#allocation93_spill] sm:$0xff] %v8967_v47  ;;  %v16950_v20 = vld [vmem:[#allocation41_spill] sm:$0xff]  ;;  %v5278_v48 = vpop.eup %5277  ;;  %5303 = vlog2.f32 %v1729_v4 }
 0x1fb   :  { %16937 = vst [vmem:[#allocation92_spill] sm:$0xff] %v8943_v3  ;;  %v16945_v50 = vand.u32 2147483647, %v16944_v57  ;;  %v1738_v53 = vadd.f32 1.0, %v16950_v20  ;;  %v8970_v2 = vmul.f32 0.6931472, %v5266_v23  ;;  %v5280_v5 = vpop.eup %5279 }
 0x1fc   :  { %vm8947_vm9 = vcmp.lt.f32.partialorder %v16939_v13, 0.0004427343  ;;  %v16946_v13 = vmov 0  ;;  %v8972_v46 = vmul.f32 0.6931472, %v5268_v45  ;;  %v16956_v55 = vld [vmem:[#allocation97_spill] sm:$0xff] }
 0x1fd   :  { %vm8962_vm7 = vcmp.lt.f32.partialorder %v16945_v50, 0.0004427343  ;;  %16951 = vst [vmem:[#allocation26_spill] sm:$0xff] %v8970_v2  ;;  %v8974_v16 = vmul.f32 0.6931472, %v5270_v39  ;;  %v16960_v39 = vld [vmem:[#allocation14_spill] sm:$0xff]  ;;  %v5282_v50 = vpop.eup %5281  ;;  %5305 = vlog2.f32 %v1738_v53 }
 0x1fe   :  { %v16947_v13 = vsel %vm8962_vm7, 4294967295, %v16946_v13  ;;  %16952 = vst [vmem:[#allocation94_spill] sm:$0xff] %v8972_v46  ;;  %v16957_v42 = vand.u32 2147483647, %v16956_v55  ;;  %v16961_v45 = vand.u32 2147483647, %v16960_v39  ;;  %v5284_v4 = vpop.eup %5283 }
 0x1ff   :  { %16948 = vst [vmem:[#allocation39_spill] sm:$0xff] %v16947_v13  ;;  %16953 = vst [vmem:[#allocation41_spill] sm:$0xff] %v8974_v16  ;;  %v16962_v26 = vmov 0  ;;  %v1733_v31 = vadd.f32 1.0, %v1732_v51  ;;  %v9000_v1 = vmul.f32 0.6931472, %v5272_v49 }
 0x200   :  { %vm8986_vm8 = vcmp.lt.f32.partialorder %v16957_v42, 0.0004427343  ;;  %vm8992_vm2 = vcmp.lt.f32.partialorder %v16961_v45, 0.0004427343  ;;  %v9002_v55 = vmul.f32 0.6931472, %v5274_v25 }
 0x201   :  { %v16963_v26 = vsel %vm8992_vm2, 4294967295, %v16962_v26  ;;  %16966 = vst [vmem:[#allocation14_spill] sm:$0xff] %v9000_v1  ;;  %v16968_v42 = vand.u32 2147483647, %v16643_v35  ;;  %v1741_v45 = vmul.f32 -0.5, %v16950_v20  ;;  %v16973_v28 = vmov 0 }
 0x202   :  { %16964 = vst [vmem:[#allocation97_spill] sm:$0xff] %v16963_v26  ;;  %16967 = vst [vmem:[#allocation341_spill] sm:$0xff] %v9002_v55  ;;  %v9011_v51 = vmul.f32 0.6931472, %v5276_v37  ;;  %v16972_v10 = vand.u32 2147483647, %v16661_v61  ;;  %v9050_v19 = vmul.f32 %v16935_v52, %v1733_v31 }
 0x203   :  { %vm9006_vm6 = vcmp.lt.f32.partialorder %v16968_v42, 0.0004427343  ;;  %v1735_v49 = vand.u32 2147483647, %v16935_v52  ;;  %v16976_v25 = vld [vmem:[#allocation45_spill] sm:$0xff]  ;;  %v5286_v42 = vpop.eup %5285  ;;  %v16982_v57 = vmov 0 }
 0x204   :  { %16971 = vst [vmem:[#allocation342_spill] sm:$0xff] %v9011_v51  ;;  %vm9015_vm10 = vcmp.lt.f32.partialorder %v16972_v10, 0.0004427343  ;;  %v1747_v35 = vadd.f32 1.0, %v16976_v25  ;;  %v9033_v12 = vmul.f32 0.6931472, %v5278_v48  ;;  %v5288_v61 = vpop.eup %5287 }
 0x205   :  { %v16974_v28 = vsel %vm9015_vm10, 4294967295, %v16973_v28  ;;  %v16981_v53 = vand.u32 2147483647, %v16669_v24  ;;  %v16985_v3 = vand.u32 2147483647, %v16714_v38  ;;  %v16986_v2 = vmov 0 }
 0x206   :  { %16975 = vst [vmem:[#allocation343_spill] sm:$0xff] %v16974_v28  ;;  %16980 = vst [vmem:[#allocation45_spill] sm:$0xff] %v9033_v12  ;;  %v9047_v46 = vmul.f32 0.6931472, %v5280_v5  ;;  %v1750_v48 = vmul.f32 -0.5, %v16976_v25  ;;  %v16990_v29 = vld [vmem:[#allocation49_spill] sm:$0xff]  ;;  %5307 = vlog2.f32 %v1747_v35 }
 0x207   :  { %vm9037_vm11 = vcmp.lt.f32.partialorder %v16981_v53, 0.0004427343  ;;  %vm9043_vm14 = vcmp.lt.f32.partialorder %v16985_v3, 0.0004427343  ;;  %16989 = vst [vmem:[#allocation346_spill] sm:$0xff] %v9050_v19  ;;  %v1756_v24 = vadd.f32 1.0, %v16990_v29  ;;  %v5290_v53 = vpop.eup %5289 }
 0x208   :  { %v16983_v57 = vsel %vm9037_vm11, 4294967295, %v16982_v57  ;;  %v16987_v2 = vsel %vm9043_vm14, 4294967295, %v16986_v2  ;;  %v16991_v16 = vld [vmem:[#allocation301_spill] sm:$0xff]  ;;  %v9062_v5 = vmul.f32 0.6931472, %v5282_v50  ;;  %v1742_v37 = vadd.f32 1.0, %v1741_v45  ;;  %v5292_v31 = vpop.eup %5291 }
 0x209   :  { %16984 = vst [vmem:[#allocation344_spill] sm:$0xff] %v16983_v57  ;;  %16988 = vst [vmem:[#allocation345_spill] sm:$0xff] %v16987_v2  ;;  %v16995_v56 = vand.u32 2147483647, %v16748_v22  ;;  %v16996_v14 = vmov 0  ;;  %v17000_v41 = vmov 0  ;;  %v5294_v10 = vpop.eup %5293  ;;  %5309 = vlog2.f32 %v1756_v24 }
 0x20a   :  { %16993 = vst [vmem:[#allocation49_spill] sm:$0xff] %v9062_v5  ;;  %v16999_v38 = vand.u32 2147483647, %v16797_v9  ;;  %v17003_v50 = vand.u32 2147483647, %v16840_v44  ;;  %v17004_v45 = vmov 0 }
 0x20b   :  { %vm9070_vm15 = vcmp.lt.f32.partialorder %v16995_v56, 0.0004427343  ;;  %v1744_v43 = vand.u32 2147483647, %v16950_v20  ;;  %v17007_v22 = vld [vmem:[#allocation58_spill] sm:$0xff]  ;;  %v1759_v44 = vmul.f32 -0.5, %v16990_v29 }
 0x20c   :  { %v16997_v14 = vsel %vm9070_vm15, 4294967295, %v16996_v14  ;;  %vm9076_vm13 = vcmp.lt.f32.partialorder %v16999_v38, 0.0004427343  ;;  %vm9082_vm3 = vcmp.lt.f32.partialorder %v17003_v50, 0.0004427343  ;;  %v1765_v56 = vadd.f32 1.0, %v17007_v22  ;;  %v5296_v50 = vpop.eup %5295 }
 0x20d   :  { %16998 = vst [vmem:[#allocation301_spill] sm:$0xff] %v16997_v14  ;;  %v17001_v41 = vsel %vm9076_vm13, 4294967295, %v17000_v41  ;;  %v17005_v45 = vsel %vm9082_vm3, 4294967295, %v17004_v45  ;;  %v9092_v38 = vmul.f32 0.6931472, %v5284_v4  ;;  %v17011_v36 = vld [vmem:[#allocation307_spill] sm:$0xff] }
 0x20e   :  { %17002 = vst [vmem:[#allocation347_spill] sm:$0xff] %v17001_v41  ;;  %17006 = vst [vmem:[#allocation348_spill] sm:$0xff] %v17005_v45  ;;  %v9094_v52 = vmul.f32 0.6931472, %v5286_v42  ;;  %v9101_v55 = vmul.f32 0.6931472, %v5288_v61  ;;  %v5298_v42 = vpop.eup %5297  ;;  %5311 = vlog2.f32 %v1765_v56 }
 0x20f   :  { %17009 = vst [vmem:[#allocation58_spill] sm:$0xff] %v9092_v38  ;;  %v17013_v3 = vand.u32 2147483647, %v16885_v15  ;;  %v17014_v1 = vmov 0  ;;  %v1751_v4 = vadd.f32 1.0, %v1750_v48  ;;  %v17018_v35 = vmov 0 }
 0x210   :  { %17010 = vst [vmem:[#allocation349_spill] sm:$0xff] %v9094_v52  ;;  %17012 = vst [vmem:[#allocation307_spill] sm:$0xff] %v9101_v55  ;;  %v9113_v51 = vmul.f32 0.6931472, %v5290_v53  ;;  %vm9115_vm4 = vcmp.lt.f32.partialorder %v1735_v49, 0.0004427343  ;;  %v9120_v15 = vmul.f32 %v16950_v20, %v1742_v37 }
 0x211   :  { %vm9105_vm5 = vcmp.lt.f32.partialorder %v17013_v3, 0.0004427343  ;;  %v17019_v35 = vsel %vm9115_vm4, 4294967295, %v17018_v35  ;;  %v1753_v61 = vand.u32 2147483647, %v16976_v25  ;;  %v5300_v3 = vpop.eup %5299  ;;  %v1768_v13 = vmul.f32 -0.5, %v17007_v22 }
 0x212   :  { %v17015_v1 = vsel %vm9105_vm5, 4294967295, %v17014_v1  ;;  %17020 = vst [vmem:[#allocation351_spill] sm:$0xff] %v17019_v35  ;;  %17021 = vst [vmem:[#allocation352_spill] sm:$0xff] %v9120_v15  ;;  %v9123_v48 = vmul.f32 0.6931472, %v5292_v31  ;;  %v17026_v37 = vmov 0  ;;  %v5302_v56 = vpop.eup %5301  ;;  %v9146_v49 = vmul.f32 %v16976_v25, %v1751_v4 }
 0x213   :  { %17016 = vst [vmem:[#allocation350_spill] sm:$0xff] %v17015_v1  ;;  %v9125_v24 = vmul.f32 0.6931472, %v5294_v10  ;;  %vm9136_vm7 = vcmp.lt.f32.partialorder %v1744_v43, 0.0004427343  ;;  %v1760_v31 = vadd.f32 1.0, %v1759_v44  ;;  %v5304_v43 = vpop.eup %5303 }
 0x214   :  { %17022 = vst [vmem:[#allocation353_spill] sm:$0xff] %v9123_v48  ;;  %v17027_v37 = vsel %vm9136_vm7, 4294967295, %v17026_v37  ;;  %v17029_v10 = vld [vmem:[#allocation61_spill] sm:$0xff]  ;;  %v1762_v38 = vand.u32 2147483647, %v16990_v29  ;;  %v17031_v26 = vld [vmem:[#allocation63_spill] sm:$0xff]  ;;  %v5306_v44 = vpop.eup %5305 }
 0x215   :  { %17023 = vst [vmem:[#allocation354_spill] sm:$0xff] %v9125_v24  ;;  %17028 = vst [vmem:[#allocation355_spill] sm:$0xff] %v17027_v37  ;;  %v1774_v5 = vadd.f32 1.0, %v17029_v10  ;;  %v1783_v20 = vadd.f32 1.0, %v17031_v26  ;;  %v9154_v52 = vmul.f32 0.6931472, %v5296_v50 }
 0x216   :  { %17030 = vst [vmem:[#allocation61_spill] sm:$0xff] %v9146_v49  ;;  %v9156_v12 = vmul.f32 0.6931472, %v5298_v42  ;;  %v9158_v53 = vmul.f32 0.6931472, %v5300_v3  ;;  %v1769_v9 = vadd.f32 1.0, %v1768_v13  ;;  %v9176_v3 = vmul.f32 %v16990_v29, %v1760_v31  ;;  %v5308_v29 = vpop.eup %5307 }
 0x217   :  { %17032 = vst [vmem:[#allocation63_spill] sm:$0xff] %v9154_v52  ;;  %v17035_v55 = vld [vmem:[#allocation66_spill] sm:$0xff]  ;;  %v9169_v50 = vmul.f32 0.6931472, %v5302_v56  ;;  %vm9171_vm10 = vcmp.lt.f32.partialorder %v1753_v61, 0.0004427343  ;;  %5313 = vlog2.f32 %v1774_v5  ;;  %v5310_v45 = vpop.eup %5309 }
 0x218   :  { %17033 = vst [vmem:[#allocation356_spill] sm:$0xff] %v9156_v12  ;;  %17034 = vst [vmem:[#allocation357_spill] sm:$0xff] %v9158_v53  ;;  %v1792_v28 = vadd.f32 1.0, %v17035_v55  ;;  %v17037_v42 = vmov 0  ;;  %v1771_v25 = vand.u32 2147483647, %v17007_v22  ;;  %5315 = vlog2.f32 %v1783_v20 }
 0x219   :  { %17036 = vst [vmem:[#allocation66_spill] sm:$0xff] %v9169_v50  ;;  %v17038_v42 = vsel %vm9171_vm10, 4294967295, %v17037_v42  ;;  %17040 = vst [vmem:[#allocation359_spill] sm:$0xff] %v9176_v3  ;;  %v9179_v48 = vmul.f32 0.6931472, %v5304_v43  ;;  %v1777_v4 = vmul.f32 -0.5, %v17029_v10  ;;  %v9203_v61 = vmul.f32 %v17007_v22, %v1769_v9 }
 0x21a   :  { %17039 = vst [vmem:[#allocation358_spill] sm:$0xff] %v17038_v42  ;;  %v17042_v13 = vld [vmem:[#allocation69_spill] sm:$0xff]  ;;  %v17043_v31 = vld [vmem:[#allocation70_spill] sm:$0xff]  ;;  %v9196_v20 = vmul.f32 0.6931472, %v5306_v44  ;;  %v17045_v43 = vmov 0  ;;  %5317 = vlog2.f32 %v1792_v28 }
 0x21b   :  { %17041 = vst [vmem:[#allocation360_spill] sm:$0xff] %v9179_v48  ;;  %v1801_v24 = vadd.f32 1.0, %v17042_v13  ;;  %v1810_v56 = vadd.f32 1.0, %v17043_v31  ;;  %vm9198_vm14 = vcmp.lt.f32.partialorder %v1762_v38, 0.0004427343  ;;  %17048 = vst [vmem:[#allocation361_spill] sm:$0xff] %v9203_v61  ;;  %v5312_v48 = vpop.eup %5311 }
 0x21c   :  { %17044 = vst [vmem:[#allocation69_spill] sm:$0xff] %v9196_v20  ;;  %v17046_v43 = vsel %vm9198_vm14, 4294967295, %v17045_v43  ;;  %v1786_v52 = vmul.f32 -0.5, %v17031_v26  ;;  %vm9210_vm3 = vcmp.lt.f32.partialorder %v1771_v25, 0.0004427343  ;;  %v17049_v53 = vmov 0 }
 0x21d   :  { %17047 = vst [vmem:[#allocation70_spill] sm:$0xff] %v17046_v43  ;;  %v17050_v53 = vsel %vm9210_vm3, 4294967295, %v17049_v53  ;;  %v1795_v38 = vmul.f32 -0.5, %v17035_v55  ;;  %v17052_v44 = vld [vmem:[#allocation73_spill] sm:$0xff]  ;;  %v1778_v28 = vadd.f32 1.0, %v1777_v4  ;;  %5319 = vlog2.f32 %v1801_v24  ;;  %v17053_v50 = vld [vmem:[#allocation38_spill] sm:$0xff] }
 0x21e   :  { %17051 = vst [vmem:[#allocation362_spill] sm:$0xff] %v17050_v53  ;;  %v1819_v27 = vadd.f32 1.0, %v17052_v44  ;;  %v1780_v9 = vand.u32 2147483647, %v17029_v10  ;;  %v1789_v5 = vand.u32 2147483647, %v17031_v26  ;;  %5321 = vlog2.f32 %v1810_v56 }
 0x21f   :  { %v1804_v25 = vmul.f32 -0.5, %v17042_v13  ;;  %v1828_v47 = vadd.f32 1.0, %v17053_v50  ;;  %v9228_v12 = vmul.f32 0.6931472, %v5308_v29  ;;  %v1787_v22 = vadd.f32 1.0, %v1786_v52  ;;  %v17060_v29 = vld [vmem:[#allocation76_spill] sm:$0xff] }
 0x220   :  { %v1813_v4 = vmul.f32 -0.5, %v17043_v31  ;;  %v1796_v24 = vadd.f32 1.0, %v1795_v38  ;;  %v1798_v19 = vand.u32 2147483647, %v17035_v55  ;;  %5323 = vlog2.f32 %v1819_v27  ;;  %v17064_v20 = vld [vmem:[#allocation40_spill] sm:$0xff] }
 0x221   :  { %17054 = vst [vmem:[#allocation73_spill] sm:$0xff] %v9228_v12  ;;  %v1822_v35 = vmul.f32 -0.5, %v17052_v44  ;;  %v9233_v56 = vmul.f32 0.6931472, %v5310_v45  ;;  %v9236_v8 = vmul.f32 %v17029_v10, %v1778_v28  ;;  %vm9238_vm4 = vcmp.lt.f32.partialorder %v1780_v9, 0.0004427343 }
 0x222   :  { %v17057_v37 = vmov 0  ;;  %v1807_v52 = vand.u32 2147483647, %v17042_v13  ;;  %v1837_v1 = vadd.f32 1.0, %v17060_v29  ;;  %vm9244_vm7 = vcmp.lt.f32.partialorder %v1789_v5, 0.0004427343 }
 0x223   :  { %17055 = vst [vmem:[#allocation38_spill] sm:$0xff] %v9233_v56  ;;  %17056 = vst [vmem:[#allocation363_spill] sm:$0xff] %v9236_v8  ;;  %v17058_v37 = vsel %vm9238_vm4, 4294967295, %v17057_v37  ;;  %v17061_v38 = vmov 0  ;;  %v1805_v27 = vadd.f32 1.0, %v1804_v25  ;;  %5325 = vlog2.f32 %v1828_v47  ;;  %v17089_v3 = vld [vmem:[#allocation56_spill] sm:$0xff] }
 0x224   :  { %17059 = vst [vmem:[#allocation364_spill] sm:$0xff] %v17058_v37  ;;  %v17062_v38 = vsel %vm9244_vm7, 4294967295, %v17061_v38  ;;  %v1831_v45 = vmul.f32 -0.5, %v17053_v50  ;;  %v1846_v15 = vadd.f32 1.0, %v17064_v20  ;;  %v9254_v28 = vmul.f32 0.6931472, %v5312_v48  ;;  %v5314_v14 = vpop.eup %5313 }
 0x225   :  { %17063 = vst [vmem:[#allocation76_spill] sm:$0xff] %v17062_v38  ;;  %v1814_v9 = vadd.f32 1.0, %v1813_v4  ;;  %v1816_v41 = vand.u32 2147483647, %v17043_v31  ;;  %v9258_v5 = vmul.f32 %v17031_v26, %v1787_v22  ;;  %v9261_v25 = vmul.f32 %v17035_v55, %v1796_v24  ;;  %v17071_v4 = vld [vmem:[#allocation44_spill] sm:$0xff]  ;;  %v5316_v12 = vpop.eup %5315 }
 0x226   :  { %17065 = vst [vmem:[#allocation40_spill] sm:$0xff] %v9254_v28  ;;  %vm9263_vm5 = vcmp.lt.f32.partialorder %v1798_v19, 0.0004427343  ;;  %v17068_v47 = vmov 0  ;;  %v1823_v33 = vadd.f32 1.0, %v1822_v35  ;;  %5327 = vlog2.f32 %v1837_v1  ;;  %v17083_v28 = vld [vmem:[#allocation53_spill] sm:$0xff] }
 0x227   :  { %17066 = vst [vmem:[#allocation365_spill] sm:$0xff] %v9258_v5  ;;  %17067 = vst [vmem:[#allocation366_spill] sm:$0xff] %v9261_v25  ;;  %v17069_v47 = vsel %vm9263_vm5, 4294967295, %v17068_v47  ;;  %v1825_v42 = vand.u32 2147483647, %v17052_v44  ;;  %v1840_v48 = vmul.f32 -0.5, %v17060_v29  ;;  %v9275_v19 = vmul.f32 %v17042_v13, %v1805_v27 }
 0x228   :  { %17070 = vst [vmem:[#allocation367_spill] sm:$0xff] %v17069_v47  ;;  %v1855_v10 = vadd.f32 1.0, %v17071_v4  ;;  %v1832_v55 = vadd.f32 1.0, %v1831_v45  ;;  %5329 = vlog2.f32 %v1846_v15  ;;  %vm9281_vm10 = vcmp.lt.f32.partialorder %v1807_v52, 0.0004427343  ;;  %v17080_v27 = vld [vmem:[#allocation87_spill] sm:$0xff]  ;;  %v5318_v45 = vpop.eup %5317 }
 0x229   :  { %17072 = vst [vmem:[#allocation44_spill] sm:$0xff] %v9275_v19  ;;  %v17073_v35 = vmov 0  ;;  %v9286_v22 = vmul.f32 %v17043_v31, %v1814_v9  ;;  %vm9288_vm13 = vcmp.lt.f32.partialorder %v1816_v41, 0.0004427343  ;;  %v17077_v24 = vmov 0 }
 0x22a   :  { %v17074_v35 = vsel %vm9281_vm10, 4294967295, %v17073_v35  ;;  %v17078_v24 = vsel %vm9288_vm13, 4294967295, %v17077_v24  ;;  %v1849_v13 = vmul.f32 -0.5, %v17064_v20  ;;  %v1864_v15 = vadd.f32 1.0, %v17080_v27  ;;  %v5320_v56 = vpop.eup %5319 }
 0x22b   :  { %17075 = vst [vmem:[#allocation368_spill] sm:$0xff] %v17074_v35  ;;  %17076 = vst [vmem:[#allocation369_spill] sm:$0xff] %v9286_v22  ;;  %v9294_v26 = vmul.f32 0.6931472, %v5314_v14  ;;  %v9297_v1 = vmul.f32 %v17052_v44, %v1823_v33  ;;  %v1834_v52 = vand.u32 2147483647, %v17053_v50  ;;  %5331 = vlog2.f32 %v1855_v10 }
 0x22c   :  { %17079 = vst [vmem:[#allocation370_spill] sm:$0xff] %v17078_v24  ;;  %v1873_v61 = vadd.f32 1.0, %v17083_v28  ;;  %v9301_v31 = vmul.f32 0.6931472, %v5316_v12  ;;  %vm9303_vm3 = vcmp.lt.f32.partialorder %v1825_v42, 0.0004427343  ;;  %v9309_v14 = vmul.f32 %v17053_v50, %v1832_v55  ;;  %v5322_v12 = vpop.eup %5321 }
 0x22d   :  { %17081 = vst [vmem:[#allocation87_spill] sm:$0xff] %v9294_v26  ;;  %17082 = vst [vmem:[#allocation371_spill] sm:$0xff] %v9297_v1  ;;  %v17085_v41 = vmov 0  ;;  %v1841_v9 = vadd.f32 1.0, %v1840_v48  ;;  %v1858_v53 = vmul.f32 -0.5, %v17071_v4  ;;  %v1882_v43 = vadd.f32 1.0, %v17089_v3  ;;  %v5324_v2 = vpop.eup %5323 }
 0x22e   :  { %17084 = vst [vmem:[#allocation53_spill] sm:$0xff] %v9301_v31  ;;  %v17086_v41 = vsel %vm9303_vm3, 4294967295, %v17085_v41  ;;  %17088 = vst [vmem:[#allocation373_spill] sm:$0xff] %v9309_v14  ;;  %v1843_v33 = vand.u32 2147483647, %v17060_v29  ;;  %v1850_v42 = vadd.f32 1.0, %v1849_v13  ;;  %5333 = vlog2.f32 %v1864_v15 }
 0x22f   :  { %17087 = vst [vmem:[#allocation372_spill] sm:$0xff] %v17086_v41  ;;  %v1852_v44 = vand.u32 2147483647, %v17064_v20  ;;  %v9314_v49 = vmul.f32 0.6931472, %v5318_v45  ;;  %v1867_v48 = vmul.f32 -0.5, %v17080_v27  ;;  %5335 = vlog2.f32 %v1873_v61 }
 0x230   :  { %vm9321_vm14 = vcmp.lt.f32.partialorder %v1834_v52, 0.0004427343  ;;  %v17091_v50 = vmov 0  ;;  %v17094_v55 = vld [vmem:[#allocation57_spill] sm:$0xff]  ;;  %v9331_v15 = vmul.f32 %v17060_v29, %v1841_v9  ;;  %v1859_v45 = vadd.f32 1.0, %v1858_v53  ;;  %v5326_v8 = vpop.eup %5325 }
 0x231   :  { %17090 = vst [vmem:[#allocation56_spill] sm:$0xff] %v9314_v49  ;;  %v17092_v50 = vsel %vm9321_vm14, 4294967295, %v17091_v50  ;;  %v1891_v59 = vadd.f32 1.0, %v17094_v55  ;;  %v1876_v37 = vmul.f32 -0.5, %v17083_v28  ;;  %v9334_v10 = vmul.f32 0.6931472, %v5320_v56 }
 0x232   :  { %17093 = vst [vmem:[#allocation374_spill] sm:$0xff] %v17092_v50  ;;  %17095 = vst [vmem:[#allocation57_spill] sm:$0xff] %v9331_v15  ;;  %v9336_v52 = vmul.f32 0.6931472, %v5322_v12  ;;  %vm9338_vm4 = vcmp.lt.f32.partialorder %v1843_v33, 0.0004427343  ;;  %5337 = vlog2.f32 %v1882_v43  ;;  %v9348_v53 = vmul.f32 %v17064_v20, %v1850_v42 }
 0x233   :  { %17096 = vst [vmem:[#allocation375_spill] sm:$0xff] %v9334_v10  ;;  %v17098_v61 = vmov 0  ;;  %v1861_v26 = vand.u32 2147483647, %v17071_v4  ;;  %vm9350_vm7 = vcmp.lt.f32.partialorder %v1852_v44, 0.0004427343  ;;  %5339 = vlog2.f32 %v1891_v59  ;;  %v5328_v42 = vpop.eup %5327 }
 0x234   :  { %17097 = vst [vmem:[#allocation376_spill] sm:$0xff] %v9336_v52  ;;  %v17099_v61 = vsel %vm9338_vm4, 4294967295, %v17098_v61  ;;  %17101 = vst [vmem:[#allocation378_spill] sm:$0xff] %v9348_v53  ;;  %v17102_v56 = vmov 0  ;;  %v1868_v9 = vadd.f32 1.0, %v1867_v48  ;;  %v17105_v33 = vld [vmem:[#allocation234_spill] sm:$0xff]  ;;  %v9360_v47 = vmul.f32 %v17071_v4, %v1859_v45 }
 0x235   :  { %17100 = vst [vmem:[#allocation377_spill] sm:$0xff] %v17099_v61  ;;  %v17103_v56 = vsel %vm9350_vm7, 4294967295, %v17102_v56  ;;  %v1900_v12 = vadd.f32 1.0, %v17105_v33  ;;  %v9355_v13 = vmul.f32 0.6931472, %v5324_v2  ;;  %v1885_v31 = vmul.f32 -0.5, %v17089_v3  ;;  %v5330_v49 = vpop.eup %5329 }
 0x236   :  { %17104 = vst [vmem:[#allocation379_spill] sm:$0xff] %v17103_v56  ;;  %v1870_v43 = vand.u32 2147483647, %v17080_v27  ;;  %17107 = vst [vmem:[#allocation380_spill] sm:$0xff] %v9360_v47  ;;  %v1877_v29 = vadd.f32 1.0, %v1876_v37  ;;  %v1894_v44 = vmul.f32 -0.5, %v17094_v55  ;;  %v9380_v25 = vmul.f32 %v17080_v27, %v1868_v9 }
 0x237   :  { %17106 = vst [vmem:[#allocation234_spill] sm:$0xff] %v9355_v13  ;;  %v1879_v20 = vand.u32 2147483647, %v17083_v28  ;;  %v9372_v59 = vmul.f32 0.6931472, %v5326_v8  ;;  %v17109_v4 = vmov 0  ;;  %5341 = vlog2.f32 %v1900_v12 }
 0x238   :  { %vm9374_vm5 = vcmp.lt.f32.partialorder %v1861_v26, 0.0004427343  ;;  %v17112_v37 = vld [vmem:[#allocation62_spill] sm:$0xff]  ;;  %v1888_v35 = vand.u32 2147483647, %v17089_v3  ;;  %v17114_v2 = vld [vmem:[#allocation236_spill] sm:$0xff]  ;;  %v9397_v12 = vmul.f32 %v17083_v28, %v1877_v29  ;;  %v5332_v8 = vpop.eup %5331 }
 0x239   :  { %17108 = vst [vmem:[#allocation381_spill] sm:$0xff] %v9372_v59  ;;  %v17110_v4 = vsel %vm9374_vm5, 4294967295, %v17109_v4  ;;  %v1909_v45 = vadd.f32 1.0, %v17112_v37  ;;  %17113 = vst [vmem:[#allocation62_spill] sm:$0xff] %v9380_v25  ;;  %v1918_v10 = vadd.f32 1.0, %v17114_v2  ;;  %v17115_v26 = vmov 0 }
 0x23a   :  { %17111 = vst [vmem:[#allocation382_spill] sm:$0xff] %v17110_v4  ;;  %vm9388_vm13 = vcmp.lt.f32.partialorder %v1870_v43, 0.0004427343  ;;  %v1886_v48 = vadd.f32 1.0, %v1885_v31  ;;  %v1903_v52 = vmul.f32 -0.5, %v17105_v33  ;;  %v17118_v22 = vld [vmem:[#allocation65_spill] sm:$0xff] }
 0x23b   :  { %v17116_v26 = vsel %vm9388_vm13, 4294967295, %v17115_v26  ;;  %v1927_v27 = vadd.f32 1.0, %v17118_v22  ;;  %v9394_v9 = vmul.f32 0.6931472, %v5328_v42  ;;  %17120 = vst [vmem:[#allocation383_spill] sm:$0xff] %v9397_v12  ;;  %v17121_v24 = vmov 0  ;;  %v5334_v1 = vpop.eup %5333 }
 0x23c   :  { %17117 = vst [vmem:[#allocation236_spill] sm:$0xff] %v17116_v26  ;;  %vm9399_vm10 = vcmp.lt.f32.partialorder %v1879_v20, 0.0004427343  ;;  %v1895_v41 = vadd.f32 1.0, %v1894_v44  ;;  %v1897_v43 = vand.u32 2147483647, %v17094_v55  ;;  %5343 = vlog2.f32 %v1909_v45  ;;  %v5336_v45 = vpop.eup %5335 }
 0x23d   :  { %17119 = vst [vmem:[#allocation65_spill] sm:$0xff] %v9394_v9  ;;  %v17122_v24 = vsel %vm9399_vm10, 4294967295, %v17121_v24  ;;  %v9408_v13 = vmul.f32 0.6931472, %v5330_v49  ;;  %v1912_v42 = vmul.f32 -0.5, %v17112_v37  ;;  %v17125_v28 = vmov 0 }
 0x23e   :  { %17123 = vst [vmem:[#allocation384_spill] sm:$0xff] %v17122_v24  ;;  %vm9411_vm3 = vcmp.lt.f32.partialorder %v1888_v35, 0.0004427343  ;;  %5345 = vlog2.f32 %v1918_v10  ;;  %v1921_v29 = vmul.f32 -0.5, %v17114_v2  ;;  %v17128_v20 = vld [vmem:[#allocation239_spill] sm:$0xff]  ;;  %v9418_v19 = vmul.f32 %v17089_v3, %v1886_v48  ;;  %v17135_v3 = vld [vmem:[#allocation240_spill] sm:$0xff] }
 0x23f   :  { %17124 = vst [vmem:[#allocation385_spill] sm:$0xff] %v9408_v13  ;;  %v17126_v28 = vsel %vm9411_vm3, 4294967295, %v17125_v28  ;;  %v1936_v44 = vadd.f32 1.0, %v17128_v20  ;;  %v1904_v50 = vadd.f32 1.0, %v1903_v52  ;;  %v1906_v49 = vand.u32 2147483647, %v17105_v33  ;;  %v5338_v35 = vpop.eup %5337 }
 0x240   :  { %17127 = vst [vmem:[#allocation386_spill] sm:$0xff] %v17126_v28  ;;  %17129 = vst [vmem:[#allocation239_spill] sm:$0xff] %v9418_v19  ;;  %5347 = vlog2.f32 %v1927_v27  ;;  %v9425_v31 = vmul.f32 0.6931472, %v5332_v8  ;;  %v9428_v10 = vmul.f32 %v17094_v55, %v1895_v41  ;;  %vm9430_vm14 = vcmp.lt.f32.partialorder %v1897_v43, 0.0004427343  ;;  %v5340_v13 = vpop.eup %5339 }
 0x241   :  { %v17132_v59 = vmov 0  ;;  %v1945_v52 = vadd.f32 1.0, %v17135_v3  ;;  %v1913_v27 = vadd.f32 1.0, %v1912_v42  ;;  %v1915_v61 = vand.u32 2147483647, %v17112_v37  ;;  %v17137_v55 = vld [vmem:[#allocation242_spill] sm:$0xff] }
 0x242   :  { %17130 = vst [vmem:[#allocation387_spill] sm:$0xff] %v9425_v31  ;;  %17131 = vst [vmem:[#allocation388_spill] sm:$0xff] %v9428_v10  ;;  %v17133_v59 = vsel %vm9430_vm14, 4294967295, %v17132_v59  ;;  %v1930_v8 = vmul.f32 -0.5, %v17118_v22  ;;  %v9441_v9 = vmul.f32 0.6931472, %v5334_v1  ;;  %5349 = vlog2.f32 %v1936_v44 }
 0x243   :  { %17134 = vst [vmem:[#allocation389_spill] sm:$0xff] %v17133_v59  ;;  %v1922_v41 = vadd.f32 1.0, %v1921_v29  ;;  %v1954_v43 = vadd.f32 1.0, %v17137_v55  ;;  %v9444_v15 = vmul.f32 0.6931472, %v5336_v45  ;;  %v9447_v14 = vmul.f32 %v17105_v33, %v1904_v50  ;;  %v17143_v44 = vld [vmem:[#allocation243_spill] sm:$0xff] }
 0x244   :  { %17136 = vst [vmem:[#allocation240_spill] sm:$0xff] %v9441_v9  ;;  %vm9449_vm4 = vcmp.lt.f32.partialorder %v1906_v49, 0.0004427343  ;;  %v17140_v56 = vmov 0  ;;  %v1924_v42 = vand.u32 2147483647, %v17114_v2  ;;  %5351 = vlog2.f32 %v1945_v52 }
 0x245   :  { %17138 = vst [vmem:[#allocation242_spill] sm:$0xff] %v9444_v15  ;;  %17139 = vst [vmem:[#allocation390_spill] sm:$0xff] %v9447_v14  ;;  %v17141_v56 = vsel %vm9449_vm4, 4294967295, %v17140_v56  ;;  %v1939_v48 = vmul.f32 -0.5, %v17128_v20  ;;  %v1933_v29 = vand.u32 2147483647, %v17118_v22  ;;  %v9464_v49 = vmul.f32 %v17112_v37, %v1913_v27  ;;  %v5342_v37 = vpop.eup %5341 }
 0x246   :  { %17142 = vst [vmem:[#allocation391_spill] sm:$0xff] %v17141_v56  ;;  %v1963_v50 = vadd.f32 1.0, %v17143_v44  ;;  %v9461_v33 = vmul.f32 0.6931472, %v5338_v35  ;;  %v1931_v45 = vadd.f32 1.0, %v1930_v8  ;;  %v1948_v53 = vmul.f32 -0.5, %v17135_v3 }
 0x247   :  { %17145 = vst [vmem:[#allocation392_spill] sm:$0xff] %v9464_v49  ;;  %vm9471_vm7 = vcmp.lt.f32.partialorder %v1915_v61, 0.0004427343  ;;  %v17146_v1 = vmov 0  ;;  %v9476_v52 = vmul.f32 %v17114_v2, %v1922_v41  ;;  %5353 = vlog2.f32 %v1954_v43  ;;  %v17150_v35 = vld [vmem:[#allocation245_spill] sm:$0xff]  ;;  %v17158_v43 = vld [vmem:[#allocation247_spill] sm:$0xff] }
 0x248   :  { %17144 = vst [vmem:[#allocation243_spill] sm:$0xff] %v9461_v33  ;;  %v17147_v1 = vsel %vm9471_vm7, 4294967295, %v17146_v1  ;;  %v1972_v31 = vadd.f32 1.0, %v17150_v35  ;;  %v9483_v8 = vmul.f32 0.6931472, %v5340_v13  ;;  %v17152_v5 = vmov 0 }
 0x249   :  { %17148 = vst [vmem:[#allocation393_spill] sm:$0xff] %v17147_v1  ;;  %17149 = vst [vmem:[#allocation394_spill] sm:$0xff] %v9476_v52  ;;  %vm9485_vm5 = vcmp.lt.f32.partialorder %v1924_v42, 0.0004427343  ;;  %v1940_v61 = vadd.f32 1.0, %v1939_v48  ;;  %v17155_v2 = vmov 0  ;;  %5355 = vlog2.f32 %v1963_v50 }
 0x24a   :  { %17151 = vst [vmem:[#allocation245_spill] sm:$0xff] %v9483_v8  ;;  %v17153_v5 = vsel %vm9485_vm5, 4294967295, %v17152_v5  ;;  %v1942_v9 = vand.u32 2147483647, %v17128_v20  ;;  %vm9490_vm13 = vcmp.lt.f32.partialorder %v1933_v29, 0.0004427343  ;;  %v9501_v42 = vmul.f32 %v17118_v22, %v1931_v45  ;;  %v5344_v29 = vpop.eup %5343 }
 0x24b   :  { %17154 = vst [vmem:[#allocation395_spill] sm:$0xff] %v17153_v5  ;;  %v17156_v2 = vsel %vm9490_vm13, 4294967295, %v17155_v2  ;;  %v1957_v41 = vmul.f32 -0.5, %v17137_v55  ;;  %v1981_v25 = vadd.f32 1.0, %v17158_v43  ;;  %v1949_v48 = vadd.f32 1.0, %v1948_v53  ;;  %v5346_v24 = vpop.eup %5345  ;;  %v17166_v26 = vld [vmem:[#allocation250_spill] sm:$0xff] }
 0x24c   :  { %17157 = vst [vmem:[#allocation396_spill] sm:$0xff] %v17156_v2  ;;  %17159 = vst [vmem:[#allocation247_spill] sm:$0xff] %v9501_v42  ;;  %v1951_v27 = vand.u32 2147483647, %v17135_v3  ;;  %v9504_v15 = vmul.f32 0.6931472, %v5342_v37  ;;  %5357 = vlog2.f32 %v1972_v31  ;;  %v9513_v22 = vmul.f32 %v17128_v20, %v1940_v61 }
 0x24d   :  { %v1966_v12 = vmul.f32 -0.5, %v17143_v44  ;;  %v1975_v50 = vmul.f32 -0.5, %v17150_v35  ;;  %vm9515_vm3 = vcmp.lt.f32.partialorder %v1942_v9, 0.0004427343  ;;  %v17162_v53 = vmov 0  ;;  %v17165_v37 = vld [vmem:[#allocation248_spill] sm:$0xff]  ;;  %v5348_v31 = vpop.eup %5347 }
 0x24e   :  { %17160 = vst [vmem:[#allocation397_spill] sm:$0xff] %v9504_v15  ;;  %17161 = vst [vmem:[#allocation398_spill] sm:$0xff] %v9513_v22  ;;  %v17163_v53 = vsel %vm9515_vm3, 4294967295, %v17162_v53  ;;  %v1960_v45 = vand.u32 2147483647, %v17137_v55  ;;  %v1990_v33 = vadd.f32 1.0, %v17165_v37  ;;  %5359 = vlog2.f32 %v1981_v25 }
 0x24f   :  { %17164 = vst [vmem:[#allocation399_spill] sm:$0xff] %v17163_v53  ;;  %v1958_v19 = vadd.f32 1.0, %v1957_v41  ;;  %v1984_v28 = vmul.f32 -0.5, %v17158_v43  ;;  %v1999_v47 = vadd.f32 1.0, %v17166_v26  ;;  %v9523_v59 = vmul.f32 0.6931472, %v5344_v29  ;;  %v5350_v4 = vpop.eup %5349 }
 0x250   :  { %v9526_v20 = vmul.f32 %v17135_v3, %v1949_v48  ;;  %vm9528_vm14 = vcmp.lt.f32.partialorder %v1951_v27, 0.0004427343  ;;  %v17169_v9 = vmov 0  ;;  %v1969_v61 = vand.u32 2147483647, %v17143_v44  ;;  %v17172_v13 = vld [vmem:[#allocation251_spill] sm:$0xff] }
 0x251   :  { %17167 = vst [vmem:[#allocation248_spill] sm:$0xff] %v9523_v59  ;;  %v17170_v9 = vsel %vm9528_vm14, 4294967295, %v17169_v9  ;;  %v2008_v8 = vadd.f32 1.0, %v17172_v13  ;;  %v9538_v41 = vmul.f32 0.6931472, %v5346_v24  ;;  %v1967_v29 = vadd.f32 1.0, %v1966_v12  ;;  %v5352_v12 = vpop.eup %5351 }
 0x252   :  { %17168 = vst [vmem:[#allocation250_spill] sm:$0xff] %v9526_v20  ;;  %17171 = vst [vmem:[#allocation400_spill] sm:$0xff] %v17170_v9  ;;  %v1976_v10 = vadd.f32 1.0, %v1975_v50  ;;  %v9540_v3 = vmul.f32 0.6931472, %v5348_v31  ;;  %v17175_v27 = vmov 0  ;;  %5361 = vlog2.f32 %v1990_v33 }
 0x253   :  { %17173 = vst [vmem:[#allocation251_spill] sm:$0xff] %v9538_v41  ;;  %vm9542_vm10 = vcmp.lt.f32.partialorder %v1960_v45, 0.0004427343  ;;  %v1978_v48 = vand.u32 2147483647, %v17150_v35  ;;  %v1993_v38 = vmul.f32 -0.5, %v17165_v37  ;;  %v9549_v32 = vmul.f32 %v17137_v55, %v1958_v19 }
 0x254   :  { %17174 = vst [vmem:[#allocation401_spill] sm:$0xff] %v9540_v3  ;;  %v17176_v27 = vsel %vm9542_vm10, 4294967295, %v17175_v27  ;;  %v1985_v25 = vadd.f32 1.0, %v1984_v28  ;;  %5363 = vlog2.f32 %v1999_v47  ;;  %v2002_v24 = vmul.f32 -0.5, %v17166_v26  ;;  %v17182_v31 = vld [vmem:[#allocation253_spill] sm:$0xff]  ;;  %v5354_v50 = vpop.eup %5353  ;;  %v17189_v47 = vld [vmem:[#allocation255_spill] sm:$0xff] }
 0x255   :  { %17177 = vst [vmem:[#allocation402_spill] sm:$0xff] %v17176_v27  ;;  %17178 = vst [vmem:[#allocation403_spill] sm:$0xff] %v9549_v32  ;;  %vm9556_vm4 = vcmp.lt.f32.partialorder %v1969_v61, 0.0004427343  ;;  %v17179_v45 = vmov 0  ;;  %5365 = vlog2.f32 %v2008_v8  ;;  %v2017_v19 = vadd.f32 1.0, %v17182_v31 }
 0x256   :  { %v17180_v45 = vsel %vm9556_vm4, 4294967295, %v17179_v45  ;;  %v1987_v33 = vand.u32 2147483647, %v17158_v43  ;;  %v9566_v28 = vmul.f32 0.6931472, %v5350_v4  ;;  %v9569_v55 = vmul.f32 %v17143_v44, %v1967_v29  ;;  %v5356_v52 = vpop.eup %5355  ;;  %v17207_v53 = vld [vmem:[#allocation259_spill] sm:$0xff] }
 0x257   :  { %17181 = vst [vmem:[#allocation404_spill] sm:$0xff] %v17180_v45  ;;  %v9572_v61 = vmul.f32 %v17150_v35, %v1976_v10  ;;  %vm9578_vm7 = vcmp.lt.f32.partialorder %v1978_v48, 0.0004427343  ;;  %v17186_v59 = vmov 0  ;;  %v1994_v5 = vadd.f32 1.0, %v1993_v38  ;;  %v17213_v20 = vld [vmem:[#allocation261_spill] sm:$0xff] }
 0x258   :  { %17183 = vst [vmem:[#allocation253_spill] sm:$0xff] %v9566_v28  ;;  %17184 = vst [vmem:[#allocation405_spill] sm:$0xff] %v9569_v55  ;;  %v17187_v59 = vsel %vm9578_vm7, 4294967295, %v17186_v59  ;;  %v2011_v4 = vmul.f32 -0.5, %v17172_v13  ;;  %v2026_v41 = vadd.f32 1.0, %v17189_v47  ;;  %v9587_v10 = vmul.f32 %v17158_v43, %v1985_v25 }
 0x259   :  { %17185 = vst [vmem:[#allocation406_spill] sm:$0xff] %v9572_v61  ;;  %17188 = vst [vmem:[#allocation407_spill] sm:$0xff] %v17187_v59  ;;  %v9584_v44 = vmul.f32 0.6931472, %v5352_v12  ;;  %v1996_v35 = vand.u32 2147483647, %v17165_v37  ;;  %5367 = vlog2.f32 %v2017_v19  ;;  %v9605_v42 = vmul.f32 %v17165_v37, %v1994_v5 }
 0x25a   :  { %17191 = vst [vmem:[#allocation408_spill] sm:$0xff] %v9587_v10  ;;  %v2003_v29 = vadd.f32 1.0, %v2002_v24  ;;  %vm9590_vm5 = vcmp.lt.f32.partialorder %v1987_v33, 0.0004427343  ;;  %v17192_v8 = vmov 0  ;;  %v2020_v38 = vmul.f32 -0.5, %v17182_v31  ;;  %v5358_v33 = vpop.eup %5357 }
 0x25b   :  { %17190 = vst [vmem:[#allocation255_spill] sm:$0xff] %v9584_v44  ;;  %v17193_v8 = vsel %vm9590_vm5, 4294967295, %v17192_v8  ;;  %v2005_v48 = vand.u32 2147483647, %v17166_v26  ;;  %v9600_v43 = vmul.f32 0.6931472, %v5354_v50  ;;  %5369 = vlog2.f32 %v2026_v41  ;;  %v5360_v37 = vpop.eup %5359 }
 0x25c   :  { %17194 = vst [vmem:[#allocation409_spill] sm:$0xff] %v17193_v8  ;;  %v2014_v25 = vand.u32 2147483647, %v17172_v13  ;;  %v17196_v24 = vld [vmem:[#allocation256_spill] sm:$0xff]  ;;  %v2012_v2 = vadd.f32 1.0, %v2011_v4  ;;  %v17198_v19 = vld [vmem:[#allocation258_spill] sm:$0xff]  ;;  %v9619_v28 = vmul.f32 %v17166_v26, %v2003_v29 }
 0x25d   :  { %17195 = vst [vmem:[#allocation410_spill] sm:$0xff] %v9600_v43  ;;  %v2035_v3 = vadd.f32 1.0, %v17196_v24  ;;  %17197 = vst [vmem:[#allocation256_spill] sm:$0xff] %v9605_v42  ;;  %v2044_v49 = vadd.f32 1.0, %v17198_v19  ;;  %v9612_v12 = vmul.f32 0.6931472, %v5356_v52 }
 0x25e   :  { %vm9614_vm3 = vcmp.lt.f32.partialorder %v1996_v35, 0.0004427343  ;;  %v17200_v50 = vmov 0  ;;  %17203 = vst [vmem:[#allocation412_spill] sm:$0xff] %v9619_v28  ;;  %v2029_v5 = vmul.f32 -0.5, %v17189_v47  ;;  %v17204_v41 = vmov 0 }
 0x25f   :  { %17199 = vst [vmem:[#allocation258_spill] sm:$0xff] %v9612_v12  ;;  %v17201_v50 = vsel %vm9614_vm3, 4294967295, %v17200_v50  ;;  %vm9622_vm13 = vcmp.lt.f32.partialorder %v2005_v48, 0.0004427343  ;;  %v2021_v4 = vadd.f32 1.0, %v2020_v38  ;;  %v2038_v52 = vmul.f32 -0.5, %v17196_v24  ;;  %v5362_v1 = vpop.eup %5361 }
 0x260   :  { %17202 = vst [vmem:[#allocation411_spill] sm:$0xff] %v17201_v50  ;;  %v17205_v41 = vsel %vm9622_vm13, 4294967295, %v17204_v41  ;;  %v2023_v9 = vand.u32 2147483647, %v17182_v31  ;;  %v2053_v35 = vadd.f32 1.0, %v17207_v53  ;;  %v17209_v44 = vmov 0 }
 0x261   :  { %17206 = vst [vmem:[#allocation413_spill] sm:$0xff] %v17205_v41  ;;  %v9633_v29 = vmul.f32 0.6931472, %v5358_v33  ;;  %vm9635_vm14 = vcmp.lt.f32.partialorder %v2014_v25, 0.0004427343  ;;  %5371 = vlog2.f32 %v2035_v3  ;;  %v9640_v48 = vmul.f32 %v17172_v13, %v2012_v2  ;;  %v5364_v3 = vpop.eup %5363  ;;  %v17221_v12 = vld [vmem:[#allocation264_spill] sm:$0xff] }
 0x262   :  { %v17210_v44 = vsel %vm9635_vm14, 4294967295, %v17209_v44  ;;  %5373 = vlog2.f32 %v2044_v49  ;;  %v2047_v38 = vmul.f32 -0.5, %v17198_v19  ;;  %v2062_v22 = vadd.f32 1.0, %v17213_v20  ;;  %v5366_v32 = vpop.eup %5365  ;;  %v17245_v42 = vld [vmem:[#allocation271_spill] sm:$0xff] }
 0x263   :  { %17208 = vst [vmem:[#allocation259_spill] sm:$0xff] %v9633_v29  ;;  %17211 = vst [vmem:[#allocation414_spill] sm:$0xff] %v17210_v44  ;;  %v9648_v26 = vmul.f32 0.6931472, %v5360_v37  ;;  %v2030_v25 = vadd.f32 1.0, %v2029_v5  ;;  %v9652_v2 = vmul.f32 %v17182_v31, %v2021_v4  ;;  %v2039_v49 = vadd.f32 1.0, %v2038_v52 }
 0x264   :  { %17212 = vst [vmem:[#allocation415_spill] sm:$0xff] %v9640_v48  ;;  %v2032_v43 = vand.u32 2147483647, %v17189_v47  ;;  %5375 = vlog2.f32 %v2053_v35  ;;  %v2056_v13 = vmul.f32 -0.5, %v17207_v53  ;;  %vm9659_vm4 = vcmp.lt.f32.partialorder %v2023_v9, 0.0004427343 }
 0x265   :  { %17214 = vst [vmem:[#allocation261_spill] sm:$0xff] %v9648_v26  ;;  %17215 = vst [vmem:[#allocation416_spill] sm:$0xff] %v9652_v2  ;;  %v17216_v37 = vmov 0  ;;  %v2041_v5 = vand.u32 2147483647, %v17196_v24  ;;  %v2065_v33 = vmul.f32 -0.5, %v17213_v20  ;;  %5377 = vlog2.f32 %v2062_v22 }
 0x266   :  { %v17217_v37 = vsel %vm9659_vm4, 4294967295, %v17216_v37  ;;  %v17219_v31 = vld [vmem:[#allocation263_spill] sm:$0xff]  ;;  %v9666_v52 = vmul.f32 0.6931472, %v5362_v1  ;;  %v2048_v35 = vadd.f32 1.0, %v2047_v38  ;;  %v2080_v55 = vadd.f32 1.0, %v17221_v12  ;;  %v5368_v9 = vpop.eup %5367 }
 0x267   :  { %17218 = vst [vmem:[#allocation417_spill] sm:$0xff] %v17217_v37  ;;  %v2071_v4 = vadd.f32 1.0, %v17219_v31  ;;  %v9673_v45 = vmul.f32 0.6931472, %v5364_v3  ;;  %v9676_v29 = vmul.f32 %v17189_v47, %v2030_v25  ;;  %vm9678_vm7 = vcmp.lt.f32.partialorder %v2032_v43, 0.0004427343 }
 0x268   :  { %17220 = vst [vmem:[#allocation263_spill] sm:$0xff] %v9666_v52  ;;  %v17224_v61 = vmov 0  ;;  %v2050_v1 = vand.u32 2147483647, %v17198_v19  ;;  %v9683_v38 = vmul.f32 0.6931472, %v5366_v32  ;;  %v9686_v22 = vmul.f32 %v17196_v24, %v2039_v49  ;;  %v5370_v10 = vpop.eup %5369 }
 0x269   :  { %17222 = vst [vmem:[#allocation264_spill] sm:$0xff] %v9673_v45  ;;  %17223 = vst [vmem:[#allocation418_spill] sm:$0xff] %v9676_v29  ;;  %v17225_v61 = vsel %vm9678_vm7, 4294967295, %v17224_v61  ;;  %v2057_v59 = vadd.f32 1.0, %v2056_v13  ;;  %v2074_v8 = vmul.f32 -0.5, %v17219_v31  ;;  %v2066_v26 = vadd.f32 1.0, %v2065_v33 }
 0x26a   :  { %17226 = vst [vmem:[#allocation419_spill] sm:$0xff] %v17225_v61  ;;  %17227 = vst [vmem:[#allocation420_spill] sm:$0xff] %v9683_v38  ;;  %v2059_v3 = vand.u32 2147483647, %v17207_v53  ;;  %5379 = vlog2.f32 %v2071_v4  ;;  %v17229_v47 = vld [vmem:[#allocation266_spill] sm:$0xff]  ;;  %v17230_v32 = vmov 0  ;;  %v9700_v24 = vmul.f32 %v17198_v19, %v2048_v35 }
 0x26b   :  { %17228 = vst [vmem:[#allocation421_spill] sm:$0xff] %v9686_v22  ;;  %v2089_v43 = vadd.f32 1.0, %v17229_v47  ;;  %vm9695_vm5 = vcmp.lt.f32.partialorder %v2041_v5, 0.0004427343  ;;  %5381 = vlog2.f32 %v2080_v55  ;;  %v17234_v49 = vld [vmem:[#allocation267_spill] sm:$0xff]  ;;  %v17235_v4 = vmov 0 }
 0x26c   :  { %v17231_v32 = vsel %vm9695_vm5, 4294967295, %v17230_v32  ;;  %17233 = vst [vmem:[#allocation422_spill] sm:$0xff] %v9700_v24  ;;  %v2098_v13 = vadd.f32 1.0, %v17234_v49  ;;  %vm9707_vm10 = vcmp.lt.f32.partialorder %v2050_v1, 0.0004427343  ;;  %v2083_v25 = vmul.f32 -0.5, %v17221_v12 }
 0x26d   :  { %17232 = vst [vmem:[#allocation266_spill] sm:$0xff] %v17231_v32  ;;  %v17236_v4 = vsel %vm9707_vm10, 4294967295, %v17235_v4  ;;  %v2068_v5 = vand.u32 2147483647, %v17213_v20  ;;  %v17238_v52 = vld [vmem:[#allocation269_spill] sm:$0xff]  ;;  %v9721_v41 = vmul.f32 %v17207_v53, %v2057_v59  ;;  %v2075_v1 = vadd.f32 1.0, %v2074_v8 }
 0x26e   :  { %17237 = vst [vmem:[#allocation267_spill] sm:$0xff] %v17236_v4  ;;  %v2107_v19 = vadd.f32 1.0, %v17238_v52  ;;  %v9718_v35 = vmul.f32 0.6931472, %v5368_v9  ;;  %vm9723_vm13 = vcmp.lt.f32.partialorder %v2059_v3, 0.0004427343  ;;  %v9728_v45 = vmul.f32 %v17213_v20, %v2066_v26  ;;  %v5372_v44 = vpop.eup %5371 }
 0x26f   :  { %17240 = vst [vmem:[#allocation423_spill] sm:$0xff] %v9721_v41  ;;  %v17241_v33 = vmov 0  ;;  %5383 = vlog2.f32 %v2089_v43  ;;  %v2092_v28 = vmul.f32 -0.5, %v17229_v47  ;;  %v2116_v50 = vadd.f32 1.0, %v17245_v42  ;;  %v5374_v53 = vpop.eup %5373  ;;  %v17270_v22 = vld [vmem:[#allocation274_spill] sm:$0xff] }
 0x270   :  { %17239 = vst [vmem:[#allocation269_spill] sm:$0xff] %v9718_v35  ;;  %v17242_v33 = vsel %vm9723_vm13, 4294967295, %v17241_v33  ;;  %17244 = vst [vmem:[#allocation425_spill] sm:$0xff] %v9728_v45  ;;  %v9732_v55 = vmul.f32 0.6931472, %v5370_v10  ;;  %5385 = vlog2.f32 %v2098_v13  ;;  %v2101_v59 = vmul.f32 -0.5, %v17234_v49 }
 0x271   :  { %17243 = vst [vmem:[#allocation424_spill] sm:$0xff] %v17242_v33  ;;  %v2077_v9 = vand.u32 2147483647, %v17219_v31  ;;  %vm9736_vm14 = vcmp.lt.f32.partialorder %v2068_v5, 0.0004427343  ;;  %v17247_v8 = vmov 0  ;;  %5387 = vlog2.f32 %v2107_v19  ;;  %v5376_v5 = vpop.eup %5375 }
 0x272   :  { %17246 = vst [vmem:[#allocation271_spill] sm:$0xff] %v9732_v55  ;;  %v17248_v8 = vsel %vm9736_vm14, 4294967295, %v17247_v8  ;;  %v2084_v20 = vadd.f32 1.0, %v2083_v25  ;;  %v2086_v26 = vand.u32 2147483647, %v17221_v12  ;;  %v9746_v3 = vmul.f32 %v17219_v31, %v2075_v1  ;;  %v17251_v13 = vld [vmem:[#allocation272_spill] sm:$0xff] }
 0x273   :  { %17249 = vst [vmem:[#allocation426_spill] sm:$0xff] %v17248_v8  ;;  %v2110_v43 = vmul.f32 -0.5, %v17238_v52  ;;  %v2125_v38 = vadd.f32 1.0, %v17251_v13  ;;  %v9750_v48 = vmul.f32 0.6931472, %v5372_v44  ;;  %v2093_v27 = vadd.f32 1.0, %v2092_v28  ;;  %v5378_v44 = vpop.eup %5377 }
 0x274   :  { %17250 = vst [vmem:[#allocation427_spill] sm:$0xff] %v9746_v3  ;;  %5389 = vlog2.f32 %v2116_v50  ;;  %v17253_v25 = vld [vmem:[#allocation273_spill] sm:$0xff]  ;;  %v9757_v10 = vmul.f32 0.6931472, %v5374_v53  ;;  %vm9759_vm4 = vcmp.lt.f32.partialorder %v2077_v9, 0.0004427343  ;;  %v9765_v28 = vmul.f32 %v17221_v12, %v2084_v20 }
 0x275   :  { %17252 = vst [vmem:[#allocation272_spill] sm:$0xff] %v9750_v48  ;;  %v2134_v15 = vadd.f32 1.0, %v17253_v25  ;;  %v17255_v31 = vmov 0  ;;  %v2095_v1 = vand.u32 2147483647, %v17229_v47  ;;  %v2102_v35 = vadd.f32 1.0, %v2101_v59 }
 0x276   :  { %17254 = vst [vmem:[#allocation273_spill] sm:$0xff] %v9757_v10  ;;  %v17256_v31 = vsel %vm9759_vm4, 4294967295, %v17255_v31  ;;  %17258 = vst [vmem:[#allocation429_spill] sm:$0xff] %v9765_v28  ;;  %vm9767_vm3 = vcmp.lt.f32.partialorder %v2086_v26, 0.0004427343  ;;  %v17259_v50 = vmov 0  ;;  %5391 = vlog2.f32 %v2125_v38 }
 0x277   :  { %17257 = vst [vmem:[#allocation428_spill] sm:$0xff] %v17256_v31  ;;  %v17260_v50 = vsel %vm9767_vm3, 4294967295, %v17259_v50  ;;  %v2104_v61 = vand.u32 2147483647, %v17234_v49  ;;  %v2119_v53 = vmul.f32 -0.5, %v17245_v42  ;;  %v17262_v19 = vld [vmem:[#allocation13_spill] sm:$0xff]  ;;  %v9782_v59 = vmul.f32 %v17229_v47, %v2093_v27  ;;  %v5380_v26 = vpop.eup %5379 }
 0x278   :  { %17261 = vst [vmem:[#allocation430_spill] sm:$0xff] %v17260_v50  ;;  %v2143_v9 = vadd.f32 1.0, %v17262_v19  ;;  %v9774_v55 = vmul.f32 0.6931472, %v5376_v5  ;;  %v2111_v29 = vadd.f32 1.0, %v2110_v43  ;;  %v2128_v20 = vmul.f32 -0.5, %v17251_v13  ;;  %v5382_v47 = vpop.eup %5381 }
 0x279   :  { %v2113_v2 = vand.u32 2147483647, %v17238_v52  ;;  %17264 = vst [vmem:[#allocation431_spill] sm:$0xff] %v9782_v59  ;;  %5393 = vlog2.f32 %v2134_v15  ;;  %v9789_v5 = vmul.f32 0.6931472, %v5378_v44  ;;  %v17266_v38 = vmov 0 }
 0x27a   :  { %17263 = vst [vmem:[#allocation13_spill] sm:$0xff] %v9774_v55  ;;  %vm9791_vm7 = vcmp.lt.f32.partialorder %v2095_v1, 0.0004427343  ;;  %v9796_v12 = vmul.f32 %v17234_v49, %v2102_v35  ;;  %v2122_v27 = vand.u32 2147483647, %v17245_v42  ;;  %v2120_v48 = vadd.f32 1.0, %v2119_v53 }
 0x27b   :  { %17265 = vst [vmem:[#allocation432_spill] sm:$0xff] %v9789_v5  ;;  %v17267_v38 = vsel %vm9791_vm7, 4294967295, %v17266_v38  ;;  %v2137_v15 = vmul.f32 -0.5, %v17253_v25  ;;  %5395 = vlog2.f32 %v2143_v9  ;;  %v2152_v32 = vadd.f32 1.0, %v17270_v22  ;;  %v17278_v53 = vld [vmem:[#allocation275_spill] sm:$0xff]  ;;  %v17280_v33 = vld [vmem:[#allocation18_spill] sm:$0xff] }
 0x27c   :  { %17268 = vst [vmem:[#allocation433_spill] sm:$0xff] %v17267_v38  ;;  %17269 = vst [vmem:[#allocation434_spill] sm:$0xff] %v9796_v12  ;;  %vm9805_vm10 = vcmp.lt.f32.partialorder %v2104_v61, 0.0004427343  ;;  %v17271_v44 = vmov 0  ;;  %v9810_v49 = vmul.f32 %v17238_v52, %v2111_v29  ;;  %v17275_v35 = vmov 0  ;;  %v5384_v61 = vpop.eup %5383 }
 0x27d   :  { %v17272_v44 = vsel %vm9805_vm10, 4294967295, %v17271_v44  ;;  %vm9812_vm5 = vcmp.lt.f32.partialorder %v2113_v2, 0.0004427343  ;;  %v2161_v9 = vadd.f32 1.0, %v17278_v53  ;;  %v9817_v43 = vmul.f32 0.6931472, %v5380_v26  ;;  %v5386_v55 = vpop.eup %5385 }
 0x27e   :  { %17273 = vst [vmem:[#allocation274_spill] sm:$0xff] %v17272_v44  ;;  %17274 = vst [vmem:[#allocation435_spill] sm:$0xff] %v9810_v49  ;;  %v17276_v35 = vsel %vm9812_vm5, 4294967295, %v17275_v35  ;;  %v2129_v10 = vadd.f32 1.0, %v2128_v20  ;;  %v2131_v24 = vand.u32 2147483647, %v17251_v13  ;;  %v9834_v41 = vmul.f32 %v17245_v42, %v2120_v48  ;;  %v5388_v8 = vpop.eup %5387 }
 0x27f   :  { %17277 = vst [vmem:[#allocation436_spill] sm:$0xff] %v17276_v35  ;;  %17279 = vst [vmem:[#allocation275_spill] sm:$0xff] %v9817_v43  ;;  %v2170_v1 = vadd.f32 1.0, %v17280_v33  ;;  %v9825_v52 = vmul.f32 0.6931472, %v5382_v47  ;;  %v17282_v2 = vmov 0  ;;  %5397 = vlog2.f32 %v2152_v32 }
 0x280   :  { %vm9827_vm13 = vcmp.lt.f32.partialorder %v2122_v27, 0.0004427343  ;;  %v2140_v26 = vand.u32 2147483647, %v17253_v25  ;;  %v2146_v20 = vmul.f32 -0.5, %v17262_v19  ;;  %17285 = vst [vmem:[#allocation438_spill] sm:$0xff] %v9834_v41  ;;  %5399 = vlog2.f32 %v2161_v9 }
 0x281   :  { %17281 = vst [vmem:[#allocation18_spill] sm:$0xff] %v9825_v52  ;;  %v17283_v2 = vsel %vm9827_vm13, 4294967295, %v17282_v2  ;;  %v2138_v4 = vadd.f32 1.0, %v2137_v15  ;;  %v2155_v37 = vmul.f32 -0.5, %v17270_v22  ;;  %v2149_v47 = vand.u32 2147483647, %v17262_v19  ;;  %v5390_v32 = vpop.eup %5389 }
 0x282   :  { %17284 = vst [vmem:[#allocation437_spill] sm:$0xff] %v17283_v2  ;;  %v2164_v27 = vmul.f32 -0.5, %v17278_v53  ;;  %v17286_v29 = vld [vmem:[#allocation277_spill] sm:$0xff]  ;;  %v9844_v14 = vmul.f32 0.6931472, %v5384_v61  ;;  %v9847_v42 = vmul.f32 %v17251_v13, %v2129_v10  ;;  %v17289_v48 = vmov 0 }
 0x283   :  { %v2179_v5 = vadd.f32 1.0, %v17286_v29  ;;  %vm9849_vm14 = vcmp.lt.f32.partialorder %v2131_v24, 0.0004427343  ;;  %5401 = vlog2.f32 %v2170_v1  ;;  %vm9857_vm15 = vcmp.lt.f32.partialorder %v2140_v26, 0.0004427343  ;;  %v17295_v10 = vld [vmem:[#allocation278_spill] sm:$0xff]  ;;  %v5392_v52 = vpop.eup %5391 }
 0x284   :  { %17287 = vst [vmem:[#allocation277_spill] sm:$0xff] %v9844_v14  ;;  %17288 = vst [vmem:[#allocation439_spill] sm:$0xff] %v9847_v42  ;;  %v17290_v48 = vsel %vm9849_vm14, 4294967295, %v17289_v48  ;;  %v17292_v9 = vmov 0  ;;  %v2147_v61 = vadd.f32 1.0, %v2146_v20  ;;  %v2173_v45 = vmul.f32 -0.5, %v17280_v33 }
 0x285   :  { %17291 = vst [vmem:[#allocation440_spill] sm:$0xff] %v17290_v48  ;;  %v17293_v9 = vsel %vm9857_vm15, 4294967295, %v17292_v9  ;;  %v2188_v13 = vadd.f32 1.0, %v17295_v10  ;;  %v9863_v24 = vmul.f32 0.6931472, %v5386_v55  ;;  %v9868_v1 = vmul.f32 %v17253_v25, %v2138_v4  ;;  %v17303_v4 = vld [vmem:[#allocation279_spill] sm:$0xff] }
 0x286   :  { %17294 = vst [vmem:[#allocation441_spill] sm:$0xff] %v17293_v9  ;;  %v9865_v43 = vmul.f32 0.6931472, %v5388_v8  ;;  %v2156_v3 = vadd.f32 1.0, %v2155_v37  ;;  %vm9870_vm4 = vcmp.lt.f32.partialorder %v2149_v47, 0.0004427343  ;;  %5403 = vlog2.f32 %v2179_v5  ;;  %v5394_v47 = vpop.eup %5393 }
 0x287   :  { %17296 = vst [vmem:[#allocation278_spill] sm:$0xff] %v9863_v24  ;;  %17298 = vst [vmem:[#allocation443_spill] sm:$0xff] %v9868_v1  ;;  %v17299_v50 = vmov 0  ;;  %v2158_v26 = vand.u32 2147483647, %v17270_v22  ;;  %v2165_v15 = vadd.f32 1.0, %v2164_v27  ;;  %v9885_v28 = vmul.f32 %v17262_v19, %v2147_v61 }
 0x288   :  { %17297 = vst [vmem:[#allocation442_spill] sm:$0xff] %v9865_v43  ;;  %v17300_v50 = vsel %vm9870_vm4, 4294967295, %v17299_v50  ;;  %v2182_v20 = vmul.f32 -0.5, %v17286_v29  ;;  %v9880_v8 = vmul.f32 0.6931472, %v5390_v32  ;;  %v2197_v25 = vadd.f32 1.0, %v17303_v4  ;;  %v5396_v61 = vpop.eup %5395 }
 0x289   :  { %17301 = vst [vmem:[#allocation444_spill] sm:$0xff] %v17300_v50  ;;  %v2167_v37 = vand.u32 2147483647, %v17278_v53  ;;  %17304 = vst [vmem:[#allocation279_spill] sm:$0xff] %v9885_v28  ;;  %v2174_v27 = vadd.f32 1.0, %v2173_v45  ;;  %5405 = vlog2.f32 %v2188_v13  ;;  %v2191_v5 = vmul.f32 -0.5, %v17295_v10 }
 0x28a   :  { %17302 = vst [vmem:[#allocation445_spill] sm:$0xff] %v9880_v8  ;;  %v9897_v55 = vmul.f32 %v17270_v22, %v2156_v3  ;;  %v17306_v14 = vld [vmem:[#allocation280_spill] sm:$0xff]  ;;  %v9900_v45 = vmul.f32 0.6931472, %v5392_v52  ;;  %vm9902_vm7 = vcmp.lt.f32.partialorder %v2158_v26, 0.0004427343  ;;  %v9907_v44 = vmul.f32 %v17278_v53, %v2165_v15 }
 0x28b   :  { %v2206_v19 = vadd.f32 1.0, %v17306_v14  ;;  %v17308_v13 = vmov 0  ;;  %v2176_v38 = vand.u32 2147483647, %v17280_v33  ;;  %v2183_v24 = vadd.f32 1.0, %v2182_v20  ;;  %v17317_v32 = vld [vmem:[#allocation25_spill] sm:$0xff] }
 0x28c   :  { %17305 = vst [vmem:[#allocation446_spill] sm:$0xff] %v9897_v55  ;;  %17307 = vst [vmem:[#allocation280_spill] sm:$0xff] %v9900_v45  ;;  %v17309_v13 = vsel %vm9902_vm7, 4294967295, %v17308_v13  ;;  %v9914_v3 = vmul.f32 0.6931472, %v5394_v47  ;;  %v17313_v52 = vmov 0  ;;  %5407 = vlog2.f32 %v2197_v25  ;;  %v5398_v22 = vpop.eup %5397 }
 0x28d   :  { %17310 = vst [vmem:[#allocation447_spill] sm:$0xff] %v17309_v13  ;;  %17311 = vst [vmem:[#allocation448_spill] sm:$0xff] %v9907_v44  ;;  %vm9916_vm5 = vcmp.lt.f32.partialorder %v2167_v37, 0.0004427343  ;;  %v2185_v26 = vand.u32 2147483647, %v17286_v29  ;;  %v9922_v53 = vmul.f32 %v17280_v33, %v2174_v27  ;;  %5409 = vlog2.f32 %v2206_v19  ;;  %v5400_v8 = vpop.eup %5399 }
 0x28e   :  { %17312 = vst [vmem:[#allocation449_spill] sm:$0xff] %v9914_v3  ;;  %v17314_v52 = vsel %vm9916_vm5, 4294967295, %v17313_v52  ;;  %v2192_v15 = vadd.f32 1.0, %v2191_v5  ;;  %v2200_v20 = vmul.f32 -0.5, %v17303_v4  ;;  %v2215_v43 = vadd.f32 1.0, %v17317_v32  ;;  %v17323_v5 = vld [vmem:[#allocation282_spill] sm:$0xff] }
 0x28f   :  { %17315 = vst [vmem:[#allocation450_spill] sm:$0xff] %v17314_v52  ;;  %17316 = vst [vmem:[#allocation451_spill] sm:$0xff] %v9922_v53  ;;  %v9926_v49 = vmul.f32 0.6931472, %v5396_v61  ;;  %v2194_v47 = vand.u32 2147483647, %v17295_v10  ;;  %v9939_v27 = vmul.f32 %v17286_v29, %v2183_v24 }
 0x290   :  { %v2209_v37 = vmul.f32 -0.5, %v17306_v14  ;;  %vm9934_vm13 = vcmp.lt.f32.partialorder %v2176_v38, 0.0004427343  ;;  %v17319_v33 = vmov 0  ;;  %v2224_v61 = vadd.f32 1.0, %v17323_v5  ;;  %v17327_v45 = vld [vmem:[#allocation284_spill] sm:$0xff]  ;;  %v5402_v29 = vpop.eup %5401 }
 0x291   :  { %17318 = vst [vmem:[#allocation25_spill] sm:$0xff] %v9926_v49  ;;  %v17320_v33 = vsel %vm9934_vm13, 4294967295, %v17319_v33  ;;  %17322 = vst [vmem:[#allocation453_spill] sm:$0xff] %v9939_v27  ;;  %vm9946_vm10 = vcmp.lt.f32.partialorder %v2185_v26, 0.0004427343  ;;  %v17324_v41 = vmov 0  ;;  %v9954_v24 = vmul.f32 %v17295_v10, %v2192_v15 }
 0x292   :  { %17321 = vst [vmem:[#allocation452_spill] sm:$0xff] %v17320_v33  ;;  %v17325_v41 = vsel %vm9946_vm10, 4294967295, %v17324_v41  ;;  %v2203_v38 = vand.u32 2147483647, %v17303_v4  ;;  %v2218_v25 = vmul.f32 -0.5, %v17317_v32  ;;  %v2233_v42 = vadd.f32 1.0, %v17327_v45 }
 0x293   :  { %17326 = vst [vmem:[#allocation282_spill] sm:$0xff] %v17325_v41  ;;  %17328 = vst [vmem:[#allocation284_spill] sm:$0xff] %v9954_v24  ;;  %v2201_v48 = vadd.f32 1.0, %v2200_v20  ;;  %5411 = vlog2.f32 %v2215_v43  ;;  %v17329_v2 = vld [vmem:[#allocation285_spill] sm:$0xff]  ;;  %v9961_v19 = vmul.f32 0.6931472, %v5398_v22  ;;  %v5404_v20 = vpop.eup %5403 }
 0x294   :  { %v2242_v35 = vadd.f32 1.0, %v17329_v2  ;;  %vm9963_vm15 = vcmp.lt.f32.partialorder %v2194_v47, 0.0004427343  ;;  %v17331_v3 = vmov 0  ;;  %v2210_v1 = vadd.f32 1.0, %v2209_v37  ;;  %v17336_v22 = vld [vmem:[#allocation286_spill] sm:$0xff] }
 0x295   :  { %17330 = vst [vmem:[#allocation285_spill] sm:$0xff] %v9961_v19  ;;  %v17332_v3 = vsel %vm9963_vm15, 4294967295, %v17331_v3  ;;  %v2227_v9 = vmul.f32 -0.5, %v17323_v5  ;;  %v9968_v10 = vmul.f32 0.6931472, %v5400_v8  ;;  %5413 = vlog2.f32 %v2224_v61  ;;  %v17348_v52 = vld [vmem:[#allocation288_spill] sm:$0xff] }
 0x296   :  { %17333 = vst [vmem:[#allocation454_spill] sm:$0xff] %v17332_v3  ;;  %v2212_v43 = vand.u32 2147483647, %v17306_v14  ;;  %v2236_v15 = vmul.f32 -0.5, %v17327_v45  ;;  %v9972_v12 = vmul.f32 0.6931472, %v5402_v29  ;;  %5415 = vlog2.f32 %v2233_v42  ;;  %v5406_v61 = vpop.eup %5405 }
 0x297   :  { %17334 = vst [vmem:[#allocation455_spill] sm:$0xff] %v9968_v10  ;;  %v2219_v26 = vadd.f32 1.0, %v2218_v25  ;;  %v2251_v47 = vadd.f32 1.0, %v17336_v22  ;;  %v9976_v49 = vmul.f32 %v17303_v4, %v2201_v48  ;;  %vm9978_vm4 = vcmp.lt.f32.partialorder %v2203_v38, 0.0004427343  ;;  %v17355_v55 = vld [vmem:[#allocation291_spill] sm:$0xff] }
 0x298   :  { %17335 = vst [vmem:[#allocation456_spill] sm:$0xff] %v9972_v12  ;;  %v17338_v37 = vmov 0  ;;  %v2221_v8 = vand.u32 2147483647, %v17317_v32  ;;  %5417 = vlog2.f32 %v2242_v35  ;;  %v9988_v42 = vmul.f32 %v17306_v14, %v2210_v1  ;;  %v17346_v1 = vld [vmem:[#allocation31_spill] sm:$0xff]  ;;  %v17360_v50 = vld [vmem:[#allocation293_spill] sm:$0xff] }
 0x299   :  { %17337 = vst [vmem:[#allocation286_spill] sm:$0xff] %v9976_v49  ;;  %v17339_v37 = vsel %vm9978_vm4, 4294967295, %v17338_v37  ;;  %v2228_v25 = vadd.f32 1.0, %v2227_v9  ;;  %v2245_v48 = vmul.f32 -0.5, %v17329_v2  ;;  %v9995_v38 = vmul.f32 0.6931472, %v5404_v20  ;;  %v5408_v20 = vpop.eup %5407 }
 0x29a   :  { %17340 = vst [vmem:[#allocation457_spill] sm:$0xff] %v17339_v37  ;;  %17341 = vst [vmem:[#allocation458_spill] sm:$0xff] %v9988_v42  ;;  %vm9997_vm14 = vcmp.lt.f32.partialorder %v2212_v43, 0.0004427343  ;;  %v17343_v35 = vmov 0  ;;  %v2237_v29 = vadd.f32 1.0, %v2236_v15  ;;  %v10007_v9 = vmul.f32 %v17317_v32, %v2219_v26 }
 0x29b   :  { %17342 = vst [vmem:[#allocation459_spill] sm:$0xff] %v9995_v38  ;;  %v17344_v35 = vsel %vm9997_vm14, 4294967295, %v17343_v35  ;;  %v2230_v13 = vand.u32 2147483647, %v17323_v5  ;;  %5419 = vlog2.f32 %v2251_v47  ;;  %v2260_v4 = vadd.f32 1.0, %v17346_v1  ;;  %v17353_v47 = vld [vmem:[#allocation289_spill] sm:$0xff] }
 0x29c   :  { %17345 = vst [vmem:[#allocation460_spill] sm:$0xff] %v10007_v9  ;;  %v10010_v10 = vmul.f32 0.6931472, %v5406_v61  ;;  %v2239_v43 = vand.u32 2147483647, %v17327_v45  ;;  %v2254_v44 = vmul.f32 -0.5, %v17336_v22  ;;  %v10020_v14 = vmul.f32 %v17323_v5, %v2228_v25  ;;  %v5410_v61 = vpop.eup %5409 }
 0x29d   :  { %v2269_v15 = vadd.f32 1.0, %v17348_v52  ;;  %vm10015_vm5 = vcmp.lt.f32.partialorder %v2221_v8, 0.0004427343  ;;  %v17349_v19 = vmov 0  ;;  %v2246_v32 = vadd.f32 1.0, %v2245_v48 }
 0x29e   :  { %17347 = vst [vmem:[#allocation31_spill] sm:$0xff] %v10010_v10  ;;  %v17350_v19 = vsel %vm10015_vm5, 4294967295, %v17349_v19  ;;  %17352 = vst [vmem:[#allocation461_spill] sm:$0xff] %v10020_v14  ;;  %v2248_v26 = vand.u32 2147483647, %v17329_v2  ;;  %v2278_v12 = vadd.f32 1.0, %v17353_v47  ;;  %v10029_v33 = vmul.f32 %v17327_v45, %v2237_v29 }
 0x29f   :  { %17351 = vst [vmem:[#allocation288_spill] sm:$0xff] %v17350_v19  ;;  %v2263_v8 = vmul.f32 -0.5, %v17346_v1  ;;  %v2287_v28 = vadd.f32 1.0, %v17355_v55  ;;  %v10033_v5 = vmul.f32 0.6931472, %v5408_v20  ;;  %v17357_v25 = vmov 0 }
 0x2a0   :  { %17354 = vst [vmem:[#allocation289_spill] sm:$0xff] %v10029_v33  ;;  %vm10035_vm13 = vcmp.lt.f32.partialorder %v2230_v13, 0.0004427343  ;;  %v2257_v48 = vand.u32 2147483647, %v17336_v22  ;;  %5421 = vlog2.f32 %v2260_v4  ;;  %v2296_v59 = vadd.f32 1.0, %v17360_v50  ;;  %v5412_v53 = vpop.eup %5411 }
 0x2a1   :  { %17356 = vst [vmem:[#allocation291_spill] sm:$0xff] %v10033_v5  ;;  %v17358_v25 = vsel %vm10035_vm13, 4294967295, %v17357_v25  ;;  %vm10045_vm10 = vcmp.lt.f32.partialorder %v2239_v43, 0.0004427343  ;;  %v17361_v29 = vmov 0  ;;  %v2255_v20 = vadd.f32 1.0, %v2254_v44 }
 0x2a2   :  { %17359 = vst [vmem:[#allocation462_spill] sm:$0xff] %v17358_v25  ;;  %v17362_v29 = vsel %vm10045_vm10, 4294967295, %v17361_v29  ;;  %5423 = vlog2.f32 %v2269_v15  ;;  %v2272_v13 = vmul.f32 -0.5, %v17348_v52  ;;  %v10050_v38 = vmul.f32 0.6931472, %v5410_v61  ;;  %v17369_v45 = vld [vmem:[#allocation294_spill] sm:$0xff]  ;;  %v5414_v15 = vpop.eup %5413 }
 0x2a3   :  { %17363 = vst [vmem:[#allocation293_spill] sm:$0xff] %v17362_v29  ;;  %v10053_v4 = vmul.f32 %v17329_v2, %v2246_v32  ;;  %vm10055_vm7 = vcmp.lt.f32.partialorder %v2248_v26, 0.0004427343  ;;  %v17366_v27 = vmov 0  ;;  %5425 = vlog2.f32 %v2278_v12  ;;  %v17370_v26 = vld [vmem:[#allocation296_spill] sm:$0xff]  ;;  %v5416_v12 = vpop.eup %5415 }
 0x2a4   :  { %17364 = vst [vmem:[#allocation463_spill] sm:$0xff] %v10050_v38  ;;  %v17367_v27 = vsel %vm10055_vm7, 4294967295, %v17366_v27  ;;  %v2305_v43 = vadd.f32 1.0, %v17369_v45  ;;  %v2264_v10 = vadd.f32 1.0, %v2263_v8  ;;  %v2266_v24 = vand.u32 2147483647, %v17346_v1 }
 0x2a5   :  { %17365 = vst [vmem:[#allocation464_spill] sm:$0xff] %v10053_v4  ;;  %17368 = vst [vmem:[#allocation465_spill] sm:$0xff] %v17367_v27  ;;  %v2281_v44 = vmul.f32 -0.5, %v17353_v47  ;;  %5427 = vlog2.f32 %v2287_v28  ;;  %v2290_v32 = vmul.f32 -0.5, %v17355_v55  ;;  %v2314_v61 = vadd.f32 1.0, %v17370_v26  ;;  %v5418_v37 = vpop.eup %5417 }
 0x2a6   :  { %5429 = vlog2.f32 %v2296_v59  ;;  %v10068_v3 = vmul.f32 0.6931472, %v5412_v53  ;;  %v10071_v8 = vmul.f32 %v17336_v22, %v2255_v20  ;;  %vm10073_vm15 = vcmp.lt.f32.partialorder %v2257_v48, 0.0004427343  ;;  %v17376_v53 = vld [vmem:[#allocation297_spill] sm:$0xff] }
 0x2a7   :  { %v17373_v41 = vmov 0  ;;  %v2273_v28 = vadd.f32 1.0, %v2272_v13  ;;  %v2275_v31 = vand.u32 2147483647, %v17348_v52  ;;  %v2299_v2 = vmul.f32 -0.5, %v17360_v50 }
 0x2a8   :  { %17371 = vst [vmem:[#allocation294_spill] sm:$0xff] %v10068_v3  ;;  %17372 = vst [vmem:[#allocation296_spill] sm:$0xff] %v10071_v8  ;;  %v17374_v41 = vsel %vm10073_vm15, 4294967295, %v17373_v41  ;;  %5431 = vlog2.f32 %v2305_v43  ;;  %v2323_v5 = vadd.f32 1.0, %v17376_v53  ;;  %v10084_v22 = vmul.f32 0.6931472, %v5414_v15  ;;  %v5420_v59 = vpop.eup %5419 }
 0x2a9   :  { %17375 = vst [vmem:[#allocation466_spill] sm:$0xff] %v17374_v41  ;;  %v10087_v48 = vmul.f32 %v17346_v1, %v2264_v10  ;;  %v2282_v20 = vadd.f32 1.0, %v2281_v44  ;;  %v2284_v13 = vand.u32 2147483647, %v17353_v47  ;;  %v10090_v49 = vmul.f32 0.6931472, %v5416_v12 }
 0x2aa   :  { %17377 = vst [vmem:[#allocation297_spill] sm:$0xff] %v10084_v22  ;;  %v2291_v56 = vadd.f32 1.0, %v2290_v32  ;;  %v2293_v57 = vand.u32 2147483647, %v17355_v55  ;;  %5433 = vlog2.f32 %v2314_v61  ;;  %v10097_v15 = vmul.f32 0.6931472, %v5418_v37 }
 0x2ab   :  { %17378 = vst [vmem:[#allocation467_spill] sm:$0xff] %v10090_v49  ;;  %vm10099_vm14 = vcmp.lt.f32.partialorder %v2266_v24, 0.0004427343  ;;  %v17380_v10 = vmov 0  ;;  %v10104_v1 = vmul.f32 %v17348_v52, %v2273_v28  ;;  %v17382_v44 = vld [vmem:[#allocation299_spill] sm:$0xff]  ;;  %v17383_v12 = vmov 0 }
 0x2ac   :  { %17379 = vst [vmem:[#allocation468_spill] sm:$0xff] %v10097_v15  ;;  %v17381_v10 = vsel %vm10099_vm14, 4294967295, %v17380_v10  ;;  %v2332_v32 = vadd.f32 1.0, %v17382_v44  ;;  %vm10107_vm4 = vcmp.lt.f32.partialorder %v2275_v31, 0.0004427343  ;;  %v2300_v61 = vadd.f32 1.0, %v2299_v2 }
 0x2ad   :  { %v17384_v12 = vsel %vm10107_vm4, 4294967295, %v17383_v12  ;;  %v2302_v38 = vand.u32 2147483647, %v17360_v50  ;;  %v2308_v43 = vmul.f32 -0.5, %v17369_v45  ;;  %5435 = vlog2.f32 %v2323_v5  ;;  %v17386_v31 = vld [vmem:[#allocation300_spill] sm:$0xff]  ;;  %v5422_v22 = vpop.eup %5421  ;;  %v17392_v2 = vld [vmem:[#allocation302_spill] sm:$0xff] }
 0x2ae   :  { %17385 = vst [vmem:[#allocation299_spill] sm:$0xff] %v17384_v12  ;;  %v10118_v52 = vmul.f32 %v17353_v47, %v2282_v20  ;;  %v2311_v37 = vand.u32 2147483647, %v17369_v45  ;;  %v2341_v28 = vadd.f32 1.0, %v17386_v31  ;;  %v10126_v3 = vmul.f32 0.6931472, %v5420_v59 }
 0x2af   :  { %vm10128_vm5 = vcmp.lt.f32.partialorder %v2284_v13, 0.0004427343  ;;  %v17388_v5 = vmov 0  ;;  %v10133_v24 = vmul.f32 %v17355_v55, %v2291_v56  ;;  %vm10135_vm13 = vcmp.lt.f32.partialorder %v2293_v57, 0.0004427343  ;;  %v5424_v33 = vpop.eup %5423  ;;  %v17399_v59 = vld [vmem:[#allocation304_spill] sm:$0xff] }
 0x2b0   :  { %17387 = vst [vmem:[#allocation300_spill] sm:$0xff] %v10126_v3  ;;  %v17389_v5 = vsel %vm10128_vm5, 4294967295, %v17388_v5  ;;  %v2317_v20 = vmul.f32 -0.5, %v17370_v26  ;;  %v2320_v13 = vand.u32 2147483647, %v17370_v26  ;;  %5437 = vlog2.f32 %v2332_v32  ;;  %v5426_v14 = vpop.eup %5425  ;;  %v334_v47 = vld [vmem:[#allocation6 + $0x70] sm:$0xff] }
 0x2b1   :  { %v2350_v49 = vadd.f32 1.0, %v17392_v2  ;;  %v10147_v56 = vmul.f32 %v17360_v50, %v2300_v61  ;;  %vm10149_vm10 = vcmp.lt.f32.partialorder %v2302_v38, 0.0004427343  ;;  %v17394_v57 = vmov 0 }
 0x2b2   :  { %v17395_v57 = vsel %vm10149_vm10, 4294967295, %v17394_v57  ;;  %v2309_v55 = vadd.f32 1.0, %v2308_v43  ;;  %v2326_v29 = vmul.f32 -0.5, %v17376_v53  ;;  %vm10154_vm3 = vcmp.lt.f32.partialorder %v2311_v37, 0.0004427343  ;;  %v5428_v4 = vpop.eup %5427 }
 0x2b3   :  { %17393 = vst [vmem:[#allocation302_spill] sm:$0xff] %v10147_v56  ;;  %17396 = vst [vmem:[#allocation469_spill] sm:$0xff] %v17395_v57  ;;  %v17397_v27 = vmov 0  ;;  %v2335_v32 = vmul.f32 -0.5, %v17382_v44  ;;  %5439 = vlog2.f32 %v2341_v28  ;;  %v2359_v15 = vadd.f32 1.0, %v17399_v59  ;;  %v5430_v37 = vpop.eup %5429  ;;  %v17418_v56 = vld [vmem:[#allocation36_spill] sm:$0xff] }
 0x2b4   :  { %v17398_v27 = vsel %vm10154_vm3, 4294967295, %v17397_v27  ;;  %v10164_v38 = vmul.f32 0.6931472, %v5422_v22  ;;  %v2318_v43 = vadd.f32 1.0, %v2317_v20  ;;  %v2344_v61 = vmul.f32 -0.5, %v17386_v31 }
 0x2b5   :  { %v10167_v25 = vmul.f32 0.6931472, %v5424_v33  ;;  %vm10169_vm7 = vcmp.lt.f32.partialorder %v2320_v13, 0.0004427343  ;;  %v17400_v9 = vmov 0  ;;  %5441 = vlog2.f32 %v2350_v49  ;;  %v5432_v3 = vpop.eup %5431 }
 0x2b6   :  { %v17401_v9 = vsel %vm10169_vm7, 4294967295, %v17400_v9  ;;  %v2329_v28 = vand.u32 2147483647, %v17376_v53  ;;  %v2353_v19 = vmul.f32 -0.5, %v17392_v2  ;;  %v10175_v42 = vmul.f32 0.6931472, %v5426_v14 }
 0x2b7   :  { %v10178_v22 = vmul.f32 %v17369_v45, %v2309_v55  ;;  %v2327_v20 = vadd.f32 1.0, %v2326_v29  ;;  %v2338_v50 = vand.u32 2147483647, %v17382_v44  ;;  %v10181_v33 = vmul.f32 0.6931472, %v5428_v4  ;;  %v5434_v29 = vpop.eup %5433 }
 0x2b8   :  { %v2336_v13 = vadd.f32 1.0, %v2335_v32  ;;  %5443 = vlog2.f32 %v2359_v15  ;;  %v2362_v8 = vmul.f32 -0.5, %v17399_v59  ;;  %v10188_v14 = vmul.f32 0.6931472, %v5430_v37  ;;  %v11303_v37 = vld [vmem:[#allocation6 + $0xa8] sm:$0xff] }
 0x2b9   :  { %17402 = vst [vmem:[#allocation304_spill] sm:$0xff] %v10181_v33  ;;  %v2345_v41 = vadd.f32 1.0, %v2344_v61  ;;  %v2347_v45 = vand.u32 2147483647, %v17386_v31  ;;  %v10196_v15 = vmul.f32 %v17370_v26, %v2318_v43  ;;  %vm10198_vm15 = vcmp.lt.f32.partialorder %v2329_v28, 0.0004427343 }
 0x2ba   :  { %17403 = vst [vmem:[#allocation470_spill] sm:$0xff] %v10188_v14  ;;  %v2354_v32 = vadd.f32 1.0, %v2353_v19  ;;  %v10202_v49 = vmul.f32 0.6931472, %v5432_v3  ;;  %v10205_v61 = vmul.f32 %v17376_v53, %v2327_v20  ;;  %vm10207_vm14 = vcmp.lt.f32.partialorder %v2338_v50, 0.0004427343  ;;  %v5436_v4 = vpop.eup %5435 }
 0x2bb   :  { %v2356_v12 = vand.u32 2147483647, %v17392_v2  ;;  %v10221_v19 = vmul.f32 %v17382_v44, %v2336_v13  ;;  %v2363_v53 = vadd.f32 1.0, %v2362_v8  ;;  %v10227_v43 = vmul.f32 0.6931472, %v5434_v29  ;;  %v17410_v8 = vld [vmem:[#allocation108_spill] sm:$0xff] }
 0x2bc   :  { %v10230_v28 = vmul.f32 %v17386_v31, %v2345_v41  ;;  %vm10232_vm5 = vcmp.lt.f32.partialorder %v2347_v45, 0.0004427343  ;;  %v2365_v3 = vand.u32 2147483647, %v17399_v59  ;;  %v10238_v44 = vmul.f32 %v17392_v2, %v2354_v32  ;;  %v17413_v26 = vld [vmem:[#allocation109_spill] sm:$0xff]  ;;  %v17417_v14 = vld [vmem:[#allocation110_spill] sm:$0xff] }
 0x2bd   :  { %v17412_v50 = vsel %vm8337_vm0, %v16698_v58, %v8419_v6  ;;  %v17414_v41 = vld [vmem:[#allocation313_spill] sm:$0xff]  ;;  %vm17419_vm10 = vnez %v17418_v56  ;;  %v17420_v2 = vld [vmem:[#allocation47_spill] sm:$0xff]  ;;  %v17421_v32 = vld [vmem:[#allocation314_spill] sm:$0xff]  ;;  %v5438_v33 = vpop.eup %5437  ;;  %v10268_v54 = vmul.f32 0.6931472, %v5436_v4 }
 0x2be   :  { %v10246_v29 = vadd.f32 %v17412_v50, %v17410_v8  ;;  %v17415_v31 = vsel %vm8348_vm1, %v16700_v62, %v17414_v41  ;;  %v17422_v57 = vsel %vm17419_vm10, %v17420_v2, %v17421_v32  ;;  %vm10270_vm0 = vcmp.lt.f32.partialorder %v2356_v12, 0.0004427343  ;;  %v17426_v62 = vld [vmem:[#allocation111_spill] sm:$0xff]  ;;  %v17429_v56 = vld [vmem:[#allocation60_spill] sm:$0xff]  ;;  %v17430_v50 = vld [vmem:[#allocation317_spill] sm:$0xff] }
 0x2bf   :  { %v10254_v45 = vadd.f32 %v17415_v31, %v17413_v26  ;;  %v10262_v13 = vadd.f32 %v17422_v57, %v17417_v14  ;;  %v17427_v26 = vld [vmem:[#allocation17_spill] sm:$0xff]  ;;  %v17433_v14 = vld [vmem:[#allocation112_spill] sm:$0xff]  ;;  %v17434_v41 = vld [vmem:[#allocation42_spill] sm:$0xff]  ;;  %v10291_v12 = vmul.f32 %v17399_v59, %v2363_v53 }
 0x2c0   :  { %vm17428_vm1 = vnez %v17427_v26  ;;  %vm17435_vm10 = vnez %v17434_v41  ;;  %v17438_v2 = vld [vmem:[#allocation113_spill] sm:$0xff]  ;;  %v17441_v26 = vld [vmem:[#allocation67_spill] sm:$0xff] }
 0x2c1   :  { %17416 = vst [vmem:[#allocation108_spill] sm:$0xff] %v10254_v45  ;;  %17423 = vst [vmem:[#allocation34_spill] sm:$0xff] %v10262_v13  ;;  %v17431_v8 = vsel %vm17428_vm1, %v17429_v56, %v17430_v50  ;;  %v17436_v31 = vsel %vm17435_vm10, %v16722_v0, %v8479_v7  ;;  %v17439_v32 = vld [vmem:[#allocation309_spill] sm:$0xff]  ;;  %v17446_v50 = vld [vmem:[#allocation46_spill] sm:$0xff]  ;;  %v10349_v45 = vmul.f32 0.6931472, %v5438_v33 }
 0x2c2   :  { %v10280_v57 = vadd.f32 %v17431_v8, %v17426_v62  ;;  %v10288_v4 = vadd.f32 %v17436_v31, %v17433_v14  ;;  %vm17440_vm3 = vnez %v17439_v32  ;;  %v17442_v6 = vld [vmem:[#allocation37_spill] sm:$0xff]  ;;  %v17445_v62 = vld [vmem:[#allocation114_spill] sm:$0xff]  ;;  %vm17447_vm1 = vnez %v17446_v50  ;;  %v17448_v8 = vld [vmem:[#allocation72_spill] sm:$0xff] }
 0x2c3   :  { %v17443_v13 = vsel %vm17440_vm3, %v17441_v26, %v17442_v6  ;;  %v17449_v41 = vld [vmem:[#allocation43_spill] sm:$0xff]  ;;  %v17453_v14 = vld [vmem:[#allocation24_spill] sm:$0xff]  ;;  %vm10321_vm3 = vcmp.lt.f32.partialorder %v2365_v3, 0.0004427343  ;;  %v17464_v26 = vld [vmem:[#allocation78_spill] sm:$0xff] }
 0x2c4   :  { %17432 = vst [vmem:[#allocation109_spill] sm:$0xff] %v10280_v57  ;;  %17437 = vst [vmem:[#allocation313_spill] sm:$0xff] %v10288_v4  ;;  %v10299_v56 = vadd.f32 %v17443_v13, %v17438_v2  ;;  %v17450_v57 = vsel %vm17447_vm1, %v17448_v8, %v17449_v41  ;;  %v17452_v0 = vld [vmem:[#allocation115_spill] sm:$0xff]  ;;  %vm17454_vm10 = vnez %v17453_v14  ;;  %v5440_v4 = vpop.eup %5439  ;;  %v17468_v41 = vld [vmem:[#allocation117_spill] sm:$0xff] }
 0x2c5   :  { %v10307_v7 = vadd.f32 %v17450_v57, %v17445_v62  ;;  %v17455_v59 = vld [vmem:[#allocation75_spill] sm:$0xff]  ;;  %v17461_v57 = vld [vmem:[#allocation116_spill] sm:$0xff]  ;;  %v17471_v14 = vld [vmem:[#allocation50_spill] sm:$0xff] }
 0x2c6   :  { %17444 = vst [vmem:[#allocation110_spill] sm:$0xff] %v10299_v56  ;;  %v17456_v53 = vld [vmem:[#allocation27_spill] sm:$0xff]  ;;  %v17465_v62 = vld [vmem:[#allocation64_spill] sm:$0xff]  ;;  %v17475_v3 = vld [vmem:[#allocation118_spill] sm:$0xff] }
 0x2c7   :  { %17451 = vst [vmem:[#allocation36_spill] sm:$0xff] %v10307_v7  ;;  %v17457_v31 = vsel %vm17454_vm10, %v17455_v59, %v17456_v53  ;;  %v17462_v2 = vld [vmem:[#allocation315_spill] sm:$0xff]  ;;  %v17472_v59 = vld [vmem:[#allocation321_spill] sm:$0xff]  ;;  %v17476_v13 = vld [vmem:[#allocation52_spill] sm:$0xff] }
 0x2c8   :  { %v10315_v32 = vadd.f32 %v17457_v31, %v17452_v0  ;;  %vm17463_vm1 = vnez %v17462_v2  ;;  %v17469_v0 = vld [vmem:[#allocation51_spill] sm:$0xff]  ;;  %vm17477_vm7 = vnez %v17476_v13  ;;  %v17479_v7 = vld [vmem:[#allocation322_spill] sm:$0xff]  ;;  %v17492_v13 = vld [vmem:[#allocation29_spill] sm:$0xff] }
 0x2c9   :  { %v17466_v50 = vsel %vm17463_vm1, %v17464_v26, %v17465_v62  ;;  %vm17470_vm10 = vnez %v17469_v0  ;;  %v17483_v26 = vld [vmem:[#allocation318_spill] sm:$0xff]  ;;  %v17485_v62 = vld [vmem:[#allocation88_spill] sm:$0xff]  ;;  %v17497_v33 = vld [vmem:[#allocation237_spill] sm:$0xff] }
 0x2ca   :  { %17458 = vst [vmem:[#allocation47_spill] sm:$0xff] %v10315_v32  ;;  %v10331_v8 = vadd.f32 %v17466_v50, %v17461_v57  ;;  %v17473_v53 = vsel %vm17470_vm10, %v17471_v14, %v17472_v59  ;;  %v17478_v32 = vld [vmem:[#allocation54_spill] sm:$0xff]  ;;  %v17482_v57 = vld [vmem:[#allocation119_spill] sm:$0xff]  ;;  %vm17484_vm1 = vnez %v17483_v26  ;;  %v17486_v50 = vld [vmem:[#allocation324_spill] sm:$0xff]  ;;  %vm17490_vm10 = vnez %v16704_v60  ;;  %v5442_v26 = vpop.eup %5441 }
 0x2cb   :  { %v10339_v31 = vadd.f32 %v17473_v53, %v17468_v41  ;;  %v17480_v56 = vsel %vm17477_vm7, %v17478_v32, %v17479_v7  ;;  %v17487_v0 = vsel %vm17484_vm1, %v17485_v62, %v17486_v50  ;;  %v17489_v41 = vld [vmem:[#allocation120_spill] sm:$0xff]  ;;  %v17491_v14 = vld [vmem:[#allocation235_spill] sm:$0xff]  ;;  %vm17496_vm7 = vnez %v16708_v63  ;;  %v17498_v7 = vld [vmem:[#allocation326_spill] sm:$0xff] }
 0x2cc   :  { %17467 = vst [vmem:[#allocation314_spill] sm:$0xff] %v10331_v8  ;;  %v10347_v2 = vadd.f32 %v17480_v56, %v17475_v3  ;;  %v10357_v8 = vadd.f32 %v17487_v0, %v17482_v57  ;;  %v17493_v59 = vsel %vm17490_vm10, %v17491_v14, %v17492_v13  ;;  %v17495_v56 = vld [vmem:[#allocation121_spill] sm:$0xff]  ;;  %v17499_v32 = vsel %vm17496_vm7, %v17497_v33, %v17498_v7  ;;  %v17501_v60 = vld [vmem:[#allocation122_spill] sm:$0xff]  ;;  %v17502_v62 = vld [vmem:[#allocation55_spill] sm:$0xff] }
 0x2cd   :  { %17474 = vst [vmem:[#allocation111_spill] sm:$0xff] %v10339_v31  ;;  %v10365_v53 = vadd.f32 %v17493_v59, %v17489_v41  ;;  %v10373_v3 = vadd.f32 %v17499_v32, %v17495_v56  ;;  %vm17503_vm1 = vnez %v17502_v62  ;;  %v17504_v50 = vld [vmem:[#allocation238_spill] sm:$0xff]  ;;  %v17505_v0 = vld [vmem:[#allocation276_spill] sm:$0xff]  ;;  %v17508_v63 = vld [vmem:[#allocation123_spill] sm:$0xff] }
 0x2ce   :  { %17481 = vst [vmem:[#allocation17_spill] sm:$0xff] %v10347_v2  ;;  %17488 = vst [vmem:[#allocation60_spill] sm:$0xff] %v10357_v8  ;;  %v17506_v41 = vsel %vm17503_vm1, %v17504_v50, %v17505_v0  ;;  %v17509_v13 = vld [vmem:[#allocation319_spill] sm:$0xff]  ;;  %v17511_v59 = vld [vmem:[#allocation241_spill] sm:$0xff]  ;;  %v10403_v2 = vmul.f32 0.6931472, %v5440_v4 }
 0x2cf   :  { %17494 = vst [vmem:[#allocation317_spill] sm:$0xff] %v10365_v53  ;;  %17500 = vst [vmem:[#allocation112_spill] sm:$0xff] %v10373_v3  ;;  %v10385_v14 = vadd.f32 %v17506_v41, %v17501_v60  ;;  %vm17510_vm10 = vnez %v17509_v13  ;;  %v17512_v56 = vld [vmem:[#allocation20_spill] sm:$0xff]  ;;  %v17516_v3 = vld [vmem:[#allocation59_spill] sm:$0xff] }
 0x2d0   :  { %v17513_v33 = vsel %vm17510_vm10, %v17511_v59, %v17512_v56  ;;  %v17515_v32 = vld [vmem:[#allocation124_spill] sm:$0xff]  ;;  %vm17517_vm7 = vnez %v17516_v3  ;;  %v17522_v60 = vld [vmem:[#allocation125_spill] sm:$0xff]  ;;  %v17523_v50 = vld [vmem:[#allocation323_spill] sm:$0xff] }
 0x2d1   :  { %17507 = vst [vmem:[#allocation42_spill] sm:$0xff] %v10385_v14  ;;  %v10393_v7 = vadd.f32 %v17513_v33, %v17508_v63  ;;  %v17518_v57 = vld [vmem:[#allocation244_spill] sm:$0xff]  ;;  %vm17524_vm1 = vnez %v17523_v50  ;;  %v17525_v0 = vld [vmem:[#allocation246_spill] sm:$0xff]  ;;  %v17526_v41 = vld [vmem:[#allocation281_spill] sm:$0xff] }
 0x2d2   :  { %v17519_v53 = vld [vmem:[#allocation328_spill] sm:$0xff]  ;;  %v17527_v13 = vsel %vm17524_vm1, %v17525_v0, %v17526_v41  ;;  %v17529_v63 = vld [vmem:[#allocation126_spill] sm:$0xff]  ;;  %v17530_v59 = vld [vmem:[#allocation325_spill] sm:$0xff] }
 0x2d3   :  { %17514 = vst [vmem:[#allocation113_spill] sm:$0xff] %v10393_v7  ;;  %v17520_v8 = vsel %vm17517_vm7, %v17518_v57, %v17519_v53  ;;  %v10411_v14 = vadd.f32 %v17527_v13, %v17522_v60  ;;  %vm17531_vm10 = vnez %v17530_v59  ;;  %v17532_v56 = vld [vmem:[#allocation249_spill] sm:$0xff]  ;;  %v17537_v53 = vld [vmem:[#allocation68_spill] sm:$0xff]  ;;  %v17544_v60 = vld [vmem:[#allocation71_spill] sm:$0xff] }
 0x2d4   :  { %v10401_v62 = vadd.f32 %v17520_v8, %v17515_v32  ;;  %v17533_v3 = vld [vmem:[#allocation81_spill] sm:$0xff]  ;;  %v17536_v8 = vld [vmem:[#allocation127_spill] sm:$0xff]  ;;  %vm17538_vm7 = vnez %v17537_v53  ;;  %v17539_v4 = vld [vmem:[#allocation252_spill] sm:$0xff]  ;;  %vm17545_vm1 = vnez %v17544_v60 }
 0x2d5   :  { %17528 = vst [vmem:[#allocation67_spill] sm:$0xff] %v10411_v14  ;;  %v17534_v33 = vsel %vm17531_vm10, %v17532_v56, %v17533_v3  ;;  %v17540_v57 = vld [vmem:[#allocation32_spill] sm:$0xff]  ;;  %v17546_v41 = vld [vmem:[#allocation254_spill] sm:$0xff]  ;;  %v17547_v13 = vld [vmem:[#allocation329_spill] sm:$0xff] }
 0x2d6   :  { %17521 = vst [vmem:[#allocation309_spill] sm:$0xff] %v10401_v62  ;;  %v10419_v7 = vadd.f32 %v17534_v33, %v17529_v63  ;;  %v17541_v32 = vsel %vm17538_vm7, %v17539_v4, %v17540_v57  ;;  %v5444_v62 = vpop.eup %5443  ;;  %v17543_v0 = vld [vmem:[#allocation128_spill] sm:$0xff]  ;;  %v17548_v59 = vsel %vm17545_vm1, %v17546_v41, %v17547_v13  ;;  %v17550_v56 = vld [vmem:[#allocation129_spill] sm:$0xff]  ;;  %v17551_v63 = vld [vmem:[#allocation74_spill] sm:$0xff] }
 0x2d7   :  { %v10427_v50 = vadd.f32 %v17541_v32, %v17536_v8  ;;  %v10435_v14 = vadd.f32 %v17548_v59, %v17543_v0  ;;  %vm17552_vm10 = vnez %v17551_v63  ;;  %v17553_v3 = vld [vmem:[#allocation257_spill] sm:$0xff]  ;;  %v17554_v33 = vld [vmem:[#allocation331_spill] sm:$0xff]  ;;  %v17557_v4 = vld [vmem:[#allocation130_spill] sm:$0xff] }
 0x2d8   :  { %17535 = vst [vmem:[#allocation37_spill] sm:$0xff] %v10419_v7  ;;  %v17555_v53 = vsel %vm17552_vm10, %v17553_v3, %v17554_v33  ;;  %v17558_v8 = vld [vmem:[#allocation77_spill] sm:$0xff]  ;;  %v17560_v57 = vld [vmem:[#allocation260_spill] sm:$0xff]  ;;  %v17564_v31 = vld [vmem:[#allocation131_spill] sm:$0xff]  ;;  %v10465_v3 = vmul.f32 0.6931472, %v5442_v26 }
 0x2d9   :  { %17542 = vst [vmem:[#allocation114_spill] sm:$0xff] %v10427_v50  ;;  %17549 = vst [vmem:[#allocation46_spill] sm:$0xff] %v10435_v14  ;;  %v10443_v7 = vadd.f32 %v17555_v53, %v17550_v56  ;;  %vm17559_vm7 = vnez %v17558_v8  ;;  %v17561_v32 = vld [vmem:[#allocation332_spill] sm:$0xff]  ;;  %v17565_v41 = vld [vmem:[#allocation79_spill] sm:$0xff] }
 0x2da   :  { %v17562_v50 = vsel %vm17559_vm7, %v17560_v57, %v17561_v32  ;;  %vm17566_vm1 = vnez %v17565_v41  ;;  %v17567_v0 = vld [vmem:[#allocation262_spill] sm:$0xff]  ;;  %v17568_v13 = vld [vmem:[#allocation333_spill] sm:$0xff]  ;;  %v17571_v33 = vld [vmem:[#allocation132_spill] sm:$0xff] }
 0x2db   :  { %17556 = vst [vmem:[#allocation72_spill] sm:$0xff] %v10443_v7  ;;  %v10451_v60 = vadd.f32 %v17562_v50, %v17557_v4  ;;  %v17569_v59 = vsel %vm17566_vm1, %v17567_v0, %v17568_v13  ;;  %v17572_v53 = vld [vmem:[#allocation80_spill] sm:$0xff]  ;;  %v17574_v50 = vld [vmem:[#allocation265_spill] sm:$0xff]  ;;  %v17579_v41 = vld [vmem:[#allocation283_spill] sm:$0xff] }
 0x2dc   :  { %v10459_v63 = vadd.f32 %v17569_v59, %v17564_v31  ;;  %vm17573_vm10 = vnez %v17572_v53  ;;  %v17575_v4 = vld [vmem:[#allocation33_spill] sm:$0xff]  ;;  %vm17580_vm7 = vnez %v17579_v41  ;;  %v17581_v31 = vld [vmem:[#allocation268_spill] sm:$0xff]  ;;  %v17582_v0 = vld [vmem:[#allocation334_spill] sm:$0xff] }
 0x2dd   :  { %17563 = vst [vmem:[#allocation43_spill] sm:$0xff] %v10451_v60  ;;  %v17576_v8 = vsel %vm17573_vm10, %v17574_v50, %v17575_v4  ;;  %v17578_v32 = vld [vmem:[#allocation133_spill] sm:$0xff]  ;;  %v17583_v13 = vsel %vm17580_vm7, %v17581_v31, %v17582_v0  ;;  %v17586_v56 = vld [vmem:[#allocation82_spill] sm:$0xff]  ;;  %v17589_v60 = vld [vmem:[#allocation335_spill] sm:$0xff] }
 0x2de   :  { %17570 = vst [vmem:[#allocation115_spill] sm:$0xff] %v10459_v63  ;;  %v10473_v57 = vadd.f32 %v17576_v8, %v17571_v33  ;;  %v10481_v59 = vadd.f32 %v17583_v13, %v17578_v32  ;;  %v17585_v63 = vld [vmem:[#allocation134_spill] sm:$0xff]  ;;  %vm17587_vm1 = vnez %v17586_v56  ;;  %v17592_v14 = vld [vmem:[#allocation135_spill] sm:$0xff]  ;;  %v17595_v33 = vld [vmem:[#allocation12_spill] sm:$0xff] }
 0x2df   :  { %v17588_v26 = vld [vmem:[#allocation270_spill] sm:$0xff]  ;;  %v17593_v50 = vld [vmem:[#allocation83_spill] sm:$0xff]  ;;  %v17596_v4 = vld [vmem:[#allocation336_spill] sm:$0xff] }
 0x2e0   :  { %17577 = vst [vmem:[#allocation24_spill] sm:$0xff] %v10473_v57  ;;  %17584 = vst [vmem:[#allocation75_spill] sm:$0xff] %v10481_v59  ;;  %v17590_v7 = vsel %vm17587_vm1, %v17588_v26, %v17589_v60  ;;  %vm17594_vm10 = vnez %v17593_v50  ;;  %v17599_v57 = vld [vmem:[#allocation136_spill] sm:$0xff]  ;;  %v17600_v31 = vld [vmem:[#allocation86_spill] sm:$0xff] }
 0x2e1   :  { %v10489_v53 = vadd.f32 %v17590_v7, %v17585_v63  ;;  %v17597_v8 = vsel %vm17594_vm10, %v17595_v33, %v17596_v4  ;;  %vm17601_vm7 = vnez %v17600_v31  ;;  %v17602_v32 = vld [vmem:[#allocation15_spill] sm:$0xff]  ;;  %v17603_v0 = vld [vmem:[#allocation337_spill] sm:$0xff]  ;;  %v17609_v7 = vld [vmem:[#allocation16_spill] sm:$0xff]  ;;  %v10519_v33 = vmul.f32 0.6931472, %v5444_v62 }
 0x2e2   :  { %v10497_v41 = vadd.f32 %v17597_v8, %v17592_v14  ;;  %v17604_v13 = vsel %vm17601_vm7, %v17602_v32, %v17603_v0  ;;  %v17606_v59 = vld [vmem:[#allocation137_spill] sm:$0xff]  ;;  %v17607_v60 = vld [vmem:[#allocation95_spill] sm:$0xff]  ;;  %v17610_v63 = vld [vmem:[#allocation338_spill] sm:$0xff] }
 0x2e3   :  { %17591 = vst [vmem:[#allocation27_spill] sm:$0xff] %v10489_v53  ;;  %v10505_v56 = vadd.f32 %v17604_v13, %v17599_v57  ;;  %vm17608_vm1 = vnez %v17607_v60  ;;  %v17613_v4 = vld [vmem:[#allocation138_spill] sm:$0xff]  ;;  %v17614_v8 = vld [vmem:[#allocation96_spill] sm:$0xff]  ;;  %v17616_v57 = vld [vmem:[#allocation19_spill] sm:$0xff] }
 0x2e4   :  { %17598 = vst [vmem:[#allocation116_spill] sm:$0xff] %v10497_v41  ;;  %v17611_v26 = vsel %vm17608_vm1, %v17609_v7, %v17610_v63  ;;  %vm17615_vm10 = vnez %v17614_v8  ;;  %v17617_v31 = vld [vmem:[#allocation104_spill] sm:$0xff]  ;;  %v17620_v13 = vld [vmem:[#allocation139_spill] sm:$0xff]  ;;  %v17634_v53 = vld [vmem:[#allocation141_spill] sm:$0xff] }
 0x2e5   :  { %17605 = vst [vmem:[#allocation315_spill] sm:$0xff] %v10505_v56  ;;  %v10513_v50 = vadd.f32 %v17611_v26, %v17606_v59  ;;  %v17618_v32 = vsel %vm17615_vm10, %v17616_v57, %v17617_v31  ;;  %v17621_v60 = vld [vmem:[#allocation99_spill] sm:$0xff]  ;;  %v17623_v59 = vld [vmem:[#allocation22_spill] sm:$0xff]  ;;  %v17628_v14 = vld [vmem:[#allocation100_spill] sm:$0xff]  ;;  %vm17635_vm10 = vnez %v16856_v21 }
 0x2e6   :  { %v10527_v0 = vadd.f32 %v17618_v32, %v17613_v4  ;;  %vm17622_vm7 = vnez %v17621_v60  ;;  %v17624_v7 = vld [vmem:[#allocation311_spill] sm:$0xff]  ;;  %vm17629_vm1 = vnez %v17628_v14  ;;  %v17631_v56 = vld [vmem:[#allocation89_spill] sm:$0xff]  ;;  %v17636_v4 = vld [vmem:[#allocation48_spill] sm:$0xff] }
 0x2e7   :  { %17612 = vst [vmem:[#allocation78_spill] sm:$0xff] %v10513_v50  ;;  %v17625_v63 = vsel %vm17622_vm7, %v17623_v59, %v17624_v7  ;;  %v17627_v50 = vld [vmem:[#allocation140_spill] sm:$0xff]  ;;  %v17630_v62 = vld [vmem:[#allocation23_spill] sm:$0xff]  ;;  %v17637_v57 = vsel %vm17635_vm10, %v16942_v18, %v17636_v4  ;;  %v17639_v32 = vld [vmem:[#allocation142_spill] sm:$0xff] }
 0x2e8   :  { %17619 = vst [vmem:[#allocation64_spill] sm:$0xff] %v10527_v0  ;;  %v10535_v26 = vadd.f32 %v17625_v63, %v17620_v13  ;;  %v17632_v41 = vsel %vm17629_vm1, %v17630_v62, %v17631_v56  ;;  %v10551_v31 = vadd.f32 %v17637_v57, %v17634_v53  ;;  %v17640_v60 = vld [vmem:[#allocation85_spill] sm:$0xff]  ;;  %v17642_v13 = vld [vmem:[#allocation28_spill] sm:$0xff]  ;;  %v17643_v59 = vld [vmem:[#allocation339_spill] sm:$0xff] }
 0x2e9   :  { %v10543_v8 = vadd.f32 %v17632_v41, %v17627_v50  ;;  %vm17641_vm7 = vnez %v17640_v60  ;;  %v17646_v63 = vld [vmem:[#allocation143_spill] sm:$0xff]  ;;  %v17647_v56 = vld [vmem:[#allocation102_spill] sm:$0xff]  ;;  %v17653_v53 = vld [vmem:[#allocation144_spill] sm:$0xff] }
 0x2ea   :  { %17626 = vst [vmem:[#allocation117_spill] sm:$0xff] %v10535_v26  ;;  %17638 = vst [vmem:[#allocation50_spill] sm:$0xff] %v10551_v31  ;;  %v17644_v7 = vsel %vm17641_vm7, %v17642_v13, %v17643_v59  ;;  %vm17648_vm1 = vnez %v17647_v56  ;;  %v17649_v41 = vld [vmem:[#allocation30_spill] sm:$0xff]  ;;  %v17654_v4 = vld [vmem:[#allocation103_spill] sm:$0xff] }
 0x2eb   :  { %17633 = vst [vmem:[#allocation51_spill] sm:$0xff] %v10543_v8  ;;  %v10559_v14 = vadd.f32 %v17644_v7, %v17639_v32  ;;  %v17650_v50 = vld [vmem:[#allocation90_spill] sm:$0xff]  ;;  %vm17655_vm10 = vnez %v17654_v4  ;;  %v17656_v57 = vld [vmem:[#allocation287_spill] sm:$0xff]  ;;  %v17657_v60 = vld [vmem:[#allocation340_spill] sm:$0xff] }
 0x2ec   :  { %v17651_v62 = vsel %vm17648_vm1, %v17649_v41, %v17650_v50  ;;  %v17658_v32 = vsel %vm17655_vm10, %v17656_v57, %v17657_v60  ;;  %v17660_v59 = vld [vmem:[#allocation145_spill] sm:$0xff]  ;;  %v17661_v7 = vld [vmem:[#allocation308_spill] sm:$0xff]  ;;  %v17663_v56 = vld [vmem:[#allocation290_spill] sm:$0xff] }
 0x2ed   :  { %17645 = vst [vmem:[#allocation321_spill] sm:$0xff] %v10559_v14  ;;  %v10567_v21 = vadd.f32 %v17651_v62, %v17646_v63  ;;  %v10579_v13 = vadd.f32 %v17658_v32, %v17653_v53  ;;  %vm17662_vm7 = vnez %v17661_v7  ;;  %v17664_v41 = vld [vmem:[#allocation92_spill] sm:$0xff]  ;;  %v17667_v62 = vld [vmem:[#allocation146_spill] sm:$0xff]  ;;  %v17674_v8 = vld [vmem:[#allocation147_spill] sm:$0xff] }
 0x2ee   :  { %v17665_v63 = vsel %vm17662_vm7, %v17663_v56, %v17664_v41  ;;  %v17670_v18 = vld [vmem:[#allocation292_spill] sm:$0xff]  ;;  %v17671_v14 = vld [vmem:[#allocation26_spill] sm:$0xff]  ;;  %v17676_v53 = vld [vmem:[#allocation295_spill] sm:$0xff]  ;;  %vm17688_vm7 = vnez %v16916_v17 }
 0x2ef   :  { %17652 = vst [vmem:[#allocation118_spill] sm:$0xff] %v10567_v21  ;;  %17659 = vst [vmem:[#allocation52_spill] sm:$0xff] %v10579_v13  ;;  %v10587_v50 = vadd.f32 %v17665_v63, %v17660_v59  ;;  %v17668_v21 = vld [vmem:[#allocation35_spill] sm:$0xff]  ;;  %v17677_v60 = vld [vmem:[#allocation94_spill] sm:$0xff] }
 0x2f0   :  { %vm17669_vm1 = vnez %v17668_v21  ;;  %v17678_v32 = vsel %vm8872_vm12, %v17676_v53, %v17677_v60  ;;  %v17680_v13 = vld [vmem:[#allocation148_spill] sm:$0xff]  ;;  %v17681_v56 = vld [vmem:[#allocation105_spill] sm:$0xff]  ;;  %v17683_v59 = vld [vmem:[#allocation298_spill] sm:$0xff] }
 0x2f1   :  { %17666 = vst [vmem:[#allocation54_spill] sm:$0xff] %v10587_v50  ;;  %v17672_v31 = vsel %vm17669_vm1, %v17670_v18, %v17671_v14  ;;  %v10603_v7 = vadd.f32 %v17678_v32, %v17674_v8  ;;  %vm17682_vm10 = vnez %v17681_v56  ;;  %v17684_v41 = vld [vmem:[#allocation41_spill] sm:$0xff]  ;;  %v17693_v57 = vld [vmem:[#allocation107_spill] sm:$0xff] }
 0x2f2   :  { %v10595_v4 = vadd.f32 %v17672_v31, %v17667_v62  ;;  %v17685_v63 = vsel %vm17682_vm10, %v17683_v59, %v17684_v41  ;;  %v17687_v50 = vld [vmem:[#allocation149_spill] sm:$0xff]  ;;  %v17689_v31 = vld [vmem:[#allocation14_spill] sm:$0xff]  ;;  %vm17694_vm12 = vnez %v17693_v57  ;;  %v17695_v8 = vld [vmem:[#allocation303_spill] sm:$0xff]  ;;  %vm17707_vm10 = vnez %v16934_v30 }
 0x2f3   :  { %17679 = vst [vmem:[#allocation119_spill] sm:$0xff] %v10603_v7  ;;  %v10611_v21 = vadd.f32 %v17685_v63, %v17680_v13  ;;  %v17690_v14 = vsel %vm17688_vm7, %v16991_v16, %v17689_v31  ;;  %v17692_v62 = vld [vmem:[#allocation150_spill] sm:$0xff]  ;;  %v17696_v53 = vld [vmem:[#allocation341_spill] sm:$0xff]  ;;  %v17699_v56 = vld [vmem:[#allocation151_spill] sm:$0xff] }
 0x2f4   :  { %17673 = vst [vmem:[#allocation322_spill] sm:$0xff] %v10595_v4  ;;  %v10619_v18 = vadd.f32 %v17690_v14, %v17687_v50  ;;  %v17697_v60 = vsel %vm17694_vm12, %v17695_v8, %v17696_v53  ;;  %v17700_v17 = vld [vmem:[#allocation91_spill] sm:$0xff]  ;;  %v17702_v59 = vld [vmem:[#allocation305_spill] sm:$0xff]  ;;  %v17703_v16 = vld [vmem:[#allocation342_spill] sm:$0xff]  ;;  %v17713_v53 = vsel %vm8947_vm9, %v17011_v36, %v9047_v46 }
 0x2f5   :  { %17686 = vst [vmem:[#allocation318_spill] sm:$0xff] %v10611_v21  ;;  %v10627_v32 = vadd.f32 %v17697_v60, %v17692_v62  ;;  %vm17701_vm1 = vnez %v17700_v17  ;;  %v17706_v63 = vld [vmem:[#allocation152_spill] sm:$0xff]  ;;  %v17708_v31 = vld [vmem:[#allocation306_spill] sm:$0xff]  ;;  %v17709_v14 = vld [vmem:[#allocation45_spill] sm:$0xff] }
 0x2f6   :  { %17691 = vst [vmem:[#allocation88_spill] sm:$0xff] %v10619_v18  ;;  %v17704_v50 = vsel %vm17701_vm1, %v17702_v59, %v17703_v16  ;;  %v17710_v62 = vsel %vm17707_vm10, %v17708_v31, %v17709_v14  ;;  %v17712_v8 = vld [vmem:[#allocation153_spill] sm:$0xff]  ;;  %v17715_v17 = vld [vmem:[#allocation154_spill] sm:$0xff]  ;;  %v17716_v59 = vld [vmem:[#allocation39_spill] sm:$0xff] }
 0x2f7   :  { %17698 = vst [vmem:[#allocation324_spill] sm:$0xff] %v10627_v32  ;;  %v10639_v41 = vadd.f32 %v17704_v50, %v17699_v56  ;;  %v10647_v57 = vadd.f32 %v17710_v62, %v17706_v63  ;;  %v10655_v60 = vadd.f32 %v17713_v53, %v17712_v8  ;;  %vm17717_vm7 = vnez %v17716_v59  ;;  %v17718_v56 = vld [vmem:[#allocation310_spill] sm:$0xff]  ;;  %v17719_v16 = vld [vmem:[#allocation49_spill] sm:$0xff]  ;;  %v17722_v13 = vld [vmem:[#allocation155_spill] sm:$0xff] }
 0x2f8   :  { %v17720_v50 = vsel %vm17717_vm7, %v17718_v56, %v17719_v16  ;;  %v17723_v63 = vld [vmem:[#allocation312_spill] sm:$0xff]  ;;  %v17724_v31 = vld [vmem:[#allocation58_spill] sm:$0xff]  ;;  %v17730_v8 = vld [vmem:[#allocation349_spill] sm:$0xff] }
 0x2f9   :  { %17705 = vst [vmem:[#allocation120_spill] sm:$0xff] %v10639_v41  ;;  %17711 = vst [vmem:[#allocation235_spill] sm:$0xff] %v10647_v57  ;;  %v10663_v30 = vadd.f32 %v17720_v50, %v17715_v17  ;;  %v17725_v14 = vsel %vm8986_vm8, %v17723_v63, %v17724_v31  ;;  %v17727_v62 = vld [vmem:[#allocation156_spill] sm:$0xff]  ;;  %v17734_v17 = vld [vmem:[#allocation307_spill] sm:$0xff] }
 0x2fa   :  { %17714 = vst [vmem:[#allocation29_spill] sm:$0xff] %v10655_v60  ;;  %v10671_v40 = vadd.f32 %v17725_v14, %v17722_v13  ;;  %v17729_v36 = vld [vmem:[#allocation316_spill] sm:$0xff]  ;;  %v17733_v60 = vld [vmem:[#allocation157_spill] sm:$0xff]  ;;  %v17735_v56 = vsel %vm9006_vm6, %v8473_v11, %v17734_v17  ;;  %v17737_v16 = vld [vmem:[#allocation158_spill] sm:$0xff] }
 0x2fb   :  { %17721 = vst [vmem:[#allocation121_spill] sm:$0xff] %v10663_v30  ;;  %v17731_v53 = vsel %vm8992_vm2, %v17729_v36, %v17730_v8  ;;  %v10687_v23 = vadd.f32 %v17735_v56, %v17733_v60  ;;  %v17738_v50 = vld [vmem:[#allocation343_spill] sm:$0xff]  ;;  %v17745_v46 = vld [vmem:[#allocation353_spill] sm:$0xff]  ;;  %v17748_v8 = vld [vmem:[#allocation160_spill] sm:$0xff] }
 0x2fc   :  { %17726 = vst [vmem:[#allocation237_spill] sm:$0xff] %v10671_v40  ;;  %v10679_v59 = vadd.f32 %v17731_v53, %v17727_v62  ;;  %vm17739_vm8 = vnez %v17738_v50  ;;  %v17742_v31 = vld [vmem:[#allocation159_spill] sm:$0xff]  ;;  %v17744_v62 = vld [vmem:[#allocation320_spill] sm:$0xff]  ;;  %v17749_v11 = vld [vmem:[#allocation345_spill] sm:$0xff] }
 0x2fd   :  { %17736 = vst [vmem:[#allocation122_spill] sm:$0xff] %v10687_v23  ;;  %v17740_v13 = vsel %vm17739_vm8, %v8506_v34, %v9113_v51  ;;  %v17746_v36 = vsel %vm9037_vm11, %v17744_v62, %v17745_v46  ;;  %vm17750_vm2 = vnez %v17749_v11  ;;  %v17751_v60 = vld [vmem:[#allocation327_spill] sm:$0xff]  ;;  %v17752_v53 = vld [vmem:[#allocation354_spill] sm:$0xff]  ;;  %v17755_v50 = vld [vmem:[#allocation161_spill] sm:$0xff] }
 0x2fe   :  { %17732 = vst [vmem:[#allocation326_spill] sm:$0xff] %v10679_v59  ;;  %v10695_v63 = vadd.f32 %v17740_v13, %v17737_v16  ;;  %v10703_v39 = vadd.f32 %v17746_v36, %v17742_v31  ;;  %v17753_v17 = vsel %vm17750_vm2, %v17751_v60, %v17752_v53  ;;  %v17756_v34 = vld [vmem:[#allocation301_spill] sm:$0xff]  ;;  %v17758_v51 = vld [vmem:[#allocation330_spill] sm:$0xff]  ;;  %v17759_v16 = vld [vmem:[#allocation63_spill] sm:$0xff] }
 0x2ff   :  { %v10711_v56 = vadd.f32 %v17753_v17, %v17748_v8  ;;  %vm17757_vm6 = vnez %v17756_v34  ;;  %v17763_v62 = vld [vmem:[#allocation347_spill] sm:$0xff]  ;;  %v17765_v31 = vld [vmem:[#allocation101_spill] sm:$0xff]  ;;  %v17766_v46 = vld [vmem:[#allocation356_spill] sm:$0xff] }
 0x300   :  { %17741 = vst [vmem:[#allocation55_spill] sm:$0xff] %v10695_v63  ;;  %17747 = vst [vmem:[#allocation238_spill] sm:$0xff] %v10703_v39  ;;  %v17760_v13 = vsel %vm17757_vm6, %v17758_v51, %v17759_v16  ;;  %v17762_v63 = vld [vmem:[#allocation162_spill] sm:$0xff]  ;;  %vm17764_vm9 = vnez %v17763_v62  ;;  %v17769_v39 = vld [vmem:[#allocation163_spill] sm:$0xff] }
 0x301   :  { %17754 = vst [vmem:[#allocation276_spill] sm:$0xff] %v10711_v56  ;;  %v10719_v14 = vadd.f32 %v17760_v13, %v17755_v50  ;;  %v17767_v36 = vsel %vm17764_vm9, %v17765_v31, %v17766_v46  ;;  %v17770_v60 = vld [vmem:[#allocation348_spill] sm:$0xff]  ;;  %v17772_v8 = vld [vmem:[#allocation106_spill] sm:$0xff]  ;;  %v17773_v53 = vld [vmem:[#allocation357_spill] sm:$0xff] }
 0x302   :  { %v10727_v11 = vadd.f32 %v17767_v36, %v17762_v63  ;;  %vm17771_vm11 = vnez %v17770_v60  ;;  %v17776_v56 = vld [vmem:[#allocation164_spill] sm:$0xff]  ;;  %v17777_v51 = vld [vmem:[#allocation350_spill] sm:$0xff]  ;;  %v17779_v50 = vld [vmem:[#allocation93_spill] sm:$0xff] }
 0x303   :  { %17761 = vst [vmem:[#allocation123_spill] sm:$0xff] %v10719_v14  ;;  %v17774_v17 = vsel %vm17771_vm11, %v17772_v8, %v17773_v53  ;;  %vm17778_vm12 = vnez %v17777_v51  ;;  %v17780_v16 = vld [vmem:[#allocation66_spill] sm:$0xff]  ;;  %v17783_v14 = vld [vmem:[#allocation165_spill] sm:$0xff]  ;;  %v17784_v31 = vld [vmem:[#allocation351_spill] sm:$0xff] }
 0x304   :  { %17768 = vst [vmem:[#allocation319_spill] sm:$0xff] %v10727_v11  ;;  %v10735_v34 = vadd.f32 %v17774_v17, %v17769_v39  ;;  %v17781_v13 = vsel %vm17778_vm12, %v17779_v50, %v17780_v16  ;;  %vm17785_vm1 = vnez %v17784_v31  ;;  %v17786_v63 = vld [vmem:[#allocation346_spill] sm:$0xff]  ;;  %v17787_v46 = vld [vmem:[#allocation360_spill] sm:$0xff]  ;;  %v17791_v8 = vld [vmem:[#allocation355_spill] sm:$0xff] }
 0x305   :  { %v10743_v62 = vadd.f32 %v17781_v13, %v17776_v56  ;;  %v17788_v36 = vsel %vm17785_vm1, %v17786_v63, %v17787_v46  ;;  %v17790_v11 = vld [vmem:[#allocation166_spill] sm:$0xff]  ;;  %vm17792_vm10 = vnez %v17791_v8  ;;  %v17793_v39 = vld [vmem:[#allocation352_spill] sm:$0xff]  ;;  %v17794_v53 = vld [vmem:[#allocation69_spill] sm:$0xff] }
 0x306   :  { %17775 = vst [vmem:[#allocation241_spill] sm:$0xff] %v10735_v34  ;;  %v10751_v60 = vadd.f32 %v17788_v36, %v17783_v14  ;;  %v17795_v17 = vsel %vm17792_vm10, %v17793_v39, %v17794_v53  ;;  %v17797_v34 = vld [vmem:[#allocation167_spill] sm:$0xff]  ;;  %v17798_v50 = vld [vmem:[#allocation358_spill] sm:$0xff]  ;;  %v17800_v56 = vld [vmem:[#allocation61_spill] sm:$0xff] }
 0x307   :  { %17782 = vst [vmem:[#allocation20_spill] sm:$0xff] %v10743_v62  ;;  %v10759_v51 = vadd.f32 %v17795_v17, %v17790_v11  ;;  %vm17799_vm7 = vnez %v17798_v50  ;;  %v17801_v16 = vld [vmem:[#allocation73_spill] sm:$0xff]  ;;  %v17804_v62 = vld [vmem:[#allocation168_spill] sm:$0xff]  ;;  %v17805_v63 = vld [vmem:[#allocation70_spill] sm:$0xff] }
 0x308   :  { %17789 = vst [vmem:[#allocation124_spill] sm:$0xff] %v10751_v60  ;;  %v17802_v13 = vsel %vm17799_vm7, %v17800_v56, %v17801_v16  ;;  %vm17806_vm8 = vnez %v17805_v63  ;;  %v17807_v14 = vld [vmem:[#allocation359_spill] sm:$0xff]  ;;  %v17808_v46 = vld [vmem:[#allocation38_spill] sm:$0xff]  ;;  %v17811_v60 = vld [vmem:[#allocation169_spill] sm:$0xff] }
 0x309   :  { %17796 = vst [vmem:[#allocation59_spill] sm:$0xff] %v10759_v51  ;;  %v10767_v31 = vadd.f32 %v17802_v13, %v17797_v34  ;;  %v17809_v36 = vsel %vm17806_vm8, %v17807_v14, %v17808_v46  ;;  %v17812_v39 = vld [vmem:[#allocation362_spill] sm:$0xff]  ;;  %v17814_v11 = vld [vmem:[#allocation361_spill] sm:$0xff]  ;;  %v17815_v53 = vld [vmem:[#allocation40_spill] sm:$0xff] }
 0x30a   :  { %v10775_v8 = vadd.f32 %v17809_v36, %v17804_v62  ;;  %vm17813_vm2 = vnez %v17812_v39  ;;  %v17818_v51 = vld [vmem:[#allocation170_spill] sm:$0xff]  ;;  %v17819_v56 = vld [vmem:[#allocation364_spill] sm:$0xff]  ;;  %v17821_v34 = vld [vmem:[#allocation363_spill] sm:$0xff] }
 0x30b   :  { %17803 = vst [vmem:[#allocation244_spill] sm:$0xff] %v10767_v31  ;;  %v17816_v17 = vsel %vm17813_vm2, %v17814_v11, %v17815_v53  ;;  %vm17820_vm6 = vnez %v17819_v56  ;;  %v17822_v16 = vld [vmem:[#allocation87_spill] sm:$0xff]  ;;  %v17826_v14 = vld [vmem:[#allocation76_spill] sm:$0xff]  ;;  %v17828_v62 = vld [vmem:[#allocation365_spill] sm:$0xff] }
 0x30c   :  { %17810 = vst [vmem:[#allocation328_spill] sm:$0xff] %v10775_v8  ;;  %v10783_v50 = vadd.f32 %v17816_v17, %v17811_v60  ;;  %v17823_v13 = vsel %vm17820_vm6, %v17821_v34, %v17822_v16  ;;  %v17825_v31 = vld [vmem:[#allocation171_spill] sm:$0xff]  ;;  %vm17827_vm9 = vnez %v17826_v14  ;;  %v17829_v46 = vld [vmem:[#allocation53_spill] sm:$0xff]  ;;  %v17832_v8 = vld [vmem:[#allocation172_spill] sm:$0xff] }
 0x30d   :  { %v10791_v63 = vadd.f32 %v17823_v13, %v17818_v51  ;;  %v17830_v36 = vsel %vm17827_vm9, %v17828_v62, %v17829_v46  ;;  %v17833_v11 = vld [vmem:[#allocation367_spill] sm:$0xff]  ;;  %v17835_v60 = vld [vmem:[#allocation366_spill] sm:$0xff]  ;;  %v17836_v53 = vld [vmem:[#allocation56_spill] sm:$0xff] }
 0x30e   :  { %17817 = vst [vmem:[#allocation125_spill] sm:$0xff] %v10783_v50  ;;  %v10799_v39 = vadd.f32 %v17830_v36, %v17825_v31  ;;  %vm17834_vm11 = vnez %v17833_v11  ;;  %v17839_v50 = vld [vmem:[#allocation173_spill] sm:$0xff]  ;;  %v17840_v34 = vld [vmem:[#allocation368_spill] sm:$0xff]  ;;  %v17843_v16 = vld [vmem:[#allocation375_spill] sm:$0xff] }
 0x30f   :  { %17824 = vst [vmem:[#allocation323_spill] sm:$0xff] %v10791_v63  ;;  %v17837_v17 = vsel %vm17834_vm11, %v17835_v60, %v17836_v53  ;;  %vm17841_vm12 = vnez %v17840_v34  ;;  %v17842_v51 = vld [vmem:[#allocation44_spill] sm:$0xff]  ;;  %v17846_v63 = vld [vmem:[#allocation174_spill] sm:$0xff]  ;;  %v17849_v31 = vld [vmem:[#allocation369_spill] sm:$0xff] }
 0x310   :  { %17831 = vst [vmem:[#allocation246_spill] sm:$0xff] %v10799_v39  ;;  %v10807_v56 = vadd.f32 %v17837_v17, %v17832_v8  ;;  %v17844_v13 = vsel %vm17841_vm12, %v17842_v51, %v17843_v16  ;;  %v17847_v62 = vld [vmem:[#allocation370_spill] sm:$0xff]  ;;  %v17850_v46 = vld [vmem:[#allocation376_spill] sm:$0xff]  ;;  %v17853_v39 = vld [vmem:[#allocation175_spill] sm:$0xff] }
 0x311   :  { %v10815_v14 = vadd.f32 %v17844_v13, %v17839_v50  ;;  %vm17848_vm1 = vnez %v17847_v62  ;;  %v17854_v60 = vld [vmem:[#allocation372_spill] sm:$0xff]  ;;  %v17856_v8 = vld [vmem:[#allocation371_spill] sm:$0xff]  ;;  %v17857_v53 = vld [vmem:[#allocation234_spill] sm:$0xff] }
 0x312   :  { %17838 = vst [vmem:[#allocation281_spill] sm:$0xff] %v10807_v56  ;;  %v17851_v36 = vsel %vm17848_vm1, %v17849_v31, %v17850_v46  ;;  %vm17855_vm10 = vnez %v17854_v60  ;;  %v17860_v56 = vld [vmem:[#allocation176_spill] sm:$0xff]  ;;  %v17861_v51 = vld [vmem:[#allocation374_spill] sm:$0xff]  ;;  %v17863_v50 = vld [vmem:[#allocation373_spill] sm:$0xff] }
 0x313   :  { %17845 = vst [vmem:[#allocation126_spill] sm:$0xff] %v10815_v14  ;;  %v10823_v11 = vadd.f32 %v17851_v36, %v17846_v63  ;;  %v17858_v17 = vsel %vm17855_vm10, %v17856_v8, %v17857_v53  ;;  %vm17862_vm7 = vnez %v17861_v51  ;;  %v17864_v16 = vld [vmem:[#allocation381_spill] sm:$0xff]  ;;  %v17875_v8 = vld [vmem:[#allocation379_spill] sm:$0xff]  ;;  %v18185_v41 = vld [vmem:[#allocation468_spill] sm:$0xff] }
 0x314   :  { %v10831_v34 = vadd.f32 %v17858_v17, %v17853_v39  ;;  %v17865_v13 = vsel %vm17862_vm7, %v17863_v50, %v17864_v16  ;;  %v17867_v14 = vld [vmem:[#allocation177_spill] sm:$0xff]  ;;  %vm17876_vm2 = vnez %v17875_v8  ;;  %v17877_v39 = vld [vmem:[#allocation378_spill] sm:$0xff]  ;;  %v17885_v16 = vld [vmem:[#allocation387_spill] sm:$0xff] }
 0x315   :  { %17852 = vst [vmem:[#allocation325_spill] sm:$0xff] %v10823_v11  ;;  %v10839_v62 = vadd.f32 %v17865_v13, %v17860_v56  ;;  %v17868_v31 = vld [vmem:[#allocation377_spill] sm:$0xff]  ;;  %v17874_v11 = vld [vmem:[#allocation178_spill] sm:$0xff]  ;;  %v17884_v56 = vld [vmem:[#allocation380_spill] sm:$0xff] }
 0x316   :  { %17859 = vst [vmem:[#allocation249_spill] sm:$0xff] %v10831_v34  ;;  %vm17869_vm8 = vnez %v17868_v31  ;;  %v17870_v63 = vld [vmem:[#allocation57_spill] sm:$0xff]  ;;  %v17881_v34 = vld [vmem:[#allocation179_spill] sm:$0xff]  ;;  %v17882_v50 = vld [vmem:[#allocation382_spill] sm:$0xff] }
 0x317   :  { %17866 = vst [vmem:[#allocation81_spill] sm:$0xff] %v10839_v62  ;;  %v17871_v46 = vld [vmem:[#allocation65_spill] sm:$0xff]  ;;  %vm17883_vm6 = vnez %v17882_v50  ;;  %v17888_v62 = vld [vmem:[#allocation180_spill] sm:$0xff]  ;;  %v11445_v26 = vld [vmem:[#allocation6 + $0x138] sm:$0xff] }
 0x318   :  { %v17872_v36 = vsel %vm17869_vm8, %v17870_v63, %v17871_v46  ;;  %v17878_v53 = vld [vmem:[#allocation385_spill] sm:$0xff]  ;;  %v17886_v13 = vsel %vm17883_vm6, %v17884_v56, %v17885_v16  ;;  %v17889_v63 = vld [vmem:[#allocation236_spill] sm:$0xff]  ;;  %v17903_v56 = vld [vmem:[#allocation386_spill] sm:$0xff] }
 0x319   :  { %v10847_v60 = vadd.f32 %v17872_v36, %v17867_v14  ;;  %v17879_v17 = vsel %vm17876_vm2, %v17877_v39, %v17878_v53  ;;  %v10863_v31 = vadd.f32 %v17886_v13, %v17881_v34  ;;  %vm17890_vm9 = vnez %v17889_v63  ;;  %v17891_v14 = vld [vmem:[#allocation62_spill] sm:$0xff]  ;;  %v17892_v46 = vld [vmem:[#allocation240_spill] sm:$0xff]  ;;  %v17905_v34 = vld [vmem:[#allocation239_spill] sm:$0xff] }
 0x31a   :  { %v10855_v51 = vadd.f32 %v17879_v17, %v17874_v11  ;;  %v17893_v36 = vsel %vm17890_vm9, %v17891_v14, %v17892_v46  ;;  %v17896_v39 = vld [vmem:[#allocation384_spill] sm:$0xff]  ;;  %v17898_v11 = vld [vmem:[#allocation383_spill] sm:$0xff]  ;;  %v17899_v53 = vld [vmem:[#allocation242_spill] sm:$0xff]  ;;  %vm17904_vm12 = vnez %v17903_v56 }
 0x31b   :  { %17873 = vst [vmem:[#allocation127_spill] sm:$0xff] %v10847_v60  ;;  %17887 = vst [vmem:[#allocation252_spill] sm:$0xff] %v10863_v31  ;;  %v10871_v8 = vadd.f32 %v17893_v36, %v17888_v62  ;;  %v17895_v60 = vld [vmem:[#allocation181_spill] sm:$0xff]  ;;  %vm17897_vm11 = vnez %v17896_v39  ;;  %v17906_v16 = vld [vmem:[#allocation243_spill] sm:$0xff] }
 0x31c   :  { %17880 = vst [vmem:[#allocation68_spill] sm:$0xff] %v10855_v51  ;;  %v17900_v17 = vsel %vm17897_vm11, %v17898_v11, %v17899_v53  ;;  %v17902_v51 = vld [vmem:[#allocation182_spill] sm:$0xff]  ;;  %v17907_v13 = vsel %vm17904_vm12, %v17905_v34, %v17906_v16  ;;  %v17909_v31 = vld [vmem:[#allocation183_spill] sm:$0xff]  ;;  %v17910_v14 = vld [vmem:[#allocation389_spill] sm:$0xff] }
 0x31d   :  { %17894 = vst [vmem:[#allocation32_spill] sm:$0xff] %v10871_v8  ;;  %v10879_v50 = vadd.f32 %v17900_v17, %v17895_v60  ;;  %v10887_v63 = vadd.f32 %v17907_v13, %v17902_v51  ;;  %vm17911_vm1 = vnez %v17910_v14  ;;  %v17912_v62 = vld [vmem:[#allocation388_spill] sm:$0xff]  ;;  %v17913_v46 = vld [vmem:[#allocation245_spill] sm:$0xff]  ;;  %v17917_v11 = vld [vmem:[#allocation391_spill] sm:$0xff] }
 0x31e   :  { %v17914_v36 = vsel %vm17911_vm1, %v17912_v62, %v17913_v46  ;;  %v17916_v8 = vld [vmem:[#allocation184_spill] sm:$0xff]  ;;  %vm17918_vm10 = vnez %v17917_v11  ;;  %v17919_v60 = vld [vmem:[#allocation390_spill] sm:$0xff]  ;;  %v17920_v53 = vld [vmem:[#allocation397_spill] sm:$0xff] }
 0x31f   :  { %17901 = vst [vmem:[#allocation128_spill] sm:$0xff] %v10879_v50  ;;  %17908 = vst [vmem:[#allocation71_spill] sm:$0xff] %v10887_v63  ;;  %v10895_v39 = vadd.f32 %v17914_v36, %v17909_v31  ;;  %v17921_v17 = vsel %vm17918_vm10, %v17919_v60, %v17920_v53  ;;  %v17923_v50 = vld [vmem:[#allocation185_spill] sm:$0xff]  ;;  %v17926_v51 = vld [vmem:[#allocation392_spill] sm:$0xff] }
 0x320   :  { %v10903_v56 = vadd.f32 %v17921_v17, %v17916_v8  ;;  %v17924_v34 = vld [vmem:[#allocation393_spill] sm:$0xff]  ;;  %v17927_v16 = vld [vmem:[#allocation248_spill] sm:$0xff]  ;;  %v17930_v63 = vld [vmem:[#allocation186_spill] sm:$0xff] }
 0x321   :  { %17915 = vst [vmem:[#allocation254_spill] sm:$0xff] %v10895_v39  ;;  %vm17925_vm7 = vnez %v17924_v34  ;;  %v17931_v62 = vld [vmem:[#allocation395_spill] sm:$0xff]  ;;  %v17933_v31 = vld [vmem:[#allocation394_spill] sm:$0xff]  ;;  %v17938_v60 = vld [vmem:[#allocation396_spill] sm:$0xff] }
 0x322   :  { %17922 = vst [vmem:[#allocation329_spill] sm:$0xff] %v10903_v56  ;;  %v17928_v13 = vsel %vm17925_vm7, %v17926_v51, %v17927_v16  ;;  %vm17932_vm8 = vnez %v17931_v62  ;;  %v17934_v46 = vld [vmem:[#allocation251_spill] sm:$0xff]  ;;  %vm17939_vm2 = vnez %v17938_v60  ;;  %v17941_v53 = vld [vmem:[#allocation401_spill] sm:$0xff]  ;;  %v17944_v56 = vld [vmem:[#allocation188_spill] sm:$0xff] }
 0x323   :  { %v10911_v14 = vadd.f32 %v17928_v13, %v17923_v50  ;;  %v17935_v36 = vsel %vm17932_vm8, %v17933_v31, %v17934_v46  ;;  %v17937_v39 = vld [vmem:[#allocation187_spill] sm:$0xff]  ;;  %v17947_v50 = vld [vmem:[#allocation398_spill] sm:$0xff]  ;;  %v17948_v16 = vld [vmem:[#allocation253_spill] sm:$0xff] }
 0x324   :  { %v10919_v11 = vadd.f32 %v17935_v36, %v17930_v63  ;;  %v17940_v8 = vld [vmem:[#allocation247_spill] sm:$0xff]  ;;  %v17952_v31 = vld [vmem:[#allocation400_spill] sm:$0xff]  ;;  %v17954_v63 = vld [vmem:[#allocation250_spill] sm:$0xff] }
 0x325   :  { %17929 = vst [vmem:[#allocation129_spill] sm:$0xff] %v10911_v14  ;;  %v17942_v17 = vsel %vm17939_vm2, %v17940_v8, %v17941_v53  ;;  %v17945_v51 = vld [vmem:[#allocation399_spill] sm:$0xff]  ;;  %v17951_v14 = vld [vmem:[#allocation189_spill] sm:$0xff]  ;;  %vm17953_vm9 = vnez %v17952_v31  ;;  %v17959_v8 = vld [vmem:[#allocation402_spill] sm:$0xff] }
 0x326   :  { %17936 = vst [vmem:[#allocation74_spill] sm:$0xff] %v10919_v11  ;;  %v10927_v34 = vadd.f32 %v17942_v17, %v17937_v39  ;;  %vm17946_vm6 = vnez %v17945_v51  ;;  %v17955_v46 = vld [vmem:[#allocation255_spill] sm:$0xff]  ;;  %v17958_v11 = vld [vmem:[#allocation190_spill] sm:$0xff]  ;;  %vm17960_vm11 = vnez %v17959_v8  ;;  %v18147_v59 = vld [vmem:[#allocation217_spill] sm:$0xff] }
 0x327   :  { %v17949_v13 = vsel %vm17946_vm6, %v17947_v50, %v17948_v16  ;;  %v17956_v36 = vsel %vm17953_vm9, %v17954_v63, %v17955_v46  ;;  %v17961_v39 = vld [vmem:[#allocation403_spill] sm:$0xff]  ;;  %v17962_v53 = vld [vmem:[#allocation410_spill] sm:$0xff]  ;;  %v17966_v50 = vld [vmem:[#allocation404_spill] sm:$0xff] }
 0x328   :  { %17943 = vst [vmem:[#allocation257_spill] sm:$0xff] %v10927_v34  ;;  %v10935_v62 = vadd.f32 %v17949_v13, %v17944_v56  ;;  %v10943_v60 = vadd.f32 %v17956_v36, %v17951_v14  ;;  %v17963_v17 = vsel %vm17960_vm11, %v17961_v39, %v17962_v53  ;;  %v17965_v34 = vld [vmem:[#allocation191_spill] sm:$0xff]  ;;  %vm17967_vm12 = vnez %v17966_v50  ;;  %v17968_v56 = vld [vmem:[#allocation405_spill] sm:$0xff]  ;;  %v17969_v16 = vld [vmem:[#allocation258_spill] sm:$0xff] }
 0x329   :  { %v10951_v51 = vadd.f32 %v17963_v17, %v17958_v11  ;;  %v17970_v13 = vsel %vm17967_vm12, %v17968_v56, %v17969_v16  ;;  %v17973_v63 = vld [vmem:[#allocation407_spill] sm:$0xff]  ;;  %v17975_v14 = vld [vmem:[#allocation406_spill] sm:$0xff]  ;;  %v17980_v39 = vld [vmem:[#allocation409_spill] sm:$0xff] }
 0x32a   :  { %17950 = vst [vmem:[#allocation331_spill] sm:$0xff] %v10935_v62  ;;  %17957 = vst [vmem:[#allocation130_spill] sm:$0xff] %v10943_v60  ;;  %v10959_v31 = vadd.f32 %v17970_v13, %v17965_v34  ;;  %v17972_v62 = vld [vmem:[#allocation192_spill] sm:$0xff]  ;;  %vm17974_vm1 = vnez %v17973_v63  ;;  %v17976_v46 = vld [vmem:[#allocation259_spill] sm:$0xff]  ;;  %vm17981_vm10 = vnez %v17980_v39 }
 0x32b   :  { %17964 = vst [vmem:[#allocation77_spill] sm:$0xff] %v10951_v51  ;;  %v17977_v36 = vsel %vm17974_vm1, %v17975_v14, %v17976_v46  ;;  %v17979_v60 = vld [vmem:[#allocation193_spill] sm:$0xff]  ;;  %v17982_v11 = vld [vmem:[#allocation408_spill] sm:$0xff]  ;;  %v17986_v51 = vld [vmem:[#allocation194_spill] sm:$0xff] }
 0x32c   :  { %17971 = vst [vmem:[#allocation260_spill] sm:$0xff] %v10959_v31  ;;  %v10967_v8 = vadd.f32 %v17977_v36, %v17972_v62  ;;  %v17983_v53 = vld [vmem:[#allocation261_spill] sm:$0xff]  ;;  %v17987_v56 = vld [vmem:[#allocation411_spill] sm:$0xff]  ;;  %v17989_v34 = vld [vmem:[#allocation256_spill] sm:$0xff] }
 0x32d   :  { %v17984_v17 = vsel %vm17981_vm10, %v17982_v11, %v17983_v53  ;;  %vm17988_vm7 = vnez %v17987_v56  ;;  %v17990_v16 = vld [vmem:[#allocation263_spill] sm:$0xff]  ;;  %v17994_v14 = vld [vmem:[#allocation413_spill] sm:$0xff]  ;;  %v17996_v62 = vld [vmem:[#allocation412_spill] sm:$0xff] }
 0x32e   :  { %17978 = vst [vmem:[#allocation332_spill] sm:$0xff] %v10967_v8  ;;  %v10975_v50 = vadd.f32 %v17984_v17, %v17979_v60  ;;  %v17991_v13 = vsel %vm17988_vm7, %v17989_v34, %v17990_v16  ;;  %v17993_v31 = vld [vmem:[#allocation195_spill] sm:$0xff]  ;;  %vm17995_vm8 = vnez %v17994_v14  ;;  %v17997_v46 = vld [vmem:[#allocation264_spill] sm:$0xff]  ;;  %v18001_v11 = vld [vmem:[#allocation414_spill] sm:$0xff] }
 0x32f   :  { %v10983_v63 = vadd.f32 %v17991_v13, %v17986_v51  ;;  %v17998_v36 = vsel %vm17995_vm8, %v17996_v62, %v17997_v46  ;;  %v18000_v8 = vld [vmem:[#allocation196_spill] sm:$0xff]  ;;  %vm18002_vm2 = vnez %v18001_v11  ;;  %v18003_v60 = vld [vmem:[#allocation415_spill] sm:$0xff]  ;;  %v18008_v34 = vld [vmem:[#allocation417_spill] sm:$0xff] }
 0x330   :  { %17985 = vst [vmem:[#allocation131_spill] sm:$0xff] %v10975_v50  ;;  %v10991_v39 = vadd.f32 %v17998_v36, %v17993_v31  ;;  %v18004_v53 = vld [vmem:[#allocation420_spill] sm:$0xff]  ;;  %v18007_v50 = vld [vmem:[#allocation197_spill] sm:$0xff]  ;;  %vm18009_vm6 = vnez %v18008_v34  ;;  %v18015_v62 = vld [vmem:[#allocation419_spill] sm:$0xff] }
 0x331   :  { %17992 = vst [vmem:[#allocation79_spill] sm:$0xff] %v10983_v63  ;;  %v18005_v17 = vsel %vm18002_vm2, %v18003_v60, %v18004_v53  ;;  %v18010_v51 = vld [vmem:[#allocation416_spill] sm:$0xff]  ;;  %v18011_v16 = vld [vmem:[#allocation269_spill] sm:$0xff]  ;;  %v18014_v63 = vld [vmem:[#allocation198_spill] sm:$0xff]  ;;  %vm18016_vm9 = vnez %v18015_v62 }
 0x332   :  { %17999 = vst [vmem:[#allocation262_spill] sm:$0xff] %v10991_v39  ;;  %v10999_v56 = vadd.f32 %v18005_v17, %v18000_v8  ;;  %v18012_v13 = vsel %vm18009_vm6, %v18010_v51, %v18011_v16  ;;  %v18017_v31 = vld [vmem:[#allocation418_spill] sm:$0xff]  ;;  %v18018_v46 = vld [vmem:[#allocation271_spill] sm:$0xff]  ;;  %v18024_v8 = vld [vmem:[#allocation421_spill] sm:$0xff] }
 0x333   :  { %v11007_v14 = vadd.f32 %v18012_v13, %v18007_v50  ;;  %v18019_v36 = vsel %vm18016_vm9, %v18017_v31, %v18018_v46  ;;  %v18021_v39 = vld [vmem:[#allocation199_spill] sm:$0xff]  ;;  %v18022_v60 = vld [vmem:[#allocation266_spill] sm:$0xff]  ;;  %v18025_v53 = vld [vmem:[#allocation272_spill] sm:$0xff] }
 0x334   :  { %18006 = vst [vmem:[#allocation333_spill] sm:$0xff] %v10999_v56  ;;  %v11015_v11 = vadd.f32 %v18019_v36, %v18014_v63  ;;  %vm18023_vm11 = vnez %v18022_v60  ;;  %v18028_v56 = vld [vmem:[#allocation200_spill] sm:$0xff]  ;;  %v18029_v51 = vld [vmem:[#allocation267_spill] sm:$0xff]  ;;  %v18031_v50 = vld [vmem:[#allocation422_spill] sm:$0xff] }
 0x335   :  { %18013 = vst [vmem:[#allocation132_spill] sm:$0xff] %v11007_v14  ;;  %v18026_v17 = vsel %vm18023_vm11, %v18024_v8, %v18025_v53  ;;  %vm18030_vm12 = vnez %v18029_v51  ;;  %v18032_v16 = vld [vmem:[#allocation273_spill] sm:$0xff]  ;;  %v18036_v31 = vld [vmem:[#allocation424_spill] sm:$0xff]  ;;  %v18038_v63 = vld [vmem:[#allocation423_spill] sm:$0xff] }
 0x336   :  { %18020 = vst [vmem:[#allocation80_spill] sm:$0xff] %v11015_v11  ;;  %v11023_v34 = vadd.f32 %v18026_v17, %v18021_v39  ;;  %v18033_v13 = vsel %vm18030_vm12, %v18031_v50, %v18032_v16  ;;  %v18035_v14 = vld [vmem:[#allocation201_spill] sm:$0xff]  ;;  %vm18037_vm1 = vnez %v18036_v31  ;;  %v18042_v11 = vld [vmem:[#allocation202_spill] sm:$0xff]  ;;  %v18046_v53 = vld [vmem:[#allocation432_spill] sm:$0xff] }
 0x337   :  { %v11031_v62 = vadd.f32 %v18033_v13, %v18028_v56  ;;  %v18039_v46 = vld [vmem:[#allocation13_spill] sm:$0xff]  ;;  %v18043_v8 = vld [vmem:[#allocation426_spill] sm:$0xff]  ;;  %v18050_v50 = vld [vmem:[#allocation428_spill] sm:$0xff] }
 0x338   :  { %18027 = vst [vmem:[#allocation265_spill] sm:$0xff] %v11023_v34  ;;  %v18040_v36 = vsel %vm18037_vm1, %v18038_v63, %v18039_v46  ;;  %vm18044_vm10 = vnez %v18043_v8  ;;  %v18045_v39 = vld [vmem:[#allocation425_spill] sm:$0xff]  ;;  %v18049_v34 = vld [vmem:[#allocation203_spill] sm:$0xff]  ;;  %vm18051_vm7 = vnez %v18050_v50  ;;  %v18057_v63 = vld [vmem:[#allocation430_spill] sm:$0xff] }
 0x339   :  { %18034 = vst [vmem:[#allocation33_spill] sm:$0xff] %v11031_v62  ;;  %v11039_v60 = vadd.f32 %v18040_v36, %v18035_v14  ;;  %v18047_v17 = vsel %vm18044_vm10, %v18045_v39, %v18046_v53  ;;  %v18052_v56 = vld [vmem:[#allocation427_spill] sm:$0xff]  ;;  %v18056_v62 = vld [vmem:[#allocation204_spill] sm:$0xff]  ;;  %vm18058_vm8 = vnez %v18057_v63  ;;  %v18059_v14 = vld [vmem:[#allocation429_spill] sm:$0xff] }
 0x33a   :  { %v11047_v51 = vadd.f32 %v18047_v17, %v18042_v11  ;;  %v18053_v16 = vld [vmem:[#allocation275_spill] sm:$0xff]  ;;  %v18060_v46 = vld [vmem:[#allocation18_spill] sm:$0xff]  ;;  %v18064_v39 = vld [vmem:[#allocation433_spill] sm:$0xff] }
 0x33b   :  { %18041 = vst [vmem:[#allocation133_spill] sm:$0xff] %v11039_v60  ;;  %v18054_v13 = vsel %vm18051_vm7, %v18052_v56, %v18053_v16  ;;  %v18061_v36 = vsel %vm18058_vm8, %v18059_v14, %v18060_v46  ;;  %v18063_v60 = vld [vmem:[#allocation205_spill] sm:$0xff]  ;;  %vm18065_vm2 = vnez %v18064_v39  ;;  %v18066_v11 = vld [vmem:[#allocation431_spill] sm:$0xff]  ;;  %v18071_v56 = vld [vmem:[#allocation274_spill] sm:$0xff] }
 0x33c   :  { %18048 = vst [vmem:[#allocation283_spill] sm:$0xff] %v11047_v51  ;;  %v11055_v31 = vadd.f32 %v18054_v13, %v18049_v34  ;;  %v11063_v8 = vadd.f32 %v18061_v36, %v18056_v62  ;;  %v18067_v53 = vld [vmem:[#allocation277_spill] sm:$0xff]  ;;  %v18070_v51 = vld [vmem:[#allocation206_spill] sm:$0xff]  ;;  %vm18072_vm6 = vnez %v18071_v56  ;;  %v18078_v14 = vld [vmem:[#allocation436_spill] sm:$0xff] }
 0x33d   :  { %v18068_v17 = vsel %vm18065_vm2, %v18066_v11, %v18067_v53  ;;  %v18073_v34 = vld [vmem:[#allocation434_spill] sm:$0xff]  ;;  %vm18079_vm9 = vnez %v18078_v14  ;;  %v18080_v62 = vld [vmem:[#allocation435_spill] sm:$0xff]  ;;  %v18085_v11 = vld [vmem:[#allocation437_spill] sm:$0xff] }
 0x33e   :  { %18055 = vst [vmem:[#allocation268_spill] sm:$0xff] %v11055_v31  ;;  %18062 = vst [vmem:[#allocation334_spill] sm:$0xff] %v11063_v8  ;;  %v11071_v50 = vadd.f32 %v18068_v17, %v18063_v60  ;;  %v18074_v16 = vld [vmem:[#allocation278_spill] sm:$0xff]  ;;  %v18077_v31 = vld [vmem:[#allocation207_spill] sm:$0xff]  ;;  %vm18086_vm11 = vnez %v18085_v11 }
 0x33f   :  { %v18075_v13 = vsel %vm18072_vm6, %v18073_v34, %v18074_v16  ;;  %v18081_v46 = vld [vmem:[#allocation442_spill] sm:$0xff]  ;;  %v18084_v8 = vld [vmem:[#allocation208_spill] sm:$0xff]  ;;  %v18088_v53 = vld [vmem:[#allocation445_spill] sm:$0xff] }
 0x340   :  { %18069 = vst [vmem:[#allocation134_spill] sm:$0xff] %v11071_v50  ;;  %v11079_v63 = vadd.f32 %v18075_v13, %v18070_v51  ;;  %v18082_v36 = vsel %vm18079_vm9, %v18080_v62, %v18081_v46  ;;  %v18087_v60 = vld [vmem:[#allocation438_spill] sm:$0xff]  ;;  %v18091_v50 = vld [vmem:[#allocation209_spill] sm:$0xff]  ;;  %v18092_v34 = vld [vmem:[#allocation440_spill] sm:$0xff] }
 0x341   :  { %v11087_v39 = vadd.f32 %v18082_v36, %v18077_v31  ;;  %v18089_v17 = vsel %vm18086_vm11, %v18087_v60, %v18088_v53  ;;  %vm18093_vm12 = vnez %v18092_v34  ;;  %v18094_v51 = vld [vmem:[#allocation439_spill] sm:$0xff]  ;;  %v18095_v16 = vld [vmem:[#allocation280_spill] sm:$0xff]  ;;  %v18099_v62 = vld [vmem:[#allocation441_spill] sm:$0xff] }
 0x342   :  { %18076 = vst [vmem:[#allocation82_spill] sm:$0xff] %v11079_v63  ;;  %v11095_v56 = vadd.f32 %v18089_v17, %v18084_v8  ;;  %v18096_v13 = vsel %vm18093_vm12, %v18094_v51, %v18095_v16  ;;  %v18098_v63 = vld [vmem:[#allocation210_spill] sm:$0xff]  ;;  %vm18100_vm1 = vnez %v18099_v62  ;;  %v18101_v31 = vld [vmem:[#allocation443_spill] sm:$0xff]  ;;  %v18102_v46 = vld [vmem:[#allocation449_spill] sm:$0xff]  ;;  %vm18155_vm12 = vnez %v17344_v35 }
 0x343   :  { %18083 = vst [vmem:[#allocation270_spill] sm:$0xff] %v11087_v39  ;;  %v11103_v14 = vadd.f32 %v18096_v13, %v18091_v50  ;;  %v18103_v36 = vsel %vm18100_vm1, %v18101_v31, %v18102_v46  ;;  %v18105_v39 = vld [vmem:[#allocation211_spill] sm:$0xff]  ;;  %v18106_v60 = vld [vmem:[#allocation444_spill] sm:$0xff]  ;;  %v18109_v53 = vld [vmem:[#allocation25_spill] sm:$0xff] }
 0x344   :  { %18090 = vst [vmem:[#allocation335_spill] sm:$0xff] %v11095_v56  ;;  %v11111_v11 = vadd.f32 %v18103_v36, %v18098_v63  ;;  %vm18107_vm10 = vnez %v18106_v60  ;;  %v18108_v8 = vld [vmem:[#allocation279_spill] sm:$0xff]  ;;  %v18112_v56 = vld [vmem:[#allocation212_spill] sm:$0xff]  ;;  %v18115_v50 = vld [vmem:[#allocation446_spill] sm:$0xff] }
 0x345   :  { %18097 = vst [vmem:[#allocation135_spill] sm:$0xff] %v11103_v14  ;;  %v18110_v17 = vsel %vm18107_vm10, %v18108_v8, %v18109_v53  ;;  %v18113_v51 = vld [vmem:[#allocation447_spill] sm:$0xff]  ;;  %v18116_v16 = vld [vmem:[#allocation285_spill] sm:$0xff]  ;;  %v18120_v31 = vld [vmem:[#allocation450_spill] sm:$0xff] }
 0x346   :  { %18104 = vst [vmem:[#allocation83_spill] sm:$0xff] %v11111_v11  ;;  %v11119_v34 = vadd.f32 %v18110_v17, %v18105_v39  ;;  %vm18114_vm7 = vnez %v18113_v51  ;;  %v18119_v14 = vld [vmem:[#allocation213_spill] sm:$0xff]  ;;  %vm18121_vm8 = vnez %v18120_v31  ;;  %v18122_v63 = vld [vmem:[#allocation448_spill] sm:$0xff]  ;;  %v18123_v46 = vld [vmem:[#allocation455_spill] sm:$0xff] }
 0x347   :  { %v18117_v13 = vsel %vm18114_vm7, %v18115_v50, %v18116_v16  ;;  %v18124_v36 = vsel %vm18121_vm8, %v18122_v63, %v18123_v46  ;;  %v320_v11 = vld [vmem:[#allocation6] sm:$0xff]  ;;  %v321_v8 = vld [vmem:[#allocation6 + $0x8] sm:$0xff]  ;;  %v18126_v39 = vld [vmem:[#allocation214_spill] sm:$0xff] }
 0x348   :  { %18111 = vst [vmem:[#allocation12_spill] sm:$0xff] %v11119_v34  ;;  %v11127_v62 = vadd.f32 %v18117_v13, %v18112_v56  ;;  %v11135_v60 = vadd.f32 %v18124_v36, %v18119_v14  ;;  %v18127_v53 = vld [vmem:[#allocation452_spill] sm:$0xff]  ;;  %v18129_v17 = vld [vmem:[#allocation451_spill] sm:$0xff]  ;;  %v18134_v50 = vld [vmem:[#allocation282_spill] sm:$0xff] }
 0x349   :  { %vm18128_vm2 = vnez %v18127_v53  ;;  %v18130_v51 = vld [vmem:[#allocation456_spill] sm:$0xff]  ;;  %v18133_v56 = vld [vmem:[#allocation215_spill] sm:$0xff]  ;;  %vm18135_vm6 = vnez %v18134_v50  ;;  %v18136_v16 = vld [vmem:[#allocation453_spill] sm:$0xff] }
 0x34a   :  { %18118 = vst [vmem:[#allocation336_spill] sm:$0xff] %v11127_v62  ;;  %18125 = vst [vmem:[#allocation136_spill] sm:$0xff] %v11135_v60  ;;  %v18131_v34 = vsel %vm18128_vm2, %v18129_v17, %v18130_v51  ;;  %v18137_v13 = vld [vmem:[#allocation459_spill] sm:$0xff]  ;;  %v18140_v14 = vld [vmem:[#allocation216_spill] sm:$0xff] }
 0x34b   :  { %v11143_v23 = vadd.f32 %v18131_v34, %v18126_v39  ;;  %v18138_v31 = vsel %vm18135_vm6, %v18136_v16, %v18137_v13  ;;  %v18141_v63 = vld [vmem:[#allocation454_spill] sm:$0xff]  ;;  %v18143_v46 = vld [vmem:[#allocation284_spill] sm:$0xff]  ;;  %v18144_v36 = vld [vmem:[#allocation31_spill] sm:$0xff]  ;;  %vm18196_vm6 = vnez %v17381_v10 }
 0x34c   :  { %v11151_v62 = vadd.f32 %v18138_v31, %v18133_v56  ;;  %vm18142_vm9 = vnez %v18141_v63  ;;  %v18148_v17 = vld [vmem:[#allocation457_spill] sm:$0xff]  ;;  %v18150_v34 = vld [vmem:[#allocation286_spill] sm:$0xff]  ;;  %v18151_v39 = vld [vmem:[#allocation291_spill] sm:$0xff] }
 0x34d   :  { %18132 = vst [vmem:[#allocation86_spill] sm:$0xff] %v11143_v23  ;;  %v18145_v60 = vsel %vm18142_vm9, %v18143_v46, %v18144_v36  ;;  %vm18149_vm11 = vnez %v18148_v17  ;;  %v322_v23 = vld [vmem:[#allocation6 + $0x10] sm:$0xff]  ;;  %v323_v16 = vld [vmem:[#allocation6 + $0x18] sm:$0xff]  ;;  %v324_v56 = vld [vmem:[#allocation6 + $0x20] sm:$0xff]  ;;  %vm18204_vm9 = vnez %v17389_v5 }
 0x34e   :  { %18139 = vst [vmem:[#allocation15_spill] sm:$0xff] %v11151_v62  ;;  %v11159_v53 = vadd.f32 %v18145_v60, %v18140_v14  ;;  %v18152_v51 = vsel %vm18149_vm11, %v18150_v34, %v18151_v39  ;;  %v325_v13 = vld [vmem:[#allocation6 + $0x28] sm:$0xff]  ;;  %v18154_v31 = vld [vmem:[#allocation218_spill] sm:$0xff]  ;;  %v18157_v62 = vld [vmem:[#allocation463_spill] sm:$0xff]  ;;  %vm18219_vm11 = vnez %v17398_v27  ;;  %v18227_v27 = vsel %vm10198_vm15, %v10205_v61, %v10268_v54 }
 0x34f   :  { %v11167_v50 = vadd.f32 %v18152_v51, %v18147_v59  ;;  %v18156_v63 = vld [vmem:[#allocation458_spill] sm:$0xff]  ;;  %v18160_v14 = vld [vmem:[#allocation219_spill] sm:$0xff]  ;;  %v18161_v36 = vld [vmem:[#allocation288_spill] sm:$0xff] }
 0x350   :  { %18146 = vst [vmem:[#allocation337_spill] sm:$0xff] %v11159_v53  ;;  %v18158_v46 = vsel %vm18155_vm12, %v18156_v63, %v18157_v62  ;;  %vm18162_vm1 = vnez %v18161_v36  ;;  %v18163_v17 = vld [vmem:[#allocation460_spill] sm:$0xff]  ;;  %v18164_v53 = vld [vmem:[#allocation294_spill] sm:$0xff]  ;;  %v18171_v40 = vld [vmem:[#allocation297_spill] sm:$0xff] }
 0x351   :  { %18153 = vst [vmem:[#allocation137_spill] sm:$0xff] %v11167_v50  ;;  %v11175_v60 = vadd.f32 %v18158_v46, %v18154_v31  ;;  %v18165_v34 = vsel %vm18162_vm1, %v18163_v17, %v18164_v53  ;;  %v18167_v39 = vld [vmem:[#allocation220_spill] sm:$0xff]  ;;  %v18168_v51 = vld [vmem:[#allocation462_spill] sm:$0xff]  ;;  %v18170_v50 = vld [vmem:[#allocation461_spill] sm:$0xff] }
 0x352   :  { %v11183_v59 = vadd.f32 %v18165_v34, %v18160_v14  ;;  %vm18169_vm10 = vnez %v18168_v51  ;;  %v18174_v57 = vld [vmem:[#allocation221_spill] sm:$0xff]  ;;  %v18178_v63 = vld [vmem:[#allocation467_spill] sm:$0xff]  ;;  %v18181_v34 = vld [vmem:[#allocation222_spill] sm:$0xff] }
 0x353   :  { %18159 = vst [vmem:[#allocation95_spill] sm:$0xff] %v11175_v60  ;;  %v18172_v30 = vsel %vm18169_vm10, %v18170_v50, %v18171_v40  ;;  %v18175_v62 = vld [vmem:[#allocation293_spill] sm:$0xff]  ;;  %v327_v53 = vld [vmem:[#allocation6 + $0x38] sm:$0xff]  ;;  %v328_v14 = vld [vmem:[#allocation6 + $0x40] sm:$0xff] }
 0x354   :  { %18166 = vst [vmem:[#allocation16_spill] sm:$0xff] %v11183_v59  ;;  %v11191_v35 = vadd.f32 %v18172_v30, %v18167_v39  ;;  %vm18176_vm7 = vnez %v18175_v62  ;;  %v18177_v31 = vld [vmem:[#allocation289_spill] sm:$0xff]  ;;  %v18184_v51 = vld [vmem:[#allocation464_spill] sm:$0xff]  ;;  %v18188_v50 = vld [vmem:[#allocation223_spill] sm:$0xff] }
 0x355   :  { %v18179_v46 = vsel %vm18176_vm7, %v18177_v31, %v18178_v63  ;;  %v326_v60 = vld [vmem:[#allocation6 + $0x30] sm:$0xff]  ;;  %v329_v17 = vld [vmem:[#allocation6 + $0x48] sm:$0xff]  ;;  %v11299_v61 = vld [vmem:[#allocation6 + $0x98] sm:$0xff] }
 0x356   :  { %18173 = vst [vmem:[#allocation338_spill] sm:$0xff] %v11191_v35  ;;  %v11199_v36 = vadd.f32 %v18179_v46, %v18174_v57  ;;  %v18182_v59 = vld [vmem:[#allocation465_spill] sm:$0xff]  ;;  %v18189_v39 = vld [vmem:[#allocation466_spill] sm:$0xff]  ;;  %v18191_v62 = vld [vmem:[#allocation296_spill] sm:$0xff]  ;;  %v18197_v46 = vsel %vm18196_vm6, %v10087_v48, %v10164_v38  ;;  %v18205_v48 = vsel %vm18204_vm9, %v10118_v52, %v10175_v42  ;;  %v18220_v42 = vsel %vm18219_vm11, %v10178_v22, %v10202_v49 }
 0x357   :  { %vm18183_vm8 = vnez %v18182_v59  ;;  %vm18190_vm2 = vnez %v18189_v39  ;;  %v18192_v35 = vld [vmem:[#allocation300_spill] sm:$0xff]  ;;  %v18207_v38 = vld [vmem:[#allocation226_spill] sm:$0xff]  ;;  %v18229_v49 = vld [vmem:[#allocation231_spill] sm:$0xff] }
 0x358   :  { %18180 = vst [vmem:[#allocation138_spill] sm:$0xff] %v11199_v36  ;;  %v18186_v40 = vsel %vm18183_vm8, %v18184_v51, %v18185_v41  ;;  %v18193_v31 = vsel %vm18190_vm2, %v18191_v62, %v18192_v35  ;;  %v18195_v63 = vld [vmem:[#allocation224_spill] sm:$0xff]  ;;  %v18199_v36 = vld [vmem:[#allocation225_spill] sm:$0xff]  ;;  %v331_v35 = vld [vmem:[#allocation6 + $0x58] sm:$0xff] }
 0x359   :  { %v11207_v30 = vadd.f32 %v18186_v40, %v18181_v34  ;;  %v11215_v57 = vadd.f32 %v18193_v31, %v18188_v50  ;;  %v11223_v59 = vadd.f32 %v18197_v46, %v18195_v63  ;;  %v18201_v34 = vsel %vm10107_vm4, %v10104_v1, %v10167_v25  ;;  %v330_v40 = vld [vmem:[#allocation6 + $0x50] sm:$0xff]  ;;  %v332_v50 = vld [vmem:[#allocation6 + $0x60] sm:$0xff]  ;;  %v333_v39 = vld [vmem:[#allocation6 + $0x68] sm:$0xff] }
 0x35a   :  { %v11231_v51 = vadd.f32 %v18201_v34, %v18199_v36  ;;  %v18203_v62 = vld [vmem:[#allocation98_spill] sm:$0xff]  ;;  %v18208_v31 = vld [vmem:[#allocation304_spill] sm:$0xff]  ;;  %v18211_v36 = vld [vmem:[#allocation227_spill] sm:$0xff] }
 0x35b   :  { %18187 = vst [vmem:[#allocation96_spill] sm:$0xff] %v11207_v30  ;;  %18194 = vst [vmem:[#allocation19_spill] sm:$0xff] %v11215_v57  ;;  %v11239_v10 = vadd.f32 %v18205_v48, %v18203_v62  ;;  %v18209_v25 = vsel %vm10135_vm13, %v10133_v24, %v18208_v31  ;;  %v18212_v63 = vld [vmem:[#allocation469_spill] sm:$0xff]  ;;  %v18214_v46 = vld [vmem:[#allocation302_spill] sm:$0xff]  ;;  %vm18223_vm13 = vnez %v17401_v9 }
 0x35c   :  { %18198 = vst [vmem:[#allocation104_spill] sm:$0xff] %v11223_v59  ;;  %18202 = vst [vmem:[#allocation139_spill] sm:$0xff] %v11231_v51  ;;  %v11247_v1 = vadd.f32 %v18209_v25, %v18207_v38  ;;  %vm18213_vm4 = vnez %v18212_v63  ;;  %v18215_v41 = vld [vmem:[#allocation470_spill] sm:$0xff]  ;;  %v18218_v51 = vld [vmem:[#allocation228_spill] sm:$0xff]  ;;  %v18224_v31 = vsel %vm18223_vm13, %v10196_v15, %v10227_v43  ;;  %v18233_v15 = vsel %vm10232_vm5, %v10230_v28, %v10403_v2 }
 0x35d   :  { %18206 = vst [vmem:[#allocation99_spill] sm:$0xff] %v11239_v10  ;;  %v18216_v34 = vsel %vm18213_vm4, %v18214_v46, %v18215_v41  ;;  %v11263_v52 = vadd.f32 %v18220_v42, %v18218_v51  ;;  %v335_v24 = vld [vmem:[#allocation6 + $0x78] sm:$0xff]  ;;  %v336_v62 = vld [vmem:[#allocation6 + $0x80] sm:$0xff]  ;;  %v337_v48 = vld [vmem:[#allocation6 + $0x88] sm:$0xff]  ;;  %v18230_v51 = vsel %vm10207_vm14, %v10221_v19, %v10349_v45  ;;  %v18236_v19 = vsel %vm10270_vm0, %v10238_v44, %v10465_v3 }
 0x35e   :  { %18210 = vst [vmem:[#allocation22_spill] sm:$0xff] %v11247_v1  ;;  %v11255_v5 = vadd.f32 %v18216_v34, %v18211_v36  ;;  %v18222_v38 = vld [vmem:[#allocation229_spill] sm:$0xff]  ;;  %v18226_v36 = vld [vmem:[#allocation230_spill] sm:$0xff]  ;;  %v11287_v9 = vadd.f32 %v18230_v51, %v18229_v49  ;;  %v18232_v63 = vld [vmem:[#allocation232_spill] sm:$0xff]  ;;  %v18239_v28 = vsel %vm10321_vm3, %v10291_v12, %v10519_v33 }
 0x35f   :  { %18221 = vst [vmem:[#allocation140_spill] sm:$0xff] %v11263_v52  ;;  %v11271_v25 = vadd.f32 %v18224_v31, %v18222_v38  ;;  %v11279_v22 = vadd.f32 %v18227_v27, %v18226_v36  ;;  %v11295_v55 = vadd.f32 %v18233_v15, %v18232_v63  ;;  %v11297_v43 = vld [vmem:[#allocation6 + $0x90] sm:$0xff]  ;;  %v11301_v54 = vld [vmem:[#allocation6 + $0xa0] sm:$0xff]  ;;  %v11326_v42 = vld [vmem:[#allocation3 + $0x8] sm:$0xff] }
 0x360   :  { %18217 = vst [vmem:[#allocation311_spill] sm:$0xff] %v11255_v5  ;;  %18231 = vst [vmem:[#allocation89_spill] sm:$0xff] %v11287_v9  ;;  %v18235_v46 = vld [vmem:[#allocation233_spill] sm:$0xff]  ;;  %v18238_v45 = vld [vmem:[#allocation84_spill] sm:$0xff]  ;;  %v11329_v58 = vmul.f32 %v11326_v42, %v321_v8 }
 0x361   :  { %18225 = vst [vmem:[#allocation100_spill] sm:$0xff] %v11271_v25  ;;  %18228 = vst [vmem:[#allocation23_spill] sm:$0xff] %v11279_v22  ;;  %v11311_v20 = vadd.f32 %v18236_v19, %v18235_v46  ;;  %v11319_v2 = vadd.f32 %v18239_v28, %v18238_v45  ;;  %v11321_v41 = vld [vmem:[#allocation3] sm:$0xff]  ;;  %v11331_v44 = vld [vmem:[#allocation6 + $0xb0] sm:$0xff] }
 0x362   :  { %18234 = vst [vmem:[#allocation141_spill] sm:$0xff] %v11295_v55  ;;  %v11324_v34 = vmul.f32 %v11321_v41, %v320_v11  ;;  %v11333_v3 = vld [vmem:[#allocation6 + $0xb8] sm:$0xff]  ;;  %v11335_v6 = vld [vmem:[#allocation6 + $0xc0] sm:$0xff]  ;;  %v11337_v38 = vld [vmem:[#allocation6 + $0xc8] sm:$0xff] }
 0x363   :  { %18237 = vst [vmem:[#allocation48_spill] sm:$0xff] %v11311_v20  ;;  %18240 = vst [vmem:[#allocation142_spill] sm:$0xff] %v11319_v2  ;;  %v11339_v12 = vld [vmem:[#allocation3 + $0x10] sm:$0xff]  ;;  %v11344_v11 = vld [vmem:[#allocation3 + $0x18] sm:$0xff] }
 0x364   :  { %v11342_v33 = vmul.f32 %v11339_v12, %v322_v23  ;;  %v11347_v31 = vmul.f32 %v11344_v11, %v323_v16  ;;  %v11349_v8 = vld [vmem:[#allocation3 + $0x20] sm:$0xff]  ;;  %v11354_v27 = vld [vmem:[#allocation3 + $0x28] sm:$0xff]  ;;  %v11359_v51 = vld [vmem:[#allocation6 + $0xd0] sm:$0xff] }
 0x365   :  { %v11352_v36 = vmul.f32 %v11349_v8, %v324_v56  ;;  %v11357_v49 = vmul.f32 %v11354_v27, %v325_v13  ;;  %v11361_v63 = vld [vmem:[#allocation6 + $0xd8] sm:$0xff]  ;;  %v11363_v23 = vld [vmem:[#allocation6 + $0xe0] sm:$0xff]  ;;  %v11365_v15 = vld [vmem:[#allocation6 + $0xe8] sm:$0xff] }
 0x366   :  { %v11367_v16 = vld [vmem:[#allocation3 + $0x30] sm:$0xff]  ;;  %v11372_v56 = vld [vmem:[#allocation3 + $0x38] sm:$0xff]  ;;  %v11377_v13 = vld [vmem:[#allocation3 + $0x40] sm:$0xff] }
 0x367   :  { %v11370_v46 = vmul.f32 %v11367_v16, %v326_v60  ;;  %v11375_v19 = vmul.f32 %v11372_v56, %v327_v53  ;;  %v11380_v45 = vmul.f32 %v11377_v13, %v328_v14  ;;  %v11382_v28 = vld [vmem:[#allocation3 + $0x48] sm:$0xff]  ;;  %v11387_v20 = vld [vmem:[#allocation6 + $0xf0] sm:$0xff]  ;;  %v11389_v55 = vld [vmem:[#allocation6 + $0xf8] sm:$0xff] }
 0x368   :  { %v11385_v2 = vmul.f32 %v11382_v28, %v329_v17  ;;  %v11391_v60 = vld [vmem:[#allocation6 + $0x100] sm:$0xff]  ;;  %v11393_v9 = vld [vmem:[#allocation6 + $0x108] sm:$0xff]  ;;  %v11395_v53 = vld [vmem:[#allocation3 + $0x50] sm:$0xff] }
 0x369   :  { %v11398_v22 = vmul.f32 %v11395_v53, %v330_v40  ;;  %v11400_v14 = vld [vmem:[#allocation3 + $0x58] sm:$0xff]  ;;  %v11405_v17 = vld [vmem:[#allocation3 + $0x60] sm:$0xff]  ;;  %v11410_v5 = vld [vmem:[#allocation3 + $0x68] sm:$0xff] }
 0x36a   :  { %v11403_v25 = vmul.f32 %v11400_v14, %v331_v35  ;;  %v11408_v52 = vmul.f32 %v11405_v17, %v332_v50  ;;  %v11413_v1 = vmul.f32 %v11410_v5, %v333_v39  ;;  %v11415_v10 = vld [vmem:[#allocation6 + $0x110] sm:$0xff]  ;;  %v11417_v59 = vld [vmem:[#allocation6 + $0x118] sm:$0xff]  ;;  %v11419_v40 = vld [vmem:[#allocation6 + $0x120] sm:$0xff] }
 0x36b   :  { %v11421_v57 = vld [vmem:[#allocation6 + $0x128] sm:$0xff]  ;;  %v11423_v35 = vld [vmem:[#allocation3 + $0x70] sm:$0xff]  ;;  %v11428_v50 = vld [vmem:[#allocation3 + $0x78] sm:$0xff] }
 0x36c   :  { %18241 = vst [vmem:[#allocation85_spill] sm:$0xff] %v11423_v35  ;;  %v11426_v30 = vmul.f32 %v11423_v35, %v334_v47  ;;  %18242 = vst [vmem:[#allocation28_spill] sm:$0xff] %v11428_v50  ;;  %v11431_v32 = vmul.f32 %v11428_v50, %v335_v24  ;;  %v11433_v39 = vld [vmem:[#allocation3 + $0x80] sm:$0xff]  ;;  %v11438_v21 = vld [vmem:[#allocation3 + $0x88] sm:$0xff] }
 0x36d   :  { %18244 = vst [vmem:[#allocation143_spill] sm:$0xff] %v11433_v39  ;;  %v11436_v18 = vmul.f32 %v11433_v39, %v336_v62  ;;  %18246 = vst [vmem:[#allocation30_spill] sm:$0xff] %v11438_v21  ;;  %v11441_v7 = vmul.f32 %v11438_v21, %v337_v48  ;;  %v11443_v4 = vld [vmem:[#allocation6 + $0x130] sm:$0xff]  ;;  %v11447_v47 = vld [vmem:[#allocation6 + $0x140] sm:$0xff] }
 0x36e   :  { %18243 = vst [vmem:[#allocation339_spill] sm:$0xff] %v11431_v32  ;;  %v11449_v0 = vld [vmem:[#allocation6 + $0x148] sm:$0xff]  ;;  %v11451_v24 = vld [vmem:[#allocation3 + $0x90] sm:$0xff]  ;;  %v11457_v62 = vld [vmem:[#allocation3 + $0x98] sm:$0xff] }
 0x36f   :  { %18245 = vst [vmem:[#allocation102_spill] sm:$0xff] %v11436_v18  ;;  %18247 = vst [vmem:[#allocation90_spill] sm:$0xff] %v11441_v7  ;;  %v11455_v50 = vmul.f32 %v11451_v24, %v11297_v43  ;;  %v11461_v48 = vmul.f32 %v11457_v62, %v11299_v61  ;;  %v11463_v21 = vld [vmem:[#allocation3 + $0xa0] sm:$0xff]  ;;  %v11469_v39 = vld [vmem:[#allocation3 + $0xa8] sm:$0xff] }
 0x370   :  { %18248 = vst [vmem:[#allocation144_spill] sm:$0xff] %v11451_v24  ;;  %18250 = vst [vmem:[#allocation287_spill] sm:$0xff] %v11457_v62  ;;  %v11467_v7 = vmul.f32 %v11463_v21, %v11301_v54  ;;  %v11473_v18 = vmul.f32 %v11469_v39, %v11303_v37  ;;  %v11475_v43 = vld [vmem:[#allocation6 + $0x150] sm:$0xff]  ;;  %v11477_v24 = vld [vmem:[#allocation6 + $0x158] sm:$0xff] }
 0x371   :  { %18249 = vst [vmem:[#allocation103_spill] sm:$0xff] %v11455_v50  ;;  %18251 = vst [vmem:[#allocation340_spill] sm:$0xff] %v11461_v48  ;;  %v11479_v50 = vld [vmem:[#allocation6 + $0x160] sm:$0xff]  ;;  %v11481_v61 = vld [vmem:[#allocation6 + $0x168] sm:$0xff] }
 0x372   :  { %18252 = vst [vmem:[#allocation145_spill] sm:$0xff] %v11463_v21  ;;  %18253 = vst [vmem:[#allocation308_spill] sm:$0xff] %v11467_v7  ;;  %v11483_v62 = vld [vmem:[#allocation3 + $0xb0] sm:$0xff]  ;;  %v11489_v21 = vld [vmem:[#allocation3 + $0xb8] sm:$0xff] }
 0x373   :  { %18254 = vst [vmem:[#allocation290_spill] sm:$0xff] %v11469_v39  ;;  %18255 = vst [vmem:[#allocation92_spill] sm:$0xff] %v11473_v18  ;;  %v11487_v54 = vmul.f32 %v11483_v62, %v11331_v44  ;;  %v11493_v37 = vmul.f32 %v11489_v21, %v11333_v3  ;;  %v11495_v39 = vld [vmem:[#allocation3 + $0xc0] sm:$0xff]  ;;  %v11501_v7 = vld [vmem:[#allocation3 + $0xc8] sm:$0xff] }
 0x374   :  { %18256 = vst [vmem:[#allocation146_spill] sm:$0xff] %v11483_v62  ;;  %18258 = vst [vmem:[#allocation292_spill] sm:$0xff] %v11489_v21  ;;  %v11499_v18 = vmul.f32 %v11495_v39, %v11335_v6  ;;  %v11505_v48 = vmul.f32 %v11501_v7, %v11337_v38  ;;  %v366_v44 = vld [vmem:[#allocation6 + $0x170] sm:$0xff]  ;;  %v11507_v62 = vld [vmem:[#allocation6 + $0x178] sm:$0xff] }
 0x375   :  { %18257 = vst [vmem:[#allocation35_spill] sm:$0xff] %v11487_v54  ;;  %18259 = vst [vmem:[#allocation26_spill] sm:$0xff] %v11493_v37  ;;  %v11509_v54 = vld [vmem:[#allocation6 + $0x180] sm:$0xff]  ;;  %v11511_v32 = vld [vmem:[#allocation6 + $0x188] sm:$0xff] }
 0x376   :  { %18260 = vst [vmem:[#allocation147_spill] sm:$0xff] %v11495_v39  ;;  %18261 = vst [vmem:[#allocation21_spill] sm:$0xff] %v11499_v18  ;;  %v11513_v3 = vld [vmem:[#allocation3 + $0xd0] sm:$0xff]  ;;  %v11519_v6 = vld [vmem:[#allocation3 + $0xd8] sm:$0xff] }
 0x377   :  { %18262 = vst [vmem:[#allocation295_spill] sm:$0xff] %v11501_v7  ;;  %18263 = vst [vmem:[#allocation94_spill] sm:$0xff] %v11505_v48  ;;  %v11517_v21 = vmul.f32 %v11513_v3, %v11359_v51  ;;  %v11523_v39 = vmul.f32 %v11519_v6, %v11361_v63  ;;  %v11525_v38 = vld [vmem:[#allocation3 + $0xe0] sm:$0xff]  ;;  %v11531_v48 = vld [vmem:[#allocation3 + $0xe8] sm:$0xff] }
 0x378   :  { %18264 = vst [vmem:[#allocation148_spill] sm:$0xff] %v11513_v3  ;;  %18266 = vst [vmem:[#allocation298_spill] sm:$0xff] %v11519_v6  ;;  %v11529_v7 = vmul.f32 %v11525_v38, %v11363_v23  ;;  %v11535_v18 = vmul.f32 %v11531_v48, %v11365_v15  ;;  %v370_v51 = vld [vmem:[#allocation6 + $0x190] sm:$0xff]  ;;  %v371_v3 = vld [vmem:[#allocation6 + $0x198] sm:$0xff] }
 0x379   :  { %18265 = vst [vmem:[#allocation105_spill] sm:$0xff] %v11517_v21  ;;  %18267 = vst [vmem:[#allocation41_spill] sm:$0xff] %v11523_v39  ;;  %v11537_v21 = vld [vmem:[#allocation6 + $0x1a0] sm:$0xff]  ;;  %v11539_v37 = vld [vmem:[#allocation6 + $0x1a8] sm:$0xff] }
 0x37a   :  { %18268 = vst [vmem:[#allocation149_spill] sm:$0xff] %v11525_v38  ;;  %18269 = vst [vmem:[#allocation14_spill] sm:$0xff] %v11529_v7  ;;  %v11541_v63 = vld [vmem:[#allocation3 + $0xf0] sm:$0xff]  ;;  %v11547_v23 = vld [vmem:[#allocation3 + $0xf8] sm:$0xff] }
 0x37b   :  { %18270 = vst [vmem:[#allocation150_spill] sm:$0xff] %v11531_v48  ;;  %18271 = vst [vmem:[#allocation107_spill] sm:$0xff] %v11535_v18  ;;  %v11545_v6 = vmul.f32 %v11541_v63, %v11387_v20  ;;  %v11551_v38 = vmul.f32 %v11547_v23, %v11389_v55  ;;  %v11553_v15 = vld [vmem:[#allocation3 + $0x100] sm:$0xff]  ;;  %v11559_v18 = vld [vmem:[#allocation3 + $0x108] sm:$0xff] }
 0x37c   :  { %18272 = vst [vmem:[#allocation303_spill] sm:$0xff] %v11541_v63  ;;  %18274 = vst [vmem:[#allocation151_spill] sm:$0xff] %v11547_v23  ;;  %v11557_v48 = vmul.f32 %v11553_v15, %v11391_v60  ;;  %v11563_v7 = vmul.f32 %v11559_v18, %v11393_v9  ;;  %v374_v20 = vld [vmem:[#allocation6 + $0x1b0] sm:$0xff]  ;;  %v375_v63 = vld [vmem:[#allocation6 + $0x1b8] sm:$0xff] }
 0x37d   :  { %18273 = vst [vmem:[#allocation341_spill] sm:$0xff] %v11545_v6  ;;  %18275 = vst [vmem:[#allocation91_spill] sm:$0xff] %v11551_v38  ;;  %v376_v6 = vld [vmem:[#allocation6 + $0x1c0] sm:$0xff]  ;;  %v11565_v39 = vld [vmem:[#allocation6 + $0x1c8] sm:$0xff] }
 0x37e   :  { %18276 = vst [vmem:[#allocation305_spill] sm:$0xff] %v11553_v15  ;;  %18277 = vst [vmem:[#allocation342_spill] sm:$0xff] %v11557_v48  ;;  %v11567_v35 = vld [vmem:[#allocation3 + $0x110] sm:$0xff]  ;;  %v11573_v23 = vld [vmem:[#allocation3 + $0x118] sm:$0xff] }
 0x37f   :  { %18278 = vst [vmem:[#allocation152_spill] sm:$0xff] %v11559_v18  ;;  %18279 = vst [vmem:[#allocation306_spill] sm:$0xff] %v11563_v7  ;;  %v11571_v55 = vmul.f32 %v11567_v35, %v11415_v10  ;;  %v11577_v60 = vmul.f32 %v11573_v23, %v11417_v59  ;;  %v11579_v15 = vld [vmem:[#allocation3 + $0x120] sm:$0xff]  ;;  %v11585_v18 = vld [vmem:[#allocation3 + $0x128] sm:$0xff] }
 0x380   :  { %18280 = vst [vmem:[#allocation45_spill] sm:$0xff] %v11567_v35  ;;  %18282 = vst [vmem:[#allocation154_spill] sm:$0xff] %v11573_v23  ;;  %v11583_v9 = vmul.f32 %v11579_v15, %v11419_v40  ;;  %v11589_v7 = vmul.f32 %v11585_v18, %v11421_v57  ;;  %v378_v10 = vld [vmem:[#allocation6 + $0x1d0] sm:$0xff]  ;;  %v379_v35 = vld [vmem:[#allocation6 + $0x1d8] sm:$0xff] }
 0x381   :  { %18281 = vst [vmem:[#allocation153_spill] sm:$0xff] %v11571_v55  ;;  %18283 = vst [vmem:[#allocation39_spill] sm:$0xff] %v11577_v60  ;;  %v380_v55 = vld [vmem:[#allocation6 + $0x1e0] sm:$0xff]  ;;  %v11591_v48 = vld [vmem:[#allocation3 + $0x130] sm:$0xff] }
 0x382   :  { %18284 = vst [vmem:[#allocation310_spill] sm:$0xff] %v11579_v15  ;;  %18285 = vst [vmem:[#allocation49_spill] sm:$0xff] %v11583_v9  ;;  %v11595_v59 = vmul.f32 %v11591_v48, %v11443_v4  ;;  %v11597_v23 = vld [vmem:[#allocation3 + $0x138] sm:$0xff]  ;;  %v11603_v15 = vld [vmem:[#allocation3 + $0x140] sm:$0xff] }
 0x383   :  { %18286 = vst [vmem:[#allocation155_spill] sm:$0xff] %v11585_v18  ;;  %18287 = vst [vmem:[#allocation312_spill] sm:$0xff] %v11589_v7  ;;  %v11601_v40 = vmul.f32 %v11597_v23, %v11445_v26  ;;  %v11607_v57 = vmul.f32 %v11603_v15, %v11447_v47  ;;  %v11609_v18 = vld [vmem:[#allocation3 + $0x148] sm:$0xff]  ;;  %v11615_v9 = vld [vmem:[#allocation3 + $0x150] sm:$0xff] }
 0x384   :  { %18288 = vst [vmem:[#allocation58_spill] sm:$0xff] %v11591_v48  ;;  %18289 = vst [vmem:[#allocation156_spill] sm:$0xff] %v11595_v59  ;;  %v11613_v7 = vmul.f32 %v11609_v18, %v11449_v0  ;;  %v381_v4 = vld [vmem:[#allocation6 + $0x1e8] sm:$0xff]  ;;  %v382_v48 = vld [vmem:[#allocation6 + $0x1f0] sm:$0xff]  ;;  %v11619_v26 = vmul.f32 %v11615_v9, %v11475_v43 }
 0x385   :  { %18290 = vst [vmem:[#allocation97_spill] sm:$0xff] %v11597_v23  ;;  %18291 = vst [vmem:[#allocation316_spill] sm:$0xff] %v11601_v40  ;;  %v383_v59 = vld [vmem:[#allocation6 + $0x1f8] sm:$0xff]  ;;  %v384_v43 = vld [vmem:[#allocation6 + $0x200] sm:$0xff] }
 0x386   :  { %18292 = vst [vmem:[#allocation349_spill] sm:$0xff] %v11603_v15  ;;  %18293 = vst [vmem:[#allocation157_spill] sm:$0xff] %v11607_v57  ;;  %v11621_v23 = vld [vmem:[#allocation3 + $0x158] sm:$0xff]  ;;  %v11627_v15 = vld [vmem:[#allocation3 + $0x160] sm:$0xff] }
 0x387   :  { %18294 = vst [vmem:[#allocation307_spill] sm:$0xff] %v11609_v18  ;;  %18295 = vst [vmem:[#allocation158_spill] sm:$0xff] %v11613_v7  ;;  %v11625_v47 = vmul.f32 %v11621_v23, %v11477_v24  ;;  %v11631_v0 = vmul.f32 %v11627_v15, %v11479_v50  ;;  %v11633_v18 = vld [vmem:[#allocation3 + $0x168] sm:$0xff]  ;;  %v11639_v57 = vld [vmem:[#allocation3 + $0x170] sm:$0xff] }
 0x388   :  { %18296 = vst [vmem:[#allocation343_spill] sm:$0xff] %v11615_v9  ;;  %18297 = vst [vmem:[#allocation159_spill] sm:$0xff] %v11619_v26  ;;  %v11637_v7 = vmul.f32 %v11633_v18, %v11481_v61  ;;  %v385_v9 = vld [vmem:[#allocation6 + $0x208] sm:$0xff]  ;;  %v386_v26 = vld [vmem:[#allocation6 + $0x210] sm:$0xff]  ;;  %v11642_v24 = vmul.f32 %v11639_v57, %v366_v44 }
 0x389   :  { %18298 = vst [vmem:[#allocation344_spill] sm:$0xff] %v11621_v23  ;;  %18299 = vst [vmem:[#allocation320_spill] sm:$0xff] %v11625_v47  ;;  %v11644_v23 = vld [vmem:[#allocation3 + $0x178] sm:$0xff] }
 0x38a   :  { %18300 = vst [vmem:[#allocation353_spill] sm:$0xff] %v11627_v15  ;;  %18301 = vst [vmem:[#allocation160_spill] sm:$0xff] %v11631_v0  ;;  %v11648_v50 = vmul.f32 %v11644_v23, %v11507_v62  ;;  %v11650_v15 = vld [vmem:[#allocation3 + $0x180] sm:$0xff]  ;;  %v387_v44 = vld [vmem:[#allocation6 + $0x218] sm:$0xff] }
 0x38b   :  { %18302 = vst [vmem:[#allocation345_spill] sm:$0xff] %v11633_v18  ;;  %18303 = vst [vmem:[#allocation327_spill] sm:$0xff] %v11637_v7  ;;  %v11654_v61 = vmul.f32 %v11650_v15, %v11509_v54  ;;  %v11656_v18 = vld [vmem:[#allocation3 + $0x188] sm:$0xff]  ;;  %v11662_v0 = vld [vmem:[#allocation3 + $0x190] sm:$0xff] }
 0x38c   :  { %18304 = vst [vmem:[#allocation354_spill] sm:$0xff] %v11639_v57  ;;  %18305 = vst [vmem:[#allocation161_spill] sm:$0xff] %v11642_v24  ;;  %v11660_v7 = vmul.f32 %v11656_v18, %v11511_v32  ;;  %v388_v57 = vld [vmem:[#allocation6 + $0x220] sm:$0xff]  ;;  %v389_v24 = vld [vmem:[#allocation6 + $0x228] sm:$0xff]  ;;  %v11665_v62 = vmul.f32 %v11662_v0, %v370_v51 }
 0x38d   :  { %18306 = vst [vmem:[#allocation301_spill] sm:$0xff] %v11644_v23  ;;  %18307 = vst [vmem:[#allocation330_spill] sm:$0xff] %v11648_v50  ;;  %v11667_v23 = vld [vmem:[#allocation3 + $0x198] sm:$0xff]  ;;  %v11672_v54 = vld [vmem:[#allocation3 + $0x1a0] sm:$0xff] }
 0x38e   :  { %18308 = vst [vmem:[#allocation63_spill] sm:$0xff] %v11650_v15  ;;  %18309 = vst [vmem:[#allocation162_spill] sm:$0xff] %v11654_v61  ;;  %v11670_v50 = vmul.f32 %v11667_v23, %v371_v3  ;;  %v11676_v15 = vmul.f32 %v11672_v54, %v11537_v21  ;;  %v11678_v32 = vld [vmem:[#allocation3 + $0x1a8] sm:$0xff]  ;;  %v391_v51 = vld [vmem:[#allocation6 + $0x238] sm:$0xff] }
 0x38f   :  { %18310 = vst [vmem:[#allocation347_spill] sm:$0xff] %v11656_v18  ;;  %18311 = vst [vmem:[#allocation101_spill] sm:$0xff] %v11660_v7  ;;  %v11682_v18 = vmul.f32 %v11678_v32, %v11539_v37  ;;  %v390_v7 = vld [vmem:[#allocation6 + $0x230] sm:$0xff]  ;;  %v11694_v21 = vld [vmem:[#allocation3 + $0x1c0] sm:$0xff] }
 0x390   :  { %18312 = vst [vmem:[#allocation356_spill] sm:$0xff] %v11662_v0  ;;  %18313 = vst [vmem:[#allocation163_spill] sm:$0xff] %v11665_v62  ;;  %v392_v0 = vld [vmem:[#allocation6 + $0x240] sm:$0xff]  ;;  %v11684_v62 = vld [vmem:[#allocation3 + $0x1b0] sm:$0xff] }
 0x391   :  { %18314 = vst [vmem:[#allocation348_spill] sm:$0xff] %v11667_v23  ;;  %18315 = vst [vmem:[#allocation106_spill] sm:$0xff] %v11670_v50  ;;  %v11687_v3 = vmul.f32 %v11684_v62, %v374_v20  ;;  %v11689_v23 = vld [vmem:[#allocation3 + $0x1b8] sm:$0xff]  ;;  %v11699_v37 = vld [vmem:[#allocation3 + $0x1c8] sm:$0xff] }
 0x392   :  { %18316 = vst [vmem:[#allocation357_spill] sm:$0xff] %v11672_v54  ;;  %18317 = vst [vmem:[#allocation164_spill] sm:$0xff] %v11676_v15  ;;  %v11692_v50 = vmul.f32 %v11689_v23, %v375_v63  ;;  %v11697_v54 = vmul.f32 %v11694_v21, %v376_v6  ;;  %v394_v15 = vld [vmem:[#allocation6 + $0x250] sm:$0xff]  ;;  %v395_v20 = vld [vmem:[#allocation6 + $0x258] sm:$0xff] }
 0x393   :  { %18318 = vst [vmem:[#allocation350_spill] sm:$0xff] %v11678_v32  ;;  %18319 = vst [vmem:[#allocation93_spill] sm:$0xff] %v11682_v18  ;;  %v11703_v32 = vmul.f32 %v11699_v37, %v11565_v39  ;;  %v393_v18 = vld [vmem:[#allocation6 + $0x248] sm:$0xff]  ;;  %v11710_v63 = vld [vmem:[#allocation3 + $0x1d8] sm:$0xff] }
 0x394   :  { %18320 = vst [vmem:[#allocation66_spill] sm:$0xff] %v11684_v62  ;;  %18321 = vst [vmem:[#allocation165_spill] sm:$0xff] %v11687_v3  ;;  %v11705_v62 = vld [vmem:[#allocation3 + $0x1d0] sm:$0xff]  ;;  %v11715_v6 = vld [vmem:[#allocation3 + $0x1e0] sm:$0xff] }
 0x395   :  { %18322 = vst [vmem:[#allocation351_spill] sm:$0xff] %v11689_v23  ;;  %18323 = vst [vmem:[#allocation346_spill] sm:$0xff] %v11692_v50  ;;  %v11708_v3 = vmul.f32 %v11705_v62, %v378_v10  ;;  %v11713_v23 = vmul.f32 %v11710_v63, %v379_v35  ;;  %v11720_v39 = vld [vmem:[#allocation3 + $0x1e8] sm:$0xff]  ;;  %v398_v50 = vld [vmem:[#allocation6 + $0x270] sm:$0xff] }
 0x396   :  { %18324 = vst [vmem:[#allocation360_spill] sm:$0xff] %v11694_v21  ;;  %18325 = vst [vmem:[#allocation166_spill] sm:$0xff] %v11697_v54  ;;  %v11718_v21 = vmul.f32 %v11715_v6, %v380_v55  ;;  %v397_v54 = vld [vmem:[#allocation6 + $0x268] sm:$0xff]  ;;  %v11725_v10 = vld [vmem:[#allocation3 + $0x1f0] sm:$0xff] }
 0x397   :  { %18326 = vst [vmem:[#allocation355_spill] sm:$0xff] %v11699_v37  ;;  %18327 = vst [vmem:[#allocation352_spill] sm:$0xff] %v11703_v32  ;;  %v11723_v37 = vmul.f32 %v11720_v39, %v381_v4  ;;  %v396_v32 = vld [vmem:[#allocation6 + $0x260] sm:$0xff]  ;;  %v11730_v35 = vld [vmem:[#allocation3 + $0x1f8] sm:$0xff] }
 0x398   :  { %18328 = vst [vmem:[#allocation69_spill] sm:$0xff] %v11705_v62  ;;  %18329 = vst [vmem:[#allocation167_spill] sm:$0xff] %v11708_v3  ;;  %v11728_v62 = vmul.f32 %v11725_v10, %v382_v48  ;;  %v11735_v55 = vld [vmem:[#allocation3 + $0x200] sm:$0xff]  ;;  %v11740_v4 = vld [vmem:[#allocation3 + $0x208] sm:$0xff] }
 0x399   :  { %18330 = vst [vmem:[#allocation358_spill] sm:$0xff] %v11710_v63  ;;  %18331 = vst [vmem:[#allocation61_spill] sm:$0xff] %v11713_v23  ;;  %v11733_v63 = vmul.f32 %v11730_v35, %v383_v59  ;;  %v401_v23 = vld [vmem:[#allocation6 + $0x288] sm:$0xff]  ;;  %v11745_v48 = vld [vmem:[#allocation3 + $0x210] sm:$0xff] }
 0x39a   :  { %18332 = vst [vmem:[#allocation73_spill] sm:$0xff] %v11715_v6  ;;  %18333 = vst [vmem:[#allocation168_spill] sm:$0xff] %v11718_v21  ;;  %v11738_v6 = vmul.f32 %v11735_v55, %v384_v43  ;;  %v400_v21 = vld [vmem:[#allocation6 + $0x280] sm:$0xff]  ;;  %v11750_v59 = vld [vmem:[#allocation3 + $0x218] sm:$0xff] }
 0x39b   :  { %18334 = vst [vmem:[#allocation70_spill] sm:$0xff] %v11720_v39  ;;  %18335 = vst [vmem:[#allocation359_spill] sm:$0xff] %v11723_v37  ;;  %v11743_v39 = vmul.f32 %v11740_v4, %v385_v9  ;;  %v399_v37 = vld [vmem:[#allocation6 + $0x278] sm:$0xff]  ;;  %v11755_v43 = vld [vmem:[#allocation3 + $0x220] sm:$0xff] }
 0x39c   :  { %18336 = vst [vmem:[#allocation38_spill] sm:$0xff] %v11725_v10  ;;  %18337 = vst [vmem:[#allocation169_spill] sm:$0xff] %v11728_v62  ;;  %v11748_v10 = vmul.f32 %v11745_v48, %v386_v26  ;;  %v11760_v9 = vld [vmem:[#allocation3 + $0x228] sm:$0xff]  ;;  %v11765_v26 = vld [vmem:[#allocation3 + $0x230] sm:$0xff] }
 0x39d   :  { %18338 = vst [vmem:[#allocation362_spill] sm:$0xff] %v11730_v35  ;;  %18339 = vst [vmem:[#allocation361_spill] sm:$0xff] %v11733_v63  ;;  %v11753_v35 = vmul.f32 %v11750_v59, %v387_v44  ;;  %v404_v63 = vld [vmem:[#allocation6 + $0x2a0] sm:$0xff]  ;;  %v11770_v44 = vld [vmem:[#allocation3 + $0x238] sm:$0xff] }
 0x39e   :  { %18340 = vst [vmem:[#allocation40_spill] sm:$0xff] %v11735_v55  ;;  %18341 = vst [vmem:[#allocation170_spill] sm:$0xff] %v11738_v6  ;;  %v11758_v55 = vmul.f32 %v11755_v43, %v388_v57  ;;  %v403_v6 = vld [vmem:[#allocation6 + $0x298] sm:$0xff]  ;;  %v11775_v57 = vld [vmem:[#allocation3 + $0x240] sm:$0xff] }
 0x39f   :  { %18342 = vst [vmem:[#allocation364_spill] sm:$0xff] %v11740_v4  ;;  %18343 = vst [vmem:[#allocation363_spill] sm:$0xff] %v11743_v39  ;;  %v11763_v4 = vmul.f32 %v11760_v9, %v389_v24  ;;  %v402_v39 = vld [vmem:[#allocation6 + $0x290] sm:$0xff]  ;;  %v11780_v24 = vld [vmem:[#allocation3 + $0x248] sm:$0xff] }
 0x3a0   :  { %18344 = vst [vmem:[#allocation87_spill] sm:$0xff] %v11745_v48  ;;  %18345 = vst [vmem:[#allocation171_spill] sm:$0xff] %v11748_v10  ;;  %v11768_v48 = vmul.f32 %v11765_v26, %v390_v7  ;;  %v11785_v7 = vld [vmem:[#allocation3 + $0x250] sm:$0xff]  ;;  %v18550_v40 = vld [vmem:[#allocation348_spill] sm:$0xff] }
 0x3a1   :  { %18346 = vst [vmem:[#allocation76_spill] sm:$0xff] %v11750_v59  ;;  %18347 = vst [vmem:[#allocation365_spill] sm:$0xff] %v11753_v35  ;;  %v11773_v59 = vmul.f32 %v11770_v44, %v391_v51  ;;  %v407_v35 = vld [vmem:[#allocation6 + $0x2b8] sm:$0xff]  ;;  %v18728_v10 = vld [vmem:[#allocation117_spill] sm:$0xff] }
 0x3a2   :  { %18348 = vst [vmem:[#allocation53_spill] sm:$0xff] %v11755_v43  ;;  %18349 = vst [vmem:[#allocation172_spill] sm:$0xff] %v11758_v55  ;;  %v11778_v43 = vmul.f32 %v11775_v57, %v392_v0  ;;  %v406_v55 = vld [vmem:[#allocation6 + $0x2b0] sm:$0xff]  ;;  %v11790_v51 = vld [vmem:[#allocation3 + $0x258] sm:$0xff] }
 0x3a3   :  { %18350 = vst [vmem:[#allocation367_spill] sm:$0xff] %v11760_v9  ;;  %18351 = vst [vmem:[#allocation366_spill] sm:$0xff] %v11763_v4  ;;  %v11783_v9 = vmul.f32 %v11780_v24, %v393_v18  ;;  %v405_v4 = vld [vmem:[#allocation6 + $0x2a8] sm:$0xff]  ;;  %v11795_v0 = vld [vmem:[#allocation3 + $0x260] sm:$0xff] }
 0x3a4   :  { %18352 = vst [vmem:[#allocation56_spill] sm:$0xff] %v11765_v26  ;;  %18353 = vst [vmem:[#allocation173_spill] sm:$0xff] %v11768_v48  ;;  %v11788_v26 = vmul.f32 %v11785_v7, %v394_v15  ;;  %v11800_v18 = vld [vmem:[#allocation3 + $0x268] sm:$0xff]  ;;  %v11805_v15 = vld [vmem:[#allocation3 + $0x270] sm:$0xff] }
 0x3a5   :  { %18354 = vst [vmem:[#allocation368_spill] sm:$0xff] %v11770_v44  ;;  %18355 = vst [vmem:[#allocation44_spill] sm:$0xff] %v11773_v59  ;;  %v11793_v44 = vmul.f32 %v11790_v51, %v395_v20  ;;  %v410_v59 = vld [vmem:[#allocation6 + $0x2d0] sm:$0xff]  ;;  %v11810_v20 = vld [vmem:[#allocation3 + $0x278] sm:$0xff] }
 0x3a6   :  { %18356 = vst [vmem:[#allocation375_spill] sm:$0xff] %v11775_v57  ;;  %18357 = vst [vmem:[#allocation174_spill] sm:$0xff] %v11778_v43  ;;  %v11798_v57 = vmul.f32 %v11795_v0, %v396_v32  ;;  %v409_v43 = vld [vmem:[#allocation6 + $0x2c8] sm:$0xff]  ;;  %v2624_v32 = vsub.f32 %v11321_v41, %v11324_v34  ;;  %v11834_v41 = vld [vmem:[#allocation3 + $0x298] sm:$0xff] }
 0x3a7   :  { %18358 = vst [vmem:[#allocation370_spill] sm:$0xff] %v11780_v24  ;;  %18359 = vst [vmem:[#allocation369_spill] sm:$0xff] %v11783_v9  ;;  %v11803_v24 = vmul.f32 %v11800_v18, %v397_v54  ;;  %v408_v9 = vld [vmem:[#allocation6 + $0x2c0] sm:$0xff]  ;;  %v2625_v54 = vsub.f32 %v11326_v42, %v11329_v58  ;;  %v11837_v34 = vmul.f32 %v11834_v41, %v403_v6  ;;  %v413_v42 = vld [vmem:[#allocation6 + $0x2e8] sm:$0xff] }
 0x3a8   :  { %18360 = vst [vmem:[#allocation376_spill] sm:$0xff] %v11785_v7  ;;  %18361 = vst [vmem:[#allocation175_spill] sm:$0xff] %v11788_v26  ;;  %v11808_v7 = vmul.f32 %v11805_v15, %v398_v50  ;;  %v11824_v50 = vld [vmem:[#allocation3 + $0x288] sm:$0xff]  ;;  %v414_v58 = vld [vmem:[#allocation6 + $0x2f0] sm:$0xff]  ;;  %v2626_v6 = vsub.f32 %v11339_v12, %v11342_v33 }
 0x3a9   :  { %18362 = vst [vmem:[#allocation372_spill] sm:$0xff] %v11790_v51  ;;  %18363 = vst [vmem:[#allocation371_spill] sm:$0xff] %v11793_v44  ;;  %v11813_v51 = vmul.f32 %v11810_v20, %v399_v37  ;;  %v11829_v37 = vld [vmem:[#allocation3 + $0x290] sm:$0xff]  ;;  %v419_v33 = vld [vmem:[#allocation6 + $0x318] sm:$0xff] }
 0x3aa   :  { %18364 = vst [vmem:[#allocation234_spill] sm:$0xff] %v11795_v0  ;;  %18365 = vst [vmem:[#allocation176_spill] sm:$0xff] %v11798_v57  ;;  %v11819_v0 = vld [vmem:[#allocation3 + $0x280] sm:$0xff] }
 0x3ab   :  { %18366 = vst [vmem:[#allocation374_spill] sm:$0xff] %v11800_v18  ;;  %18367 = vst [vmem:[#allocation373_spill] sm:$0xff] %v11803_v24  ;;  %v411_v18 = vld [vmem:[#allocation6 + $0x2d8] sm:$0xff]  ;;  %v412_v24 = vld [vmem:[#allocation6 + $0x2e0] sm:$0xff]  ;;  %v11822_v57 = vmul.f32 %v11819_v0, %v400_v21 }
 0x3ac   :  { %18368 = vst [vmem:[#allocation381_spill] sm:$0xff] %v11805_v15  ;;  %18369 = vst [vmem:[#allocation177_spill] sm:$0xff] %v11808_v7  ;;  %v11827_v15 = vmul.f32 %v11824_v50, %v401_v23  ;;  %v11839_v21 = vld [vmem:[#allocation3 + $0x2a0] sm:$0xff]  ;;  %v11844_v23 = vld [vmem:[#allocation3 + $0x2a8] sm:$0xff] }
 0x3ad   :  { %18370 = vst [vmem:[#allocation377_spill] sm:$0xff] %v11810_v20  ;;  %18371 = vst [vmem:[#allocation57_spill] sm:$0xff] %v11813_v51  ;;  %v11832_v20 = vmul.f32 %v11829_v37, %v402_v39  ;;  %v415_v51 = vld [vmem:[#allocation6 + $0x2f8] sm:$0xff]  ;;  %v11849_v39 = vld [vmem:[#allocation3 + $0x2b0] sm:$0xff] }
 0x3ae   :  { %18372 = vst [vmem:[#allocation65_spill] sm:$0xff] %v11819_v0  ;;  %18373 = vst [vmem:[#allocation178_spill] sm:$0xff] %v11822_v57  ;;  %v11842_v0 = vmul.f32 %v11839_v21, %v404_v63  ;;  %v18559_v47 = vld [vmem:[#allocation351_spill] sm:$0xff]  ;;  %v18592_v60 = vld [vmem:[#allocation174_spill] sm:$0xff] }
 0x3af   :  { %18374 = vst [vmem:[#allocation379_spill] sm:$0xff] %v11824_v50  ;;  %18375 = vst [vmem:[#allocation378_spill] sm:$0xff] %v11827_v15  ;;  %v11847_v50 = vmul.f32 %v11844_v23, %v405_v4  ;;  %v11856_v15 = vld [vmem:[#allocation3 + $0x2b8] sm:$0xff] }
 0x3b0   :  { %18376 = vst [vmem:[#allocation385_spill] sm:$0xff] %v11829_v37  ;;  %18377 = vst [vmem:[#allocation179_spill] sm:$0xff] %v11832_v20  ;;  %v11852_v37 = vmul.f32 %v11849_v39, %v406_v55  ;;  %v418_v20 = vld [vmem:[#allocation6 + $0x310] sm:$0xff]  ;;  %v11859_v63 = vmul.f32 %v11856_v15, %v407_v35  ;;  %v11876_v35 = vld [vmem:[#allocation3 + $0x2d8] sm:$0xff] }
 0x3b1   :  { %18378 = vst [vmem:[#allocation382_spill] sm:$0xff] %v11834_v41  ;;  %18379 = vst [vmem:[#allocation380_spill] sm:$0xff] %v11837_v34  ;;  %v416_v41 = vld [vmem:[#allocation6 + $0x300] sm:$0xff]  ;;  %v417_v34 = vld [vmem:[#allocation6 + $0x308] sm:$0xff] }
 0x3b2   :  { %18380 = vst [vmem:[#allocation387_spill] sm:$0xff] %v11839_v21  ;;  %18381 = vst [vmem:[#allocation180_spill] sm:$0xff] %v11842_v0  ;;  %v11861_v21 = vld [vmem:[#allocation3 + $0x2c0] sm:$0xff]  ;;  %v18603_v61 = vld [vmem:[#allocation374_spill] sm:$0xff] }
 0x3b3   :  { %18382 = vst [vmem:[#allocation236_spill] sm:$0xff] %v11844_v23  ;;  %18383 = vst [vmem:[#allocation62_spill] sm:$0xff] %v11847_v50  ;;  %v11864_v4 = vmul.f32 %v11861_v21, %v408_v9  ;;  %v11866_v23 = vld [vmem:[#allocation3 + $0x2c8] sm:$0xff]  ;;  %v2627_v9 = vsub.f32 %v11344_v11, %v11347_v31  ;;  %v18730_v7 = vld [vmem:[#allocation91_spill] sm:$0xff] }
 0x3b4   :  { %18384 = vst [vmem:[#allocation240_spill] sm:$0xff] %v11849_v39  ;;  %18385 = vst [vmem:[#allocation181_spill] sm:$0xff] %v11852_v37  ;;  %v11869_v55 = vmul.f32 %v11866_v23, %v409_v43  ;;  %v11871_v39 = vld [vmem:[#allocation3 + $0x2d0] sm:$0xff]  ;;  %v420_v37 = vld [vmem:[#allocation6 + $0x320] sm:$0xff] }
 0x3b5   :  { %18386 = vst [vmem:[#allocation384_spill] sm:$0xff] %v11856_v15  ;;  %18387 = vst [vmem:[#allocation383_spill] sm:$0xff] %v11859_v63  ;;  %v11874_v12 = vmul.f32 %v11871_v39, %v410_v59  ;;  %v421_v50 = vld [vmem:[#allocation6 + $0x328] sm:$0xff]  ;;  %v11879_v15 = vmul.f32 %v11876_v35, %v411_v18  ;;  %v11885_v63 = vld [vmem:[#allocation3 + $0x2e0] sm:$0xff] }
 0x3b6   :  { %18388 = vst [vmem:[#allocation242_spill] sm:$0xff] %v11861_v21  ;;  %18389 = vst [vmem:[#allocation182_spill] sm:$0xff] %v11864_v4  ;;  %v2752_v21 = vadd.f32 %v2624_v32, %v10246_v29  ;;  %v18396_v43 = vld [vmem:[#allocation108_spill] sm:$0xff]  ;;  %v423_v4 = vld [vmem:[#allocation6 + $0x338] sm:$0xff]  ;;  %v11888_v59 = vmul.f32 %v11885_v63, %v412_v24 }
 0x3b7   :  { %18390 = vst [vmem:[#allocation386_spill] sm:$0xff] %v11866_v23  ;;  %18391 = vst [vmem:[#allocation239_spill] sm:$0xff] %v11869_v55  ;;  %v2753_v23 = vadd.f32 %v2625_v54, %v18396_v43  ;;  %v422_v55 = vld [vmem:[#allocation6 + $0x330] sm:$0xff]  ;;  %v11900_v29 = vld [vmem:[#allocation3 + $0x2f8] sm:$0xff] }
 0x3b8   :  { %18392 = vst [vmem:[#allocation243_spill] sm:$0xff] %v11871_v39  ;;  %18393 = vst [vmem:[#allocation183_spill] sm:$0xff] %v11874_v12  ;;  %v11890_v39 = vld [vmem:[#allocation3 + $0x2e8] sm:$0xff]  ;;  %v11895_v18 = vld [vmem:[#allocation3 + $0x2f0] sm:$0xff]  ;;  %v11903_v31 = vmul.f32 %v11900_v29, %v415_v51 }
 0x3b9   :  { %18394 = vst [vmem:[#allocation389_spill] sm:$0xff] %v11876_v35  ;;  %18395 = vst [vmem:[#allocation388_spill] sm:$0xff] %v11879_v15  ;;  %v11893_v12 = vmul.f32 %v11890_v39, %v413_v42  ;;  %v11898_v11 = vmul.f32 %v11895_v18, %v414_v58  ;;  %v424_v32 = vld [vmem:[#allocation6 + $0x340] sm:$0xff]  ;;  %v425_v54 = vld [vmem:[#allocation6 + $0x348] sm:$0xff]  ;;  %v2628_v58 = vsub.f32 %v11349_v8, %v11352_v36 }
 0x3ba   :  { %18397 = vst [vmem:[#allocation245_spill] sm:$0xff] %v11885_v63  ;;  %18398 = vst [vmem:[#allocation184_spill] sm:$0xff] %v11888_v59  ;;  %v426_v43 = vld [vmem:[#allocation6 + $0x350] sm:$0xff]  ;;  %v11905_v24 = vld [vmem:[#allocation3 + $0x300] sm:$0xff] }
 0x3bb   :  { %18399 = vst [vmem:[#allocation391_spill] sm:$0xff] %v11890_v39  ;;  %18400 = vst [vmem:[#allocation390_spill] sm:$0xff] %v11893_v12  ;;  %v11908_v63 = vmul.f32 %v11905_v24, %v416_v41  ;;  %v11910_v42 = vld [vmem:[#allocation3 + $0x308] sm:$0xff]  ;;  %v427_v51 = vld [vmem:[#allocation6 + $0x358] sm:$0xff] }
 0x3bc   :  { %18401 = vst [vmem:[#allocation397_spill] sm:$0xff] %v11895_v18  ;;  %18402 = vst [vmem:[#allocation185_spill] sm:$0xff] %v11898_v11  ;;  %v11913_v39 = vmul.f32 %v11910_v42, %v417_v34  ;;  %v18408_v18 = vld [vmem:[#allocation34_spill] sm:$0xff]  ;;  %v11933_v8 = vld [vmem:[#allocation3 + $0x328] sm:$0xff] }
 0x3bd   :  { %18403 = vst [vmem:[#allocation393_spill] sm:$0xff] %v11900_v29  ;;  %18404 = vst [vmem:[#allocation392_spill] sm:$0xff] %v11903_v31  ;;  %v2754_v11 = vadd.f32 %v2626_v6, %v18408_v18  ;;  %v428_v29 = vld [vmem:[#allocation6 + $0x360] sm:$0xff]  ;;  %v11918_v31 = vld [vmem:[#allocation3 + $0x310] sm:$0xff]  ;;  %v11936_v36 = vmul.f32 %v11933_v8, %v421_v50 }
 0x3be   :  { %18405 = vst [vmem:[#allocation248_spill] sm:$0xff] %v11905_v24  ;;  %18406 = vst [vmem:[#allocation186_spill] sm:$0xff] %v11910_v42  ;;  %v11921_v12 = vmul.f32 %v11918_v31, %v418_v20  ;;  %v11923_v59 = vld [vmem:[#allocation3 + $0x318] sm:$0xff]  ;;  %v11928_v24 = vld [vmem:[#allocation3 + $0x320] sm:$0xff] }
 0x3bf   :  { %18407 = vst [vmem:[#allocation395_spill] sm:$0xff] %v11913_v39  ;;  %18409 = vst [vmem:[#allocation394_spill] sm:$0xff] %v11918_v31  ;;  %v11926_v41 = vmul.f32 %v11923_v59, %v419_v33  ;;  %v11931_v34 = vmul.f32 %v11928_v24, %v420_v37  ;;  %v429_v6 = vld [vmem:[#allocation6 + $0x368] sm:$0xff]  ;;  %v430_v18 = vld [vmem:[#allocation6 + $0x370] sm:$0xff]  ;;  %v2629_v33 = vsub.f32 %v11354_v27, %v11357_v49 }
 0x3c0   :  { %18410 = vst [vmem:[#allocation251_spill] sm:$0xff] %v11921_v12  ;;  %18411 = vst [vmem:[#allocation187_spill] sm:$0xff] %v11923_v59  ;;  %v431_v42 = vld [vmem:[#allocation6 + $0x378] sm:$0xff]  ;;  %v11938_v20 = vld [vmem:[#allocation3 + $0x330] sm:$0xff]  ;;  %v4016_v37 = vadd.f32 %v2753_v23, %v2752_v21 }
 0x3c1   :  { %18412 = vst [vmem:[#allocation396_spill] sm:$0xff] %v11926_v41  ;;  %18413 = vst [vmem:[#allocation247_spill] sm:$0xff] %v11928_v24  ;;  %v11941_v31 = vmul.f32 %v11938_v20, %v422_v55  ;;  %v18419_v59 = vld [vmem:[#allocation109_spill] sm:$0xff]  ;;  %v432_v24 = vld [vmem:[#allocation6 + $0x380] sm:$0xff] }
 0x3c2   :  { %18414 = vst [vmem:[#allocation401_spill] sm:$0xff] %v11931_v34  ;;  %18415 = vst [vmem:[#allocation188_spill] sm:$0xff] %v11933_v8  ;;  %v2755_v41 = vadd.f32 %v2627_v9, %v18419_v59  ;;  %v433_v34 = vld [vmem:[#allocation6 + $0x388] sm:$0xff]  ;;  %v11946_v12 = vld [vmem:[#allocation3 + $0x338] sm:$0xff] }
 0x3c3   :  { %18416 = vst [vmem:[#allocation399_spill] sm:$0xff] %v11936_v36  ;;  %18417 = vst [vmem:[#allocation398_spill] sm:$0xff] %v11938_v20  ;;  %v11949_v50 = vmul.f32 %v11946_v12, %v423_v4  ;;  %v11951_v8 = vld [vmem:[#allocation3 + $0x340] sm:$0xff]  ;;  %v11956_v55 = vld [vmem:[#allocation3 + $0x348] sm:$0xff] }
 0x3c4   :  { %18418 = vst [vmem:[#allocation253_spill] sm:$0xff] %v11941_v31  ;;  %18420 = vst [vmem:[#allocation189_spill] sm:$0xff] %v11946_v12  ;;  %v11954_v36 = vmul.f32 %v11951_v8, %v424_v32  ;;  %v11959_v20 = vmul.f32 %v11956_v55, %v425_v54  ;;  %v11961_v27 = vld [vmem:[#allocation3 + $0x350] sm:$0xff]  ;;  %v435_v23 = vld [vmem:[#allocation6 + $0x398] sm:$0xff]  ;;  %v2630_v32 = vsub.f32 %v11367_v16, %v11370_v46 }
 0x3c5   :  { %18421 = vst [vmem:[#allocation400_spill] sm:$0xff] %v11949_v50  ;;  %18422 = vst [vmem:[#allocation250_spill] sm:$0xff] %v11951_v8  ;;  %v11964_v49 = vmul.f32 %v11961_v27, %v426_v43  ;;  %v434_v21 = vld [vmem:[#allocation6 + $0x390] sm:$0xff]  ;;  %v436_v9 = vld [vmem:[#allocation6 + $0x3a0] sm:$0xff]  ;;  %v4017_v54 = vadd.f32 %v4016_v37, %v2754_v11 }
 0x3c6   :  { %18423 = vst [vmem:[#allocation255_spill] sm:$0xff] %v11954_v36  ;;  %18424 = vst [vmem:[#allocation190_spill] sm:$0xff] %v11956_v55  ;;  %v11966_v4 = vld [vmem:[#allocation3 + $0x358] sm:$0xff]  ;;  %v18430_v8 = vld [vmem:[#allocation313_spill] sm:$0xff] }
 0x3c7   :  { %18425 = vst [vmem:[#allocation402_spill] sm:$0xff] %v11959_v20  ;;  %18426 = vst [vmem:[#allocation403_spill] sm:$0xff] %v11961_v27  ;;  %v11969_v59 = vmul.f32 %v11966_v4, %v427_v51  ;;  %v2756_v36 = vadd.f32 %v2628_v58, %v18430_v8  ;;  %v437_v55 = vld [vmem:[#allocation6 + $0x3a8] sm:$0xff]  ;;  %v438_v20 = vld [vmem:[#allocation6 + $0x3b0] sm:$0xff] }
 0x3c8   :  { %18427 = vst [vmem:[#allocation410_spill] sm:$0xff] %v11964_v49  ;;  %18428 = vst [vmem:[#allocation191_spill] sm:$0xff] %v11966_v4  ;;  %v11974_v12 = vld [vmem:[#allocation3 + $0x360] sm:$0xff]  ;;  %v11979_v27 = vld [vmem:[#allocation3 + $0x368] sm:$0xff] }
 0x3c9   :  { %18429 = vst [vmem:[#allocation404_spill] sm:$0xff] %v11969_v59  ;;  %18431 = vst [vmem:[#allocation405_spill] sm:$0xff] %v11974_v12  ;;  %v11977_v43 = vmul.f32 %v11974_v12, %v428_v29  ;;  %v11982_v49 = vmul.f32 %v11979_v27, %v429_v6  ;;  %v11984_v51 = vld [vmem:[#allocation3 + $0x370] sm:$0xff]  ;;  %v11989_v16 = vld [vmem:[#allocation3 + $0x378] sm:$0xff]  ;;  %v2631_v6 = vsub.f32 %v11372_v56, %v11375_v19 }
 0x3ca   :  { %18433 = vst [vmem:[#allocation192_spill] sm:$0xff] %v11979_v27  ;;  %18435 = vst [vmem:[#allocation406_spill] sm:$0xff] %v11984_v51  ;;  %v11987_v4 = vmul.f32 %v11984_v51, %v430_v18  ;;  %v11992_v46 = vmul.f32 %v11989_v16, %v431_v42  ;;  %v439_v11 = vld [vmem:[#allocation6 + $0x3b8] sm:$0xff]  ;;  %v440_v58 = vld [vmem:[#allocation6 + $0x3c0] sm:$0xff]  ;;  %v4018_v18 = vadd.f32 %v4017_v54, %v2755_v41 }
 0x3cb   :  { %18432 = vst [vmem:[#allocation258_spill] sm:$0xff] %v11977_v43  ;;  %18434 = vst [vmem:[#allocation407_spill] sm:$0xff] %v11982_v49  ;;  %v441_v8 = vld [vmem:[#allocation6 + $0x3c8] sm:$0xff]  ;;  %v11994_v29 = vld [vmem:[#allocation3 + $0x380] sm:$0xff] }
 0x3cc   :  { %18436 = vst [vmem:[#allocation259_spill] sm:$0xff] %v11987_v4  ;;  %18437 = vst [vmem:[#allocation193_spill] sm:$0xff] %v11989_v16  ;;  %v11997_v37 = vmul.f32 %v11994_v29, %v432_v24  ;;  %v18441_v27 = vld [vmem:[#allocation110_spill] sm:$0xff]  ;;  %v12002_v12 = vld [vmem:[#allocation3 + $0x388] sm:$0xff] }
 0x3cd   :  { %18438 = vst [vmem:[#allocation409_spill] sm:$0xff] %v11992_v46  ;;  %18439 = vst [vmem:[#allocation408_spill] sm:$0xff] %v11994_v29  ;;  %v2757_v49 = vadd.f32 %v2629_v33, %v18441_v27  ;;  %v442_v51 = vld [vmem:[#allocation6 + $0x3d0] sm:$0xff]  ;;  %v443_v4 = vld [vmem:[#allocation6 + $0x3d8] sm:$0xff]  ;;  %v12005_v42 = vmul.f32 %v12002_v12, %v433_v34 }
 0x3ce   :  { %18440 = vst [vmem:[#allocation261_spill] sm:$0xff] %v11997_v37  ;;  %18442 = vst [vmem:[#allocation194_spill] sm:$0xff] %v12002_v12  ;;  %v12007_v16 = vld [vmem:[#allocation3 + $0x390] sm:$0xff]  ;;  %v12012_v24 = vld [vmem:[#allocation3 + $0x398] sm:$0xff] }
 0x3cf   :  { %18443 = vst [vmem:[#allocation411_spill] sm:$0xff] %v12005_v42  ;;  %18444 = vst [vmem:[#allocation256_spill] sm:$0xff] %v12007_v16  ;;  %v12010_v46 = vmul.f32 %v12007_v16, %v434_v21  ;;  %v12015_v29 = vmul.f32 %v12012_v24, %v435_v23  ;;  %v12017_v56 = vld [vmem:[#allocation3 + $0x3a0] sm:$0xff]  ;;  %v445_v33 = vld [vmem:[#allocation6 + $0x3e8] sm:$0xff]  ;;  %v2632_v21 = vsub.f32 %v11377_v13, %v11380_v45 }
 0x3d0   :  { %18446 = vst [vmem:[#allocation195_spill] sm:$0xff] %v12012_v24  ;;  %18448 = vst [vmem:[#allocation412_spill] sm:$0xff] %v12017_v56  ;;  %v12020_v19 = vmul.f32 %v12017_v56, %v436_v9  ;;  %v444_v41 = vld [vmem:[#allocation6 + $0x3e0] sm:$0xff]  ;;  %v446_v27 = vld [vmem:[#allocation6 + $0x3f0] sm:$0xff]  ;;  %v4019_v23 = vadd.f32 %v4018_v18, %v2756_v36 }
 0x3d1   :  { %18445 = vst [vmem:[#allocation263_spill] sm:$0xff] %v12010_v46  ;;  %18447 = vst [vmem:[#allocation413_spill] sm:$0xff] %v12015_v29  ;;  %v12022_v34 = vld [vmem:[#allocation3 + $0x3a8] sm:$0xff]  ;;  %v447_v24 = vld [vmem:[#allocation6 + $0x3f8] sm:$0xff] }
 0x3d2   :  { %18449 = vst [vmem:[#allocation264_spill] sm:$0xff] %v12020_v19  ;;  %18450 = vst [vmem:[#allocation196_spill] sm:$0xff] %v12022_v34  ;;  %v12025_v54 = vmul.f32 %v12022_v34, %v437_v55  ;;  %v18452_v16 = vld [vmem:[#allocation36_spill] sm:$0xff]  ;;  %v12030_v29 = vld [vmem:[#allocation3 + $0x3b0] sm:$0xff]  ;;  %v4020_v18 = vadd.f32 %v4019_v23, %v2757_v49 }
 0x3d3   :  { %v2758_v46 = vadd.f32 %v2630_v32, %v18452_v16  ;;  %18453 = vst [vmem:[#allocation415_spill] sm:$0xff] %v12030_v29  ;;  %v12033_v9 = vmul.f32 %v12030_v29, %v438_v20  ;;  %v12035_v56 = vld [vmem:[#allocation3 + $0x3b8] sm:$0xff]  ;;  %v12040_v12 = vld [vmem:[#allocation3 + $0x3c0] sm:$0xff]  ;;  %v12045_v13 = vld [vmem:[#allocation3 + $0x3c8] sm:$0xff]  ;;  %v2633_v32 = vsub.f32 %v11382_v28, %v11385_v2 }
 0x3d4   :  { %18451 = vst [vmem:[#allocation414_spill] sm:$0xff] %v12025_v54  ;;  %18455 = vst [vmem:[#allocation197_spill] sm:$0xff] %v12035_v56  ;;  %v12038_v19 = vmul.f32 %v12035_v56, %v439_v11  ;;  %v12043_v55 = vmul.f32 %v12040_v12, %v440_v58  ;;  %v12048_v45 = vmul.f32 %v12045_v13, %v441_v8  ;;  %v12050_v36 = vld [vmem:[#allocation3 + $0x3d0] sm:$0xff]  ;;  %v18463_v16 = vld [vmem:[#allocation47_spill] sm:$0xff] }
 0x3d5   :  { %18454 = vst [vmem:[#allocation420_spill] sm:$0xff] %v12033_v9  ;;  %18457 = vst [vmem:[#allocation416_spill] sm:$0xff] %v12040_v12  ;;  %v12053_v20 = vmul.f32 %v12050_v36, %v442_v51  ;;  %v2759_v11 = vadd.f32 %v2631_v6, %v18463_v16  ;;  %v12058_v56 = vld [vmem:[#allocation3 + $0x3d8] sm:$0xff]  ;;  %v12063_v12 = vld [vmem:[#allocation3 + $0x3e0] sm:$0xff]  ;;  %v4021_v23 = vadd.f32 %v4020_v18, %v2758_v46 }
 0x3d6   :  { %18456 = vst [vmem:[#allocation417_spill] sm:$0xff] %v12038_v19  ;;  %18458 = vst [vmem:[#allocation269_spill] sm:$0xff] %v12043_v55  ;;  %v12061_v58 = vmul.f32 %v12058_v56, %v443_v4  ;;  %v12066_v8 = vmul.f32 %v12063_v12, %v444_v41  ;;  %v12078_v28 = vld [vmem:[#allocation3 + $0x3f8] sm:$0xff]  ;;  %v2634_v4 = vsub.f32 %v11395_v53, %v11398_v22  ;;  %v18513_v9 = vld [vmem:[#allocation305_spill] sm:$0xff] }
 0x3d7   :  { %18459 = vst [vmem:[#allocation198_spill] sm:$0xff] %v12045_v13  ;;  %18460 = vst [vmem:[#allocation419_spill] sm:$0xff] %v12048_v45  ;;  %v12068_v13 = vld [vmem:[#allocation3 + $0x3e8] sm:$0xff]  ;;  %v12081_v49 = vmul.f32 %v12078_v28, %v447_v24  ;;  %v18474_v6 = vld [vmem:[#allocation314_spill] sm:$0xff]  ;;  %v2636_v16 = vsub.f32 %v11405_v17, %v11408_v52  ;;  %v4022_v18 = vadd.f32 %v4021_v23, %v2759_v11 }
 0x3d8   :  { %18461 = vst [vmem:[#allocation418_spill] sm:$0xff] %v12050_v36  ;;  %18462 = vst [vmem:[#allocation271_spill] sm:$0xff] %v12053_v20  ;;  %v12071_v51 = vmul.f32 %v12068_v13, %v445_v33  ;;  %v12073_v36 = vld [vmem:[#allocation3 + $0x3f0] sm:$0xff]  ;;  %v2760_v41 = vadd.f32 %v2632_v21, %v18474_v6  ;;  %v2635_v33 = vsub.f32 %v11400_v14, %v11403_v25  ;;  %v18476_v24 = vld [vmem:[#allocation339_spill] sm:$0xff] }
 0x3d9   :  { %18464 = vst [vmem:[#allocation199_spill] sm:$0xff] %v12058_v56  ;;  %18465 = vst [vmem:[#allocation266_spill] sm:$0xff] %v12061_v58  ;;  %v12076_v2 = vmul.f32 %v12073_v36, %v446_v27  ;;  %v2637_v27 = vsub.f32 %v11410_v5, %v11413_v1  ;;  %v18479_v22 = vld [vmem:[#allocation143_spill] sm:$0xff]  ;;  %v18481_v6 = vld [vmem:[#allocation90_spill] sm:$0xff] }
 0x3da   :  { %18466 = vst [vmem:[#allocation421_spill] sm:$0xff] %v12063_v12  ;;  %18467 = vst [vmem:[#allocation272_spill] sm:$0xff] %v12066_v8  ;;  %v18480_v21 = vld [vmem:[#allocation111_spill] sm:$0xff]  ;;  %v18482_v25 = vld [vmem:[#allocation30_spill] sm:$0xff]  ;;  %v4023_v23 = vadd.f32 %v4022_v18, %v2760_v41 }
 0x3db   :  { %18468 = vst [vmem:[#allocation200_spill] sm:$0xff] %v12068_v13  ;;  %18469 = vst [vmem:[#allocation267_spill] sm:$0xff] %v12071_v51  ;;  %v18478_v13 = vld [vmem:[#allocation102_spill] sm:$0xff]  ;;  %v2761_v46 = vadd.f32 %v2633_v32, %v18480_v21  ;;  %v2641_v14 = vsub.f32 %v18482_v25, %v18481_v6  ;;  %v18483_v51 = vld [vmem:[#allocation103_spill] sm:$0xff] }
 0x3dc   :  { %18470 = vst [vmem:[#allocation422_spill] sm:$0xff] %v12073_v36  ;;  %18471 = vst [vmem:[#allocation273_spill] sm:$0xff] %v12076_v2  ;;  %v18475_v36 = vld [vmem:[#allocation85_spill] sm:$0xff]  ;;  %v2640_v53 = vsub.f32 %v18479_v22, %v18478_v13  ;;  %v18484_v52 = vld [vmem:[#allocation144_spill] sm:$0xff] }
 0x3dd   :  { %18472 = vst [vmem:[#allocation201_spill] sm:$0xff] %v12078_v28  ;;  %18473 = vst [vmem:[#allocation424_spill] sm:$0xff] %v12081_v49  ;;  %v2638_v2 = vsub.f32 %v18475_v36, %v11426_v30  ;;  %v18477_v28 = vld [vmem:[#allocation28_spill] sm:$0xff]  ;;  %v18486_v1 = vld [vmem:[#allocation287_spill] sm:$0xff]  ;;  %v4024_v18 = vadd.f32 %v4023_v23, %v2761_v46 }
 0x3de   :  { %v2639_v49 = vsub.f32 %v18477_v28, %v18476_v24  ;;  %v18485_v12 = vld [vmem:[#allocation340_spill] sm:$0xff]  ;;  %v18488_v30 = vld [vmem:[#allocation145_spill] sm:$0xff]  ;;  %v18490_v28 = vld [vmem:[#allocation290_spill] sm:$0xff] }
 0x3df   :  { %v18487_v8 = vld [vmem:[#allocation308_spill] sm:$0xff]  ;;  %v18491_v58 = vld [vmem:[#allocation35_spill] sm:$0xff]  ;;  %v18492_v13 = vld [vmem:[#allocation146_spill] sm:$0xff] }
 0x3e0   :  { %v18489_v56 = vld [vmem:[#allocation92_spill] sm:$0xff]  ;;  %v18493_v32 = vld [vmem:[#allocation17_spill] sm:$0xff]  ;;  %v18494_v21 = vld [vmem:[#allocation26_spill] sm:$0xff] }
 0x3e1   :  { %v2762_v11 = vadd.f32 %v2634_v4, %v18493_v32  ;;  %v18495_v6 = vld [vmem:[#allocation292_spill] sm:$0xff]  ;;  %v18497_v17 = vld [vmem:[#allocation147_spill] sm:$0xff]  ;;  %v18505_v22 = vld [vmem:[#allocation149_spill] sm:$0xff] }
 0x3e2   :  { %v18506_v4 = vld [vmem:[#allocation60_spill] sm:$0xff]  ;;  %v18508_v25 = vld [vmem:[#allocation150_spill] sm:$0xff]  ;;  %v18517_v37 = vld [vmem:[#allocation45_spill] sm:$0xff] }
 0x3e3   :  { %v2763_v41 = vadd.f32 %v2635_v33, %v18506_v4  ;;  %v18518_v33 = vld [vmem:[#allocation317_spill] sm:$0xff]  ;;  %v4025_v23 = vadd.f32 %v4024_v18, %v2762_v11  ;;  %v18521_v20 = vld [vmem:[#allocation310_spill] sm:$0xff]  ;;  %v18531_v43 = vld [vmem:[#allocation307_spill] sm:$0xff] }
 0x3e4   :  { %v2764_v46 = vadd.f32 %v2636_v16, %v18518_v33  ;;  %v18528_v42 = vld [vmem:[#allocation349_spill] sm:$0xff]  ;;  %v18529_v16 = vld [vmem:[#allocation112_spill] sm:$0xff]  ;;  %v18540_v24 = vld [vmem:[#allocation354_spill] sm:$0xff] }
 0x3e5   :  { %v2765_v11 = vadd.f32 %v2637_v27, %v18529_v16  ;;  %v4026_v18 = vadd.f32 %v4025_v23, %v2763_v41  ;;  %v18541_v27 = vld [vmem:[#allocation42_spill] sm:$0xff]  ;;  %v18552_v54 = vld [vmem:[#allocation357_spill] sm:$0xff]  ;;  %v18576_v36 = vld [vmem:[#allocation40_spill] sm:$0xff] }
 0x3e6   :  { %v2766_v41 = vadd.f32 %v2638_v2, %v18541_v27  ;;  %v18553_v2 = vld [vmem:[#allocation113_spill] sm:$0xff]  ;;  %v18567_v16 = vld [vmem:[#allocation358_spill] sm:$0xff]  ;;  %v18579_v27 = vld [vmem:[#allocation364_spill] sm:$0xff] }
 0x3e7   :  { %v4027_v23 = vadd.f32 %v4026_v18, %v2764_v46  ;;  %v2767_v46 = vadd.f32 %v2639_v49, %v18553_v2  ;;  %v18564_v34 = vld [vmem:[#allocation69_spill] sm:$0xff]  ;;  %v18574_v5 = vld [vmem:[#allocation362_spill] sm:$0xff]  ;;  %v18590_v2 = vld [vmem:[#allocation44_spill] sm:$0xff] }
 0x3e8   :  { %v18565_v49 = vld [vmem:[#allocation309_spill] sm:$0xff]  ;;  %v18591_v33 = vld [vmem:[#allocation368_spill] sm:$0xff]  ;;  %v18593_v4 = vld [vmem:[#allocation375_spill] sm:$0xff] }
 0x3e9   :  { %v4028_v18 = vadd.f32 %v4027_v23, %v2765_v11  ;;  %v2768_v11 = vadd.f32 %v2640_v53, %v18565_v49  ;;  %v18577_v53 = vld [vmem:[#allocation67_spill] sm:$0xff]  ;;  %v18584_v45 = vld [vmem:[#allocation53_spill] sm:$0xff]  ;;  %v18615_v32 = vld [vmem:[#allocation382_spill] sm:$0xff] }
 0x3ea   :  { %v18578_v49 = vld [vmem:[#allocation363_spill] sm:$0xff]  ;;  %v18604_v59 = vld [vmem:[#allocation381_spill] sm:$0xff]  ;;  %v18618_v44 = vld [vmem:[#allocation236_spill] sm:$0xff] }
 0x3eb   :  { %v4029_v23 = vadd.f32 %v4028_v18, %v2766_v41  ;;  %v2769_v41 = vadd.f32 %v2641_v14, %v18577_v53  ;;  %v18588_v14 = vld [vmem:[#allocation37_spill] sm:$0xff]  ;;  %v18616_v26 = vld [vmem:[#allocation387_spill] sm:$0xff]  ;;  %v18628_v62 = vld [vmem:[#allocation386_spill] sm:$0xff] }
 0x3ec   :  { %v18629_v0 = vld [vmem:[#allocation183_spill] sm:$0xff]  ;;  %v18640_v38 = vld [vmem:[#allocation393_spill] sm:$0xff]  ;;  %v18641_v29 = vld [vmem:[#allocation248_spill] sm:$0xff] }
 0x3ed   :  { %v4030_v18 = vadd.f32 %v4029_v23, %v2767_v46  ;;  %v18589_v46 = vsub.f32 %v18484_v52, %v18483_v51  ;;  %v18600_v52 = vld [vmem:[#allocation114_spill] sm:$0xff]  ;;  %v18630_v57 = vld [vmem:[#allocation243_spill] sm:$0xff]  ;;  %v18652_v15 = vld [vmem:[#allocation188_spill] sm:$0xff] }
 0x3ee   :  { %v18718_v51 = vld [vmem:[#allocation315_spill] sm:$0xff]  ;;  %v18721_v39 = vld [vmem:[#allocation78_spill] sm:$0xff] }
 0x3ef   :  { %v2770_v23 = vadd.f32 %v18589_v46, %v18588_v14  ;;  %v4031_v53 = vadd.f32 %v4030_v18, %v2768_v11  ;;  %v18601_v11 = vsub.f32 %v18486_v1, %v18485_v12  ;;  %v18602_v46 = vld [vmem:[#allocation373_spill] sm:$0xff]  ;;  %v18612_v1 = vld [vmem:[#allocation46_spill] sm:$0xff]  ;;  %v18722_v50 = vld [vmem:[#allocation107_spill] sm:$0xff] }
 0x3f1   :  { %v2771_v18 = vadd.f32 %v18601_v11, %v18600_v52  ;;  %v4032_v14 = vadd.f32 %v4031_v53, %v2769_v41  ;;  %v18613_v41 = vsub.f32 %v18488_v30, %v18487_v8  ;;  %v18614_v11 = vld [vmem:[#allocation380_spill] sm:$0xff] }
 0x3f2   :  { %v18625_v30 = vld [vmem:[#allocation72_spill] sm:$0xff] }
 0x3f3   :  { %v2772_v53 = vadd.f32 %v18613_v41, %v18612_v1  ;;  %v4033_v52 = vadd.f32 %v4032_v14, %v2770_v23  ;;  %v18626_v23 = vsub.f32 %v18490_v28, %v18489_v56  ;;  %v18627_v41 = vld [vmem:[#allocation239_spill] sm:$0xff]  ;;  %v18736_v8 = vld [vmem:[#allocation152_spill] sm:$0xff] }
 0x3f4   :  { %v18637_v28 = vld [vmem:[#allocation43_spill] sm:$0xff] }
 0x3f5   :  { %v2773_v14 = vadd.f32 %v18626_v23, %v18625_v30  ;;  %v4034_v1 = vadd.f32 %v4033_v52, %v2771_v18  ;;  %v18638_v18 = vsub.f32 %v18492_v13, %v18491_v58  ;;  %v18639_v23 = vld [vmem:[#allocation392_spill] sm:$0xff]  ;;  %v18649_v13 = vld [vmem:[#allocation115_spill] sm:$0xff] }
 0x3f6   :  { %v18729_v56 = vld [vmem:[#allocation151_spill] sm:$0xff] }
 0x3f7   :  { %v2774_v52 = vadd.f32 %v18638_v18, %v18637_v28  ;;  %v4035_v30 = vadd.f32 %v4034_v1, %v2772_v53  ;;  %v18650_v53 = vsub.f32 %v18495_v6, %v18494_v21  ;;  %v18661_v6 = vld [vmem:[#allocation24_spill] sm:$0xff]  ;;  %v18719_v18 = vld [vmem:[#allocation14_spill] sm:$0xff]  ;;  %v18731_v3 = vsub.f32 %v18729_v56, %v18730_v7  ;;  %v18732_v21 = vld [vmem:[#allocation51_spill] sm:$0xff] }
 0x3f8   :  { %v18743_v7 = vld [vmem:[#allocation154_spill] sm:$0xff]  ;;  %v18746_v56 = vld [vmem:[#allocation52_spill] sm:$0xff] }
 0x3f9   :  { %v2775_v1 = vadd.f32 %v18650_v53, %v18649_v13  ;;  %v4036_v28 = vadd.f32 %v4035_v30, %v2773_v14  ;;  %v18662_v14 = vld [vmem:[#allocation21_spill] sm:$0xff]  ;;  %v2783_v35 = vadd.f32 %v18731_v3, %v18728_v10  ;;  %v18744_v3 = vld [vmem:[#allocation39_spill] sm:$0xff] }
 0x3fa   :  { %v18663_v30 = vsub.f32 %v18497_v17, %v18662_v14  ;;  %v18720_v17 = vsub.f32 %v18505_v22, %v18719_v18  ;;  %v18733_v22 = vld [vmem:[#allocation342_spill] sm:$0xff]  ;;  %v18745_v10 = vsub.f32 %v18743_v7, %v18744_v3  ;;  %v18757_v7 = vld [vmem:[#allocation119_spill] sm:$0xff]  ;;  %v18758_v3 = vld [vmem:[#allocation97_spill] sm:$0xff] }
 0x3fb   :  { %v4037_v53 = vadd.f32 %v4036_v28, %v2774_v52  ;;  %v18677_v52 = vld [vmem:[#allocation295_spill] sm:$0xff]  ;;  %v18678_v28 = vld [vmem:[#allocation94_spill] sm:$0xff] }
 0x3fc   :  { %v2776_v13 = vadd.f32 %v18663_v30, %v18661_v6  ;;  %v18676_v6 = vld [vmem:[#allocation75_spill] sm:$0xff]  ;;  %v18679_v14 = vsub.f32 %v18677_v52, %v18678_v28 }
 0x3fd   :  { %v4038_v31 = vadd.f32 %v4037_v53, %v2775_v1  ;;  %v18693_v1 = vld [vmem:[#allocation148_spill] sm:$0xff]  ;;  %v18694_v53 = vld [vmem:[#allocation105_spill] sm:$0xff] }
 0x3fe   :  { %v2777_v30 = vadd.f32 %v18679_v14, %v18676_v6  ;;  %v18692_v6 = vld [vmem:[#allocation27_spill] sm:$0xff]  ;;  %v18695_v28 = vsub.f32 %v18693_v1, %v18694_v53  ;;  %v2780_v1 = vadd.f32 %v18720_v17, %v18718_v51  ;;  %v18734_v51 = vsub.f32 %v18513_v9, %v18733_v22  ;;  %v18735_v17 = vld [vmem:[#allocation50_spill] sm:$0xff]  ;;  %v18747_v9 = vld [vmem:[#allocation49_spill] sm:$0xff] }
 0x3ff   :  { %v4039_v48 = vadd.f32 %v4038_v31, %v2776_v13  ;;  %v18709_v31 = vld [vmem:[#allocation298_spill] sm:$0xff]  ;;  %v18710_v13 = vld [vmem:[#allocation41_spill] sm:$0xff]  ;;  %v18750_v22 = vld [vmem:[#allocation155_spill] sm:$0xff] }
 0x400   :  { %v2778_v14 = vadd.f32 %v18695_v28, %v18692_v6  ;;  %v18708_v6 = vld [vmem:[#allocation116_spill] sm:$0xff]  ;;  %v18711_v53 = vsub.f32 %v18709_v31, %v18710_v13  ;;  %v18723_v31 = vsub.f32 %v18508_v25, %v18722_v50  ;;  %v18726_v13 = vld [vmem:[#allocation341_spill] sm:$0xff]  ;;  %v2784_v18 = vadd.f32 %v18734_v51, %v18732_v21  ;;  %v18737_v50 = vld [vmem:[#allocation306_spill] sm:$0xff] }
 0x401   :  { %v4040_v19 = vadd.f32 %v4039_v48, %v2777_v30  ;;  %v18724_v48 = vld [vmem:[#allocation64_spill] sm:$0xff]  ;;  %v18725_v30 = vld [vmem:[#allocation303_spill] sm:$0xff]  ;;  %v18748_v21 = vsub.f32 %v18521_v20, %v18747_v9  ;;  %v18762_v9 = vld [vmem:[#allocation157_spill] sm:$0xff] }
 0x402   :  { %v2779_v28 = vadd.f32 %v18711_v53, %v18708_v6  ;;  %v2781_v6 = vadd.f32 %v18723_v31, %v18721_v39  ;;  %v18727_v53 = vsub.f32 %v18725_v30, %v18726_v13  ;;  %v18738_v39 = vsub.f32 %v18736_v8, %v18737_v50  ;;  %v18739_v31 = vld [vmem:[#allocation321_spill] sm:$0xff]  ;;  %v18749_v8 = vld [vmem:[#allocation54_spill] sm:$0xff]  ;;  %v18751_v51 = vld [vmem:[#allocation312_spill] sm:$0xff] }
 0x403   :  { %v4041_v58 = vadd.f32 %v4040_v19, %v2778_v14  ;;  %v18740_v30 = vld [vmem:[#allocation153_spill] sm:$0xff]  ;;  %v12409_v14 = vadd.f32 %v18748_v21, %v18746_v56  ;;  %v18761_v56 = vld [vmem:[#allocation318_spill] sm:$0xff]  ;;  %v18763_v21 = vsub.f32 %v18528_v42, %v18762_v9  ;;  %v18778_v42 = vld [vmem:[#allocation235_spill] sm:$0xff] }
 0x404   :  { %v2782_v55 = vadd.f32 %v18727_v53, %v18724_v48  ;;  %v2785_v25 = vadd.f32 %v18738_v39, %v18735_v17  ;;  %v18741_v48 = vsub.f32 %v18517_v37, %v18740_v30  ;;  %v18742_v53 = vld [vmem:[#allocation118_spill] sm:$0xff]  ;;  %v18752_v17 = vsub.f32 %v18750_v22, %v18751_v51  ;;  %v18780_v9 = vld [vmem:[#allocation160_spill] sm:$0xff] }
 0x405   :  { %v12403_v19 = vadd.f32 %v18745_v10, %v18742_v53  ;;  %v18753_v37 = vld [vmem:[#allocation322_spill] sm:$0xff]  ;;  %v4042_v53 = vadd.f32 %v4041_v58, %v2779_v28  ;;  %v18759_v10 = vld [vmem:[#allocation316_spill] sm:$0xff]  ;;  %v12433_v22 = vadd.f32 %v18763_v21, %v18761_v56  ;;  %v18770_v58 = vld [vmem:[#allocation343_spill] sm:$0xff] }
 0x406   :  { %v12397_v13 = vadd.f32 %v18741_v48, %v18739_v31  ;;  %v12415_v50 = vadd.f32 %v18752_v17, %v18749_v8  ;;  %v18754_v39 = vld [vmem:[#allocation58_spill] sm:$0xff]  ;;  %v18755_v31 = vld [vmem:[#allocation156_spill] sm:$0xff]  ;;  %v18760_v52 = vsub.f32 %v18758_v3, %v18759_v10  ;;  %v18771_v28 = vld [vmem:[#allocation159_spill] sm:$0xff] }
 0x407   :  { %v18756_v30 = vsub.f32 %v18754_v39, %v18755_v31  ;;  %18764 = vst [vmem:[#allocation423_spill] sm:$0xff] %v12433_v22  ;;  %v18765_v8 = vld [vmem:[#allocation88_spill] sm:$0xff]  ;;  %v18766_v51 = vld [vmem:[#allocation158_spill] sm:$0xff]  ;;  %v18772_v31 = vsub.f32 %v18770_v58, %v18771_v28  ;;  %v18779_v56 = vld [vmem:[#allocation353_spill] sm:$0xff] }
 0x408   :  { %v12427_v20 = vadd.f32 %v18760_v52, %v18757_v7  ;;  %v18767_v17 = vsub.f32 %v18531_v43, %v18766_v51  ;;  %v18773_v52 = vld [vmem:[#allocation120_spill] sm:$0xff]  ;;  %v18781_v21 = vsub.f32 %v18779_v56, %v18780_v9  ;;  %v18783_v43 = vld [vmem:[#allocation29_spill] sm:$0xff]  ;;  %v18785_v51 = vld [vmem:[#allocation327_spill] sm:$0xff] }
 0x409   :  { %v12421_v48 = vadd.f32 %v18756_v30, %v18753_v37  ;;  %v18769_v37 = vld [vmem:[#allocation324_spill] sm:$0xff]  ;;  %v18787_v58 = vld [vmem:[#allocation121_spill] sm:$0xff]  ;;  %v18796_v9 = vld [vmem:[#allocation63_spill] sm:$0xff] }
 0x40a   :  { %v12439_v39 = vadd.f32 %v18767_v17, %v18765_v8  ;;  %v12445_v30 = vadd.f32 %v18772_v31, %v18769_v37  ;;  %v18774_v7 = vld [vmem:[#allocation344_spill] sm:$0xff]  ;;  %v12457_v22 = vadd.f32 %v18781_v21, %v18778_v42  ;;  %v18784_v8 = vld [vmem:[#allocation345_spill] sm:$0xff]  ;;  %v4043_v37 = vadd.f32 %v4042_v53, %v2780_v1  ;;  %v18795_v42 = vld [vmem:[#allocation326_spill] sm:$0xff] }
 0x40b   :  { %v18775_v3 = vld [vmem:[#allocation320_spill] sm:$0xff]  ;;  %v18786_v17 = vsub.f32 %v18784_v8, %v18785_v51  ;;  %v18788_v28 = vld [vmem:[#allocation161_spill] sm:$0xff]  ;;  %v18797_v21 = vld [vmem:[#allocation162_spill] sm:$0xff] }
 0x40c   :  { %18768 = vst [vmem:[#allocation13_spill] sm:$0xff] %v12439_v39  ;;  %v18776_v10 = vsub.f32 %v18774_v7, %v18775_v3  ;;  %18782 = vst [vmem:[#allocation426_spill] sm:$0xff] %v12457_v22  ;;  %v18789_v31 = vsub.f32 %v18540_v24, %v18788_v28  ;;  %v18792_v3 = vld [vmem:[#allocation301_spill] sm:$0xff]  ;;  %v18798_v22 = vsub.f32 %v18796_v9, %v18797_v21  ;;  %v18800_v1 = vld [vmem:[#allocation347_spill] sm:$0xff] }
 0x40d   :  { %v12463_v39 = vadd.f32 %v18786_v17, %v18783_v43  ;;  %v18799_v43 = vld [vmem:[#allocation122_spill] sm:$0xff]  ;;  %v18801_v53 = vld [vmem:[#allocation101_spill] sm:$0xff]  ;;  %v18804_v24 = vld [vmem:[#allocation55_spill] sm:$0xff] }
 0x40e   :  { %v12451_v12 = vadd.f32 %v18776_v10, %v18773_v52  ;;  %v12469_v7 = vadd.f32 %v18789_v31, %v18787_v58  ;;  %v18791_v52 = vld [vmem:[#allocation237_spill] sm:$0xff]  ;;  %v18793_v10 = vld [vmem:[#allocation330_spill] sm:$0xff]  ;;  %v12481_v8 = vadd.f32 %v18798_v22, %v18795_v42  ;;  %v18802_v51 = vsub.f32 %v18800_v1, %v18801_v53  ;;  %v18805_v58 = vld [vmem:[#allocation356_spill] sm:$0xff] }
 0x40f   :  { %v18806_v28 = vld [vmem:[#allocation163_spill] sm:$0xff]  ;;  %v18812_v22 = vld [vmem:[#allocation276_spill] sm:$0xff]  ;;  %v18816_v53 = vld [vmem:[#allocation350_spill] sm:$0xff] }
 0x410   :  { %18777 = vst [vmem:[#allocation202_spill] sm:$0xff] %v12451_v12  ;;  %18790 = vst [vmem:[#allocation425_spill] sm:$0xff] %v12469_v7  ;;  %v18794_v12 = vsub.f32 %v18792_v3, %v18793_v10  ;;  %v12487_v17 = vadd.f32 %v18802_v51, %v18799_v43  ;;  %v18807_v31 = vsub.f32 %v18805_v58, %v18806_v28  ;;  %v18813_v42 = vld [vmem:[#allocation164_spill] sm:$0xff]  ;;  %v18815_v1 = vld [vmem:[#allocation123_spill] sm:$0xff] }
 0x411   :  { %v18814_v9 = vsub.f32 %v18552_v54, %v18813_v42  ;;  %v4044_v43 = vadd.f32 %v4043_v37, %v2781_v6  ;;  %v18817_v51 = vld [vmem:[#allocation93_spill] sm:$0xff]  ;;  %v18821_v28 = vld [vmem:[#allocation66_spill] sm:$0xff]  ;;  %v18828_v6 = vld [vmem:[#allocation360_spill] sm:$0xff] }
 0x412   :  { %v12475_v56 = vadd.f32 %v18794_v12, %v18791_v52  ;;  %18803 = vst [vmem:[#allocation432_spill] sm:$0xff] %v12487_v17  ;;  %v12493_v7 = vadd.f32 %v18807_v31, %v18804_v24  ;;  %v18809_v12 = vld [vmem:[#allocation238_spill] sm:$0xff]  ;;  %v18818_v17 = vsub.f32 %v18816_v53, %v18817_v51  ;;  %v18820_v24 = vld [vmem:[#allocation319_spill] sm:$0xff]  ;;  %v18822_v31 = vld [vmem:[#allocation165_spill] sm:$0xff] }
 0x413   :  { %v18810_v52 = vld [vmem:[#allocation106_spill] sm:$0xff]  ;;  %v12505_v21 = vadd.f32 %v18814_v9, %v18812_v22  ;;  %v18827_v22 = vld [vmem:[#allocation20_spill] sm:$0xff] }
 0x414   :  { %18808 = vst [vmem:[#allocation203_spill] sm:$0xff] %v12493_v7  ;;  %v18811_v3 = vsub.f32 %v18550_v40, %v18810_v52  ;;  %v12511_v58 = vadd.f32 %v18818_v17, %v18815_v1  ;;  %v18823_v7 = vsub.f32 %v18821_v28, %v18822_v31  ;;  %v18825_v52 = vld [vmem:[#allocation346_spill] sm:$0xff]  ;;  %v18831_v17 = vld [vmem:[#allocation124_spill] sm:$0xff]  ;;  %v18832_v1 = vld [vmem:[#allocation355_spill] sm:$0xff] }
 0x415   :  { %v18829_v37 = vld [vmem:[#allocation166_spill] sm:$0xff]  ;;  %v18833_v53 = vld [vmem:[#allocation352_spill] sm:$0xff] }
 0x416   :  { %v12499_v10 = vadd.f32 %v18811_v3, %v18809_v12  ;;  %18819 = vst [vmem:[#allocation428_spill] sm:$0xff] %v12511_v58  ;;  %v12517_v40 = vadd.f32 %v18823_v7, %v18820_v24  ;;  %v18824_v12 = vld [vmem:[#allocation241_spill] sm:$0xff]  ;;  %v18826_v3 = vsub.f32 %v18559_v47, %v18825_v52  ;;  %v18830_v42 = vsub.f32 %v18828_v6, %v18829_v37  ;;  %v18836_v7 = vld [vmem:[#allocation59_spill] sm:$0xff]  ;;  %v18840_v47 = vld [vmem:[#allocation244_spill] sm:$0xff] }
 0x417   :  { %v18834_v51 = vsub.f32 %v18832_v1, %v18833_v53  ;;  %v18837_v24 = vld [vmem:[#allocation167_spill] sm:$0xff]  ;;  %v18844_v37 = vld [vmem:[#allocation328_spill] sm:$0xff] }
 0x418   :  { %v12523_v54 = vadd.f32 %v18826_v3, %v18824_v12  ;;  %v12529_v9 = vadd.f32 %v18830_v42, %v18827_v22  ;;  %v18838_v28 = vsub.f32 %v18564_v34, %v18837_v24  ;;  %v18841_v12 = vld [vmem:[#allocation61_spill] sm:$0xff]  ;;  %v4045_v22 = vadd.f32 %v4044_v43, %v2782_v55  ;;  %v12552_v6 = vld [vmem:[%s14352_s2] sm:$0xff] }
 0x419   :  { %v12535_v58 = vadd.f32 %v18834_v51, %v18831_v17  ;;  %v18842_v52 = vsub.f32 %v18567_v16, %v18841_v12  ;;  %v18845_v42 = vld [vmem:[#allocation73_spill] sm:$0xff]  ;;  %v18846_v17 = vld [vmem:[#allocation168_spill] sm:$0xff]  ;;  %v18849_v51 = vld [vmem:[#allocation70_spill] sm:$0xff] }
 0x41a   :  { %v12541_v31 = vadd.f32 %v18838_v28, %v18836_v7  ;;  %v18847_v1 = vsub.f32 %v18845_v42, %v18846_v17  ;;  %v18848_v34 = vld [vmem:[#allocation125_spill] sm:$0xff]  ;;  %v18850_v7 = vld [vmem:[#allocation359_spill] sm:$0xff]  ;;  %v18861_v42 = vld [vmem:[#allocation170_spill] sm:$0xff] }
 0x41b   :  { %18835 = vst [vmem:[#allocation427_spill] sm:$0xff] %v12535_v58  ;;  %v12547_v3 = vadd.f32 %v18842_v52, %v18840_v47  ;;  %v18851_v24 = vsub.f32 %v18849_v51, %v18850_v7  ;;  %v18852_v16 = vld [vmem:[#allocation323_spill] sm:$0xff]  ;;  %v18853_v47 = vld [vmem:[#allocation38_spill] sm:$0xff]  ;;  %v18854_v55 = vld [vmem:[#allocation169_spill] sm:$0xff]  ;;  %v18862_v17 = vsub.f32 %v18576_v36, %v18861_v42  ;;  %v18864_v51 = vsub.f32 %v18579_v27, %v18578_v49 }
 0x41c   :  { %18839 = vst [vmem:[#allocation275_spill] sm:$0xff] %v12541_v31  ;;  %v12558_v53 = vadd.f32 %v18847_v1, %v18844_v37  ;;  %v18855_v43 = vsub.f32 %v18853_v47, %v18854_v55  ;;  %v18856_v52 = vld [vmem:[#allocation246_spill] sm:$0xff]  ;;  %v18860_v37 = vld [vmem:[#allocation281_spill] sm:$0xff]  ;;  %v18868_v47 = vld [vmem:[#allocation171_spill] sm:$0xff] }
 0x41d   :  { %18843 = vst [vmem:[#allocation204_spill] sm:$0xff] %v12547_v3  ;;  %v12564_v28 = vadd.f32 %v18851_v24, %v18848_v34  ;;  %v18857_v3 = vld [vmem:[#allocation361_spill] sm:$0xff]  ;;  %v12582_v1 = vadd.f32 %v18862_v17, %v18860_v37  ;;  %v18863_v34 = vld [vmem:[#allocation126_spill] sm:$0xff]  ;;  %v18875_v42 = vld [vmem:[#allocation172_spill] sm:$0xff] }
 0x41e   :  { %v12570_v12 = vadd.f32 %v18855_v43, %v18852_v16  ;;  %v18858_v31 = vsub.f32 %v18574_v5, %v18857_v3  ;;  %v12588_v7 = vadd.f32 %v18864_v51, %v18863_v34  ;;  %v18866_v24 = vld [vmem:[#allocation325_spill] sm:$0xff]  ;;  %v18867_v16 = vld [vmem:[#allocation87_spill] sm:$0xff]  ;;  %v4046_v5 = vadd.f32 %v4045_v22, %v2783_v35  ;;  %v18871_v3 = vld [vmem:[#allocation76_spill] sm:$0xff] }
 0x41f   :  { %v18869_v55 = vsub.f32 %v18867_v16, %v18868_v47  ;;  %v18874_v37 = vld [vmem:[#allocation81_spill] sm:$0xff]  ;;  %v18876_v17 = vsub.f32 %v18584_v45, %v18875_v42  ;;  %v18877_v49 = vld [vmem:[#allocation127_spill] sm:$0xff]  ;;  %v18879_v51 = vld [vmem:[#allocation366_spill] sm:$0xff] }
 0x420   :  { %v12576_v58 = vadd.f32 %v18858_v31, %v18856_v52  ;;  %18865 = vst [vmem:[#allocation429_spill] sm:$0xff] %v12588_v7  ;;  %v18870_v31 = vld [vmem:[#allocation249_spill] sm:$0xff]  ;;  %v18878_v34 = vld [vmem:[#allocation367_spill] sm:$0xff]  ;;  %v18882_v22 = vld [vmem:[#allocation68_spill] sm:$0xff] }
 0x421   :  { %v12594_v43 = vadd.f32 %v18869_v55, %v18866_v24  ;;  %v18872_v52 = vld [vmem:[#allocation365_spill] sm:$0xff]  ;;  %v12606_v27 = vadd.f32 %v18876_v17, %v18874_v37  ;;  %v18880_v7 = vsub.f32 %v18878_v34, %v18879_v51  ;;  %v18883_v24 = vld [vmem:[#allocation56_spill] sm:$0xff]  ;;  %v18891_v37 = vsub.f32 %v18593_v4, %v18592_v60  ;;  %v18894_v34 = vld [vmem:[#allocation370_spill] sm:$0xff] }
 0x422   :  { %18859 = vst [vmem:[#allocation430_spill] sm:$0xff] %v12576_v58  ;;  %v18873_v58 = vsub.f32 %v18871_v3, %v18872_v52  ;;  %v12617_v35 = vld [vmem:[%s14352_s2 + $0x8] sm:$0xff]  ;;  %v18888_v3 = vsub.f32 %v18591_v33, %v18590_v2  ;;  %v4047_v17 = vadd.f32 %v4046_v5, %v2784_v18  ;;  %v18903_v2 = vld [vmem:[#allocation254_spill] sm:$0xff] }
 0x423   :  { %v12612_v16 = vadd.f32 %v18880_v7, %v18877_v49  ;;  %v18884_v47 = vld [vmem:[#allocation173_spill] sm:$0xff]  ;;  %v18890_v7 = vld [vmem:[#allocation32_spill] sm:$0xff]  ;;  %v18909_v18 = vld [vmem:[#allocation234_spill] sm:$0xff] }
 0x424   :  { %v12600_v36 = vadd.f32 %v18873_v58, %v18870_v31  ;;  %v4280_v58 = vand.u32 2147483647, %v12552_v6  ;;  %v18885_v55 = vsub.f32 %v18883_v24, %v18884_v47  ;;  %v18887_v31 = vld [vmem:[#allocation252_spill] sm:$0xff]  ;;  %v12636_v42 = vadd.f32 %v18891_v37, %v18890_v7  ;;  %v18895_v51 = vld [vmem:[#allocation369_spill] sm:$0xff] }
 0x425   :  { %18881 = vst [vmem:[#allocation18_spill] sm:$0xff] %v12612_v16  ;;  %v12630_v52 = vadd.f32 %v18888_v3, %v18887_v31  ;;  %v18893_v49 = vld [vmem:[#allocation128_spill] sm:$0xff]  ;;  %v18896_v16 = vsub.f32 %v18894_v34, %v18895_v51  ;;  %v18905_v3 = vld [vmem:[#allocation371_spill] sm:$0xff]  ;;  %v18908_v4 = vld [vmem:[#allocation329_spill] sm:$0xff] }
 0x426   :  { %v12624_v45 = vadd.f32 %v18885_v55, %v18882_v22  ;;  %18892 = vst [vmem:[#allocation431_spill] sm:$0xff] %v12636_v42  ;;  %v18898_v22 = vld [vmem:[#allocation71_spill] sm:$0xff]  ;;  %v18899_v47 = vld [vmem:[#allocation376_spill] sm:$0xff]  ;;  %v18917_v51 = vld [vmem:[#allocation177_spill] sm:$0xff] }
 0x427   :  { %18889 = vst [vmem:[#allocation433_spill] sm:$0xff] %v12630_v52  ;;  %v12642_v24 = vadd.f32 %v18896_v16, %v18893_v49  ;;  %v18900_v55 = vld [vmem:[#allocation175_spill] sm:$0xff]  ;;  %v18904_v31 = vld [vmem:[#allocation372_spill] sm:$0xff]  ;;  %v18913_v16 = vld [vmem:[#allocation129_spill] sm:$0xff]  ;;  %v18914_v49 = vsub.f32 %v18603_v61, %v18602_v46 }
 0x428   :  { %18886 = vst [vmem:[#allocation205_spill] sm:$0xff] %v12624_v45  ;;  %v18901_v45 = vsub.f32 %v18899_v47, %v18900_v55  ;;  %v18906_v52 = vsub.f32 %v18904_v31, %v18905_v3  ;;  %v18910_v5 = vld [vmem:[#allocation176_spill] sm:$0xff]  ;;  %v12677_v55 = vld [vmem:[%s14352_s2 + $0x10] sm:$0xff] }
 0x429   :  { %18897 = vst [vmem:[#allocation277_spill] sm:$0xff] %v12642_v24  ;;  %v18911_v7 = vsub.f32 %v18909_v18, %v18910_v5  ;;  %v12666_v34 = vadd.f32 %v18914_v49, %v18913_v16  ;;  %v18920_v31 = vld [vmem:[#allocation257_spill] sm:$0xff]  ;;  %v18925_v18 = vld [vmem:[#allocation331_spill] sm:$0xff]  ;;  %v18932_v49 = vld [vmem:[#allocation378_spill] sm:$0xff] }
 0x42a   :  { %v12648_v33 = vadd.f32 %v18901_v45, %v18898_v22  ;;  %v12654_v60 = vadd.f32 %v18906_v52, %v18903_v2  ;;  %v18916_v45 = vld [vmem:[#allocation74_spill] sm:$0xff]  ;;  %v18918_v22 = vsub.f32 %v18604_v59, %v18917_v51  ;;  %v4048_v52 = vadd.f32 %v4047_v17, %v2785_v25  ;;  %v18921_v3 = vld [vmem:[#allocation377_spill] sm:$0xff]  ;;  %v18931_v17 = vld [vmem:[#allocation379_spill] sm:$0xff] }
 0x42b   :  { %v12660_v37 = vadd.f32 %v18911_v7, %v18908_v4  ;;  %18915 = vst [vmem:[#allocation278_spill] sm:$0xff] %v12666_v34  ;;  %v4281_v2 = vand.u32 2147483647, %v12617_v35  ;;  %v18922_v4 = vld [vmem:[#allocation57_spill] sm:$0xff]  ;;  %v18927_v7 = vld [vmem:[#allocation178_spill] sm:$0xff] }
 0x42c   :  { %18902 = vst [vmem:[#allocation206_spill] sm:$0xff] %v12648_v33  ;;  %18907 = vst [vmem:[#allocation274_spill] sm:$0xff] %v12654_v60  ;;  %v12672_v47 = vadd.f32 %v18918_v22, %v18916_v45  ;;  %v18923_v61 = vsub.f32 %v18921_v3, %v18922_v4  ;;  %v18926_v5 = vld [vmem:[#allocation65_spill] sm:$0xff]  ;;  %v18930_v25 = vld [vmem:[#allocation130_spill] sm:$0xff]  ;;  %v18933_v45 = vsub.f32 %v18931_v17, %v18932_v49  ;;  %v4312_v3 = vsub.f32 0.0, %v4280_v58 }
 0x42d   :  { %18912 = vst [vmem:[#allocation434_spill] sm:$0xff] %v12660_v37  ;;  %v18928_v59 = vsub.f32 %v18926_v5, %v18927_v7  ;;  %v12701_v22 = vld [vmem:[%s14352_s2 + $0x18] sm:$0xff]  ;;  %v18936_v4 = vld [vmem:[#allocation385_spill] sm:$0xff]  ;;  %v18941_v5 = vsub.f32 %v18615_v32, %v18614_v11  ;;  %v4049_v58 = vadd.f32 %v4048_v52, %v12397_v13 }
 0x42e   :  { %18919 = vst [vmem:[#allocation207_spill] sm:$0xff] %v12672_v47  ;;  %v12684_v46 = vadd.f32 %v18923_v61, %v18920_v31  ;;  %v12696_v51 = vadd.f32 %v18933_v45, %v18930_v25  ;;  %v18935_v31 = vld [vmem:[#allocation77_spill] sm:$0xff]  ;;  %v18937_v61 = vld [vmem:[#allocation179_spill] sm:$0xff]  ;;  %v18944_v25 = vld [vmem:[#allocation180_spill] sm:$0xff] }
 0x42f   :  { %v12690_v16 = vadd.f32 %v18928_v59, %v18925_v18  ;;  %v18940_v18 = vld [vmem:[#allocation260_spill] sm:$0xff]  ;;  %v18945_v17 = vsub.f32 %v18616_v26, %v18944_v25  ;;  %v18951_v11 = vld [vmem:[#allocation79_spill] sm:$0xff] }
 0x430   :  { %18924 = vst [vmem:[#allocation436_spill] sm:$0xff] %v12684_v46  ;;  %18934 = vst [vmem:[#allocation442_spill] sm:$0xff] %v12696_v51  ;;  %v18938_v46 = vsub.f32 %v18936_v4, %v18937_v61  ;;  %v12713_v7 = vadd.f32 %v18941_v5, %v18940_v18  ;;  %v18943_v59 = vld [vmem:[#allocation332_spill] sm:$0xff]  ;;  %v18953_v18 = vld [vmem:[#allocation181_spill] sm:$0xff] }
 0x431   :  { %18929 = vst [vmem:[#allocation435_spill] sm:$0xff] %v12690_v16  ;;  %v12719_v49 = vadd.f32 %v18945_v17, %v18943_v59  ;;  %v12725_v45 = vld [vmem:[%s14352_s2 + $0x20] sm:$0xff]  ;;  %v18956_v59 = vld [vmem:[#allocation262_spill] sm:$0xff] }
 0x432   :  { %v12707_v47 = vadd.f32 %v18938_v46, %v18935_v31  ;;  %18942 = vst [vmem:[#allocation437_spill] sm:$0xff] %v12713_v7  ;;  %v18947_v46 = vld [vmem:[#allocation131_spill] sm:$0xff]  ;;  %v18948_v31 = vld [vmem:[#allocation62_spill] sm:$0xff]  ;;  %v18952_v61 = vld [vmem:[#allocation240_spill] sm:$0xff] }
 0x433   :  { %18946 = vst [vmem:[#allocation438_spill] sm:$0xff] %v12719_v49  ;;  %v18949_v4 = vsub.f32 %v18618_v44, %v18948_v31  ;;  %v18954_v5 = vsub.f32 %v18952_v61, %v18953_v18  ;;  %v18957_v25 = vld [vmem:[#allocation384_spill] sm:$0xff]  ;;  %v18958_v13 = vld [vmem:[#allocation383_spill] sm:$0xff]  ;;  %v4282_v44 = vand.u32 2147483647, %v12677_v55  ;;  %v18962_v31 = vld [vmem:[#allocation242_spill] sm:$0xff] }
 0x434   :  { %18939 = vst [vmem:[#allocation208_spill] sm:$0xff] %v12707_v47  ;;  %v18959_v52 = vsub.f32 %v18957_v25, %v18958_v13  ;;  %v12748_v49 = vld [vmem:[%s14352_s2 + $0x28] sm:$0xff]  ;;  %v4283_v18 = vand.u32 2147483647, %v12701_v22  ;;  %v18967_v25 = vsub.f32 %v18628_v62, %v18627_v41  ;;  %v18987_v47 = vld [vmem:[#allocation283_spill] sm:$0xff] }
 0x435   :  { %v12731_v32 = vadd.f32 %v18949_v4, %v18947_v46  ;;  %v12737_v26 = vadd.f32 %v18954_v5, %v18951_v11  ;;  %v18961_v46 = vld [vmem:[#allocation333_spill] sm:$0xff]  ;;  %v18963_v4 = vld [vmem:[#allocation182_spill] sm:$0xff]  ;;  %v4050_v11 = vadd.f32 %v4049_v58, %v12403_v19  ;;  %v4313_v5 = vsub.f32 0.0, %v4281_v2 }
 0x436   :  { %v12743_v17 = vadd.f32 %v18959_v52, %v18956_v59  ;;  %v18966_v59 = vld [vmem:[#allocation132_spill] sm:$0xff]  ;;  %v4284_v19 = vand.u32 2147483647, %v12725_v45  ;;  %v4344_v2 = vmul.f32 1.442695, %v4312_v3  ;;  %v18972_v58 = vld [vmem:[#allocation265_spill] sm:$0xff] }
 0x437   :  { %18950 = vst [vmem:[#allocation445_spill] sm:$0xff] %v12731_v32  ;;  %18955 = vst [vmem:[#allocation209_spill] sm:$0xff] %v12737_v26  ;;  %v18964_v32 = vsub.f32 %v18962_v31, %v18963_v4  ;;  %v12763_v13 = vadd.f32 %v18967_v25, %v18966_v59  ;;  %v18969_v52 = vld [vmem:[#allocation80_spill] sm:$0xff]  ;;  %v18977_v4 = vld [vmem:[#allocation33_spill] sm:$0xff] }
 0x438   :  { %18960 = vst [vmem:[#allocation440_spill] sm:$0xff] %v12743_v17  ;;  %v18970_v17 = vsub.f32 %v18630_v57, %v18629_v0  ;;  %v18974_v31 = vld [vmem:[#allocation388_spill] sm:$0xff]  ;;  %v18978_v59 = vld [vmem:[#allocation245_spill] sm:$0xff]  ;;  %5445 = vpow2.f32 %v4344_v2 }
 0x439   :  { %v12755_v61 = vadd.f32 %v18964_v32, %v18961_v46  ;;  %18968 = vst [vmem:[#allocation280_spill] sm:$0xff] %v12763_v13  ;;  %v12774_v32 = vld [vmem:[%s14352_s2 + $0x30] sm:$0xff]  ;;  %v18979_v25 = vld [vmem:[#allocation184_spill] sm:$0xff]  ;;  %v18983_v13 = vld [vmem:[#allocation391_spill] sm:$0xff] }
 0x43a   :  { %v12769_v26 = vadd.f32 %v18970_v17, %v18969_v52  ;;  %v18973_v46 = vld [vmem:[#allocation389_spill] sm:$0xff]  ;;  %v18980_v57 = vsub.f32 %v18978_v59, %v18979_v25  ;;  %v4051_v17 = vadd.f32 %v4050_v11, %v12409_v14  ;;  %v4285_v52 = vand.u32 2147483647, %v12748_v49 }
 0x43b   :  { %18965 = vst [vmem:[#allocation439_spill] sm:$0xff] %v12755_v61  ;;  %v18975_v62 = vsub.f32 %v18973_v46, %v18974_v31  ;;  %v18984_v61 = vld [vmem:[#allocation390_spill] sm:$0xff]  ;;  %v18988_v46 = vld [vmem:[#allocation397_spill] sm:$0xff]  ;;  %v4314_v14 = vsub.f32 0.0, %v4282_v44  ;;  %v4346_v25 = vmul.f32 1.442695, %v4313_v5 }
 0x43c   :  { %18971 = vst [vmem:[#allocation210_spill] sm:$0xff] %v12769_v26  ;;  %v12787_v0 = vadd.f32 %v18980_v57, %v18977_v4  ;;  %v18982_v26 = vld [vmem:[#allocation133_spill] sm:$0xff]  ;;  %v18985_v3 = vsub.f32 %v18983_v13, %v18984_v61  ;;  %v18993_v4 = vsub.f32 %v18640_v38, %v18639_v23  ;;  %v4052_v11 = vadd.f32 %v4051_v17, %v12415_v50  ;;  %v18998_v38 = vld [vmem:[#allocation134_spill] sm:$0xff]  ;;  %v19000_v44 = vld [vmem:[#allocation395_spill] sm:$0xff] }
 0x43d   :  { %v12781_v41 = vadd.f32 %v18975_v62, %v18972_v58  ;;  %v18989_v58 = vld [vmem:[#allocation185_spill] sm:$0xff]  ;;  %v4286_v61 = vand.u32 2147483647, %v12774_v32  ;;  %v4315_v13 = vsub.f32 0.0, %v4283_v18  ;;  %v18996_v57 = vsub.f32 %v18641_v29, %v11908_v63  ;;  %v18999_v23 = vld [vmem:[#allocation186_spill] sm:$0xff] }
 0x43e   :  { %18981 = vst [vmem:[#allocation443_spill] sm:$0xff] %v12787_v0  ;;  %v12795_v7 = vadd.f32 %v18985_v3, %v18982_v26  ;;  %v18990_v31 = vsub.f32 %v18988_v46, %v18989_v58  ;;  %v12813_v26 = vld [vmem:[%s14352_s2 + $0x38] sm:$0xff]  ;;  %v4316_v17 = vsub.f32 0.0, %v4284_v19  ;;  %5447 = vpow2.f32 %v4346_v25  ;;  %v19037_v25 = vld [vmem:[#allocation136_spill] sm:$0xff] }
 0x43f   :  { %18976 = vst [vmem:[#allocation441_spill] sm:$0xff] %v12781_v41  ;;  %v18992_v41 = vld [vmem:[#allocation268_spill] sm:$0xff]  ;;  %v19003_v46 = vld [vmem:[#allocation82_spill] sm:$0xff] }
 0x440   :  { %18986 = vst [vmem:[#allocation449_spill] sm:$0xff] %v12795_v7  ;;  %v12801_v62 = vadd.f32 %v18990_v31, %v18987_v47  ;;  %v12807_v59 = vadd.f32 %v18993_v4, %v18992_v41  ;;  %v18995_v47 = vld [vmem:[#allocation334_spill] sm:$0xff]  ;;  %v19001_v41 = vsub.f32 %v18999_v23, %v19000_v44  ;;  %v19005_v31 = vld [vmem:[#allocation251_spill] sm:$0xff]  ;;  %v19015_v44 = vld [vmem:[#allocation401_spill] sm:$0xff] }
 0x441   :  { %v12820_v3 = vadd.f32 %v18996_v57, %v18995_v47  ;;  %v19004_v58 = vld [vmem:[#allocation394_spill] sm:$0xff]  ;;  %v4053_v47 = vadd.f32 %v4052_v11, %v12421_v48  ;;  %v4317_v57 = vsub.f32 0.0, %v4285_v52  ;;  %v19013_v23 = vld [vmem:[#allocation335_spill] sm:$0xff]  ;;  %v4318_v52 = vsub.f32 0.0, %v4286_v61  ;;  %v12881_v61 = vld [vmem:[%s14352_s2 + $0x48] sm:$0xff] }
 0x442   :  { %18991 = vst [vmem:[#allocation211_spill] sm:$0xff] %v12801_v62  ;;  %18994 = vst [vmem:[#allocation444_spill] sm:$0xff] %v12807_v59  ;;  %v12826_v50 = vadd.f32 %v19001_v41, %v18998_v38  ;;  %v19006_v4 = vsub.f32 %v19004_v58, %v19005_v31  ;;  %v19008_v5 = vld [vmem:[#allocation270_spill] sm:$0xff]  ;;  %v19009_v59 = vld [vmem:[#allocation187_spill] sm:$0xff]  ;;  %v4350_v11 = vmul.f32 1.442695, %v4315_v13 }
 0x443   :  { %18997 = vst [vmem:[#allocation279_spill] sm:$0xff] %v12820_v3  ;;  %v19010_v62 = vld [vmem:[#allocation396_spill] sm:$0xff]  ;;  %v19014_v38 = vld [vmem:[#allocation247_spill] sm:$0xff]  ;;  %v4352_v13 = vmul.f32 1.442695, %v4316_v17  ;;  %v19133_v7 = vld [vmem:[#allocation266_spill] sm:$0xff] }
 0x444   :  { %19002 = vst [vmem:[#allocation25_spill] sm:$0xff] %v12826_v50  ;;  %v12832_v18 = vadd.f32 %v19006_v4, %v19003_v46  ;;  %v19011_v63 = vsub.f32 %v19009_v59, %v19010_v62  ;;  %v19016_v19 = vsub.f32 %v19014_v38, %v19015_v44  ;;  %v19018_v41 = vld [vmem:[#allocation135_spill] sm:$0xff]  ;;  %v4287_v4 = vand.u32 2147483647, %v12813_v26  ;;  %v19027_v44 = vld [vmem:[#allocation12_spill] sm:$0xff]  ;;  %v19071_v50 = vld [vmem:[#allocation409_spill] sm:$0xff] }
 0x445   :  { %v19019_v58 = vld [vmem:[#allocation399_spill] sm:$0xff]  ;;  %v4348_v62 = vmul.f32 1.442695, %v4314_v14  ;;  %v4054_v59 = vadd.f32 %v4053_v47, %v12427_v20  ;;  %v19032_v20 = vld [vmem:[#allocation336_spill] sm:$0xff]  ;;  %v19033_v47 = vld [vmem:[#allocation250_spill] sm:$0xff] }
 0x446   :  { %19007 = vst [vmem:[#allocation212_spill] sm:$0xff] %v12832_v18  ;;  %v12838_v29 = vadd.f32 %v19011_v63, %v19008_v5  ;;  %v12845_v2 = vadd.f32 %v19016_v19, %v19013_v23  ;;  %v19020_v46 = vsub.f32 %v18652_v15, %v19019_v58  ;;  %v12858_v48 = vld [vmem:[%s14352_s2 + $0x40] sm:$0xff]  ;;  %v19023_v63 = vld [vmem:[#allocation398_spill] sm:$0xff]  ;;  %v19024_v23 = vld [vmem:[#allocation253_spill] sm:$0xff] }
 0x447   :  { %v19022_v5 = vld [vmem:[#allocation83_spill] sm:$0xff]  ;;  %v19025_v38 = vsub.f32 %v19023_v63, %v19024_v23  ;;  %v19028_v19 = vld [vmem:[#allocation189_spill] sm:$0xff]  ;;  %v19039_v63 = vld [vmem:[#allocation402_spill] sm:$0xff]  ;;  %5449 = vpow2.f32 %v4348_v62 }
 0x448   :  { %19012 = vst [vmem:[#allocation447_spill] sm:$0xff] %v12838_v29  ;;  %19017 = vst [vmem:[#allocation446_spill] sm:$0xff] %v12845_v2  ;;  %v12851_v31 = vadd.f32 %v19020_v46, %v19018_v41  ;;  %v19029_v41 = vld [vmem:[#allocation400_spill] sm:$0xff]  ;;  %v19034_v46 = vld [vmem:[#allocation255_spill] sm:$0xff]  ;;  %5451 = vpow2.f32 %v4350_v11 }
 0x449   :  { %v12864_v15 = vadd.f32 %v19025_v38, %v19022_v5  ;;  %v19030_v14 = vsub.f32 %v19028_v19, %v19029_v41  ;;  %v19038_v5 = vld [vmem:[#allocation190_spill] sm:$0xff]  ;;  %v19043_v19 = vld [vmem:[#allocation403_spill] sm:$0xff]  ;;  %5453 = vpow2.f32 %v4352_v13  ;;  %v19070_v11 = vld [vmem:[#allocation193_spill] sm:$0xff] }
 0x44a   :  { %19021 = vst [vmem:[#allocation285_spill] sm:$0xff] %v12851_v31  ;;  %v19035_v31 = vsub.f32 %v19033_v47, %v19034_v46  ;;  %v19040_v23 = vsub.f32 %v19038_v5, %v19039_v63  ;;  %v19044_v41 = vld [vmem:[#allocation410_spill] sm:$0xff]  ;;  %v4354_v47 = vmul.f32 1.442695, %v4317_v57  ;;  %v19048_v46 = vld [vmem:[#allocation15_spill] sm:$0xff]  ;;  %v4319_v63 = vsub.f32 0.0, %v4287_v4 }
 0x44b   :  { %19026 = vst [vmem:[#allocation213_spill] sm:$0xff] %v12864_v15  ;;  %v12870_v58 = vadd.f32 %v19030_v14, %v19027_v44  ;;  %v19042_v44 = vld [vmem:[#allocation86_spill] sm:$0xff]  ;;  %v19045_v14 = vsub.f32 %v19043_v19, %v19044_v41  ;;  %v19050_v15 = vld [vmem:[#allocation404_spill] sm:$0xff]  ;;  %v4288_v5 = vand.u32 2147483647, %v12858_v48  ;;  %v19061_v62 = vld [vmem:[#allocation407_spill] sm:$0xff]  ;;  %v19072_v3 = vsub.f32 %v19070_v11, %v19071_v50 }
 0x44c   :  { %v12876_v2 = vadd.f32 %v19035_v31, %v19032_v20  ;;  %v12887_v38 = vadd.f32 %v19040_v23, %v19037_v25  ;;  %v19047_v31 = vld [vmem:[#allocation423_spill] sm:$0xff]  ;;  %v12905_v25 = vld [vmem:[%s14352_s2 + $0x50] sm:$0xff]  ;;  %v19060_v4 = vld [vmem:[#allocation192_spill] sm:$0xff]  ;;  %5455 = vpow2.f32 %v4354_v47 }
 0x44d   :  { %19031 = vst [vmem:[#allocation450_spill] sm:$0xff] %v12870_v58  ;;  %v12893_v58 = vadd.f32 %v19045_v14, %v19042_v44  ;;  %v4055_v20 = vadd.f32 %v4054_v59, %v19047_v31  ;;  %v19053_v23 = vld [vmem:[#allocation13_spill] sm:$0xff]  ;;  %v12912_v57 = vld [vmem:[%s14352_s2 + $0x58] sm:$0xff] }
 0x44e   :  { %19036 = vst [vmem:[#allocation448_spill] sm:$0xff] %v12876_v2  ;;  %19041 = vst [vmem:[#allocation455_spill] sm:$0xff] %v12887_v38  ;;  %v19049_v2 = vld [vmem:[#allocation191_spill] sm:$0xff]  ;;  %v19054_v59 = vld [vmem:[#allocation337_spill] sm:$0xff]  ;;  %v4291_v50 = vand.u32 2147483647, %v12912_v57 }
 0x44f   :  { %19046 = vst [vmem:[#allocation214_spill] sm:$0xff] %v12893_v58  ;;  %v19051_v29 = vsub.f32 %v19049_v2, %v19050_v15  ;;  %v4056_v44 = vadd.f32 %v4055_v20, %v19053_v23  ;;  %v4289_v2 = vand.u32 2147483647, %v12881_v61  ;;  %v19055_v15 = vld [vmem:[#allocation405_spill] sm:$0xff]  ;;  %v19056_v19 = vld [vmem:[#allocation258_spill] sm:$0xff]  ;;  %v19064_v23 = vld [vmem:[#allocation95_spill] sm:$0xff] }
 0x450   :  { %v19057_v41 = vsub.f32 %v19055_v15, %v19056_v19  ;;  %v19059_v31 = vld [vmem:[#allocation137_spill] sm:$0xff]  ;;  %v19066_v58 = vld [vmem:[#allocation259_spill] sm:$0xff] }
 0x451   :  { %v12900_v17 = vadd.f32 %v19051_v29, %v19048_v46  ;;  %v4356_v29 = vmul.f32 1.442695, %v4318_v52  ;;  %v19062_v46 = vsub.f32 %v19060_v4, %v19061_v62  ;;  %v19069_v52 = vld [vmem:[#allocation16_spill] sm:$0xff]  ;;  %v4358_v4 = vmul.f32 1.442695, %v4319_v63  ;;  %v19079_v62 = vld [vmem:[#allocation138_spill] sm:$0xff] }
 0x452   :  { %v12919_v14 = vadd.f32 %v19057_v41, %v19054_v59  ;;  %v12937_v15 = vadd.f32 %v19072_v3, %v19069_v52  ;;  %v4057_v59 = vadd.f32 %v4056_v44, %v12445_v30  ;;  %v12943_v19 = vld [vmem:[%s14352_s2 + $0x60] sm:$0xff]  ;;  %v4290_v41 = vand.u32 2147483647, %v12905_v25  ;;  %v19080_v30 = vld [vmem:[#allocation194_spill] sm:$0xff]  ;;  %v12963_v47 = vld [vmem:[%s14352_s2 + $0x68] sm:$0xff] }
 0x453   :  { %19052 = vst [vmem:[#allocation452_spill] sm:$0xff] %v12900_v17  ;;  %v12925_v20 = vadd.f32 %v19062_v46, %v19059_v31  ;;  %v19065_v17 = vld [vmem:[#allocation406_spill] sm:$0xff]  ;;  %v4320_v3 = vsub.f32 0.0, %v4288_v5  ;;  %v19081_v44 = vld [vmem:[#allocation411_spill] sm:$0xff]  ;;  %5457 = vpow2.f32 %v4356_v29  ;;  %v12984_v29 = vpop.eup %5445 }
 0x454   :  { %19058 = vst [vmem:[#allocation451_spill] sm:$0xff] %v12919_v14  ;;  %v19067_v38 = vsub.f32 %v19065_v17, %v19066_v58  ;;  %19073 = vst [vmem:[#allocation282_spill] sm:$0xff] %v12937_v15  ;;  %v19074_v58 = vld [vmem:[#allocation338_spill] sm:$0xff]  ;;  %v19076_v17 = vld [vmem:[#allocation261_spill] sm:$0xff]  ;;  %v19082_v46 = vsub.f32 %v19080_v30, %v19081_v44  ;;  %5459 = vpow2.f32 %v4358_v4 }
 0x455   :  { %19063 = vst [vmem:[#allocation456_spill] sm:$0xff] %v12925_v20  ;;  %v19084_v52 = vld [vmem:[#allocation202_spill] sm:$0xff]  ;;  %v19091_v15 = vld [vmem:[#allocation195_spill] sm:$0xff]  ;;  %v19092_v30 = vld [vmem:[#allocation413_spill] sm:$0xff] }
 0x456   :  { %v12931_v18 = vadd.f32 %v19067_v38, %v19064_v23  ;;  %v19075_v38 = vld [vmem:[#allocation408_spill] sm:$0xff]  ;;  %v12957_v23 = vadd.f32 %v19082_v46, %v19079_v62  ;;  %v4058_v11 = vadd.f32 %v4057_v59, %v19084_v52  ;;  %v19093_v62 = vsub.f32 %v19091_v15, %v19092_v30  ;;  %v19100_v20 = vld [vmem:[#allocation139_spill] sm:$0xff] }
 0x457   :  { %v19077_v13 = vsub.f32 %v19075_v38, %v19076_v17  ;;  %v4321_v38 = vsub.f32 0.0, %v4289_v2  ;;  %v19086_v17 = vld [vmem:[#allocation256_spill] sm:$0xff]  ;;  %v4292_v2 = vand.u32 2147483647, %v12943_v19  ;;  %v19106_v15 = vld [vmem:[#allocation415_spill] sm:$0xff] }
 0x458   :  { %19068 = vst [vmem:[#allocation215_spill] sm:$0xff] %v12931_v18  ;;  %19083 = vst [vmem:[#allocation459_spill] sm:$0xff] %v12957_v23  ;;  %v19095_v59 = vld [vmem:[#allocation104_spill] sm:$0xff]  ;;  %v19132_v14 = vld [vmem:[#allocation199_spill] sm:$0xff] }
 0x459   :  { %v12950_v31 = vadd.f32 %v19077_v13, %v19074_v58  ;;  %v19085_v58 = vld [vmem:[#allocation96_spill] sm:$0xff]  ;;  %v19087_v13 = vld [vmem:[#allocation263_spill] sm:$0xff]  ;;  %v19134_v0 = vsub.f32 %v19132_v14, %v19133_v7 }
 0x45a   :  { %v19088_v5 = vsub.f32 %v19086_v17, %v19087_v13  ;;  %v19096_v46 = vld [vmem:[#allocation412_spill] sm:$0xff] }
 0x45b   :  { %19078 = vst [vmem:[#allocation453_spill] sm:$0xff] %v12950_v31  ;;  %v19090_v31 = vld [vmem:[#allocation19_spill] sm:$0xff]  ;;  %v19097_v52 = vld [vmem:[#allocation264_spill] sm:$0xff] }
 0x45c   :  { %v12969_v63 = vadd.f32 %v19088_v5, %v19085_v58  ;;  %v12975_v44 = vadd.f32 %v19093_v62, %v19090_v31  ;;  %v19098_v23 = vsub.f32 %v19096_v46, %v19097_v52  ;;  %v19101_v17 = vld [vmem:[#allocation196_spill] sm:$0xff]  ;;  %v19102_v58 = vld [vmem:[#allocation414_spill] sm:$0xff]  ;;  %v4293_v52 = vand.u32 2147483647, %v12963_v47 }
 0x45d   :  { %v19103_v13 = vsub.f32 %v19101_v17, %v19102_v58  ;;  %v19107_v31 = vld [vmem:[#allocation420_spill] sm:$0xff]  ;;  %v19111_v17 = vld [vmem:[#allocation22_spill] sm:$0xff]  ;;  %v19112_v58 = vld [vmem:[#allocation197_spill] sm:$0xff] }
 0x45e   :  { %19089 = vst [vmem:[#allocation216_spill] sm:$0xff] %v12969_v63  ;;  %19094 = vst [vmem:[#allocation454_spill] sm:$0xff] %v12975_v44  ;;  %v12981_v18 = vadd.f32 %v19098_v23, %v19095_v59  ;;  %v19105_v63 = vld [vmem:[#allocation99_spill] sm:$0xff]  ;;  %v19108_v30 = vsub.f32 %v19106_v15, %v19107_v31  ;;  %v19110_v44 = vld [vmem:[#allocation426_spill] sm:$0xff]  ;;  %v4322_v59 = vsub.f32 0.0, %v4290_v41 }
 0x45f   :  { %v12990_v5 = vadd.f32 %v19103_v13, %v19100_v20  ;;  %v4059_v46 = vadd.f32 %v4058_v11, %v19110_v44  ;;  %v13002_v23 = vld [vmem:[%s14352_s2 + $0x70] sm:$0xff]  ;;  %v4360_v20 = vmul.f32 1.442695, %v4320_v3  ;;  %v19117_v31 = vld [vmem:[#allocation416_spill] sm:$0xff]  ;;  %v13021_v41 = vld [vmem:[%s14352_s2 + $0x78] sm:$0xff]  ;;  %v13023_v3 = vpop.eup %5447 }
 0x460   :  { %19099 = vst [vmem:[#allocation284_spill] sm:$0xff] %v12981_v18  ;;  %v12996_v62 = vadd.f32 %v19108_v30, %v19105_v63  ;;  %v4323_v18 = vsub.f32 0.0, %v4291_v50  ;;  %v19113_v13 = vld [vmem:[#allocation417_spill] sm:$0xff]  ;;  %v19116_v63 = vld [vmem:[#allocation311_spill] sm:$0xff]  ;;  %v4362_v50 = vmul.f32 1.442695, %v4321_v38 }
 0x461   :  { %19104 = vst [vmem:[#allocation31_spill] sm:$0xff] %v12990_v5  ;;  %v19114_v5 = vsub.f32 %v19112_v58, %v19113_v13  ;;  %v19118_v11 = vld [vmem:[#allocation269_spill] sm:$0xff]  ;;  %v19121_v4 = vld [vmem:[#allocation140_spill] sm:$0xff]  ;;  %v19122_v58 = vld [vmem:[#allocation198_spill] sm:$0xff]  ;;  %5461 = vpow2.f32 %v4360_v20 }
 0x462   :  { %19109 = vst [vmem:[#allocation217_spill] sm:$0xff] %v12996_v62  ;;  %v19119_v44 = vsub.f32 %v19117_v31, %v19118_v11  ;;  %v4060_v62 = vadd.f32 %v4059_v46, %v12463_v39  ;;  %v4294_v31 = vand.u32 2147483647, %v13002_v23  ;;  %v4408_v11 = vadd.f32 1.0, %v12984_v29  ;;  %v19126_v39 = vld [vmem:[#allocation100_spill] sm:$0xff]  ;;  %v19127_v46 = vld [vmem:[#allocation418_spill] sm:$0xff] }
 0x463   :  { %v13009_v15 = vadd.f32 %v19114_v5, %v19111_v17  ;;  %v19123_v5 = vld [vmem:[#allocation419_spill] sm:$0xff]  ;;  %v19139_v7 = vld [vmem:[#allocation272_spill] sm:$0xff]  ;;  %5463 = vpow2.f32 %v4362_v50 }
 0x464   :  { %v13015_v30 = vadd.f32 %v19119_v44, %v19116_v63  ;;  %v19124_v17 = vsub.f32 %v19122_v58, %v19123_v5  ;;  %v4324_v63 = vsub.f32 0.0, %v4292_v2  ;;  %v19128_v44 = vld [vmem:[#allocation271_spill] sm:$0xff]  ;;  %v19136_v58 = vld [vmem:[#allocation425_spill] sm:$0xff]  ;;  %v4364_v5 = vmul.f32 1.442695, %v4322_v59 }
 0x465   :  { %19115 = vst [vmem:[#allocation457_spill] sm:$0xff] %v13009_v15  ;;  %v19131_v38 = vld [vmem:[#allocation23_spill] sm:$0xff]  ;;  %v4417_v59 = vadd.f32 1.0, %v13023_v3  ;;  %5465 = vlog2.f32 %v4408_v11  ;;  %v19153_v11 = vld [vmem:[#allocation201_spill] sm:$0xff] }
 0x466   :  { %19120 = vst [vmem:[#allocation286_spill] sm:$0xff] %v13015_v30  ;;  %v13029_v13 = vadd.f32 %v19124_v17, %v19121_v4  ;;  %v19129_v30 = vsub.f32 %v19127_v46, %v19128_v44  ;;  %v13043_v51 = vadd.f32 %v19134_v0, %v19131_v38  ;;  %v4061_v4 = vadd.f32 %v4060_v62, %v19136_v58  ;;  %v13049_v2 = vld [vmem:[%s14352_s2 + $0x80] sm:$0xff]  ;;  %v19137_v46 = vld [vmem:[#allocation89_spill] sm:$0xff] }
 0x467   :  { %v4295_v17 = vand.u32 2147483647, %v13021_v41  ;;  %v19138_v44 = vld [vmem:[#allocation421_spill] sm:$0xff]  ;;  %v4368_v16 = vmul.f32 1.442695, %v4324_v63  ;;  %5467 = vpow2.f32 %v4364_v5  ;;  %v19152_v63 = vld [vmem:[#allocation142_spill] sm:$0xff] }
 0x468   :  { %19125 = vst [vmem:[#allocation291_spill] sm:$0xff] %v13029_v13  ;;  %v13037_v15 = vadd.f32 %v19129_v30, %v19126_v39  ;;  %19135 = vst [vmem:[#allocation458_spill] sm:$0xff] %v13043_v51  ;;  %v4325_v13 = vsub.f32 0.0, %v4293_v52  ;;  %v4366_v30 = vmul.f32 1.442695, %v4323_v18  ;;  %v13052_v39 = vpop.eup %5449  ;;  %v19140_v0 = vsub.f32 %v19138_v44, %v19139_v7  ;;  %v19142_v58 = vld [vmem:[#allocation141_spill] sm:$0xff] }
 0x469   :  { %v4062_v62 = vadd.f32 %v4061_v4, %v12475_v56  ;;  %v13062_v38 = vpop.eup %5451  ;;  %v19143_v51 = vld [vmem:[#allocation200_spill] sm:$0xff]  ;;  %v19144_v52 = vld [vmem:[#allocation267_spill] sm:$0xff]  ;;  %v19148_v44 = vld [vmem:[#allocation422_spill] sm:$0xff] }
 0x46a   :  { %19130 = vst [vmem:[#allocation218_spill] sm:$0xff] %v13037_v15  ;;  %v13058_v14 = vadd.f32 %v19140_v0, %v19137_v46  ;;  %v19145_v20 = vsub.f32 %v19143_v51, %v19144_v52  ;;  %v4326_v15 = vsub.f32 0.0, %v4294_v31  ;;  %v13070_v34 = vpop.eup %5453  ;;  %v19147_v46 = vld [vmem:[#allocation48_spill] sm:$0xff]  ;;  %v19149_v7 = vld [vmem:[#allocation273_spill] sm:$0xff]  ;;  %v4296_v51 = vand.u32 2147483647, %v13049_v2 }
 0x46b   :  { %v19150_v56 = vsub.f32 %v19148_v44, %v19149_v7  ;;  %v4063_v4 = vadd.f32 %v4062_v62, %v12481_v8  ;;  %v13082_v0 = vld [vmem:[%s14352_s2 + $0x88] sm:$0xff]  ;;  %v13085_v31 = vpop.eup %5455  ;;  %v13096_v8 = vld [vmem:[%s14352_s2 + $0x90] sm:$0xff]  ;;  %v4327_v62 = vsub.f32 0.0, %v4295_v17  ;;  %5469 = vpow2.f32 %v4366_v30  ;;  %v13102_v5 = vld [vmem:[%s14352_s2 + $0x98] sm:$0xff] }
 0x46c   :  { %19141 = vst [vmem:[#allocation463_spill] sm:$0xff] %v13058_v14  ;;  %v13068_v18 = vadd.f32 %v19145_v20, %v19142_v58  ;;  %v19154_v58 = vld [vmem:[#allocation424_spill] sm:$0xff]  ;;  %5471 = vlog2.f32 %v4417_v59  ;;  %v4372_v17 = vmul.f32 1.442695, %v4326_v15  ;;  %v19158_v30 = vld [vmem:[#allocation203_spill] sm:$0xff]  ;;  %v4411_v15 = vmul.f32 -0.5, %v12984_v29 }
 0x46d   :  { %v13076_v50 = vadd.f32 %v19150_v56, %v19147_v46  ;;  %v19155_v52 = vsub.f32 %v19153_v11, %v19154_v58  ;;  %v4370_v46 = vmul.f32 1.442695, %v4325_v13  ;;  %v19157_v44 = vld [vmem:[#allocation432_spill] sm:$0xff]  ;;  %v4426_v56 = vadd.f32 1.0, %v13052_v39  ;;  %v13108_v11 = vpop.eup %5457 }
 0x46e   :  { %19146 = vst [vmem:[#allocation219_spill] sm:$0xff] %v13068_v18  ;;  %v4064_v7 = vadd.f32 %v4063_v4, %v19157_v44  ;;  %v4297_v58 = vand.u32 2147483647, %v13082_v0  ;;  %5473 = vpow2.f32 %v4368_v16  ;;  %v13112_v13 = vadd.f32 1.0, %v13070_v34  ;;  %v13118_v59 = vld [vmem:[%s14352_s2 + $0xa0] sm:$0xff]  ;;  %v13126_v18 = vpop.eup %5459 }
 0x46f   :  { %19151 = vst [vmem:[#allocation288_spill] sm:$0xff] %v13076_v50  ;;  %v13091_v20 = vadd.f32 %v19155_v52, %v19152_v63  ;;  %v13106_v63 = vadd.f32 1.0, %v13062_v38  ;;  %19159 = vst [vmem:[#allocation294_spill] sm:$0xff] %v13118_v59  ;;  %v4298_v52 = vand.u32 2147483647, %v13096_v8  ;;  %v4328_v44 = vsub.f32 0.0, %v4296_v51 }
 0x470   :  { %v4065_v4 = vadd.f32 %v4064_v7, %v19158_v30  ;;  %v4299_v50 = vand.u32 2147483647, %v13102_v5  ;;  %5475 = vpow2.f32 %v4370_v46  ;;  %v4374_v16 = vmul.f32 1.442695, %v4327_v62  ;;  %19160 = vst [vmem:[#allocation220_spill] sm:$0xff] %v13126_v18  ;;  %v13136_v51 = vld [vmem:[%s14352_s2 + $0xa8] sm:$0xff] }
 0x471   :  { %19156 = vst [vmem:[#allocation460_spill] sm:$0xff] %v13091_v20  ;;  %v13122_v20 = vadd.f32 1.0, %v13085_v31  ;;  %v4420_v30 = vmul.f32 -0.5, %v13023_v3  ;;  %5477 = vlog2.f32 %v4426_v56  ;;  %v13131_v14 = vadd.f32 1.0, %v13108_v11  ;;  %19161 = vst [vmem:[#allocation462_spill] sm:$0xff] %v13136_v51 }
 0x472   :  { %v4066_v7 = vadd.f32 %v4065_v4, %v12499_v10  ;;  %v4216_v46 = vsub.f32 0.0, %v12552_v6  ;;  %v4300_v62 = vand.u32 2147483647, %v13118_v59  ;;  %v4329_v37 = vsub.f32 0.0, %v4297_v58  ;;  %v13144_v10 = vld [vmem:[%s14352_s2 + $0xb0] sm:$0xff]  ;;  %v13150_v59 = vpop.eup %5461  ;;  %v19164_v58 = vld [vmem:[#allocation428_spill] sm:$0xff] }
 0x473   :  { %5479 = vpow2.f32 %v4372_v17  ;;  %19162 = vst [vmem:[#allocation461_spill] sm:$0xff] %v13144_v10  ;;  %v4217_v56 = vsub.f32 0.0, %v12617_v35  ;;  %v4330_v4 = vsub.f32 0.0, %v4298_v52  ;;  %v4376_v33 = vmul.f32 1.442695, %v4328_v44  ;;  %19163 = vst [vmem:[#allocation297_spill] sm:$0xff] %v13150_v59 }
 0x474   :  { %v4067_v60 = vadd.f32 %v4066_v7, %v12505_v21  ;;  %v4331_v24 = vsub.f32 0.0, %v4299_v50  ;;  %5481 = vpow2.f32 %v4374_v16  ;;  %v4412_v42 = vadd.f32 1.0, %v4411_v15  ;;  %v13156_v21 = vld [vmem:[%s14352_s2 + $0xb8] sm:$0xff]  ;;  %v13160_v50 = vpop.eup %5463 }
 0x475   :  { %v13148_v6 = vadd.f32 1.0, %v13126_v18  ;;  %v4218_v7 = vsub.f32 0.0, %v12677_v55  ;;  %v4301_v35 = vand.u32 2147483647, %v13136_v51  ;;  %v4421_v52 = vadd.f32 1.0, %v4420_v30  ;;  %19165 = vst [vmem:[#allocation221_spill] sm:$0xff] %v13160_v50  ;;  %v5466_v59 = vpop.eup %5465 }
 0x476   :  { %v4068_v17 = vadd.f32 %v4067_v60, %v19164_v58  ;;  %v13162_v44 = vmax.f32 %v4216_v46, 0.0  ;;  %v4302_v16 = vand.u32 2147483647, %v13144_v10  ;;  %v4332_v15 = vsub.f32 0.0, %v4300_v62  ;;  %v13169_v58 = vld [vmem:[%s14352_s2 + $0xc0] sm:$0xff]  ;;  %v13173_v51 = vpop.eup %5467 }
 0x477   :  { %v4378_v18 = vmul.f32 1.442695, %v4329_v37  ;;  %v13171_v55 = vmax.f32 %v4217_v56, 0.0  ;;  %5483 = vpow2.f32 %v4376_v33  ;;  %v4380_v30 = vmul.f32 1.442695, %v4330_v4 }
 0x478   :  { %19166 = vst [vmem:[#allocation293_spill] sm:$0xff] %v13162_v44  ;;  %v4069_v60 = vadd.f32 %v4068_v17, %v12517_v40  ;;  %v4219_v46 = vsub.f32 0.0, %v12701_v22  ;;  %v4220_v44 = vsub.f32 0.0, %v12725_v45  ;;  %v4303_v37 = vand.u32 2147483647, %v13156_v21  ;;  %v13178_v50 = vpop.eup %5469 }
 0x479   :  { %19167 = vst [vmem:[#allocation289_spill] sm:$0xff] %v13171_v55  ;;  %v4382_v62 = vmul.f32 1.442695, %v4331_v24  ;;  %v4221_v17 = vsub.f32 0.0, %v12748_v49  ;;  %v13182_v10 = vmax.f32 %v4218_v7, 0.0  ;;  %v4333_v56 = vsub.f32 0.0, %v4301_v35  ;;  %v13184_v33 = vpop.eup %5471 }
 0x47a   :  { %v4070_v40 = vadd.f32 %v4069_v60, %v12523_v54  ;;  %v4304_v4 = vand.u32 2147483647, %v13169_v58  ;;  %v4334_v55 = vsub.f32 0.0, %v4302_v16  ;;  %5485 = vpow2.f32 %v4378_v18  ;;  %v13193_v54 = vld [vmem:[%s14352_s2 + $0xc8] sm:$0xff]  ;;  %v13202_v18 = vld [vmem:[%s14352_s2 + $0xd0] sm:$0xff]  ;;  %v19173_v60 = vld [vmem:[#allocation427_spill] sm:$0xff] }
 0x47b   :  { %19168 = vst [vmem:[#allocation467_spill] sm:$0xff] %v13182_v10  ;;  %v4384_v22 = vmul.f32 1.442695, %v4332_v15  ;;  %v13187_v45 = vpop.eup %5473  ;;  %v4222_v49 = vsub.f32 0.0, %v12774_v32  ;;  %5487 = vpow2.f32 %v4380_v30  ;;  %v13197_v7 = vmul.f32 %v12984_v29, %v4412_v42  ;;  %v13214_v42 = vld [vmem:[%s14352_s2 + $0xd8] sm:$0xff] }
 0x47c   :  { %19169 = vst [vmem:[#allocation222_spill] sm:$0xff] %v13187_v45  ;;  %v4071_v24 = vadd.f32 %v4070_v40, %v12529_v9  ;;  %v13204_v35 = vmax.f32 %v4219_v46, 0.0  ;;  %v13206_v16 = vmax.f32 %v4220_v44, 0.0  ;;  %v4335_v9 = vsub.f32 0.0, %v4303_v37  ;;  %19174 = vst [vmem:[#allocation223_spill] sm:$0xff] %v13214_v42  ;;  %v13225_v44 = vld [vmem:[%s14352_s2 + $0xe0] sm:$0xff] }
 0x47d   :  { %5489 = vpow2.f32 %v4382_v62  ;;  %v13208_v15 = vpop.eup %5475  ;;  %v13216_v32 = vmax.f32 %v4221_v17, 0.0  ;;  %v4386_v30 = vmul.f32 1.442695, %v4333_v56  ;;  %v13218_v10 = vmul.f32 0.6931472, %v5466_v59  ;;  %19176 = vst [vmem:[#allocation296_spill] sm:$0xff] %v13225_v44 }
 0x47e   :  { %19170 = vst [vmem:[#allocation465_spill] sm:$0xff] %v13204_v35  ;;  %19171 = vst [vmem:[#allocation464_spill] sm:$0xff] %v13206_v16  ;;  %v4072_v40 = vadd.f32 %v4071_v24, %v19173_v60  ;;  %v13220_v46 = vpop.eup %5477  ;;  %v4305_v37 = vand.u32 2147483647, %v13193_v54  ;;  %v4336_v62 = vsub.f32 0.0, %v4304_v4  ;;  %5491 = vpow2.f32 %v4384_v22  ;;  %v19178_v16 = vld [vmem:[#allocation275_spill] sm:$0xff] }
 0x47f   :  { %19172 = vst [vmem:[#allocation468_spill] sm:$0xff] %v13208_v15  ;;  %19175 = vst [vmem:[#allocation466_spill] sm:$0xff] %v13216_v32  ;;  %v4388_v24 = vmul.f32 1.442695, %v4334_v55  ;;  %v4223_v56 = vsub.f32 0.0, %v12813_v26  ;;  %v13232_v59 = vmax.f32 %v4222_v49, 0.0  ;;  %v13243_v22 = vmul.f32 %v13023_v3, %v4421_v52 }
 0x480   :  { %v13228_v60 = vpop.eup %5479  ;;  %v4073_v17 = vadd.f32 %v4072_v40, %v19178_v16  ;;  %v4306_v32 = vand.u32 2147483647, %v13202_v18  ;;  %v13238_v35 = vld [vmem:[%s14352_s2 + $0xe8] sm:$0xff]  ;;  %v4224_v15 = vsub.f32 0.0, %v12858_v48  ;;  %v4307_v4 = vand.u32 2147483647, %v13214_v42 }
 0x481   :  { %19177 = vst [vmem:[#allocation300_spill] sm:$0xff] %v13228_v60  ;;  %19179 = vst [vmem:[#allocation224_spill] sm:$0xff] %v13232_v59  ;;  %v4390_v55 = vmul.f32 1.442695, %v4335_v9  ;;  %v13245_v16 = vpop.eup %5481  ;;  %v19181_v26 = vld [vmem:[#allocation204_spill] sm:$0xff]  ;;  %5493 = vpow2.f32 %v4386_v30  ;;  %v13253_v60 = vld [vmem:[%s14352_s2 + $0xf0] sm:$0xff] }
 0x482   :  { %19180 = vst [vmem:[#allocation225_spill] sm:$0xff] %v13245_v16  ;;  %v4074_v49 = vadd.f32 %v4073_v17, %v19181_v26  ;;  %v4308_v40 = vand.u32 2147483647, %v13225_v44  ;;  %v4414_v59 = vand.u32 2147483647, %v12984_v29  ;;  %v4225_v48 = vsub.f32 0.0, %v12881_v61 }
 0x483   :  { %v4337_v9 = vsub.f32 0.0, %v4305_v37  ;;  %5495 = vpow2.f32 %v4388_v24  ;;  %v4392_v52 = vmul.f32 1.442695, %v4336_v62  ;;  %v13257_v16 = vmax.f32 %v4223_v56, 0.0  ;;  %v13269_v37 = vld [vmem:[%s14352_s2 + $0xf8] sm:$0xff] }
 0x484   :  { %v4075_v45 = vadd.f32 %v4074_v49, %v12558_v53  ;;  %v4309_v17 = vand.u32 2147483647, %v13238_v35  ;;  %v4338_v26 = vsub.f32 0.0, %v4306_v32  ;;  %v13260_v30 = vpop.eup %5483  ;;  %v13262_v29 = vmax.f32 %v4224_v15, 0.0  ;;  %19184 = vst [vmem:[#allocation226_spill] sm:$0xff] %v13269_v37  ;;  %v5705_v32 = vld [vmem:[%s14352_s2 + $0x20] sm:$0xff] }
 0x485   :  { %19182 = vst [vmem:[#allocation299_spill] sm:$0xff] %v13257_v16  ;;  %v4339_v44 = vsub.f32 0.0, %v4307_v4  ;;  %5497 = vpow2.f32 %v4390_v55  ;;  %v4429_v42 = vmul.f32 -0.5, %v13052_v39  ;;  %v4310_v53 = vand.u32 2147483647, %v13253_v60 }
 0x486   :  { %19183 = vst [vmem:[#allocation98_spill] sm:$0xff] %v13262_v29  ;;  %v4076_v61 = vadd.f32 %v4075_v45, %v12564_v28  ;;  %v4340_v62 = vsub.f32 0.0, %v4308_v40  ;;  %vm13272_vm5 = vcmp.lt.f32.partialorder %v4414_v59, 0.0004427343  ;;  %v4226_v15 = vsub.f32 0.0, %v12905_v25 }
 0x487   :  { %v13277_v24 = vmax.f32 %v4225_v48, 0.0  ;;  %5499 = vpow2.f32 %v4392_v52  ;;  %v4394_v56 = vmul.f32 1.442695, %v4337_v9  ;;  %v13279_v4 = vpop.eup %5485  ;;  %v4227_v45 = vsub.f32 0.0, %v12912_v57  ;;  %v19188_v52 = vld [vmem:[#allocation430_spill] sm:$0xff] }
 0x488   :  { %v4077_v28 = vadd.f32 %v4076_v61, %v12570_v12  ;;  %v4341_v55 = vsub.f32 0.0, %v4309_v17  ;;  %v4396_v49 = vmul.f32 1.442695, %v4338_v26  ;;  %v13283_v29 = vpop.eup %5487  ;;  %v4311_v59 = vand.u32 2147483647, %v13269_v37 }
 0x489   :  { %19187 = vst [vmem:[#allocation304_spill] sm:$0xff] %v13277_v24  ;;  %v4398_v40 = vmul.f32 1.442695, %v4339_v44  ;;  %v4423_v48 = vand.u32 2147483647, %v13023_v3  ;;  %v4228_v57 = vsub.f32 0.0, %v12943_v19  ;;  %5501 = vpow2.f32 %v4394_v56 }
 0x48a   :  { %v13291_v9 = vpop.eup %5489  ;;  %v4078_v12 = vadd.f32 %v4077_v28, %v19188_v52  ;;  %v4342_v17 = vsub.f32 0.0, %v4310_v53  ;;  %v4400_v26 = vmul.f32 1.442695, %v4340_v62  ;;  %v4229_v61 = vsub.f32 0.0, %v12963_v47  ;;  %v19193_v53 = vld [vmem:[#allocation429_spill] sm:$0xff] }
 0x48b   :  { %v13296_v24 = vmax.f32 %v4226_v15, 0.0  ;;  %v13299_v44 = vmul.f32 0.6931472, %v13184_v33  ;;  %v13301_v16 = vpop.eup %5491  ;;  %v13304_v25 = vmax.f32 %v4227_v45, 0.0  ;;  %5503 = vpow2.f32 %v4396_v49  ;;  %v4190_v19 = vld [vmem:[%s14353_s3 + $0x30] sm:$0xff] }
 0x48c   :  { %v4079_v3 = vadd.f32 %v4078_v12, %v12582_v1  ;;  %v4402_v28 = vmul.f32 1.442695, %v4341_v55  ;;  %v4343_v52 = vsub.f32 0.0, %v4311_v59  ;;  %5505 = vpow2.f32 %v4398_v40 }
 0x48d   :  { %19189 = vst [vmem:[#allocation227_spill] sm:$0xff] %v13296_v24  ;;  %19190 = vst [vmem:[#allocation469_spill] sm:$0xff] %v13304_v25  ;;  %vm13306_vm14 = vcmp.lt.f32.partialorder %v4423_v48, 0.0004427343  ;;  %v4430_v47 = vadd.f32 1.0, %v4429_v42  ;;  %v13311_v15 = vmax.f32 %v4228_v57, 0.0  ;;  %5507 = vpow2.f32 %v4400_v26 }
 0x48e   :  { %v4080_v62 = vadd.f32 %v4079_v3, %v19193_v53  ;;  %v4404_v33 = vmul.f32 1.442695, %v4342_v17  ;;  %v13313_v56 = vpop.eup %5493  ;;  %v4230_v1 = vsub.f32 0.0, %v13002_v23  ;;  %v13316_v45 = vmax.f32 %v4229_v61, 0.0 }
 0x48f   :  { %19194 = vst [vmem:[#allocation302_spill] sm:$0xff] %v13311_v15  ;;  %v4432_v55 = vand.u32 2147483647, %v13052_v39  ;;  %5509 = vlog2.f32 %v13106_v63  ;;  %v4438_v40 = vmul.f32 -0.5, %v13062_v38  ;;  %v4231_v23 = vsub.f32 0.0, %v13021_v41 }
 0x490   :  { %19195 = vst [vmem:[#allocation470_spill] sm:$0xff] %v13316_v45  ;;  %v13320_v49 = vpop.eup %5495  ;;  %v4081_v42 = vadd.f32 %v4080_v62, %v12594_v43  ;;  %5511 = vpow2.f32 %v4402_v28  ;;  %v4406_v48 = vmul.f32 1.442695, %v4343_v52  ;;  %v13330_v12 = vmul.f32 0.6931472, %v13220_v46  ;;  %v19200_v52 = vld [vmem:[#allocation18_spill] sm:$0xff] }
 0x491   :  { %5513 = vlog2.f32 %v13112_v13  ;;  %v4232_v57 = vsub.f32 0.0, %v13049_v2  ;;  %v13338_v17 = vmul.f32 %v13052_v39, %v4430_v47  ;;  %v4233_v26 = vsub.f32 0.0, %v13082_v0 }
 0x492   :  { %v13333_v63 = vpop.eup %5497  ;;  %v4082_v43 = vadd.f32 %v4081_v42, %v12600_v36  ;;  %5515 = vpow2.f32 %v4404_v33  ;;  %vm13341_vm15 = vcmp.lt.f32.partialorder %v4432_v55, 0.0004427343  ;;  %v4441_v46 = vand.u32 2147483647, %v13062_v38  ;;  %v19203_v55 = vld [vmem:[#allocation205_spill] sm:$0xff] }
 0x493   :  { %5517 = vlog2.f32 %v13122_v20  ;;  %v4439_v61 = vadd.f32 1.0, %v4438_v40  ;;  %v4447_v2 = vmul.f32 -0.5, %v13070_v34  ;;  %v4456_v39 = vmul.f32 -0.5, %v13085_v31 }
 0x494   :  { %v13347_v13 = vpop.eup %5499  ;;  %v4083_v36 = vadd.f32 %v4082_v43, %v12606_v27  ;;  %v4234_v3 = vsub.f32 0.0, %v13096_v8  ;;  %v13353_v0 = vmax.f32 %v4230_v1, 0.0  ;;  %v13355_v28 = vmax.f32 %v4231_v23, 0.0  ;;  %v19213_v8 = vld [vmem:[#allocation462_spill] sm:$0xff] }
 0x495   :  { %5519 = vpow2.f32 %v4406_v48  ;;  %v13358_v53 = vmax.f32 %v4232_v57, 0.0  ;;  %v4450_v20 = vand.u32 2147483647, %v13070_v34  ;;  %v4235_v27 = vsub.f32 0.0, %v13102_v5 }
 0x496   :  { %19198 = vst [vmem:[#allocation228_spill] sm:$0xff] %v13353_v0  ;;  %19199 = vst [vmem:[#allocation229_spill] sm:$0xff] %v13355_v28  ;;  %v4084_v47 = vadd.f32 %v4083_v36, %v19200_v52  ;;  %5521 = vlog2.f32 %v13131_v14  ;;  %v13363_v62 = vmax.f32 %v4233_v26, 0.0  ;;  %v4465_v33 = vmul.f32 -0.5, %v13108_v11  ;;  %v13370_v1 = vpop.eup %5501  ;;  %v19207_v26 = vld [vmem:[#allocation297_spill] sm:$0xff]  ;;  %v19215_v28 = vld [vmem:[#allocation431_spill] sm:$0xff] }
 0x497   :  { %19201 = vst [vmem:[#allocation230_spill] sm:$0xff] %v13358_v53  ;;  %v13374_v40 = vmul.f32 %v13062_v38, %v4439_v61  ;;  %vm13376_vm0 = vcmp.lt.f32.partialorder %v4441_v46, 0.0004427343  ;;  %v4448_v5 = vadd.f32 1.0, %v4447_v2  ;;  %v4457_v23 = vadd.f32 1.0, %v4456_v39  ;;  %v19208_v38 = vld [vmem:[#allocation433_spill] sm:$0xff] }
 0x498   :  { %19202 = vst [vmem:[#allocation231_spill] sm:$0xff] %v13363_v62  ;;  %v4085_v42 = vadd.f32 %v4084_v47, %v19203_v55  ;;  %v13380_v48 = vpop.eup %5503  ;;  %v13382_v43 = vmax.f32 %v4234_v3, 0.0  ;;  %v4459_v57 = vand.u32 2147483647, %v13085_v31  ;;  %5523 = vlog2.f32 %v13148_v6  ;;  %v19209_v46 = vld [vmem:[#allocation294_spill] sm:$0xff]  ;;  %v19212_v2 = vld [vmem:[#allocation220_spill] sm:$0xff] }
 0x499   :  { %v4480_v36 = vadd.f32 1.0, %v19207_v26  ;;  %v13387_v52 = vpop.eup %5505  ;;  %v4236_v47 = vsub.f32 0.0, %v19209_v46  ;;  %vm13391_vm3 = vcmp.lt.f32.partialorder %v4450_v20, 0.0004427343  ;;  %v4474_v39 = vmul.f32 -0.5, %v19212_v2 }
 0x49a   :  { %19206 = vst [vmem:[#allocation232_spill] sm:$0xff] %v13382_v43  ;;  %v4086_v61 = vadd.f32 %v4085_v42, %v19208_v38  ;;  %v13396_v3 = vpop.eup %5507  ;;  %v4237_v59 = vsub.f32 0.0, %v19213_v8  ;;  %v13399_v43 = vmax.f32 %v4235_v27, 0.0  ;;  %v4466_v6 = vadd.f32 1.0, %v4465_v33  ;;  %v19216_v38 = vld [vmem:[#allocation461_spill] sm:$0xff] }
 0x49b   :  { %v4468_v62 = vand.u32 2147483647, %v13108_v11  ;;  %v4238_v46 = vsub.f32 0.0, %v19216_v38  ;;  %v13405_v20 = vmul.f32 %v13070_v34, %v4448_v5  ;;  %v13408_v0 = vmul.f32 %v13085_v31, %v4457_v23  ;;  %v19221_v33 = vld [vmem:[#allocation221_spill] sm:$0xff] }
 0x49c   :  { %19214 = vst [vmem:[#allocation233_spill] sm:$0xff] %v13399_v43  ;;  %v5510_v53 = vpop.eup %5509  ;;  %v4087_v42 = vadd.f32 %v4086_v61, %v19215_v28  ;;  %vm13412_vm12 = vcmp.lt.f32.partialorder %v4459_v57, 0.0004427343  ;;  %v19218_v8 = vmov 0  ;;  %5525 = vlog2.f32 %v4480_v36  ;;  %v19222_v61 = vld [vmem:[#allocation277_spill] sm:$0xff] }
 0x49d   :  { %19217 = vst [vmem:[#allocation84_spill] sm:$0xff] %v13408_v0  ;;  %v13410_v45 = vpop.eup %5511  ;;  %v19219_v8 = vsel %vm13412_vm12, 4294967295, %v19218_v8  ;;  %v4483_v27 = vmul.f32 -0.5, %v19207_v26  ;;  %v4489_v43 = vadd.f32 1.0, %v19221_v33  ;;  %v13419_v15 = vmax.f32 %v4236_v47, 0.0 }
 0x49e   :  { %19220 = vst [vmem:[#allocation108_spill] sm:$0xff] %v19219_v8  ;;  %v5514_v28 = vpop.eup %5513  ;;  %v4088_v38 = vadd.f32 %v4087_v42, %v19222_v61  ;;  %v4475_v34 = vadd.f32 1.0, %v4474_v39  ;;  %v4477_v31 = vand.u32 2147483647, %v19212_v2  ;;  %v4239_v23 = vsub.f32 0.0, %v13156_v21  ;;  %v19229_v42 = vld [vmem:[#allocation206_spill] sm:$0xff] }
 0x49f   :  { %19223 = vst [vmem:[#allocation34_spill] sm:$0xff] %v13419_v15  ;;  %v13422_v5 = vpop.eup %5515  ;;  %v13425_v57 = vmax.f32 %v4237_v59, 0.0  ;;  %v13427_v25 = vmul.f32 0.6931472, %v5510_v53  ;;  %v13430_v36 = vmul.f32 %v13108_v11, %v4466_v6  ;;  %vm13432_vm1 = vcmp.lt.f32.partialorder %v4468_v62, 0.0004427343 }
 0x4a0   :  { %19224 = vst [vmem:[#allocation109_spill] sm:$0xff] %v13422_v5  ;;  %v19226_v24 = vmov 0  ;;  %v5518_v47 = vpop.eup %5517  ;;  %v4089_v39 = vadd.f32 %v4088_v38, %v19229_v42  ;;  %v13437_v61 = vmax.f32 %v4238_v46, 0.0  ;;  %v4492_v15 = vmul.f32 -0.5, %v19221_v33  ;;  %v19233_v62 = vld [vmem:[#allocation274_spill] sm:$0xff] }
 0x4a1   :  { %19225 = vst [vmem:[#allocation313_spill] sm:$0xff] %v13425_v57  ;;  %v19227_v24 = vsel %vm13432_vm1, 4294967295, %v19226_v24  ;;  %v4498_v21 = vadd.f32 1.0, %v13173_v51  ;;  %v4240_v59 = vsub.f32 0.0, %v13169_v58  ;;  %v13442_v53 = vmul.f32 0.6931472, %v5514_v28 }
 0x4a2   :  { %19228 = vst [vmem:[#allocation110_spill] sm:$0xff] %v19227_v24  ;;  %19230 = vst [vmem:[#allocation36_spill] sm:$0xff] %v13437_v61  ;;  %v4484_v57 = vadd.f32 1.0, %v4483_v27  ;;  %5527 = vlog2.f32 %v4489_v43  ;;  %v13444_v11 = vpop.eup %5519  ;;  %v4090_v6 = vadd.f32 %v4089_v39, %v19233_v62  ;;  %v4241_v5 = vsub.f32 0.0, %v13193_v54  ;;  %v19242_v61 = vld [vmem:[#allocation278_spill] sm:$0xff] }
 0x4a3   :  { %19231 = vst [vmem:[#allocation47_spill] sm:$0xff] %v13442_v53  ;;  %19232 = vst [vmem:[#allocation314_spill] sm:$0xff] %v13444_v11  ;;  %v13449_v38 = vmul.f32 %v19212_v2, %v4475_v34  ;;  %vm13451_vm10 = vcmp.lt.f32.partialorder %v4477_v31, 0.0004427343  ;;  %v19234_v46 = vmov 0  ;;  %v5522_v58 = vpop.eup %5521  ;;  %v13456_v28 = vmax.f32 %v4239_v23, 0.0 }
 0x4a4   :  { %v19235_v46 = vsel %vm13451_vm10, 4294967295, %v19234_v46  ;;  %v4486_v42 = vand.u32 2147483647, %v19207_v26  ;;  %v13462_v27 = vmul.f32 0.6931472, %v5518_v47  ;;  %v4507_v54 = vadd.f32 1.0, %v13178_v50 }
 0x4a5   :  { %19236 = vst [vmem:[#allocation85_spill] sm:$0xff] %v19235_v46  ;;  %19237 = vst [vmem:[#allocation339_spill] sm:$0xff] %v13456_v28  ;;  %v19239_v2 = vld [vmem:[#allocation434_spill] sm:$0xff]  ;;  %v4242_v31 = vsub.f32 0.0, %v13202_v18  ;;  %v4493_v39 = vadd.f32 1.0, %v4492_v15  ;;  %5529 = vlog2.f32 %v4498_v21  ;;  %v13467_v62 = vmax.f32 %v4240_v59, 0.0  ;;  %v5524_v43 = vpop.eup %5523 }
 0x4a6   :  { %19238 = vst [vmem:[#allocation28_spill] sm:$0xff] %v13462_v27  ;;  %v4091_v34 = vadd.f32 %v4090_v6, %v19239_v2  ;;  %v13474_v28 = vmul.f32 %v19207_v26, %v4484_v57  ;;  %v4501_v47 = vmul.f32 -0.5, %v13173_v51  ;;  %v13478_v6 = vmax.f32 %v4241_v5, 0.0  ;;  %v19247_v59 = vld [vmem:[#allocation223_spill] sm:$0xff] }
 0x4a7   :  { %19240 = vst [vmem:[#allocation102_spill] sm:$0xff] %v13467_v62  ;;  %v13480_v18 = vmul.f32 0.6931472, %v5522_v58  ;;  %vm13482_vm7 = vcmp.lt.f32.partialorder %v4486_v42, 0.0004427343  ;;  %v19244_v15 = vmov 0  ;;  %5531 = vlog2.f32 %v4507_v54 }
 0x4a8   :  { %19241 = vst [vmem:[#allocation143_spill] sm:$0xff] %v13474_v28  ;;  %v4092_v11 = vadd.f32 %v4091_v34, %v19242_v61  ;;  %19243 = vst [vmem:[#allocation111_spill] sm:$0xff] %v13478_v6  ;;  %v19245_v15 = vsel %vm13482_vm7, 4294967295, %v19244_v15  ;;  %v4495_v21 = vand.u32 2147483647, %v19221_v33  ;;  %v4243_v2 = vsub.f32 0.0, %v19247_v59 }
 0x4a9   :  { %19246 = vst [vmem:[#allocation90_spill] sm:$0xff] %v19245_v15  ;;  %v4510_v57 = vmul.f32 -0.5, %v13178_v50  ;;  %v19248_v5 = vld [vmem:[#allocation207_spill] sm:$0xff]  ;;  %v13494_v58 = vmax.f32 %v4242_v31, 0.0  ;;  %v13497_v42 = vmul.f32 %v19221_v33, %v4493_v39  ;;  %v19251_v34 = vld [vmem:[#allocation222_spill] sm:$0xff]  ;;  %v19252_v6 = vld [vmem:[#allocation296_spill] sm:$0xff]  ;;  %v5526_v26 = vpop.eup %5525 }
 0x4aa   :  { %v4093_v61 = vadd.f32 %v4092_v11, %v19248_v5  ;;  %v4516_v23 = vadd.f32 1.0, %v19251_v34  ;;  %v4244_v62 = vsub.f32 0.0, %v19252_v6  ;;  %v13501_v59 = vmul.f32 0.6931472, %v5524_v43  ;;  %v19254_v54 = vld [vmem:[#allocation436_spill] sm:$0xff]  ;;  %v19361_v14 = vld [vmem:[#allocation47_spill] sm:$0xff] }
 0x4ab   :  { %19249 = vst [vmem:[#allocation30_spill] sm:$0xff] %v13494_v58  ;;  %19250 = vst [vmem:[#allocation103_spill] sm:$0xff] %v13497_v42  ;;  %v4502_v53 = vadd.f32 1.0, %v4501_v47  ;;  %v4504_v8 = vand.u32 2147483647, %v13173_v51  ;;  %v4245_v0 = vsub.f32 0.0, %v13238_v35 }
 0x4ac   :  { %19253 = vst [vmem:[#allocation144_spill] sm:$0xff] %v13501_v59  ;;  %v4094_v27 = vadd.f32 %v4093_v61, %v19254_v54  ;;  %vm13510_vm8 = vcmp.lt.f32.partialorder %v4495_v21, 0.0004427343  ;;  %v19255_v11 = vmov 0  ;;  %v19258_v31 = vld [vmem:[#allocation468_spill] sm:$0xff]  ;;  %v13515_v39 = vmax.f32 %v4243_v2, 0.0 }
 0x4ad   :  { %v19256_v11 = vsel %vm13510_vm8, 4294967295, %v19255_v11  ;;  %v4525_v43 = vadd.f32 1.0, %v19258_v31  ;;  %v4511_v47 = vadd.f32 1.0, %v4510_v57  ;;  %v4519_v6 = vmul.f32 -0.5, %v19251_v34  ;;  %v19260_v5 = vld [vmem:[#allocation300_spill] sm:$0xff]  ;;  %v19261_v54 = vld [vmem:[#allocation435_spill] sm:$0xff] }
 0x4ae   :  { %19257 = vst [vmem:[#allocation340_spill] sm:$0xff] %v19256_v11  ;;  %19259 = vst [vmem:[#allocation287_spill] sm:$0xff] %v13515_v39  ;;  %v4534_v61 = vadd.f32 1.0, %v19260_v5  ;;  %v4095_v35 = vadd.f32 %v4094_v27, %v19261_v54  ;;  %v4246_v58 = vsub.f32 0.0, %v13253_v60  ;;  %v4513_v24 = vand.u32 2147483647, %v13178_v50 }
 0x4af   :  { %5533 = vlog2.f32 %v4516_v23  ;;  %v13522_v21 = vmax.f32 %v4244_v62, 0.0  ;;  %v13528_v33 = vmul.f32 0.6931472, %v5526_v26  ;;  %v13531_v57 = vmul.f32 %v13173_v51, %v4502_v53  ;;  %v5528_v60 = vpop.eup %5527  ;;  %v19268_v27 = vld [vmem:[#allocation442_spill] sm:$0xff]  ;;  %v19270_v62 = vld [vmem:[#allocation225_spill] sm:$0xff]  ;;  %v19272_v51 = vld [vmem:[#allocation208_spill] sm:$0xff] }
 0x4b0   :  { %vm13533_vm2 = vcmp.lt.f32.partialorder %v4504_v8, 0.0004427343  ;;  %v19265_v39 = vmov 0  ;;  %v4096_v54 = vadd.f32 %v4095_v35, %v19268_v27  ;;  %v13538_v23 = vmax.f32 %v4245_v0, 0.0 }
 0x4b1   :  { %19262 = vst [vmem:[#allocation308_spill] sm:$0xff] %v13522_v21  ;;  %19263 = vst [vmem:[#allocation145_spill] sm:$0xff] %v13528_v33  ;;  %v19266_v39 = vsel %vm13533_vm2, 4294967295, %v19265_v39  ;;  %5535 = vlog2.f32 %v4525_v43  ;;  %v4543_v21 = vadd.f32 1.0, %v19270_v62  ;;  %v13542_v46 = vmul.f32 %v13178_v50, %v4511_v47 }
 0x4b2   :  { %19264 = vst [vmem:[#allocation92_spill] sm:$0xff] %v13531_v57  ;;  %19267 = vst [vmem:[#allocation290_spill] sm:$0xff] %v19266_v39  ;;  %v4520_v26 = vadd.f32 1.0, %v4519_v6  ;;  %v4528_v2 = vmul.f32 -0.5, %v19258_v31  ;;  %5537 = vlog2.f32 %v4534_v61  ;;  %v4097_v8 = vadd.f32 %v4096_v54, %v19272_v51  ;;  %v5530_v43 = vpop.eup %5529  ;;  %v19299_v39 = vld [vmem:[#allocation280_spill] sm:$0xff] }
 0x4b3   :  { %19269 = vst [vmem:[#allocation35_spill] sm:$0xff] %v13538_v23  ;;  %19271 = vst [vmem:[#allocation146_spill] sm:$0xff] %v13542_v46  ;;  %v13547_v59 = vmax.f32 %v4246_v58, 0.0  ;;  %vm13549_vm6 = vcmp.lt.f32.partialorder %v4513_v24, 0.0004427343  ;;  %v19274_v35 = vmov 0  ;;  %5539 = vlog2.f32 %v4543_v21 }
 0x4b4   :  { %v19275_v35 = vsel %vm13549_vm6, 4294967295, %v19274_v35  ;;  %v4552_v0 = vadd.f32 1.0, %v13260_v30  ;;  %v13558_v47 = vmul.f32 0.6931472, %v5528_v60  ;;  %v4522_v6 = vand.u32 2147483647, %v19251_v34  ;;  %v5532_v50 = vpop.eup %5531 }
 0x4b5   :  { %19273 = vst [vmem:[#allocation17_spill] sm:$0xff] %v13547_v59  ;;  %19276 = vst [vmem:[#allocation26_spill] sm:$0xff] %v19275_v35  ;;  %v4537_v61 = vmul.f32 -0.5, %v19260_v5  ;;  %v19278_v58 = vld [vmem:[#allocation437_spill] sm:$0xff]  ;;  %v4546_v24 = vmul.f32 -0.5, %v19270_v62  ;;  %v4561_v54 = vadd.f32 1.0, %v13279_v4  ;;  %v13566_v51 = vmul.f32 %v19251_v34, %v4520_v26 }
 0x4b6   :  { %19277 = vst [vmem:[#allocation292_spill] sm:$0xff] %v13558_v47  ;;  %v4098_v27 = vadd.f32 %v4097_v8, %v19278_v58  ;;  %v4529_v53 = vadd.f32 1.0, %v4528_v2  ;;  %v4531_v59 = vand.u32 2147483647, %v19258_v31  ;;  %v4570_v60 = vadd.f32 1.0, %v13283_v29  ;;  %v19279_v23 = vld [vmem:[#allocation438_spill] sm:$0xff] }
 0x4b7   :  { %v13571_v33 = vmul.f32 0.6931472, %v5530_v43  ;;  %v4540_v8 = vand.u32 2147483647, %v19260_v5  ;;  %5541 = vlog2.f32 %v4552_v0  ;;  %vm13578_vm9 = vcmp.lt.f32.partialorder %v4522_v6, 0.0004427343 }
 0x4b8   :  { %v4099_v37 = vadd.f32 %v4098_v27, %v19279_v23  ;;  %v19281_v34 = vmov 0  ;;  %v4555_v2 = vmul.f32 -0.5, %v13260_v30  ;;  %v4579_v26 = vadd.f32 1.0, %v13291_v9  ;;  %v19283_v58 = vld [vmem:[#allocation445_spill] sm:$0xff] }
 0x4b9   :  { %19280 = vst [vmem:[#allocation147_spill] sm:$0xff] %v13571_v33  ;;  %v19282_v34 = vsel %vm13578_vm9, 4294967295, %v19281_v34  ;;  %v4538_v43 = vadd.f32 1.0, %v4537_v61  ;;  %v4547_v27 = vadd.f32 1.0, %v4546_v24  ;;  %5543 = vlog2.f32 %v4561_v54  ;;  %v19288_v47 = vld [vmem:[#allocation209_spill] sm:$0xff] }
 0x4ba   :  { %v4100_v23 = vadd.f32 %v4099_v37, %v19283_v58  ;;  %v13585_v28 = vmul.f32 0.6931472, %v5532_v50  ;;  %v13588_v0 = vmul.f32 %v19258_v31, %v4529_v53  ;;  %vm13590_vm4 = vcmp.lt.f32.partialorder %v4531_v59, 0.0004427343 }
 0x4bb   :  { %v19286_v21 = vmov 0  ;;  %v4549_v6 = vand.u32 2147483647, %v19270_v62  ;;  %5545 = vlog2.f32 %v4570_v60  ;;  %vm13600_vm11 = vcmp.lt.f32.partialorder %v4540_v8, 0.0004427343 }
 0x4bc   :  { %19284 = vst [vmem:[#allocation149_spill] sm:$0xff] %v13585_v28  ;;  %19285 = vst [vmem:[#allocation60_spill] sm:$0xff] %v13588_v0  ;;  %v19287_v21 = vsel %vm13590_vm4, 4294967295, %v19286_v21  ;;  %v4101_v42 = vadd.f32 %v4100_v23, %v19288_v47  ;;  %v19289_v50 = vmov 0  ;;  %v4564_v31 = vmul.f32 -0.5, %v13279_v4  ;;  %v5534_v53 = vpop.eup %5533  ;;  %v19291_v47 = vld [vmem:[#allocation440_spill] sm:$0xff] }
 0x4bd   :  { %v19290_v50 = vsel %vm13600_vm11, 4294967295, %v19289_v50  ;;  %v4588_v59 = vadd.f32 1.0, %v13301_v16  ;;  %v4556_v61 = vadd.f32 1.0, %v4555_v2  ;;  %v4558_v24 = vand.u32 2147483647, %v13260_v30 }
 0x4be   :  { %v4573_v54 = vmul.f32 -0.5, %v13283_v29  ;;  %5547 = vlog2.f32 %v4579_v26  ;;  %v4102_v60 = vadd.f32 %v4101_v42, %v19291_v47  ;;  %v13610_v58 = vmul.f32 %v19260_v5, %v4538_v43  ;;  %v5536_v37 = vpop.eup %5535  ;;  %v19295_v43 = vld [vmem:[#allocation439_spill] sm:$0xff] }
 0x4bf   :  { %v13613_v8 = vmul.f32 %v19270_v62, %v4547_v27  ;;  %v4597_v23 = vadd.f32 1.0, %v13313_v56  ;;  %vm13620_vm13 = vcmp.lt.f32.partialorder %v4549_v6, 0.0004427343  ;;  %v19293_v33 = vmov 0  ;;  %v5538_v62 = vpop.eup %5537  ;;  %v4210_v6 = vld [vmem:[%s14353_s3 + $0xd0] sm:$0xff] }
 0x4c0   :  { %19292 = vst [vmem:[#allocation150_spill] sm:$0xff] %v13610_v58  ;;  %v19294_v33 = vsel %vm13620_vm13, 4294967295, %v19293_v33  ;;  %v4567_v42 = vand.u32 2147483647, %v13279_v4  ;;  %v4582_v5 = vmul.f32 -0.5, %v13291_v9  ;;  %v4606_v26 = vadd.f32 1.0, %v13320_v49 }
 0x4c1   :  { %v4103_v27 = vadd.f32 %v4102_v60, %v19295_v43  ;;  %v13628_v47 = vmul.f32 0.6931472, %v5534_v53  ;;  %v4565_v57 = vadd.f32 1.0, %v4564_v31  ;;  %5549 = vlog2.f32 %v4588_v59  ;;  %v5540_v31 = vpop.eup %5539  ;;  %v19310_v43 = vld [vmem:[#allocation441_spill] sm:$0xff] }
 0x4c2   :  { %v13631_v35 = vmul.f32 %v13260_v30, %v4556_v61  ;;  %vm13633_vm6 = vcmp.lt.f32.partialorder %v4558_v24, 0.0004427343  ;;  %v4574_v2 = vadd.f32 1.0, %v4573_v54  ;;  %v4576_v28 = vand.u32 2147483647, %v13283_v29  ;;  %v19302_v24 = vld [vmem:[#allocation210_spill] sm:$0xff] }
 0x4c3   :  { %v4591_v46 = vmul.f32 -0.5, %v13301_v16  ;;  %v4104_v11 = vadd.f32 %v4103_v27, %v19299_v39  ;;  %v13640_v15 = vmul.f32 0.6931472, %v5536_v37  ;;  %v4585_v53 = vand.u32 2147483647, %v13291_v9 }
 0x4c4   :  { %19296 = vst [vmem:[#allocation305_spill] sm:$0xff] %v13631_v35  ;;  %5551 = vlog2.f32 %v4597_v23  ;;  %v13643_v59 = vmul.f32 0.6931472, %v5538_v62  ;;  %v4583_v30 = vadd.f32 1.0, %v4582_v5  ;;  %v4600_v61 = vmul.f32 -0.5, %v13313_v56  ;;  %v5542_v23 = vpop.eup %5541  ;;  %v19332_v35 = vld [vmem:[#allocation279_spill] sm:$0xff] }
 0x4c5   :  { %19300 = vst [vmem:[#allocation45_spill] sm:$0xff] %v13640_v15  ;;  %5553 = vlog2.f32 %v4606_v26  ;;  %v4105_v54 = vadd.f32 %v4104_v11, %v19302_v24  ;;  %v13652_v39 = vmul.f32 %v13279_v4, %v4565_v57  ;;  %vm13654_vm2 = vcmp.lt.f32.partialorder %v4567_v42, 0.0004427343  ;;  %v4213_v42 = vld [vmem:[%s14353_s3 + $0xe8] sm:$0xff] }
 0x4c6   :  { %19301 = vst [vmem:[#allocation317_spill] sm:$0xff] %v13643_v59  ;;  %v19304_v37 = vmov 0  ;;  %v13659_v5 = vmul.f32 %v13283_v29, %v4574_v2  ;;  %vm13661_vm8 = vcmp.lt.f32.partialorder %v4576_v28, 0.0004427343  ;;  %v19308_v26 = vmov 0  ;;  %v5544_v28 = vpop.eup %5543 }
 0x4c7   :  { %19303 = vst [vmem:[#allocation310_spill] sm:$0xff] %v13652_v39  ;;  %v19305_v37 = vsel %vm13654_vm2, 4294967295, %v19304_v37  ;;  %v19309_v26 = vsel %vm13661_vm8, 4294967295, %v19308_v26  ;;  %v4592_v11 = vadd.f32 1.0, %v4591_v46  ;;  %v4615_v62 = vadd.f32 1.0, %v13333_v63 }
 0x4c8   :  { %19306 = vst [vmem:[#allocation349_spill] sm:$0xff] %v19305_v37  ;;  %19307 = vst [vmem:[#allocation112_spill] sm:$0xff] %v13659_v5  ;;  %v4106_v27 = vadd.f32 %v4105_v54, %v19310_v43  ;;  %v13671_v57 = vmul.f32 0.6931472, %v5540_v31  ;;  %vm13673_vm9 = vcmp.lt.f32.partialorder %v4585_v53, 0.0004427343  ;;  %v13683_v2 = vmul.f32 %v13291_v9, %v4583_v30  ;;  %v5546_v31 = vpop.eup %5545 }
 0x4c9   :  { %v4594_v29 = vand.u32 2147483647, %v13301_v16  ;;  %v4601_v24 = vadd.f32 1.0, %v4600_v61  ;;  %v4609_v54 = vmul.f32 -0.5, %v13320_v49  ;;  %v19314_v43 = vld [vmem:[#allocation443_spill] sm:$0xff]  ;;  %v4618_v15 = vmul.f32 -0.5, %v13333_v63 }
 0x4ca   :  { %19311 = vst [vmem:[#allocation307_spill] sm:$0xff] %v13671_v57  ;;  %v4107_v53 = vadd.f32 %v4106_v27, %v19314_v43  ;;  %v13687_v4 = vmul.f32 0.6931472, %v5542_v23  ;;  %v4603_v60 = vand.u32 2147483647, %v13313_v56  ;;  %v13692_v0 = vmul.f32 %v13301_v16, %v4592_v11  ;;  %v19317_v61 = vld [vmem:[#allocation449_spill] sm:$0xff] }
 0x4cb   :  { %v4612_v46 = vand.u32 2147483647, %v13320_v49  ;;  %5555 = vlog2.f32 %v4615_v62  ;;  %v4624_v9 = vadd.f32 1.0, %v13347_v13  ;;  %v5548_v30 = vpop.eup %5547  ;;  %v13701_v27 = vmul.f32 0.6931472, %v5544_v28 }
 0x4cc   :  { %19315 = vst [vmem:[#allocation354_spill] sm:$0xff] %v13687_v4  ;;  %19316 = vst [vmem:[#allocation42_spill] sm:$0xff] %v13692_v0  ;;  %v4108_v59 = vadd.f32 %v4107_v53, %v19317_v61  ;;  %vm13703_vm11 = vcmp.lt.f32.partialorder %v4594_v29, 0.0004427343  ;;  %v13707_v16 = vmul.f32 0.6931472, %v5546_v31  ;;  %v13710_v11 = vmul.f32 %v13313_v56, %v4601_v24 }
 0x4cd   :  { %19318 = vst [vmem:[#allocation348_spill] sm:$0xff] %v13701_v27  ;;  %v4610_v62 = vadd.f32 1.0, %v4609_v54  ;;  %v4627_v58 = vmul.f32 -0.5, %v13347_v13  ;;  %v19323_v53 = vld [vmem:[#allocation211_spill] sm:$0xff]  ;;  %vm13718_vm13 = vcmp.lt.f32.partialorder %v4603_v60, 0.0004427343  ;;  %5557 = vlog2.f32 %v4624_v9 }
 0x4ce   :  { %19321 = vst [vmem:[#allocation357_spill] sm:$0xff] %v13707_v16  ;;  %19322 = vst [vmem:[#allocation113_spill] sm:$0xff] %v13710_v11  ;;  %v4109_v61 = vadd.f32 %v4108_v59, %v19323_v53  ;;  %v19324_v29 = vmov 0  ;;  %v4619_v23 = vadd.f32 1.0, %v4618_v15  ;;  %v4636_v31 = vmul.f32 -0.5, %v13370_v1  ;;  %v5550_v57 = vpop.eup %5549  ;;  %v19330_v54 = vld [vmem:[#allocation444_spill] sm:$0xff] }
 0x4cf   :  { %v19325_v29 = vsel %vm13718_vm13, 4294967295, %v19324_v29  ;;  %v13723_v56 = vmul.f32 0.6931472, %v5548_v30  ;;  %vm13725_vm4 = vcmp.lt.f32.partialorder %v4612_v46, 0.0004427343  ;;  %v19327_v24 = vmov 0 }
 0x4d0   :  { %19326 = vst [vmem:[#allocation351_spill] sm:$0xff] %v19325_v29  ;;  %v19328_v24 = vsel %vm13725_vm4, 4294967295, %v19327_v24  ;;  %v4645_v59 = vmul.f32 -0.5, %v13380_v48  ;;  %v4110_v53 = vadd.f32 %v4109_v61, %v19330_v54  ;;  %v4621_v15 = vand.u32 2147483647, %v13333_v63  ;;  %v19334_v16 = vld [vmem:[#allocation25_spill] sm:$0xff] }
 0x4d1   :  { %19329 = vst [vmem:[#allocation69_spill] sm:$0xff] %v19328_v24  ;;  %v4633_v28 = vadd.f32 1.0, %v13370_v1  ;;  %v5552_v30 = vpop.eup %5551  ;;  %v13742_v9 = vmul.f32 %v13320_v49, %v4610_v62  ;;  %v4628_v4 = vadd.f32 1.0, %v4627_v58  ;;  %v4630_v61 = vand.u32 2147483647, %v13347_v13  ;;  %v19339_v46 = vld [vmem:[#allocation212_spill] sm:$0xff] }
 0x4d2   :  { %v5554_v54 = vpop.eup %5553  ;;  %v4111_v37 = vadd.f32 %v4110_v53, %v19332_v35  ;;  %v13746_v60 = vmul.f32 0.6931472, %v5550_v57  ;;  %v13749_v27 = vmul.f32 %v13333_v63, %v4619_v23  ;;  %v4637_v39 = vadd.f32 1.0, %v4636_v31  ;;  %v4187_v0 = vld [vmem:[%s14353_s3 + $0x18] sm:$0xff]  ;;  %v5701_v63 = vld [vmem:[%s14352_s2] sm:$0xff] }
 0x4d3   :  { %19331 = vst [vmem:[#allocation309_spill] sm:$0xff] %v13742_v9  ;;  %v4642_v49 = vadd.f32 1.0, %v13380_v48  ;;  %v4646_v62 = vadd.f32 1.0, %v4645_v59  ;;  %v4654_v58 = vmul.f32 -0.5, %v13387_v52  ;;  %vm13758_vm8 = vcmp.lt.f32.partialorder %v4621_v15, 0.0004427343 }
 0x4d4   :  { %19333 = vst [vmem:[#allocation358_spill] sm:$0xff] %v13746_v60  ;;  %v4112_v5 = vadd.f32 %v4111_v37, %v19334_v16  ;;  %5559 = vlog2.f32 %v4633_v28  ;;  %v4651_v57 = vadd.f32 1.0, %v13387_v52  ;;  %v13764_v23 = vmul.f32 0.6931472, %v5552_v30  ;;  %v4184_v30 = vld [vmem:[%s14353_s3] sm:$0xff] }
 0x4d5   :  { %v13766_v31 = vmul.f32 0.6931472, %v5554_v54  ;;  %v13769_v53 = vmul.f32 %v13347_v13, %v4628_v4  ;;  %v4660_v59 = vadd.f32 1.0, %v13396_v3  ;;  %v13778_v28 = vmul.f32 %v13370_v1, %v4637_v39  ;;  %v4185_v13 = vld [vmem:[%s14353_s3 + $0x8] sm:$0xff]  ;;  %v19341_v16 = vld [vmem:[#allocation447_spill] sm:$0xff] }
 0x4d6   :  { %19337 = vst [vmem:[#allocation362_spill] sm:$0xff] %v13764_v23  ;;  %v4113_v37 = vadd.f32 %v4112_v5, %v19339_v46  ;;  %v4186_v5 = vld [vmem:[%s14353_s3 + $0x10] sm:$0xff]  ;;  %5561 = vlog2.f32 %v4642_v49  ;;  %v13791_v4 = vmul.f32 %v13380_v48, %v4646_v62  ;;  %v4655_v39 = vadd.f32 1.0, %v4654_v58  ;;  %v5702_v49 = vld [vmem:[%s14352_s2 + $0x8] sm:$0xff] }
 0x4d7   :  { %19338 = vst [vmem:[#allocation40_spill] sm:$0xff] %v13766_v31  ;;  %v4663_v46 = vmul.f32 -0.5, %v13396_v3  ;;  %5563 = vlog2.f32 %v4651_v57  ;;  %v4669_v60 = vadd.f32 1.0, %v13410_v45  ;;  %v19342_v57 = vld [vmem:[#allocation446_spill] sm:$0xff]  ;;  %v4728_v29 = vmul.f32 %v5701_v63, %v4184_v30  ;;  %v19344_v30 = vld [vmem:[#allocation285_spill] sm:$0xff] }
 0x4d8   :  { %19340 = vst [vmem:[#allocation67_spill] sm:$0xff] %v13791_v4  ;;  %v5556_v54 = vpop.eup %5555  ;;  %v4114_v15 = vadd.f32 %v4113_v37, %v19341_v16  ;;  %5565 = vlog2.f32 %v4660_v59  ;;  %v4188_v16 = vld [vmem:[%s14353_s3 + $0x20] sm:$0xff]  ;;  %v4729_v24 = vmul.f32 %v5702_v49, %v4185_v13  ;;  %v5703_v59 = vld [vmem:[%s14352_s2 + $0x10] sm:$0xff]  ;;  %v4672_v31 = vmul.f32 -0.5, %v13410_v45 }
 0x4d9   :  { %v4730_v62 = vmul.f32 %v5703_v59, %v4186_v5  ;;  %v4664_v58 = vadd.f32 1.0, %v4663_v46  ;;  %vm13829_vm4 = vcmp.lt.f32.partialorder %v4630_v61, 0.0004427343  ;;  %5567 = vlog2.f32 %v4669_v60  ;;  %v5704_v5 = vld [vmem:[%s14352_s2 + $0x18] sm:$0xff]  ;;  %v19347_v46 = vld [vmem:[#allocation293_spill] sm:$0xff] }
 0x4da   :  { %v4115_v37 = vadd.f32 %v4114_v15, %v19342_v57  ;;  %v13822_v15 = vmul.f32 0.6931472, %v5556_v54  ;;  %v13825_v57 = vmul.f32 %v13387_v52, %v4655_v39  ;;  %v5558_v9 = vpop.eup %5557  ;;  %v4731_v54 = vmul.f32 %v5704_v5, %v4187_v0  ;;  %v4189_v39 = vld [vmem:[%s14353_s3 + $0x28] sm:$0xff] }
 0x4db   :  { %v19348_v61 = vsel %vm13272_vm5, %v13197_v7, %v13218_v10  ;;  %v19350_v60 = vsel %vm13306_vm14, %v13243_v22, %v13299_v44  ;;  %v19352_v0 = vsel %vm13341_vm15, %v13338_v17, %v13330_v12  ;;  %v4732_v10 = vmul.f32 %v5705_v32, %v4188_v16  ;;  %v19353_v7 = vld [vmem:[#allocation213_spill] sm:$0xff] }
 0x4dc   :  { %19343 = vst [vmem:[#allocation363_spill] sm:$0xff] %v13825_v57  ;;  %v4116_v23 = vadd.f32 %v4115_v37, %v19344_v30  ;;  %v4696_v37 = vadd.f32 %v19348_v61, %v19347_v46  ;;  %v19349_v30 = vld [vmem:[#allocation289_spill] sm:$0xff]  ;;  %v19351_v57 = vld [vmem:[#allocation467_spill] sm:$0xff]  ;;  %v4760_v22 = vsub.f32 %v5701_v63, %v4728_v29  ;;  %v4761_v44 = vsub.f32 %v5702_v49, %v4729_v24 }
 0x4dd   :  { %v4697_v13 = vadd.f32 %v19350_v60, %v19349_v30  ;;  %v4698_v4 = vadd.f32 %v19352_v0, %v19351_v57  ;;  %v4762_v61 = vsub.f32 %v5703_v59, %v4730_v62  ;;  %v13869_v17 = vmul.f32 0.6931472, %v5558_v9  ;;  %v19356_v16 = vld [vmem:[#allocation109_spill] sm:$0xff]  ;;  %v19360_v0 = vld [vmem:[#allocation464_spill] sm:$0xff] }
 0x4de   :  { %v4117_v46 = vadd.f32 %v4116_v23, %v19353_v7  ;;  %v13872_v41 = vmul.f32 %v13396_v3, %v4664_v58  ;;  %v4678_v57 = vadd.f32 1.0, %v19356_v16  ;;  %v19357_v23 = vld [vmem:[#allocation450_spill] sm:$0xff]  ;;  %v19358_v60 = vld [vmem:[#allocation465_spill] sm:$0xff]  ;;  %v19359_v29 = vsel %vm13376_vm0, %v13374_v40, %v13427_v25 }
 0x4df   :  { %19354 = vst [vmem:[#allocation364_spill] sm:$0xff] %v13869_v17  ;;  %v4699_v24 = vadd.f32 %v19359_v29, %v19358_v60  ;;  %v5706_v63 = vld [vmem:[%s14352_s2 + $0x28] sm:$0xff]  ;;  %v4763_v49 = vsub.f32 %v5704_v5, %v4731_v54  ;;  %v4191_v58 = vld [vmem:[%s14353_s3 + $0x38] sm:$0xff]  ;;  %v4673_v59 = vadd.f32 1.0, %v4672_v31  ;;  %v19362_v25 = vsel %vm13391_vm3, %v13405_v20, %v19361_v14  ;;  %v5707_v7 = vld [vmem:[%s14352_s2 + $0x30] sm:$0xff] }
 0x4e0   :  { %19355 = vst [vmem:[#allocation53_spill] sm:$0xff] %v13872_v41  ;;  %v4118_v30 = vadd.f32 %v4117_v46, %v19357_v23  ;;  %v4733_v9 = vmul.f32 %v5706_v63, %v4189_v39  ;;  %v4700_v40 = vadd.f32 %v19362_v25, %v19360_v0  ;;  %v4734_v39 = vmul.f32 %v5707_v7, %v4190_v19  ;;  %v19363_v54 = vld [vmem:[#allocation448_spill] sm:$0xff]  ;;  %v19364_v20 = vld [vmem:[#allocation466_spill] sm:$0xff] }
 0x4e1   :  { %v13885_v62 = vpop.eup %5559  ;;  %v4764_v5 = vsub.f32 %v5705_v32, %v4732_v10  ;;  %v4192_v23 = vld [vmem:[%s14353_s3 + $0x40] sm:$0xff]  ;;  %v4792_v31 = vadd.f32 %v4760_v22, %v4696_v37  ;;  %v4793_v60 = vadd.f32 %v4761_v44, %v4697_v13  ;;  %v4794_v29 = vadd.f32 %v4762_v61, %v4698_v4  ;;  %v4193_v44 = vld [vmem:[%s14353_s3 + $0x48] sm:$0xff]  ;;  %v5708_v61 = vld [vmem:[%s14352_s2 + $0x38] sm:$0xff] }
 0x4e2   :  { %v4119_v46 = vadd.f32 %v4118_v30, %v19363_v54  ;;  %5569 = vlog2.f32 %v4678_v57  ;;  %v13904_v55 = vmul.f32 -0.5, %v19356_v16  ;;  %v19366_v14 = vld [vmem:[#allocation84_spill] sm:$0xff]  ;;  %v19371_v54 = vsel %vm13432_vm1, %v13430_v36, %v13480_v18  ;;  %v19372_v4 = vld [vmem:[#allocation455_spill] sm:$0xff] }
 0x4e3   :  { %v19367_v25 = vld [vmem:[#allocation28_spill] sm:$0xff]  ;;  %v13918_v13 = vpop.eup %5561  ;;  %v4735_v57 = vmul.f32 %v5708_v61, %v4191_v58  ;;  %v4795_v0 = vadd.f32 %v4763_v49, %v4699_v24  ;;  %vm4824_vm5 = vcmask 7168   ;;  %v4194_v58 = vld [vmem:[%s14353_s3 + $0x50] sm:$0xff]  ;;  %vm19416_vm1 = vnez %v19287_v21 }
 0x4e4   :  { %v19368_v19 = vsel %vm13412_vm12, %v19366_v14, %v19367_v25  ;;  %v19369_v10 = vld [vmem:[#allocation224_spill] sm:$0xff]  ;;  %v4120_v22 = vadd.f32 %v4119_v46, %v19372_v4  ;;  %v13927_v14 = vpop.eup %5563  ;;  %v4766_v25 = vsub.f32 %v5707_v7, %v4734_v39  ;;  %v4796_v46 = vadd.f32 %v4764_v5, %v4700_v40  ;;  %v19374_v40 = vld [vmem:[#allocation299_spill] sm:$0xff] }
 0x4e5   :  { %v4701_v32 = vadd.f32 %v19368_v19, %v19364_v20  ;;  %v4702_v37 = vadd.f32 %v19371_v54, %v19369_v10  ;;  %v4765_v20 = vsub.f32 %v5706_v63, %v4733_v9  ;;  %v5709_v36 = vld [vmem:[%s14352_s2 + $0x40] sm:$0xff]  ;;  %v13932_v19 = vpop.eup %5565  ;;  %v19373_v10 = vld [vmem:[#allocation214_spill] sm:$0xff]  ;;  %v4825_v24 = vsel %vm4824_vm5, %v4792_v31, 0.0  ;;  %v5710_v31 = vld [vmem:[%s14352_s2 + $0x48] sm:$0xff] }
 0x4e6   :  { %v4736_v18 = vmul.f32 %v5709_v36, %v4192_v23  ;;  %v4121_v30 = vadd.f32 %v4120_v22, %v19373_v10  ;;  %v4826_v63 = vsel %vm4824_vm5, %v4793_v60, 0.0  ;;  %v4828_v9 = vsel %vm4824_vm5, %v4794_v29, 0.0  ;;  %v19376_v39 = vld [vmem:[#allocation144_spill] sm:$0xff]  ;;  %v4195_v22 = vld [vmem:[%s14353_s3 + $0x58] sm:$0xff]  ;;  %v13959_v12 = vpop.eup %5567 }
 0x4e7   :  { %v19377_v5 = vsel %vm13451_vm10, %v13449_v38, %v19376_v39  ;;  %v4737_v54 = vmul.f32 %v5710_v31, %v4193_v44  ;;  %v4827_v60 = vadd.f32 %v4826_v63, %v4825_v24  ;;  %v19378_v4 = vld [vmem:[#allocation452_spill] sm:$0xff]  ;;  %v4767_v10 = vsub.f32 %v5708_v61, %v4735_v57  ;;  %v19382_v44 = vld [vmem:[#allocation143_spill] sm:$0xff]  ;;  %v19383_v24 = vld [vmem:[#allocation145_spill] sm:$0xff] }
 0x4e8   :  { %v4703_v23 = vadd.f32 %v19377_v5, %v19374_v40  ;;  %v4122_v29 = vadd.f32 %v4121_v30, %v19378_v4  ;;  %v4797_v49 = vadd.f32 %v4765_v20, %v4701_v32  ;;  %v4830_v7 = vsel %vm4824_vm5, %v4795_v0, 0.0  ;;  %v19380_v40 = vld [vmem:[#allocation98_spill] sm:$0xff]  ;;  %v19385_v57 = vld [vmem:[#allocation451_spill] sm:$0xff] }
 0x4e9   :  { %v13962_v38 = vmul.f32 %v13410_v45, %v4673_v59  ;;  %v19384_v63 = vsel %vm13482_vm7, %v19382_v44, %v19383_v24  ;;  %v5711_v5 = vld [vmem:[%s14352_s2 + $0x50] sm:$0xff]  ;;  %v4829_v32 = vadd.f32 %v4828_v9, %v4827_v60  ;;  %v4196_v59 = vld [vmem:[%s14353_s3 + $0x60] sm:$0xff]  ;;  %v4768_v0 = vsub.f32 %v5709_v36, %v4736_v18  ;;  %v5712_v9 = vld [vmem:[%s14352_s2 + $0x58] sm:$0xff] }
 0x4ea   :  { %v4704_v30 = vadd.f32 %v19384_v63, %v19380_v40  ;;  %v4738_v61 = vmul.f32 %v5711_v5, %v4194_v58  ;;  %v4123_v20 = vadd.f32 %v4122_v29, %v19385_v57  ;;  %v4798_v4 = vadd.f32 %v4766_v25, %v4702_v37  ;;  %v19386_v44 = vld [vmem:[#allocation304_spill] sm:$0xff]  ;;  %v19389_v24 = vld [vmem:[#allocation103_spill] sm:$0xff] }
 0x4eb   :  { %19379 = vst [vmem:[#allocation37_spill] sm:$0xff] %v13962_v38  ;;  %v4832_v39 = vsel %vm4824_vm5, %v4796_v46, 0.0  ;;  %v19387_v40 = vld [vmem:[#allocation340_spill] sm:$0xff]  ;;  %v4739_v60 = vmul.f32 %v5712_v9, %v4195_v22  ;;  %v4831_v29 = vadd.f32 %v4830_v7, %v4829_v32  ;;  %v4769_v18 = vsub.f32 %v5710_v31, %v4737_v54 }
 0x4ec   :  { %vm19388_vm14 = vnez %v19387_v40  ;;  %v19390_v63 = vld [vmem:[#allocation292_spill] sm:$0xff]  ;;  %v4799_v25 = vadd.f32 %v4767_v10, %v4703_v23  ;;  %v4834_v46 = vsel %vm4824_vm5, %v4797_v49, 0.0  ;;  %v19393_v40 = vld [vmem:[#allocation314_spill] sm:$0xff]  ;;  %v19401_v23 = vand.u32 2147483647, %v13370_v1 }
 0x4ed   :  { %v19391_v41 = vsel %vm19388_vm14, %v19389_v24, %v19390_v63  ;;  %v19392_v57 = vld [vmem:[#allocation456_spill] sm:$0xff]  ;;  %v4687_v38 = vadd.f32 1.0, %v19393_v40  ;;  %v19394_v24 = vld [vmem:[#allocation227_spill] sm:$0xff]  ;;  %v4198_v49 = vld [vmem:[%s14353_s3 + $0x70] sm:$0xff]  ;;  %v4770_v10 = vsub.f32 %v5711_v5, %v4738_v61  ;;  %vm19412_vm12 = vnez %v19282_v34 }
 0x4ee   :  { %v4705_v58 = vadd.f32 %v19391_v41, %v19386_v44  ;;  %v4124_v36 = vadd.f32 %v4123_v20, %v19392_v57  ;;  %v4197_v37 = vld [vmem:[%s14353_s3 + $0x68] sm:$0xff]  ;;  %v19395_v41 = vld [vmem:[#allocation290_spill] sm:$0xff]  ;;  %v19398_v63 = vld [vmem:[#allocation147_spill] sm:$0xff]  ;;  %v4833_v20 = vadd.f32 %v4832_v39, %v4831_v29  ;;  %vm14009_vm0 = vcmp.lt.f32.partialorder %v19401_v23, 0.0004427343 }
 0x4ef   :  { %vm19396_vm15 = vnez %v19395_v41  ;;  %v19397_v44 = vld [vmem:[#allocation92_spill] sm:$0xff]  ;;  %v19400_v57 = vld [vmem:[#allocation215_spill] sm:$0xff]  ;;  %v14015_v41 = vmul.f32 0.6931472, %v13885_v62  ;;  %v19405_v39 = vld [vmem:[#allocation26_spill] sm:$0xff]  ;;  %v14026_v5 = vpop.eup %5569  ;;  %5571 = vlog2.f32 %v4687_v38  ;;  %vm19422_vm10 = vnez %v19290_v50 }
 0x4f0   :  { %v19399_v17 = vsel %vm19396_vm15, %v19397_v44, %v19398_v63  ;;  %v5713_v7 = vld [vmem:[%s14352_s2 + $0x60] sm:$0xff]  ;;  %v4125_v31 = vadd.f32 %v4124_v36, %v19400_v57  ;;  %vm19406_vm3 = vnez %v19405_v39  ;;  %v19407_v29 = vld [vmem:[#allocation146_spill] sm:$0xff]  ;;  %v19408_v36 = vld [vmem:[#allocation149_spill] sm:$0xff]  ;;  %v4835_v23 = vadd.f32 %v4834_v46, %v4833_v20 }
 0x4f1   :  { %v4706_v22 = vadd.f32 %v19399_v17, %v19394_v24  ;;  %v4740_v32 = vmul.f32 %v5713_v7, %v4196_v59  ;;  %v4800_v17 = vadd.f32 %v4768_v0, %v4704_v30  ;;  %v4836_v24 = vsel %vm4824_vm5, %v4798_v4, 0.0  ;;  %v19404_v59 = vld [vmem:[#allocation469_spill] sm:$0xff]  ;;  %v19410_v30 = vld [vmem:[#allocation282_spill] sm:$0xff] }
 0x4f2   :  { %v19409_v44 = vsel %vm19406_vm3, %v19407_v29, %v19408_v36  ;;  %v5714_v1 = vld [vmem:[%s14352_s2 + $0x68] sm:$0xff]  ;;  %v4126_v61 = vadd.f32 %v4125_v31, %v19410_v30  ;;  %v4199_v62 = vld [vmem:[%s14353_s3 + $0x78] sm:$0xff]  ;;  %v4771_v0 = vsub.f32 %v5712_v9, %v4739_v60  ;;  %v4801_v4 = vadd.f32 %v4769_v18, %v4705_v58  ;;  %v5715_v20 = vld [vmem:[%s14352_s2 + $0x70] sm:$0xff] }
 0x4f3   :  { %v4707_v63 = vadd.f32 %v19409_v44, %v19404_v59  ;;  %v4741_v57 = vmul.f32 %v5714_v1, %v4197_v37  ;;  %v4838_v39 = vsel %vm4824_vm5, %v4799_v25, 0.0  ;;  %v4682_v59 = vadd.f32 1.0, %v13904_v55  ;;  %v19411_v29 = vld [vmem:[#allocation302_spill] sm:$0xff]  ;;  %v19414_v44 = vld [vmem:[#allocation453_spill] sm:$0xff]  ;;  %v4200_v58 = vld [vmem:[%s14353_s3 + $0x80] sm:$0xff] }
 0x4f4   :  { %v19413_v37 = vsel %vm19412_vm12, %v13566_v51, %v13628_v47  ;;  %v4742_v31 = vmul.f32 %v5715_v20, %v4198_v49  ;;  %v4837_v36 = vadd.f32 %v4836_v24, %v4835_v23  ;;  %v4127_v9 = vadd.f32 %v4126_v61, %v19414_v44  ;;  %v19415_v51 = vld [vmem:[#allocation470_spill] sm:$0xff]  ;;  %v19417_v47 = vld [vmem:[#allocation60_spill] sm:$0xff]  ;;  %v19418_v25 = vld [vmem:[#allocation45_spill] sm:$0xff] }
 0x4f5   :  { %v4708_v46 = vadd.f32 %v19413_v37, %v19411_v29  ;;  %v4772_v55 = vsub.f32 %v5713_v7, %v4740_v32  ;;  %v4802_v60 = vadd.f32 %v4770_v10, %v4706_v22  ;;  %v4840_v34 = vsel %vm4824_vm5, %v4800_v17, 0.0  ;;  %v5716_v24 = vld [vmem:[%s14352_s2 + $0x78] sm:$0xff]  ;;  %v4201_v22 = vld [vmem:[%s14353_s3 + $0x88] sm:$0xff] }
 0x4f6   :  { %v4690_v18 = vmul.f32 -0.5, %v19393_v40  ;;  %v19419_v30 = vsel %vm19416_vm1, %v19417_v47, %v19418_v25  ;;  %v4743_v23 = vmul.f32 %v5716_v24, %v4199_v62  ;;  %v4839_v61 = vadd.f32 %v4838_v39, %v4837_v36  ;;  %v19420_v29 = vld [vmem:[#allocation459_spill] sm:$0xff]  ;;  %v19421_v17 = vld [vmem:[#allocation228_spill] sm:$0xff]  ;;  %v19423_v37 = vld [vmem:[#allocation150_spill] sm:$0xff] }
 0x4f7   :  { %v4709_v49 = vadd.f32 %v19419_v30, %v19415_v51  ;;  %v4128_v7 = vadd.f32 %v4127_v9, %v19420_v29  ;;  %v4773_v32 = vsub.f32 %v5714_v1, %v4741_v57  ;;  %v4803_v10 = vadd.f32 %v4771_v0, %v4707_v63  ;;  %v19424_v44 = vld [vmem:[#allocation317_spill] sm:$0xff]  ;;  %v5717_v62 = vld [vmem:[%s14352_s2 + $0x80] sm:$0xff] }
 0x4f8   :  { %v4842_v21 = vsel %vm4824_vm5, %v4801_v4, 0.0  ;;  %v19425_v51 = vsel %vm19422_vm10, %v19423_v37, %v19424_v44  ;;  %v4744_v39 = vmul.f32 %v5717_v62, %v4200_v58  ;;  %v4841_v36 = vadd.f32 %v4840_v34, %v4839_v61  ;;  %v19426_v9 = vld [vmem:[#allocation216_spill] sm:$0xff]  ;;  %v4202_v63 = vld [vmem:[%s14353_s3 + $0x90] sm:$0xff]  ;;  %v19429_v4 = vld [vmem:[#allocation307_spill] sm:$0xff] }
 0x4f9   :  { %v4710_v47 = vadd.f32 %v19425_v51, %v19421_v17  ;;  %v4129_v25 = vadd.f32 %v4128_v7, %v19426_v9  ;;  %v4774_v38 = vsub.f32 %v5715_v20, %v4742_v31  ;;  %v4804_v1 = vadd.f32 %v4772_v55, %v4708_v46  ;;  %v19427_v0 = vld [vmem:[#allocation229_spill] sm:$0xff]  ;;  %v19431_v7 = vld [vmem:[#allocation454_spill] sm:$0xff] }
 0x4fa   :  { %v4844_v50 = vsel %vm4824_vm5, %v4802_v60, 0.0  ;;  %v4693_v57 = vand.u32 2147483647, %v19393_v40  ;;  %vm19428_vm7 = vnez %v19294_v33  ;;  %v5718_v34 = vld [vmem:[%s14352_s2 + $0x88] sm:$0xff]  ;;  %v4843_v29 = vadd.f32 %v4842_v21, %v4841_v36  ;;  %v4203_v46 = vld [vmem:[%s14353_s3 + $0x98] sm:$0xff]  ;;  %v5719_v51 = vld [vmem:[%s14352_s2 + $0x90] sm:$0xff] }
 0x4fb   :  { %v19430_v30 = vsel %vm19428_vm7, %v13613_v8, %v19429_v4  ;;  %v4745_v61 = vmul.f32 %v5718_v34, %v4201_v22  ;;  %v4130_v20 = vadd.f32 %v4129_v25, %v19431_v7  ;;  %v19432_v31 = vand.u32 2147483647, %v13380_v48  ;;  %v19435_v21 = vld [vmem:[#allocation230_spill] sm:$0xff]  ;;  %v19436_v17 = vld [vmem:[#allocation305_spill] sm:$0xff] }
 0x4fc   :  { %v4711_v58 = vadd.f32 %v19430_v30, %v19427_v0  ;;  %v4775_v8 = vsub.f32 %v5716_v24, %v4743_v23  ;;  %v4805_v55 = vadd.f32 %v4773_v32, %v4709_v49  ;;  %v4846_v60 = vsel %vm4824_vm5, %v4803_v10, 0.0  ;;  %v19437_v37 = vld [vmem:[#allocation354_spill] sm:$0xff]  ;;  %v19439_v23 = vld [vmem:[#allocation284_spill] sm:$0xff] }
 0x4fd   :  { %vm14093_vm14 = vcmp.lt.f32.partialorder %v19432_v31, 0.0004427343  ;;  %v4641_v22 = vsel %vm14009_vm0, %v13778_v28, %v14015_v41  ;;  %v19438_v44 = vsel %vm13633_vm6, %v19436_v17, %v19437_v37  ;;  %v4746_v24 = vmul.f32 %v5719_v51, %v4202_v63  ;;  %v4204_v10 = vld [vmem:[%s14353_s3 + $0xa0] sm:$0xff]  ;;  %v19445_v30 = vld [vmem:[#allocation310_spill] sm:$0xff]  ;;  %v4209_v33 = vld [vmem:[%s14353_s3 + $0xc8] sm:$0xff] }
 0x4fe   :  { %v4712_v48 = vadd.f32 %v19438_v44, %v19435_v21  ;;  %v4845_v49 = vadd.f32 %v4844_v50, %v4843_v29  ;;  %v4131_v32 = vadd.f32 %v4130_v20, %v19439_v23  ;;  %v19440_v36 = vand.u32 2147483647, %v13387_v52  ;;  %v19443_v63 = vld [vmem:[#allocation231_spill] sm:$0xff]  ;;  %v19446_v29 = vld [vmem:[#allocation348_spill] sm:$0xff]  ;;  %v19452_v23 = vld [vmem:[#allocation357_spill] sm:$0xff] }
 0x4ff   :  { %v4776_v9 = vsub.f32 %v5717_v62, %v4744_v39  ;;  %v4806_v25 = vadd.f32 %v4774_v38, %v4710_v47  ;;  %v4848_v0 = vsel %vm4824_vm5, %v4804_v1, 0.0  ;;  %v14123_v4 = vmul.f32 %v19356_v16, %v4682_v59  ;;  %v5720_v52 = vld [vmem:[%s14352_s2 + $0x98] sm:$0xff]  ;;  %v4205_v59 = vld [vmem:[%s14353_s3 + $0xa8] sm:$0xff] }
 0x500   :  { %vm14117_vm15 = vcmp.lt.f32.partialorder %v19440_v36, 0.0004427343  ;;  %v19447_v7 = vsel %vm13654_vm2, %v19445_v30, %v19446_v29  ;;  %v4747_v31 = vmul.f32 %v5720_v52, %v4203_v46  ;;  %v4847_v21 = vadd.f32 %v4846_v60, %v4845_v49  ;;  %v19448_v62 = vld [vmem:[#allocation31_spill] sm:$0xff]  ;;  %v19449_v37 = vld [vmem:[#allocation232_spill] sm:$0xff]  ;;  %v19500_v41 = vld [vmem:[#allocation30_spill] sm:$0xff] }
 0x501   :  { %v4713_v20 = vadd.f32 %v19447_v7, %v19443_v63  ;;  %v4132_v47 = vadd.f32 %v4131_v32, %v19448_v62  ;;  %v4777_v39 = vsub.f32 %v5718_v34, %v4745_v61  ;;  %v4807_v38 = vadd.f32 %v4775_v8, %v4711_v58  ;;  %v19451_v44 = vld [vmem:[#allocation112_spill] sm:$0xff]  ;;  %v19454_v63 = vld [vmem:[#allocation217_spill] sm:$0xff]  ;;  %v19461_v7 = vld [vmem:[#allocation34_spill] sm:$0xff] }
 0x502   :  { %v4850_v1 = vsel %vm4824_vm5, %v4805_v55, 0.0  ;;  %v14139_v17 = vadd.f32 1.0, %v4690_v18  ;;  %vm19450_vm2 = vnez %v19309_v26  ;;  %v5721_v60 = vld [vmem:[%s14352_s2 + $0xa0] sm:$0xff]  ;;  %v4849_v32 = vadd.f32 %v4848_v0, %v4847_v21  ;;  %v4206_v18 = vld [vmem:[%s14353_s3 + $0xb0] sm:$0xff]  ;;  %v5722_v50 = vld [vmem:[%s14352_s2 + $0xa8] sm:$0xff] }
 0x503   :  { %v19453_v36 = vsel %vm19450_vm2, %v19451_v44, %v19452_v23  ;;  %v4748_v49 = vmul.f32 %v5721_v60, %v4204_v10  ;;  %v4133_v34 = vadd.f32 %v4132_v47, %v19454_v63  ;;  %v4778_v58 = vsub.f32 %v5719_v51, %v4746_v24  ;;  %v19455_v55 = vld [vmem:[#allocation233_spill] sm:$0xff]  ;;  %v19462_v21 = vld [vmem:[#allocation42_spill] sm:$0xff] }
 0x504   :  { %v4714_v46 = vadd.f32 %v19453_v36, %v19449_v37  ;;  %v4808_v61 = vadd.f32 %v4776_v9, %v4712_v48  ;;  %v4852_v26 = vsel %vm4824_vm5, %v4806_v25, 0.0  ;;  %v14156_v8 = vmul.f32 0.6931472, %v13918_v13  ;;  %v19457_v51 = vld [vmem:[#allocation457_spill] sm:$0xff]  ;;  %v4207_v13 = vld [vmem:[%s14353_s3 + $0xb8] sm:$0xff] }
 0x505   :  { %v19456_v10 = vsel %vm13673_vm9, %v13683_v2, %v13723_v56  ;;  %v4749_v30 = vmul.f32 %v5722_v50, %v4205_v59  ;;  %v4851_v29 = vadd.f32 %v4850_v1, %v4849_v32  ;;  %v4134_v48 = vadd.f32 %v4133_v34, %v19457_v51  ;;  %v19463_v62 = vld [vmem:[#allocation358_spill] sm:$0xff]  ;;  %v19469_v36 = vld [vmem:[#allocation67_spill] sm:$0xff]  ;;  %v19470_v63 = vld [vmem:[#allocation313_spill] sm:$0xff] }
 0x506   :  { %v4715_v0 = vadd.f32 %v19456_v10, %v19455_v55  ;;  %v19458_v24 = vand.u32 2147483647, %v13396_v3  ;;  %v4779_v2 = vsub.f32 %v5720_v52, %v4747_v31  ;;  %v4809_v56 = vadd.f32 %v4777_v39, %v4713_v20  ;;  %v5723_v3 = vld [vmem:[%s14352_s2 + $0xb0] sm:$0xff]  ;;  %v14190_v52 = vpop.eup %5571  ;;  %v5724_v10 = vld [vmem:[%s14352_s2 + $0xb8] sm:$0xff] }
 0x507   :  { %v4854_v9 = vsel %vm4824_vm5, %v4807_v38, 0.0  ;;  %v14179_v25 = vmul.f32 0.6931472, %v13927_v14  ;;  %v19464_v47 = vsel %vm13703_vm11, %v19462_v21, %v19463_v62  ;;  %v4750_v1 = vmul.f32 %v5723_v3, %v4206_v18  ;;  %v19465_v20 = vld [vmem:[#allocation286_spill] sm:$0xff]  ;;  %v4208_v14 = vld [vmem:[%s14353_s3 + $0xc0] sm:$0xff]  ;;  %v19472_v18 = vld [vmem:[#allocation113_spill] sm:$0xff] }
 0x508   :  { %vm14173_vm6 = vcmp.lt.f32.partialorder %v19458_v24, 0.0004427343  ;;  %v4716_v59 = vadd.f32 %v19464_v47, %v19461_v7  ;;  %v4853_v37 = vadd.f32 %v4852_v26, %v4851_v29  ;;  %v4135_v31 = vadd.f32 %v4134_v48, %v19465_v20  ;;  %v19473_v26 = vld [vmem:[#allocation362_spill] sm:$0xff]  ;;  %v19476_v51 = vld [vmem:[#allocation363_spill] sm:$0xff]  ;;  %v19477_v24 = vld [vmem:[#allocation36_spill] sm:$0xff] }
 0x509   :  { %v19466_v43 = vand.u32 2147483647, %v13410_v45  ;;  %v4780_v38 = vsub.f32 %v5721_v60, %v4748_v49  ;;  %v4810_v44 = vadd.f32 %v4778_v58, %v4714_v46  ;;  %v4856_v23 = vsel %vm4824_vm5, %v4808_v61, 0.0  ;;  %v19475_v49 = vld [vmem:[#allocation291_spill] sm:$0xff]  ;;  %v19478_v7 = vld [vmem:[#allocation69_spill] sm:$0xff]  ;;  %v19486_v34 = vld [vmem:[#allocation458_spill] sm:$0xff] }
 0x50a   :  { %v4650_v32 = vsel %vm14093_vm14, %v19469_v36, %v14156_v8  ;;  %v19474_v55 = vsel %vm13718_vm13, %v19472_v18, %v19473_v26  ;;  %v4751_v60 = vmul.f32 %v5724_v10, %v4207_v13  ;;  %v4855_v46 = vadd.f32 %v4854_v9, %v4853_v37  ;;  %v19480_v13 = vld [vmem:[#allocation309_spill] sm:$0xff]  ;;  %v19481_v9 = vld [vmem:[#allocation40_spill] sm:$0xff] }
 0x50b   :  { %vm14198_vm9 = vcmp.lt.f32.partialorder %v19466_v43, 0.0004427343  ;;  %v4717_v45 = vadd.f32 %v19474_v55, %v19470_v63  ;;  %v4136_v58 = vadd.f32 %v4135_v31, %v19475_v49  ;;  %v4781_v61 = vsub.f32 %v5722_v50, %v4749_v30  ;;  %v5725_v47 = vld [vmem:[%s14352_s2 + $0xc0] sm:$0xff]  ;;  %v19483_v30 = vld [vmem:[#allocation218_spill] sm:$0xff] }
 0x50c   :  { %v4811_v8 = vadd.f32 %v4779_v2, %v4715_v0  ;;  %v4858_v29 = vsel %vm4824_vm5, %v4809_v56, 0.0  ;;  %v4659_v48 = vsel %vm14117_vm15, %v19476_v51, %v14179_v25  ;;  %vm19479_vm11 = vnez %v19478_v7  ;;  %v19484_v31 = vld [vmem:[#allocation339_spill] sm:$0xff]  ;;  %v19491_v18 = vld [vmem:[#allocation364_spill] sm:$0xff] }
 0x50d   :  { %v19482_v21 = vsel %vm19479_vm11, %v19480_v13, %v19481_v9  ;;  %v4752_v50 = vmul.f32 %v5725_v47, %v4208_v14  ;;  %v4857_v0 = vadd.f32 %v4856_v23, %v4855_v46  ;;  %v4137_v2 = vadd.f32 %v4136_v58, %v19483_v30  ;;  %v5726_v23 = vld [vmem:[%s14352_s2 + $0xc8] sm:$0xff]  ;;  %v19493_v58 = vld [vmem:[#allocation463_spill] sm:$0xff] }
 0x50e   :  { %v4718_v62 = vadd.f32 %v19482_v21, %v19477_v24  ;;  %v4782_v56 = vsub.f32 %v5723_v3, %v4750_v1  ;;  %v4812_v25 = vadd.f32 %v4780_v38, %v4716_v59  ;;  %v4860_v37 = vsel %vm4824_vm5, %v4810_v44, 0.0  ;;  %v4211_v59 = vld [vmem:[%s14353_s3 + $0xd8] sm:$0xff]  ;;  %v19501_v30 = vld [vmem:[#allocation288_spill] sm:$0xff] }
 0x50f   :  { %v4662_v20 = vmul.f32 0.6931472, %v13932_v19  ;;  %v19485_v43 = vsel %vm13758_vm8, %v13749_v27, %v13822_v15  ;;  %v4753_v36 = vmul.f32 %v5726_v23, %v4209_v33  ;;  %v4859_v63 = vadd.f32 %v4858_v29, %v4857_v0  ;;  %v19490_v44 = vld [vmem:[#allocation102_spill] sm:$0xff]  ;;  %v19496_v33 = vld [vmem:[#allocation53_spill] sm:$0xff]  ;;  %v19498_v7 = vld [vmem:[#allocation219_spill] sm:$0xff] }
 0x510   :  { %v4719_v14 = vadd.f32 %v19485_v43, %v19484_v31  ;;  %v4138_v3 = vadd.f32 %v4137_v2, %v19486_v34  ;;  %v19487_v19 = vand.u32 2147483647, %v19356_v16  ;;  %v4783_v27 = vsub.f32 %v5724_v10, %v4751_v60  ;;  %v5727_v16 = vld [vmem:[%s14352_s2 + $0xd0] sm:$0xff]  ;;  %v5730_v31 = vld [vmem:[%s14352_s2 + $0xe8] sm:$0xff] }
 0x511   :  { %v4813_v15 = vadd.f32 %v4781_v61, %v4717_v45  ;;  %v4862_v1 = vsel %vm4824_vm5, %v4811_v8, 0.0  ;;  %v4671_v38 = vmul.f32 0.6931472, %v13959_v12  ;;  %v19492_v26 = vsel %vm13829_vm4, %v13769_v53, %v19491_v18  ;;  %v4212_v45 = vld [vmem:[%s14353_s3 + $0xe0] sm:$0xff] }
 0x512   :  { %vm14255_vm13 = vcmp.lt.f32.partialorder %v19487_v19, 0.0004427343  ;;  %v4720_v55 = vadd.f32 %v19492_v26, %v19490_v44  ;;  %v4754_v46 = vmul.f32 %v5727_v16, %v4210_v6  ;;  %v4861_v49 = vadd.f32 %v4860_v37, %v4859_v63  ;;  %v19497_v8 = vld [vmem:[#allocation111_spill] sm:$0xff]  ;;  %v4214_v37 = vld [vmem:[%s14353_s3 + $0xf0] sm:$0xff]  ;;  %v19504_v19 = vld [vmem:[#allocation308_spill] sm:$0xff] }
 0x513   :  { %v4139_v10 = vadd.f32 %v4138_v3, %v19493_v58  ;;  %vm14276_vm8 = vcmp.lt.f32.partialorder %v4693_v57, 0.0004427343  ;;  %v4784_v53 = vsub.f32 %v5725_v47, %v4752_v50  ;;  %v4814_v12 = vadd.f32 %v4782_v56, %v4718_v62  ;;  %v5728_v57 = vld [vmem:[%s14352_s2 + $0xd8] sm:$0xff]  ;;  %v19499_v62 = vld [vmem:[#allocation37_spill] sm:$0xff]  ;;  %v5729_v47 = vld [vmem:[%s14352_s2 + $0xe0] sm:$0xff] }
 0x514   :  { %v4864_v60 = vsel %vm4824_vm5, %v4812_v25, 0.0  ;;  %v4668_v61 = vsel %vm14173_vm6, %v19496_v33, %v4662_v20  ;;  %v4721_v29 = vadd.f32 %v4641_v22, %v19497_v8  ;;  %v4755_v51 = vmul.f32 %v5728_v57, %v4211_v59  ;;  %v19502_v20 = vld [vmem:[#allocation287_spill] sm:$0xff] }
 0x515   :  { %v4863_v24 = vadd.f32 %v4862_v1, %v4861_v49  ;;  %v4140_v13 = vadd.f32 %v4139_v10, %v19498_v7  ;;  %v4785_v9 = vsub.f32 %v5726_v23, %v4753_v36  ;;  %v4815_v21 = vadd.f32 %v4783_v27, %v4719_v14  ;;  %v19503_v23 = vld [vmem:[#allocation460_spill] sm:$0xff]  ;;  %v4215_v59 = vld [vmem:[%s14353_s3 + $0xf8] sm:$0xff]  ;;  %v5731_v1 = vld [vmem:[%s14352_s2 + $0xf0] sm:$0xff] }
 0x516   :  { %v4866_v54 = vsel %vm4824_vm5, %v4813_v15, 0.0  ;;  %v4677_v28 = vsel %vm14198_vm9, %v19499_v62, %v4671_v38  ;;  %v4722_v22 = vadd.f32 %v4650_v32, %v19500_v41  ;;  %v4756_v50 = vmul.f32 %v5729_v47, %v4212_v45  ;;  %v5732_v58 = vld [vmem:[%s14352_s2 + $0xf8] sm:$0xff] }
 0x517   :  { %v4865_v0 = vadd.f32 %v4864_v60, %v4863_v24  ;;  %v4141_v2 = vadd.f32 %v4140_v13, %v19501_v30  ;;  %v4786_v6 = vsub.f32 %v5727_v16, %v4754_v46  ;;  %v4816_v56 = vadd.f32 %v4784_v53, %v4720_v55  ;;  %v19505_v55 = vld [vmem:[#allocation226_spill] sm:$0xff] }
 0x518   :  { %v4868_v25 = vsel %vm4824_vm5, %v4814_v12, 0.0  ;;  %v4680_v39 = vmul.f32 0.6931472, %v14026_v5  ;;  %v4723_v32 = vadd.f32 %v4659_v48, %v19502_v20  ;;  %v4757_v43 = vmul.f32 %v5730_v31, %v4213_v42 }
 0x519   :  { %v4867_v14 = vadd.f32 %v4866_v54, %v4865_v0  ;;  %v4142_v36 = vadd.f32 %v4141_v2, %v19503_v23  ;;  %v4787_v63 = vsub.f32 %v5728_v57, %v4755_v51  ;;  %v4817_v34 = vadd.f32 %v4785_v9, %v4721_v29 }
 0x51a   :  { %v4870_v3 = vsel %vm4824_vm5, %v4815_v21, 0.0  ;;  %v4689_v5 = vmul.f32 0.6931472, %v14190_v52  ;;  %v4692_v48 = vmul.f32 %v19393_v40, %v14139_v17  ;;  %v4724_v27 = vadd.f32 %v4668_v61, %v19504_v19  ;;  %v19507_v17 = vld [vmem:[#allocation35_spill] sm:$0xff]  ;;  %v19508_v61 = vld [vmem:[#allocation17_spill] sm:$0xff] }
 0x51b   :  { %v4869_v15 = vadd.f32 %v4868_v25, %v4867_v14  ;;  %4143 = vadd.xlane.f32.xlu0 %v4142_v36  ;;  %v4758_v38 = vmul.f32 %v5731_v1, %v4214_v37  ;;  %v4788_v44 = vsub.f32 %v5729_v47, %v4756_v50  ;;  %v4818_v18 = vadd.f32 %v4786_v6, %v4722_v22 }
 0x51c   :  { %v4872_v26 = vsel %vm4824_vm5, %v4816_v56, 0.0  ;;  %v19506_v16 = vsub.f32 0.0, %v19505_v55  ;;  %v4686_v40 = vsel %vm14255_vm13, %v14123_v4, %v4680_v39  ;;  %v4725_v52 = vadd.f32 %v4677_v28, %v19507_v17 }
 0x51d   :  { %v4871_v49 = vadd.f32 %v4870_v3, %v4869_v15  ;;  %v4759_v10 = vmul.f32 %v5732_v58, %v4215_v59  ;;  %v4789_v45 = vsub.f32 %v5730_v31, %v4757_v43  ;;  %v4819_v53 = vadd.f32 %v4787_v63, %v4723_v32 }
 0x51e   :  { %v4279_v46 = vmax.f32 %v19506_v16, 0.0  ;;  %v4874_v12 = vsel %vm4824_vm5, %v4817_v34, 0.0  ;;  %v4695_v60 = vsel %vm14276_vm8, %v4692_v48, %v4689_v5  ;;  %v4726_v8 = vadd.f32 %v4686_v40, %v19508_v61 }
 0x51f   :  { %v4873_v33 = vadd.f32 %v4872_v26, %v4871_v49  ;;  %v4790_v35 = vsub.f32 %v5731_v1, %v4758_v38  ;;  %v4820_v4 = vadd.f32 %v4788_v44, %v4724_v27  ;;  %v4876_v29 = vsel %vm4824_vm5, %v4818_v18, 0.0 }
 0x520   :  { %v4727_v51 = vadd.f32 %v4695_v60, %v4279_v46  ;;  %v4791_v24 = vsub.f32 %v5732_v58, %v4759_v10  ;;  %v4821_v7 = vadd.f32 %v4789_v45, %v4725_v52  ;;  %v4878_v13 = vsel %vm4824_vm5, %v4819_v53, 0.0 }
 0x521   :  { %v4875_v57 = vadd.f32 %v4874_v12, %v4873_v33  ;;  %v4822_v9 = vadd.f32 %v4790_v35, %v4726_v8  ;;  %v4880_v21 = vsel %vm4824_vm5, %v4820_v4, 0.0  ;;  %v4899_v63 = vlaneseq }
 0x522   :  { %v4823_v11 = vadd.f32 %v4791_v24, %v4727_v51  ;;  %v4882_v62 = vsel %vm4824_vm5, %v4821_v7, 0.0 }
 0x523   :  { %v4877_v42 = vadd.f32 %v4876_v29, %v4875_v57  ;;  %v4884_v41 = vsel %vm4824_vm5, %v4822_v9, 0.0  ;;  %v4900_v34 = vand.u32 127, %v4899_v63 }
 0x524   :  { %v4886_v47 = vsel %vm4824_vm5, %v4823_v11, 0.0 }
 0x525   :  { %v4879_v54 = vadd.f32 %v4878_v13, %v4877_v42  ;;  %vm4902_vm4 = vcmp.eq.s32.totalorder %v4900_v34, 1  ;;  %vm4901_vm5 = vcmp.eq.s32.totalorder %v4900_v34, 0 }
 0x527   :  { %v4881_v28 = vadd.f32 %v4880_v21, %v4879_v54 }
 0x529   :  { %v4883_v22 = vadd.f32 %v4882_v62, %v4881_v28 }
 0x52b   :  { %v4885_v50 = vadd.f32 %v4884_v41, %v4883_v22 }
 0x52d   :  { %v4887_v0 = vadd.f32 %v4886_v47, %v4885_v50 }
 0x52f   :  { %4888 = vadd.xlane.f32.xlu0 %v4887_v0 }
 0x5a4   :  { %v4144_v30 = vpop.xlane.xlu0 %4143 }
 0x5a5   :  { %v4145_v2 = vrot.slane %v4144_v30, 4 }
 0x5a7   :  { %v4146_v6 = vadd.f32 %v4145_v2, %v4144_v30 }
 0x5a9   :  { %v4147_v56 = vrot.slane %v4146_v6, 2 }
 0x5ab   :  { %v4148_v25 = vadd.f32 %v4147_v56, %v4146_v6 }
 0x5ad   :  { %v4149_v37 = vrot.slane %v4148_v25, 1 }
 0x5af   :  { %v4150_v39 = vadd.f32 %v4149_v37, %v4148_v25 }
 0x5b1   :  { %4924 = vpush %v4150_v39 }
 0x5b8   :  { %v4889_v20 = vpop.xlane.xlu0 %4888 }
 0x5b9   :  { %v4890_v32 = vrot.slane %v4889_v20, 4 }
 0x5bb   :  { %v4891_v31 = vadd.f32 %v4890_v32, %v4889_v20 }
 0x5bd   :  { %v4892_v43 = vrot.slane %v4891_v31, 2 }
 0x5bf   :  { %v4893_v14 = vadd.f32 %v4892_v43, %v4891_v31 }
 0x5c1   :  { %v4894_v23 = vrot.slane %v4893_v14, 1 }
 0x5c3   :  { %v4895_v36 = vadd.f32 %v4894_v23, %v4893_v14 }
 0x5c5   :  { %4926 = vpush %v4895_v36 }
 0x5e2   :  { %s4925_s2 = spop %4924 }
 0x5e3   :  { %v4905_v5 = vstv %s4925_s2 }
 0x5f6   :  { %s4927_s24 = spop %4926 }
 0x5f7   :  { %v4903_v3 = vstv %s4927_s24 }
 0x5f8   :  { %v4904_v59 = vsel %vm4902_vm4, %v4903_v3, 0.0 }
 0x5f9   :  { %v4906_v48 = vsel %vm4901_vm5, %v4905_v5, %v4904_v59 }
 0x5fa   :  { %4907 = vst [vmem:[#allocation8] sm:$0x1] %v4906_v48 }
 0x5fb   :  { %5784 = shalt.err (!%p5781_p0)
}
 0x5fc   :  { %4917 = dma.vmem_to_hbm [thread:$0]  %s4915_s23, 16, %s14354_s4, [#allocation5]  }
 0x5fd   :  { %5797 = dma.done.wait [#allocation5], 16  }
 0x5fe   :  { %5798 = vsyncadd [#allocation5], 4294967280 }
 0x5ff   :  { %4921 = vsyncpa [#allocation4], 1 }
 0x600   :  { %4922 = vsyncpa [#allocation7], 1 }
 0x601   :  { %4923 = vsyncpa [#allocation5], 1 }

</bundles_post_ra>
